<compile_context>
chip_gen: v7x
topology: tpu7x:2x2x1
jax: 0.10.0
libtpu: 0.0.40
codegen_flags: <defaults>
</compile_context>

<pallas_src>
import functools

import numpy as np

import jax
import jax.numpy as jnp
from jax import lax
from jax.experimental import pallas as pl
from jax.experimental.pallas import tpu as pltpu

ALL_WINDOW_SIZES = (2, 4, 8, 16)


# --------------------------------- kernel -----------------------------------


def _fused_mwa_kernel(x_ref, widr_ref, widc_ref, wqkv_ref, wproj_ref, b_ref,
                      o_ref, *, num_heads, head_dim, apply_mask, scale):
    # x_ref      : (C, S)      channel-major input pixels for this batch image
    # widr_ref   : (nh, S, 1)  per-head window id of each query token
    # widc_ref   : (nh, 1, S)  per-head window id of each key token
    # wqkv_ref   : (3C, C)     h_qkv 1x1-conv weight (O, I)
    # wproj_ref  : (C, C)      h_proj 1x1-conv weight (O, I)
    # b_ref      : (C, 1)      h_proj bias
    # o_ref      : (C, S)      output (channel-major)
    c = num_heads * head_dim

    x = x_ref[...].astype(jnp.float32)                          # (C, S)
    w_qkv = wqkv_ref[...].astype(jnp.float32)                   # (3C, C)
    w_proj = wproj_ref[...].astype(jnp.float32)                 # (C, C)
    bias = b_ref[...].astype(jnp.float32)                       # (C, 1)

    # h_qkv (1x1 conv, no bias), channel-major: (3C, C) @ (C, S) -> (3C, S).
    qkv = jnp.dot(w_qkv, x, preferred_element_type=jnp.float32)

    head_outs = []
    for i in range(num_heads):
        # Sublane-aligned per-head slices (channel-major, head_dim rows each).
        q = qkv[i * head_dim:(i + 1) * head_dim, :] * scale          # (D, S)
        k = qkv[c + i * head_dim:c + (i + 1) * head_dim, :]          # (D, S)
        v = qkv[2 * c + i * head_dim:2 * c + (i + 1) * head_dim, :]  # (D, S)

        # logits[q_tok, k_tok] = scale * <q, k>   -- (S, S), stays in VMEM.
        logits = jnp.dot(q.T, k, preferred_element_type=jnp.float32)

        if apply_mask[i]:
            same = widr_ref[i] == widc_ref[i]                    # (S,1)==(1,S)
            logits = jnp.where(same, logits, jnp.float32(-1e30))

        # Numerically-stable softmax over keys (lane axis).
        m = jnp.max(logits, axis=-1, keepdims=True)
        p = jnp.exp(logits - m)
        inv_l = 1.0 / jnp.sum(p, axis=-1, keepdims=True)
        attn = p * inv_l                                         # (S, S)

        # out_cm[d, q_tok] = sum_k v[d, k] * attn[q_tok, k]  (rhs-transposed
        # matmul, same contraction pattern as flash attention's 'bqd,bkd->bqk')
        o_h = lax.dot_general(v, attn, (((1,), (1,)), ((), ())),
                              preferred_element_type=jnp.float32)  # (D, S)
        head_outs.append(o_h)

    y = jnp.concatenate(head_outs, axis=0)                       # (C, S)

    # h_proj (1x1 conv + bias) fused with the residual "+ x".
    out = jnp.dot(w_proj, y, preferred_element_type=jnp.float32) + bias + x
    o_ref[...] = out.astype(o_ref.dtype)


# ------------------------------ module forward ------------------------------


@functools.partial(jax.jit, static_argnames=("num_heads", "all_window_sizes"))
def mul_window_attention(x, w_qkv, w_proj, b_proj, *, num_heads,
                         all_window_sizes=ALL_WINDOW_SIZES):
    """x: (B, C, H, W); w_qkv: (3C, C); w_proj: (C, C); b_proj: (C,)."""
    bsz, ch, hh, ww = x.shape
    head_dim = ch // num_heads
    s_tok = hh * ww
    scale = float(head_dim) ** -0.5
    window_sizes = tuple(ws for ws in all_window_sizes if ws <= min(hh, ww))
    # The PyTorch module is only shape-consistent when every head has a window.
    assert len(window_sizes) == num_heads

    # Per-token window id for every head (static; computed at trace time).
    t = np.arange(s_tok)
    ty, tx = t // ww, t % ww
    wid = np.stack(
        [(ty // ws) * (ww // ws) + (tx // ws) for ws in window_sizes]
    ).astype(np.int32)                                           # (nh, S)
    wid_row = jnp.asarray(wid[:, :, None])                       # (nh, S, 1)
    wid_col = jnp.asarray(wid[:, None, :])                       # (nh, 1, S)
    # Heads whose window covers the whole image need no mask at all.
    apply_mask = tuple((hh // ws) * (ww // ws) > 1 for ws in window_sizes)

    x3 = x.reshape(bsz, ch, s_tok)           # free reshape, stays channel-major

    kernel = functools.partial(
        _fused_mwa_kernel, num_heads=num_heads, head_dim=head_dim,
        apply_mask=apply_mask, scale=scale)

    flops = bsz * (2 * (3 * ch) * ch * s_tok          # qkv projection
                   + num_heads * 4 * s_tok * s_tok * head_dim  # attention
                   + 2 * ch * ch * s_tok)             # output projection

    out = pl.pallas_call(
        kernel,
        out_shape=jax.ShapeDtypeStruct((bsz, ch, s_tok), x.dtype),
        grid_spec=pltpu.PrefetchScalarGridSpec(
            num_scalar_prefetch=0,
            grid=(bsz,),
            in_specs=[
                pl.BlockSpec((None, ch, s_tok), lambda i: (i, 0, 0)),       # x
                pl.BlockSpec((num_heads, s_tok, 1), lambda i: (0, 0, 0)),   # wid_row
                pl.BlockSpec((num_heads, 1, s_tok), lambda i: (0, 0, 0)),   # wid_col
                pl.BlockSpec((3 * ch, ch), lambda i: (0, 0)),               # w_qkv
                pl.BlockSpec((ch, ch), lambda i: (0, 0)),                   # w_proj
                pl.BlockSpec((ch, 1), lambda i: (0, 0)),                    # bias
            ],
            out_specs=pl.BlockSpec((None, ch, s_tok), lambda i: (i, 0, 0)),
        ),
        compiler_params=pltpu.CompilerParams(
            dimension_semantics=("parallel",)),
        cost_estimate=pl.CostEstimate(
            flops=flops,
            transcendentals=bsz * num_heads * s_tok * s_tok,
            bytes_accessed=4 * (2 * bsz * ch * s_tok + 4 * ch * ch + ch
                                + 2 * num_heads * s_tok)),
    )(x3, wid_row, wid_col, w_qkv, w_proj, b_proj.reshape(ch, 1))

    return out.reshape(bsz, ch, hh, ww)


# -------------------------------- reference ---------------------------------


def _reference(x, w_qkv, w_proj, b_proj, num_heads,
               all_window_sizes=ALL_WINDOW_SIZES):
    b, c, h, w = x.shape
    head_dim = c // num_heads
    scale = head_dim ** -0.5
    window_sizes = [ws for ws in all_window_sizes if ws <= min(h, w)]

    qkv = jnp.einsum("oc,bchw->bohw", w_qkv, x)                      # (B, 3C, H, W)
    qkv = qkv.reshape(b, 3, num_heads, head_dim, h, w).transpose(1, 0, 2, 4, 5, 3)
    q, k, v = qkv[0], qkv[1], qkv[2]                                 # (B, nh, H, W, hd)

    outs = []
    for i, ws in enumerate(window_sizes):
        hg, wg = h // ws, w // ws
        g = hg * wg

        def win(t):
            t = t[:, i].reshape(b, hg, ws, wg, ws, head_dim)
            t = t.transpose(0, 1, 3, 2, 4, 5)
            return t.reshape(b, g, ws * ws, head_dim)

        qi, ki, vi = win(q), win(k), win(v)
        attn = jnp.einsum("bgqd,bgkd->bgqk", qi, ki) * scale
        attn = jax.nn.softmax(attn, axis=-1)
        oi = jnp.einsum("bgqk,bgkd->bgqd", attn, vi)
        oi = oi.reshape(b, hg, wg, ws, ws, head_dim).transpose(0, 1, 3, 2, 4, 5)
        outs.append(oi.reshape(b, h, w, head_dim))

    y = jnp.concatenate(outs, axis=-1)                               # (B, H, W, C)
    y = jnp.einsum("oc,bhwc->bohw", w_proj, y) + b_proj.reshape(1, c, 1, 1)
    return y + x


if __name__ == "__main__":
    # Mul_Window_attention(dim=32, num_heads=4) on a (2, 32, 16, 16) input.
    # At 16x16 all four window sizes [2, 4, 8, 16] are valid, so num_heads=4 is
    # the configuration the PyTorch module requires to be shape-consistent.
    B, C, H, W = 2, 32, 16, 16
    NUM_HEADS = 4

    key = jax.random.PRNGKey(0)
    kx, kq, kp, kb = jax.random.split(key, 4)
    x = jax.random.normal(kx, (B, C, H, W), dtype=jnp.float32)
    w_qkv = jax.random.normal(kq, (3 * C, C), dtype=jnp.float32) * (C ** -0.5)
    w_proj = jax.random.normal(kp, (C, C), dtype=jnp.float32) * (C ** -0.5)
    b_proj = 0.1 * jax.random.normal(kb, (C,), dtype=jnp.float32)

    out = mul_window_attention(x, w_qkv, w_proj, b_proj, num_heads=NUM_HEADS)
    out = jax.block_until_ready(out)

    ref = _reference(x, w_qkv, w_proj, b_proj, NUM_HEADS)
    assert out.shape == ref.shape == (B, C, H, W)
    max_err = float(jnp.max(jnp.abs(out - ref)))
    assert jnp.allclose(out, ref, rtol=2e-3, atol=2e-3), max_err
    print("KERNEL_OK")
</pallas_src>

<mosaic_0001>
module attributes {stable_mosaic.version = 11 : i64} {
  func.func @_fused_mwa_kernel(%arg0: i32, %arg1: memref<1x32x256xf32, #tpu.memory_space<vmem>>, %arg2: memref<4x256x1xi32, #tpu.memory_space<vmem>>, %arg3: memref<4x1x256xi32, #tpu.memory_space<vmem>>, %arg4: memref<96x32xf32, #tpu.memory_space<vmem>>, %arg5: memref<32x32xf32, #tpu.memory_space<vmem>>, %arg6: memref<32x1xf32, #tpu.memory_space<vmem>>, %arg7: memref<1x32x256xf32, #tpu.memory_space<vmem>>) attributes {dimension_semantics = [#tpu.dimension_semantics<parallel>], iteration_bounds = array<i64: 2>, scalar_prefetch = 0 : i64, scratch_operands = 0 : i64, tpu.core_type = #tpu.core_type<tc>, window_params = [{transform_indices = @transform_0, window_bounds = array<i64: 1, 32, 256>}, {pipeline_mode = #tpu.pipeline_mode<synchronous>, transform_indices = @transform_1, window_bounds = array<i64: 4, 256, 1>}, {pipeline_mode = #tpu.pipeline_mode<synchronous>, transform_indices = @transform_2, window_bounds = array<i64: 4, 1, 256>}, {pipeline_mode = #tpu.pipeline_mode<synchronous>, transform_indices = @transform_3, window_bounds = array<i64: 96, 32>}, {pipeline_mode = #tpu.pipeline_mode<synchronous>, transform_indices = @transform_4, window_bounds = array<i64: 32, 32>}, {pipeline_mode = #tpu.pipeline_mode<synchronous>, transform_indices = @transform_5, window_bounds = array<i64: 32, 1>}, {transform_indices = @transform_6, window_bounds = array<i64: 1, 32, 256>}]} {
    %c0 = arith.constant 0 : index
    %c0_0 = arith.constant 0 : index
    %c0_1 = arith.constant 0 : index
    %0 = vector.load %arg1[%c0, %c0_0, %c0_1] : memref<1x32x256xf32, #tpu.memory_space<vmem>>, vector<1x32x256xf32>
    %1 = vector.shape_cast %0 : vector<1x32x256xf32> to vector<32x256xf32>
    %c0_2 = arith.constant 0 : index
    %c0_3 = arith.constant 0 : index
    %2 = vector.load %arg4[%c0_2, %c0_3] : memref<96x32xf32, #tpu.memory_space<vmem>>, vector<96x32xf32>
    %c0_4 = arith.constant 0 : index
    %c0_5 = arith.constant 0 : index
    %3 = vector.load %arg5[%c0_4, %c0_5] : memref<32x32xf32, #tpu.memory_space<vmem>>, vector<32x32xf32>
    %c0_6 = arith.constant 0 : index
    %c0_7 = arith.constant 0 : index
    %4 = vector.load %arg6[%c0_6, %c0_7] : memref<32x1xf32, #tpu.memory_space<vmem>>, vector<32x1xf32>
    %cst = arith.constant dense<0.000000e+00> : vector<96x256xf32>
    %5 = tpu.matmul %2, %1, %cst {dimension_numbers = #tpu.dot_dimension_numbers<[1], [0], [0], [1], [0, 0, 1, 1], [], []>} : vector<96x32xf32>, vector<32x256xf32>, vector<96x256xf32> -> vector<96x256xf32>
    %6 = vector.extract_strided_slice %5 {offsets = [0, 0], sizes = [8, 256], strides = [1, 1]} : vector<96x256xf32> to vector<8x256xf32>
    %cst_8 = arith.constant 0.353553385 : f32
    %7 = vector.broadcast %cst_8 : f32 to vector<8x256xf32>
    %8 = arith.mulf %6, %7 : vector<8x256xf32>
    %9 = vector.extract_strided_slice %5 {offsets = [32, 0], sizes = [8, 256], strides = [1, 1]} : vector<96x256xf32> to vector<8x256xf32>
    %10 = vector.extract_strided_slice %5 {offsets = [64, 0], sizes = [8, 256], strides = [1, 1]} : vector<96x256xf32> to vector<8x256xf32>
    %11 = tpu.transpose %8, [1, 0] : vector<8x256xf32> -> vector<256x8xf32>
    %cst_9 = arith.constant dense<0.000000e+00> : vector<256x256xf32>
    %12 = tpu.matmul %11, %9, %cst_9 {dimension_numbers = #tpu.dot_dimension_numbers<[1], [0], [0], [1], [0, 0, 1, 1], [], []>} : vector<256x8xf32>, vector<8x256xf32>, vector<256x256xf32> -> vector<256x256xf32>
    %c0_10 = arith.constant 0 : index
    %c0_11 = arith.constant 0 : index
    %c0_12 = arith.constant 0 : index
    %13 = vector.load %arg2[%c0_10, %c0_11, %c0_12] : memref<4x256x1xi32, #tpu.memory_space<vmem>>, vector<1x256x1xi32>
    %14 = vector.shape_cast %13 : vector<1x256x1xi32> to vector<256x1xi32>
    %c0_13 = arith.constant 0 : index
    %c0_14 = arith.constant 0 : index
    %c0_15 = arith.constant 0 : index
    %15 = vector.load %arg3[%c0_13, %c0_14, %c0_15] : memref<4x1x256xi32, #tpu.memory_space<vmem>>, vector<1x1x256xi32>
    %16 = vector.shape_cast %15 : vector<1x1x256xi32> to vector<1x256xi32>
    %17 = vector.broadcast %14 : vector<256x1xi32> to vector<256x256xi32>
    %18 = vector.broadcast %16 : vector<1x256xi32> to vector<256x256xi32>
    %19 = arith.cmpi eq, %17, %18 : vector<256x256xi32>
    %cst_16 = arith.constant -1.000000e+30 : f32
    %20 = vector.broadcast %cst_16 : f32 to vector<256x256xf32>
    %21 = arith.select %19, %12, %20 : vector<256x256xi1>, vector<256x256xf32>
    %cst_17 = arith.constant dense<0xFF800000> : vector<256xf32>
    %22 = vector.multi_reduction <maximumf>, %21, %cst_17 [1] : vector<256x256xf32> to vector<256xf32>
    %23 = vector.shape_cast %22 : vector<256xf32> to vector<256x1xf32>
    %24 = vector.broadcast %23 : vector<256x1xf32> to vector<256x256xf32>
    %25 = arith.subf %21, %24 : vector<256x256xf32>
    %26 = math.exp %25 : vector<256x256xf32>
    %cst_18 = arith.constant dense<0.000000e+00> : vector<256xf32>
    %27 = vector.multi_reduction <add>, %26, %cst_18 [1] : vector<256x256xf32> to vector<256xf32>
    %28 = vector.shape_cast %27 : vector<256xf32> to vector<256x1xf32>
    %cst_19 = arith.constant 1.000000e+00 : f32
    %29 = vector.broadcast %cst_19 : f32 to vector<256x1xf32>
    %30 = arith.divf %29, %28 : vector<256x1xf32>
    %31 = vector.broadcast %30 : vector<256x1xf32> to vector<256x256xf32>
    %32 = arith.mulf %26, %31 : vector<256x256xf32>
    %cst_20 = arith.constant dense<0.000000e+00> : vector<8x256xf32>
    %33 = tpu.matmul %10, %32, %cst_20 {dimension_numbers = #tpu.dot_dimension_numbers<[1], [1], [0], [0], [0, 0, 1, 0], [], []>} : vector<8x256xf32>, vector<256x256xf32>, vector<8x256xf32> -> vector<8x256xf32>
    %34 = vector.extract_strided_slice %5 {offsets = [8, 0], sizes = [8, 256], strides = [1, 1]} : vector<96x256xf32> to vector<8x256xf32>
    %cst_21 = arith.constant 0.353553385 : f32
    %35 = vector.broadcast %cst_21 : f32 to vector<8x256xf32>
    %36 = arith.mulf %34, %35 : vector<8x256xf32>
    %37 = vector.extract_strided_slice %5 {offsets = [40, 0], sizes = [8, 256], strides = [1, 1]} : vector<96x256xf32> to vector<8x256xf32>
    %38 = vector.extract_strided_slice %5 {offsets = [72, 0], sizes = [8, 256], strides = [1, 1]} : vector<96x256xf32> to vector<8x256xf32>
    %39 = tpu.transpose %36, [1, 0] : vector<8x256xf32> -> vector<256x8xf32>
    %cst_22 = arith.constant dense<0.000000e+00> : vector<256x256xf32>
    %40 = tpu.matmul %39, %37, %cst_22 {dimension_numbers = #tpu.dot_dimension_numbers<[1], [0], [0], [1], [0, 0, 1, 1], [], []>} : vector<256x8xf32>, vector<8x256xf32>, vector<256x256xf32> -> vector<256x256xf32>
    %c1 = arith.constant 1 : index
    %c0_23 = arith.constant 0 : index
    %c0_24 = arith.constant 0 : index
    %41 = vector.load %arg2[%c1, %c0_23, %c0_24] : memref<4x256x1xi32, #tpu.memory_space<vmem>>, vector<1x256x1xi32>
    %42 = vector.shape_cast %41 : vector<1x256x1xi32> to vector<256x1xi32>
    %c1_25 = arith.constant 1 : index
    %c0_26 = arith.constant 0 : index
    %c0_27 = arith.constant 0 : index
    %43 = vector.load %arg3[%c1_25, %c0_26, %c0_27] : memref<4x1x256xi32, #tpu.memory_space<vmem>>, vector<1x1x256xi32>
    %44 = vector.shape_cast %43 : vector<1x1x256xi32> to vector<1x256xi32>
    %45 = vector.broadcast %42 : vector<256x1xi32> to vector<256x256xi32>
    %46 = vector.broadcast %44 : vector<1x256xi32> to vector<256x256xi32>
    %47 = arith.cmpi eq, %45, %46 : vector<256x256xi32>
    %cst_28 = arith.constant -1.000000e+30 : f32
    %48 = vector.broadcast %cst_28 : f32 to vector<256x256xf32>
    %49 = arith.select %47, %40, %48 : vector<256x256xi1>, vector<256x256xf32>
    %cst_29 = arith.constant dense<0xFF800000> : vector<256xf32>
    %50 = vector.multi_reduction <maximumf>, %49, %cst_29 [1] : vector<256x256xf32> to vector<256xf32>
    %51 = vector.shape_cast %50 : vector<256xf32> to vector<256x1xf32>
    %52 = vector.broadcast %51 : vector<256x1xf32> to vector<256x256xf32>
    %53 = arith.subf %49, %52 : vector<256x256xf32>
    %54 = math.exp %53 : vector<256x256xf32>
    %cst_30 = arith.constant dense<0.000000e+00> : vector<256xf32>
    %55 = vector.multi_reduction <add>, %54, %cst_30 [1] : vector<256x256xf32> to vector<256xf32>
    %56 = vector.shape_cast %55 : vector<256xf32> to vector<256x1xf32>
    %cst_31 = arith.constant 1.000000e+00 : f32
    %57 = vector.broadcast %cst_31 : f32 to vector<256x1xf32>
    %58 = arith.divf %57, %56 : vector<256x1xf32>
    %59 = vector.broadcast %58 : vector<256x1xf32> to vector<256x256xf32>
    %60 = arith.mulf %54, %59 : vector<256x256xf32>
    %cst_32 = arith.constant dense<0.000000e+00> : vector<8x256xf32>
    %61 = tpu.matmul %38, %60, %cst_32 {dimension_numbers = #tpu.dot_dimension_numbers<[1], [1], [0], [0], [0, 0, 1, 0], [], []>} : vector<8x256xf32>, vector<256x256xf32>, vector<8x256xf32> -> vector<8x256xf32>
    %62 = vector.extract_strided_slice %5 {offsets = [16, 0], sizes = [8, 256], strides = [1, 1]} : vector<96x256xf32> to vector<8x256xf32>
    %cst_33 = arith.constant 0.353553385 : f32
    %63 = vector.broadcast %cst_33 : f32 to vector<8x256xf32>
    %64 = arith.mulf %62, %63 : vector<8x256xf32>
    %65 = vector.extract_strided_slice %5 {offsets = [48, 0], sizes = [8, 256], strides = [1, 1]} : vector<96x256xf32> to vector<8x256xf32>
    %66 = vector.extract_strided_slice %5 {offsets = [80, 0], sizes = [8, 256], strides = [1, 1]} : vector<96x256xf32> to vector<8x256xf32>
    %67 = tpu.transpose %64, [1, 0] : vector<8x256xf32> -> vector<256x8xf32>
    %cst_34 = arith.constant dense<0.000000e+00> : vector<256x256xf32>
    %68 = tpu.matmul %67, %65, %cst_34 {dimension_numbers = #tpu.dot_dimension_numbers<[1], [0], [0], [1], [0, 0, 1, 1], [], []>} : vector<256x8xf32>, vector<8x256xf32>, vector<256x256xf32> -> vector<256x256xf32>
    %c2 = arith.constant 2 : index
    %c0_35 = arith.constant 0 : index
    %c0_36 = arith.constant 0 : index
    %69 = vector.load %arg2[%c2, %c0_35, %c0_36] : memref<4x256x1xi32, #tpu.memory_space<vmem>>, vector<1x256x1xi32>
    %70 = vector.shape_cast %69 : vector<1x256x1xi32> to vector<256x1xi32>
    %c2_37 = arith.constant 2 : index
    %c0_38 = arith.constant 0 : index
    %c0_39 = arith.constant 0 : index
    %71 = vector.load %arg3[%c2_37, %c0_38, %c0_39] : memref<4x1x256xi32, #tpu.memory_space<vmem>>, vector<1x1x256xi32>
    %72 = vector.shape_cast %71 : vector<1x1x256xi32> to vector<1x256xi32>
    %73 = vector.broadcast %70 : vector<256x1xi32> to vector<256x256xi32>
    %74 = vector.broadcast %72 : vector<1x256xi32> to vector<256x256xi32>
    %75 = arith.cmpi eq, %73, %74 : vector<256x256xi32>
    %cst_40 = arith.constant -1.000000e+30 : f32
    %76 = vector.broadcast %cst_40 : f32 to vector<256x256xf32>
    %77 = arith.select %75, %68, %76 : vector<256x256xi1>, vector<256x256xf32>
    %cst_41 = arith.constant dense<0xFF800000> : vector<256xf32>
    %78 = vector.multi_reduction <maximumf>, %77, %cst_41 [1] : vector<256x256xf32> to vector<256xf32>
    %79 = vector.shape_cast %78 : vector<256xf32> to vector<256x1xf32>
    %80 = vector.broadcast %79 : vector<256x1xf32> to vector<256x256xf32>
    %81 = arith.subf %77, %80 : vector<256x256xf32>
    %82 = math.exp %81 : vector<256x256xf32>
    %cst_42 = arith.constant dense<0.000000e+00> : vector<256xf32>
    %83 = vector.multi_reduction <add>, %82, %cst_42 [1] : vector<256x256xf32> to vector<256xf32>
    %84 = vector.shape_cast %83 : vector<256xf32> to vector<256x1xf32>
    %cst_43 = arith.constant 1.000000e+00 : f32
    %85 = vector.broadcast %cst_43 : f32 to vector<256x1xf32>
    %86 = arith.divf %85, %84 : vector<256x1xf32>
    %87 = vector.broadcast %86 : vector<256x1xf32> to vector<256x256xf32>
    %88 = arith.mulf %82, %87 : vector<256x256xf32>
    %cst_44 = arith.constant dense<0.000000e+00> : vector<8x256xf32>
    %89 = tpu.matmul %66, %88, %cst_44 {dimension_numbers = #tpu.dot_dimension_numbers<[1], [1], [0], [0], [0, 0, 1, 0], [], []>} : vector<8x256xf32>, vector<256x256xf32>, vector<8x256xf32> -> vector<8x256xf32>
    %90 = vector.extract_strided_slice %5 {offsets = [24, 0], sizes = [8, 256], strides = [1, 1]} : vector<96x256xf32> to vector<8x256xf32>
    %cst_45 = arith.constant 0.353553385 : f32
    %91 = vector.broadcast %cst_45 : f32 to vector<8x256xf32>
    %92 = arith.mulf %90, %91 : vector<8x256xf32>
    %93 = vector.extract_strided_slice %5 {offsets = [56, 0], sizes = [8, 256], strides = [1, 1]} : vector<96x256xf32> to vector<8x256xf32>
    %94 = vector.extract_strided_slice %5 {offsets = [88, 0], sizes = [8, 256], strides = [1, 1]} : vector<96x256xf32> to vector<8x256xf32>
    %95 = tpu.transpose %92, [1, 0] : vector<8x256xf32> -> vector<256x8xf32>
    %cst_46 = arith.constant dense<0.000000e+00> : vector<256x256xf32>
    %96 = tpu.matmul %95, %93, %cst_46 {dimension_numbers = #tpu.dot_dimension_numbers<[1], [0], [0], [1], [0, 0, 1, 1], [], []>} : vector<256x8xf32>, vector<8x256xf32>, vector<256x256xf32> -> vector<256x256xf32>
    %cst_47 = arith.constant dense<0xFF800000> : vector<256xf32>
    %97 = vector.multi_reduction <maximumf>, %96, %cst_47 [1] : vector<256x256xf32> to vector<256xf32>
    %98 = vector.shape_cast %97 : vector<256xf32> to vector<256x1xf32>
    %99 = vector.broadcast %98 : vector<256x1xf32> to vector<256x256xf32>
    %100 = arith.subf %96, %99 : vector<256x256xf32>
    %101 = math.exp %100 : vector<256x256xf32>
    %cst_48 = arith.constant dense<0.000000e+00> : vector<256xf32>
    %102 = vector.multi_reduction <add>, %101, %cst_48 [1] : vector<256x256xf32> to vector<256xf32>
    %103 = vector.shape_cast %102 : vector<256xf32> to vector<256x1xf32>
    %cst_49 = arith.constant 1.000000e+00 : f32
    %104 = vector.broadcast %cst_49 : f32 to vector<256x1xf32>
    %105 = arith.divf %104, %103 : vector<256x1xf32>
    %106 = vector.broadcast %105 : vector<256x1xf32> to vector<256x256xf32>
    %107 = arith.mulf %101, %106 : vector<256x256xf32>
    %cst_50 = arith.constant dense<0.000000e+00> : vector<8x256xf32>
    %108 = tpu.matmul %94, %107, %cst_50 {dimension_numbers = #tpu.dot_dimension_numbers<[1], [1], [0], [0], [0, 0, 1, 0], [], []>} : vector<8x256xf32>, vector<256x256xf32>, vector<8x256xf32> -> vector<8x256xf32>
    %109 = tpu.concatenate %33, %61, %89, %108 in 0 : vector<8x256xf32>, vector<8x256xf32>, vector<8x256xf32>, vector<8x256xf32> -> vector<32x256xf32>
    %cst_51 = arith.constant dense<0.000000e+00> : vector<32x256xf32>
    %110 = tpu.matmul %3, %109, %cst_51 {dimension_numbers = #tpu.dot_dimension_numbers<[1], [0], [0], [1], [0, 0, 1, 1], [], []>} : vector<32x32xf32>, vector<32x256xf32>, vector<32x256xf32> -> vector<32x256xf32>
    %111 = vector.broadcast %4 : vector<32x1xf32> to vector<32x256xf32>
    %112 = arith.addf %110, %111 : vector<32x256xf32>
    %113 = arith.addf %112, %1 : vector<32x256xf32>
    %c0_52 = arith.constant 0 : index
    %c0_53 = arith.constant 0 : index
    %c0_54 = arith.constant 0 : index
    %114 = vector.load %arg7[%c0_52, %c0_53, %c0_54] : memref<1x32x256xf32, #tpu.memory_space<vmem>>, vector<1x32x256xf32>
    %115 = vector.shape_cast %114 : vector<1x32x256xf32> to vector<32x256xf32>
    %116 = vector.shape_cast %113 : vector<32x256xf32> to vector<1x32x256xf32>
    tpu.vector_store %arg7[%c0_52, %c0_53, %c0_54], %116 {strides = array<i32>} : memref<1x32x256xf32, #tpu.memory_space<vmem>>, vector<1x32x256xf32>,
    return
  }
  func.func @transform_0(%arg0: i32) -> (i32, i32, i32) {
    %c0_i32 = arith.constant 0 : i32
    %c0_i32_0 = arith.constant 0 : i32
    %c0_i32_1 = arith.constant 0 : i32
    return %arg0, %c0_i32, %c0_i32_0 : i32, i32, i32
  }
  func.func @transform_1(%arg0: i32) -> (i32, i32, i32) {
    %c0_i32 = arith.constant 0 : i32
    %c0_i32_0 = arith.constant 0 : i32
    %c0_i32_1 = arith.constant 0 : i32
    %c0_i32_2 = arith.constant 0 : i32
    return %c0_i32, %c0_i32_0, %c0_i32_1 : i32, i32, i32
  }
  func.func @transform_2(%arg0: i32) -> (i32, i32, i32) {
    %c0_i32 = arith.constant 0 : i32
    %c0_i32_0 = arith.constant 0 : i32
    %c0_i32_1 = arith.constant 0 : i32
    %c0_i32_2 = arith.constant 0 : i32
    return %c0_i32, %c0_i32_0, %c0_i32_1 : i32, i32, i32
  }
  func.func @transform_3(%arg0: i32) -> (i32, i32) {
    %c0_i32 = arith.constant 0 : i32
    %c0_i32_0 = arith.constant 0 : i32
    %c0_i32_1 = arith.constant 0 : i32
    return %c0_i32, %c0_i32_0 : i32, i32
  }
  func.func @transform_4(%arg0: i32) -> (i32, i32) {
    %c0_i32 = arith.constant 0 : i32
    %c0_i32_0 = arith.constant 0 : i32
    %c0_i32_1 = arith.constant 0 : i32
    return %c0_i32, %c0_i32_0 : i32, i32
  }
  func.func @transform_5(%arg0: i32) -> (i32, i32) {
    %c0_i32 = arith.constant 0 : i32
    %c0_i32_0 = arith.constant 0 : i32
    %c0_i32_1 = arith.constant 0 : i32
    return %c0_i32, %c0_i32_0 : i32, i32
  }
  func.func @transform_6(%arg0: i32) -> (i32, i32, i32) {
    %c0_i32 = arith.constant 0 : i32
    %c0_i32_0 = arith.constant 0 : i32
    %c0_i32_1 = arith.constant 0 : i32
    return %arg0, %c0_i32, %c0_i32_0 : i32, i32, i32
  }
}

</mosaic_0001>

<bundles_post_ra>
// kernel: mul_window_attention.1
= control target key start
LH: loop header
LB: loop body
LE: loop exit
PB: predicated region body
PF: predicated region fallthrough
CT: control target
= control target key end

     0   :  { %11 = vsyncpa [#allocation3], 0  ;;  %s6799_s21 = smov 0   ;;  %s10471_s0 = inlined_call_operand.vmem [shape: f32[2,32,256], index: 0, kind: input, shape index: {}]   ;;  %s10472_s1 = inlined_call_operand.hbm [shape: s32[4,256,1], index: 1, kind: input, shape index: {}]   ;;  %s10473_s2 = inlined_call_operand.vmem [shape: s32[4,1,256], index: 2, kind: input, shape index: {}]   ;;  %s10474_s3 = inlined_call_operand.vmem [shape: f32[96,32], index: 3, kind: input, shape index: {}]   ;;  %s10475_s4 = inlined_call_operand.vmem [shape: f32[32,32], index: 4, kind: input, shape index: {}]   ;;  %s10476_s5 = inlined_call_operand.vmem [shape: f32[32,1], index: 5, kind: input, shape index: {}]   ;;  %s10477_s6 = inlined_call_operand.vmem [shape: f32[2,32,256], index: 6, kind: output, shape index: {}]  }
   0x1 LB: > { %s6805_s22 = sadd.s32 4294967295, %s6757_s21   ;;  %p5483_p0 = scmp.ge.s32.totalorder %s6757_s21, 1  ;;  %s6757_s21 = sphi %s6799_s21, %s17_s21  }
   0x2   : > { %p179_p1 = scmp.lt.s32.totalorder %s6757_s21, 3  ;;  %s6759_s23 = smov [#allocation2]  }
   0x3   : > { %s191_s24 = sshll.u32 %s6759_s23, 4  ;;  %p10478_p3 = scmp.eq.s32.totalorder %s6805_s22, 0  ;;  %s192_s24 = int_to_ptr.vmem [resolvable:$true] %s191_s24 }
   0x4   : > { %p6809_p2 = pnand %p5483_p0, %p179_p1  ;;  %s6719_s29 = scalar_lea.hbm %s10472_s1, 16384 }
   0x5   : > { %p6720_p6 = scmp.ne.s32.totalorder %s10472_s1, %s6719_s29  ;;  %p6726_p10 = scmp.lt.u32.totalorder %s6719_s29, %s10472_s1 }
   0x6   : > { %s10874_s25 = scalar_select %p6809_p2, 1, 0 }
   0x7   : > { %p5922_p4 = pneg %p6809_p2 }
   0x9   : > { %p6818_p5 = pnand %p10478_p3, %p5922_p4 }
   0xb   : > { %p6721_p7 = pneg %p6818_p5 }
   0xd   : > { %p6722_p8 = pnand %p6721_p7, %p6720_p6 }
   0xf   : > { %p6723_p9 = pneg %p6722_p8 }
  0x11   : > { %p6728_p11 = pnand %p6726_p10, %p6723_p9 }
  0x13   : > { %6731 = shalt.err (!%p6728_p11)
}
  0x14   : > { %s6732_s10 = scalar_lea.vmem %s192_s24, 16384  ;;  %p6740_p1 = scmp.lt.s32.totalorder %s192_s24, %s192_s24 }
  0x15   : > { %p6733_p12 = scmp.ne.s32.totalorder %s192_s24, %s6732_s10  ;;  %p6741_p4 = scmp.lt.s32.totalorder %s6732_s10, %s6732_s10 }
  0x17   : > { %p6735_p13 = pnand %p6733_p12, %p6721_p7  ;;  %p6742_p3 = por %p6741_p4, %p6740_p1 }
  0x19   : > { %p6736_p0 = pneg %p6735_p13 }
  0x1b   : > { %p6743_p2 = pnand %p6742_p3, %p6736_p0 }
  0x1d   : > { %6746 = shalt.err (!%p6743_p2)
}
  0x1e   : > { %s6760_s11 = smov 128   ;;  %s6761_s12 = smov 8  }
  0x1f   : > { %5925 = dma.hbm_to_vmem [thread:$0]  (!%p6818_p5), %s10472_s1, 16384, %s192_s24, [#allocation3], %s6760_s11, %s6760_s11, %s6761_s12  }
  0x20   : > { %p10876_p6 = scmp.ne.s32.totalorder %s10874_s25, 0 }
  0x22   : > { %227 = sbr.rel (%p10876_p6) target bundleno = 2578 (0xa12), region = 44 }
  0x29   : > { %p10877_p8 = scmp.eq.s32.totalorder %s6805_s22, 0 }
  0x2b   : > { %6752 = dma.done.wait (%p10877_p8), [#allocation3], 16384   ;;  %p10878_p7 = pmov %p10877_p8 }
  0x2c   : > { %p257_p2 = scmp.lt.s32.totalorder %s6805_s22, 1  ;;  %v10480_v0 = vmov 0.0   ;;  %v6763_v1 = vmov 0   ;;  %v889_v13 = vld [vmem:[#allocation2] sm:$0xff]  ;;  %v892_v15 = vld [vmem:[#allocation2 + $0x18] sm:$0xff]  ;;  %v890_v16 = vld [vmem:[#allocation2 + $0x8] sm:$0xff] }
  0x2d   : > { %6754 = vsyncadd (%p10878_p7), [#allocation3], 4294950912  ;;  %396 = vmatprep.mubr.f32.mxu0 %v10480_v0  ;;  %5941 = vset.pattern.permute.xlu0 %v6763_v1  ;;  %v275_v17 = vld [vmem:[%s10474_s3] sm:$0xff]  ;;  %vm295_vm0 = vcmask 261120   ;;  %v2160_v18 = vld [vmem:[#allocation2 + $0x118] sm:$0xff]  ;;  %vm535_vm1 = vcmask 64512  }
  0x2e   : > { %s11793_s22 = smov (!%p257_p2, %s6805_s22), 1  ;;  %5942 = vset.pattern.permute.xlu1 %v6763_v1  ;;  %450 = vmatprep.mubr.f32.mxu1 %v10480_v0  ;;  %v2157_v19 = vld [vmem:[#allocation2 + $0x100] sm:$0xff]  ;;  %v276_v20 = vld [vmem:[%s10474_s3 + $0x8] sm:$0xff]  ;;  %v277_v23 = vld [vmem:[%s10474_s3 + $0x10] sm:$0xff] }
  0x2f   : > { %s5640_s15 = sshll.u32 %s11793_s22, 6  ;;  %923 = vperm.xlu0 %5941, %v889_v13   ;;  %926 = vperm.xlu1 %5942, %v890_v16   ;;  %v894_v21 = vld [vmem:[#allocation2 + $0x28] sm:$0xff]  ;;  %v891_v25 = vld [vmem:[#allocation2 + $0x10] sm:$0xff]  ;;  %v278_v26 = vld [vmem:[%s10474_s3 + $0x18] sm:$0xff] }
  0x30   : > { %s6856_s18 = scalar_lea.vmem %s10471_s0, %s5640_s15  ;;  %v2158_v22 = vld [vmem:[#allocation2 + $0x108] sm:$0xff]  ;;  %v896_v27 = vld [vmem:[#allocation2 + $0x38] sm:$0xff]  ;;  %v2159_v28 = vld [vmem:[#allocation2 + $0x110] sm:$0xff]  ;;  %s10450_s29 = scalar_lea.vmem %s10477_s6, %s5640_s15 }
  0x31   : > { %v268_v2 = vld [vmem:[%s6856_s18 + $0x8] sm:$0xff]  ;;  %v270_v3 = vld [vmem:[%s6856_s18 + $0x18] sm:$0xff]  ;;  %v267_v4 = vld [vmem:[%s6856_s18] sm:$0xff] }
  0x32   : > { %v5642_v5 = vpack.c.bf16 %v270_v3, %v268_v2  ;;  %v269_v6 = vld [vmem:[%s6856_s18 + $0x10] sm:$0xff]  ;;  %v272_v7 = vld [vmem:[%s6856_s18 + $0x28] sm:$0xff]  ;;  %v274_v8 = vld [vmem:[%s6856_s18 + $0x38] sm:$0xff] }
  0x33   : > { %v5644_v9 = vpack.c.bf16 %v269_v6, %v267_v4  ;;  %v5646_v10 = vpack.c.bf16 %v274_v8, %v272_v7  ;;  %v271_v11 = vld [vmem:[%s6856_s18 + $0x20] sm:$0xff]  ;;  %v273_v12 = vld [vmem:[%s6856_s18 + $0x30] sm:$0xff]  ;;  %932 = vperm.xlu0 %5941, %v892_v15   ;;  %2192 = vperm.xlu1 %5942, %v2157_v19   ;;  %v2162_v24 = vld [vmem:[#allocation2 + $0x128] sm:$0xff] }
  0x34   : > { %5643 = vmatprep.subr.bf16.mxu0 %v5642_v5  ;;  %5914 = vmatprep.subr.bf16.mxu1 %v5642_v5  ;;  %v5648_v14 = vpack.c.bf16 %v273_v12, %v271_v11  ;;  %v279_v29 = vld [vmem:[%s10474_s3 + $0x20] sm:$0xff]  ;;  %v2164_v30 = vld [vmem:[#allocation2 + $0x138] sm:$0xff]  ;;  %v280_v32 = vld [vmem:[%s10474_s3 + $0x28] sm:$0xff] }
  0x35   : > { %5645 = vmatpush1.bf16.msra.mxu0 %v5644_v9  ;;  %5916 = vmatpush1.bf16.msra.mxu1 %v5644_v9  ;;  %v893_v31 = vld [vmem:[#allocation2 + $0x20] sm:$0xff]  ;;  %v898_v33 = vld [vmem:[#allocation2 + $0x48] sm:$0xff]  ;;  %v895_v36 = vld [vmem:[#allocation2 + $0x30] sm:$0xff] }
  0x36   : > { %5647 = vmatprep.subr.bf16.mxu0 %v5646_v10  ;;  %5915 = vmatprep.subr.bf16.mxu1 %v5646_v10  ;;  %v2161_v34 = vld [vmem:[#allocation2 + $0x120] sm:$0xff]  ;;  %v2166_v35 = vld [vmem:[#allocation2 + $0x148] sm:$0xff]  ;;  %v900_v37 = vld [vmem:[#allocation2 + $0x58] sm:$0xff] }
  0x37   : > { %2201 = vperm.xlu0 %5941, %v2160_v18   ;;  %2195 = vperm.xlu1 %5942, %v2158_v22   ;;  %v2163_v38 = vld [vmem:[#allocation2 + $0x130] sm:$0xff]  ;;  %v2168_v39 = vld [vmem:[#allocation2 + $0x158] sm:$0xff]  ;;  %v897_v40 = vld [vmem:[#allocation2 + $0x40] sm:$0xff] }
  0x38   : > { %v902_v41 = vld [vmem:[#allocation2 + $0x68] sm:$0xff]  ;;  %v2165_v42 = vld [vmem:[#allocation2 + $0x140] sm:$0xff]  ;;  %v899_v44 = vld [vmem:[#allocation2 + $0x50] sm:$0xff] }
  0x39   : > { %5649 = vmatpush1.bf16.msra.mxu0 %v5648_v14  ;;  %5917 = vmatpush1.bf16.msra.mxu1 %v5648_v14  ;;  %v2170_v43 = vld [vmem:[#allocation2 + $0x168] sm:$0xff]  ;;  %v904_v45 = vld [vmem:[#allocation2 + $0x78] sm:$0xff]  ;;  %v2167_v46 = vld [vmem:[#allocation2 + $0x150] sm:$0xff] }
  0x3a   : > { %v2172_v47 = vld [vmem:[#allocation2 + $0x178] sm:$0xff]  ;;  %v901_v48 = vld [vmem:[#allocation2 + $0x60] sm:$0xff]  ;;  %v906_v49 = vld [vmem:[#allocation2 + $0x88] sm:$0xff] }
  0x3b   : > { %938 = vperm.xlu0 %5941, %v894_v21   ;;  %929 = vperm.xlu1 %5942, %v891_v25   ;;  %v2169_v50 = vld [vmem:[#allocation2 + $0x160] sm:$0xff]  ;;  %v2174_v51 = vld [vmem:[#allocation2 + $0x188] sm:$0xff]  ;;  %v903_v52 = vld [vmem:[#allocation2 + $0x70] sm:$0xff] }
  0x3c   : > { %5492 = vmatmul.mubr.msk.f32.vlgmr.msra.gmra.mrb[0].mxu0 %vm295_vm0, %v275_v17  ;;  %v2171_v53 = vld [vmem:[#allocation2 + $0x170] sm:$0xff]  ;;  %v905_v54 = vld [vmem:[#allocation2 + $0x80] sm:$0xff]  ;;  %v284_v56 = vld [vmem:[%s10474_s3 + $0x48] sm:$0xff] }
  0x3d   : > { %402 = vmatprep.mubr.f32.mxu0 %v10480_v0  ;;  %v2173_v55 = vld [vmem:[#allocation2 + $0x180] sm:$0xff]  ;;  %5501 = vmatmul.mubr.msk.f32.vlgmr.msra.gmra.mrb[0].mxu1 %vm295_vm0, %v284_v56  ;;  %v285_v57 = vld [vmem:[%s10474_s3 + $0x50] sm:$0xff]  ;;  %v286_v58 = vld [vmem:[%s10474_s3 + $0x58] sm:$0xff] }
  0x3e   : > { %456 = vmatprep.mubr.f32.mxu1 %v10480_v0 }
  0x3f   : > { %2207 = vperm.xlu0 %5941, %v2162_v24   ;;  %2198 = vperm.xlu1 %5942, %v2159_v28  }
  0x40   : > { %5493 = vmatmul.mubr.msk.f32.gmra.mrb[2].mxu0 %vm295_vm0, %v276_v20  ;;  %v281_v20 = vld [vmem:[%s10474_s3 + $0x30] sm:$0xff] }
  0x41   : > { %408 = vmatprep.mubr.f32.mxu0 %v10480_v0  ;;  %5502 = vmatmul.mubr.msk.f32.gmra.mrb[2].mxu1 %vm295_vm0, %v285_v57 }
  0x42   : > { %462 = vmatprep.mubr.f32.mxu1 %v10480_v0 }
  0x43   : > { %944 = vperm.xlu0 %5941, %v896_v27   ;;  %935 = vperm.xlu1 %5942, %v893_v31  }
  0x44   : > { %5494 = vmatmul.mubr.msk.f32.gmra.mrb[4].mxu0 %vm295_vm0, %v277_v23  ;;  %v282_v23 = vld [vmem:[%s10474_s3 + $0x38] sm:$0xff] }
  0x45   : > { %414 = vmatprep.mubr.f32.mxu0 %v10480_v0  ;;  %5503 = vmatmul.mubr.msk.f32.gmra.mrb[4].mxu1 %vm295_vm0, %v286_v58 }
  0x46   : > { %696 = vmatprep.mubr.f32.mxu1 %v10480_v0 }
  0x47   : > { %2213 = vperm.xlu0 %5941, %v2164_v30   ;;  %2204 = vperm.xlu1 %5942, %v2161_v34  }
  0x48   : > { %5495 = vmatmul.mubr.msk.f32.gmra.mrb[6].mxu0 %vm295_vm0, %v278_v26  ;;  %v283_v26 = vld [vmem:[%s10474_s3 + $0x40] sm:$0xff] }
  0x49   : > { %420 = vmatprep.mubr.f32.mxu0 %v10480_v0 }
  0x4b   : > { %950 = vperm.xlu0 %5941, %v898_v33   ;;  %941 = vperm.xlu1 %5942, %v895_v36  }
  0x4c   : > { %5496 = vmatmul.mubr.msk.f32.gmra.mrb[8].mxu0 %vm295_vm0, %v279_v29 }
  0x4d   : > { %426 = vmatprep.mubr.f32.mxu0 %v10480_v0 }
  0x4f   : > { %2219 = vperm.xlu0 %5941, %v2166_v35   ;;  %2210 = vperm.xlu1 %5942, %v2163_v38  }
  0x50   : > { %5497 = vmatmul.mubr.msk.f32.gmra.mrb[10].mxu0 %vm295_vm0, %v280_v32 }
  0x51   : > { %432 = vmatprep.mubr.f32.mxu0 %v10480_v0 }
  0x53   : > { %956 = vperm.xlu0 %5941, %v900_v37   ;;  %947 = vperm.xlu1 %5942, %v897_v40  }
  0x54   : > { %5498 = vmatmul.mubr.msk.f32.gmra.mrb[12].mxu0 %vm295_vm0, %v281_v20 }
  0x55   : > { %438 = vmatprep.mubr.f32.mxu0 %v10480_v0 }
  0x57   : > { %2225 = vperm.xlu0 %5941, %v2168_v39   ;;  %2216 = vperm.xlu1 %5942, %v2165_v42  }
  0x58   : > { %5499 = vmatmul.mubr.msk.f32.gmra.mrb[14].mxu0 %vm295_vm0, %v282_v23  ;;  %v2177_v23 = vld [vmem:[#allocation2 + $0x1a0] sm:$0xff] }
  0x59   : > { %444 = vmatprep.mubr.f32.mxu0 %v10480_v0 }
  0x5b   : > { %962 = vperm.xlu0 %5941, %v902_v41   ;;  %953 = vperm.xlu1 %5942, %v899_v44  }
  0x5c   : > { %5500 = vmatmul.mubr.msk.f32.gmra.mrb[16].mxu0 %vm295_vm0, %v283_v26 }
  0x5d   : > { %1963 = vmatprep.mubr.f32.mxu0 %v10480_v0 }
  0x5f   : > { %2231 = vperm.xlu0 %5941, %v2170_v43   ;;  %2222 = vperm.xlu1 %5942, %v2167_v46  }
  0x63   : > { %968 = vperm.xlu0 %5941, %v904_v45   ;;  %959 = vperm.xlu1 %5942, %v901_v48  }
  0x67   : > { %2237 = vperm.xlu0 %5941, %v2172_v47   ;;  %2228 = vperm.xlu1 %5942, %v2169_v50  }
  0x6b   : > { %974 = vperm.xlu0 %5941, %v906_v49   ;;  %965 = vperm.xlu1 %5942, %v903_v52  }
  0x6f   : > { %2243 = vperm.xlu0 %5941, %v2174_v51   ;;  %2234 = vperm.xlu1 %5942, %v2171_v53  }
  0x73   : > { %971 = vperm.xlu1 %5942, %v905_v54  }
  0x77   : > { %2240 = vperm.xlu1 %5942, %v2173_v55  }
  0xae   : > { %v6919_v8 = vpop.permute.xlu1 %926  ;;  %v6925_v13 = vpop.permute.xlu0 %923 }
  0xb2   : > { %v6921_v9 = vpop.permute.xlu1 %2192  ;;  %v6929_v15 = vpop.permute.xlu0 %932 }
  0xb6   : > { %v6923_v12 = vpop.permute.xlu1 %2195  ;;  %v6933_v17 = vpop.permute.xlu0 %2201 }
  0xba   : > { %v6927_v14 = vpop.permute.xlu1 %929  ;;  %v6937_v19 = vpop.permute.xlu0 %938 }
  0xbe   : > { %v6931_v16 = vpop.permute.xlu1 %2198  ;;  %v6945_v22 = vpop.permute.xlu0 %2207 }
  0xc2   : > { %v6935_v18 = vpop.permute.xlu1 %935  ;;  %v6958_v27 = vpop.permute.xlu0 %944 }
  0xc6   : > { %v6942_v21 = vpop.permute.xlu1 %2204  ;;  %v6964_v30 = vpop.permute.xlu0 %2213 }
  0xca   : > { %v6953_v25 = vpop.permute.xlu1 %941  ;;  %v6968_v32 = vpop.permute.xlu0 %950 }
  0xce   : > { %v6962_v29 = vpop.permute.xlu1 %2210  ;;  %v6972_v34 = vpop.permute.xlu0 %2219 }
  0xd2   : > { %v6966_v31 = vpop.permute.xlu1 %947  ;;  %v6976_v36 = vpop.permute.xlu0 %956 }
  0xd6   : > { %v6970_v33 = vpop.permute.xlu1 %2216  ;;  %v6980_v38 = vpop.permute.xlu0 %2225 }
  0xda   : > { %v6974_v35 = vpop.permute.xlu1 %953  ;;  %v6984_v40 = vpop.permute.xlu0 %962 }
  0xde   : > { %v6978_v37 = vpop.permute.xlu1 %2222  ;;  %v6988_v42 = vpop.permute.xlu0 %2231 }
  0xe2   : > { %v6982_v39 = vpop.permute.xlu1 %959  ;;  %v6992_v44 = vpop.permute.xlu0 %968 }
  0xe3   : > { %10884 = vst [vmem:[#allocation10_spill] sm:$0xff] %v6992_v44 }
  0xe6   : > { %v6986_v41 = vpop.permute.xlu1 %2228  ;;  %v6996_v46 = vpop.permute.xlu0 %2237 }
  0xe7   : > { %10886 = vst [vmem:[#allocation12_spill] sm:$0xff] %v6996_v46 }
  0xea   : > { %v6990_v43 = vpop.permute.xlu1 %965  ;;  %v7000_v48 = vpop.permute.xlu0 %974 }
  0xeb   : > { %10883 = vst [vmem:[#allocation9_spill] sm:$0xff] %v6990_v43  ;;  %10888 = vst [vmem:[#allocation14_spill] sm:$0xff] %v7000_v48 }
  0xee   : > { %v6994_v45 = vpop.permute.xlu1 %2234  ;;  %v7004_v50 = vpop.permute.xlu0 %2243 }
  0xef   : > { %10885 = vst [vmem:[#allocation11_spill] sm:$0xff] %v6994_v45  ;;  %10890 = vst [vmem:[#allocation16_spill] sm:$0xff] %v7004_v50  ;;  %v5568_v50 = vld [vmem:[%s10473_s2 + $0x2] sm:$0x3] }
  0xf2   : > { %v6998_v47 = vpop.permute.xlu1 %971 }
  0xf3   : > { %10887 = vst [vmem:[#allocation13_spill] sm:$0xff] %v6998_v47 }
  0xf6   : > { %v7002_v49 = vpop.permute.xlu1 %2240 }
  0xf7   : > { %10889 = vst [vmem:[#allocation15_spill] sm:$0xff] %v7002_v49 }
 0x10f   : > { %v398_v59 = vpop.f32.mrb[0].mxu0 }
 0x110   : > { %v469_v60 = vmul.f32 0.35355338, %v398_v59  ;;  %v400_v61 = vpop.f32.mrb[1].mxu0 }
 0x111   : > { %v470_v62 = vmul.f32 0.35355338, %v400_v61  ;;  %v908_v61 = vld [vmem:[#allocation2 + $0x98] sm:$0xff] }
 0x112   : > { %471 = vxpose.xlu0.b32.start.end [1/1] (short) %v469_v60, 128 }
 0x113   : > { %503 = vxpose.xlu1.b32.start.end [1/1] (short) %v470_v62, 128  ;;  %v404_v63 = vpop.f32.mrb[2].mxu0 }
 0x114   : > { %v406_v1 = vpop.f32.mrb[3].mxu0  ;;  %v1737_v24 = vmul.f32 0.35355338, %v404_v63  ;;  %v2175_v63 = vld [vmem:[#allocation2 + $0x190] sm:$0xff] }
 0x115   : > { %v1738_v28 = vmul.f32 0.35355338, %v406_v1 }
 0x117   : > { %v6911_v2 = vpop.f32.mrb[4].mxu0 }
 0x118   : > { %10879 = vst [vmem:[#allocation5_spill] sm:$0xff] %v6911_v2  ;;  %v6913_v3 = vpop.f32.mrb[5].mxu0 }
 0x119   : > { %10880 = vst [vmem:[#allocation6_spill] sm:$0xff] %v6913_v3 }
 0x11b   : > { %v6915_v4 = vpop.f32.mrb[6].mxu0 }
 0x11c   : > { %10881 = vst [vmem:[#allocation7_spill] sm:$0xff] %v6915_v4  ;;  %v6917_v5 = vpop.f32.mrb[7].mxu0 }
 0x11d   : > { %10882 = vst [vmem:[#allocation8_spill] sm:$0xff] %v6917_v5 }
 0x11f   : > { %v422_v6 = vpop.f32.mrb[8].mxu0 }
 0x120   : > { %v424_v7 = vpop.f32.mrb[9].mxu0 }
 0x121   : > { %632 = vmatprep.subr.mxu1 %v424_v7  ;;  %v910_v7 = vld [vmem:[#allocation2 + $0xa8] sm:$0xff] }
 0x122   : > { %633 = vmatpush1.msra.mxu1 %v422_v6 }
 0x123   : > { %v428_v10 = vpop.f32.mrb[10].mxu0 }
 0x124   : > { %v430_v11 = vpop.f32.mrb[11].mxu0 }
 0x125   : > { %1899 = vmatprep.subr.mxu0 %v430_v11 }
 0x126   : > { %1900 = vmatpush1.msra.mxu0 %v428_v10  ;;  %v907_v10 = vld [vmem:[#allocation2 + $0x90] sm:$0xff] }
 0x14f   : > { %1739 = vxpose.xlu0.b32.start.end [1/1] (short) %v1737_v24, 128  ;;  %v2176_v24 = vld [vmem:[#allocation2 + $0x198] sm:$0xff] }
 0x150   : > { %1771 = vxpose.xlu1.b32.start.end [1/1] (short) %v1738_v28, 128  ;;  %v912_v28 = vld [vmem:[#allocation2 + $0xb8] sm:$0xff] }
 0x192   : > { %v487_v51 = vpop.trf.xlu0 }
 0x193   : > { %5504 = vmatmul.mubr.msk.f32.vlgmr.msra.gmra.mrb[6].mxu1 %vm535_vm1, %v487_v51  ;;  %v7007_v52 = vpop.trf.xlu1 }
 0x194   : > { %702 = vmatprep.mubr.f32.mxu1 %v10480_v0 }
 0x196   : > { %v488_v53 = vpop.trf.xlu0 }
 0x197   : > { %5505 = vmatmul.mubr.msk.f32.gmra.mrb[8].mxu1 %vm535_vm1, %v488_v53  ;;  %v7012_v54 = vpop.trf.xlu1  ;;  %v909_v53 = vld [vmem:[#allocation2 + $0xa0] sm:$0xff] }
 0x198   : > { %708 = vmatprep.mubr.f32.mxu1 %v10480_v0 }
 0x19a   : > { %v489_v55 = vpop.trf.xlu0 }
 0x19b   : > { %5506 = vmatmul.mubr.msk.f32.gmra.mrb[10].mxu1 %vm535_vm1, %v489_v55  ;;  %v7017_v57 = vpop.trf.xlu1 }
 0x19c   : > { %714 = vmatprep.mubr.f32.mxu1 %v10480_v0 }
 0x19e   : > { %v490_v56 = vpop.trf.xlu0 }
 0x19f   : > { %5507 = vmatmul.mubr.msk.f32.gmra.mrb[12].mxu1 %vm535_vm1, %v490_v56  ;;  %v7022_v59 = vpop.trf.xlu1  ;;  %v2179_v56 = vld [vmem:[#allocation2 + $0x1b0] sm:$0xff] }
 0x1a0   : > { %720 = vmatprep.mubr.f32.mxu1 %v10480_v0 }
 0x1a2   : > { %v491_v58 = vpop.trf.xlu0 }
 0x1a3   : > { %5508 = vmatmul.mubr.msk.f32.gmra.mrb[14].mxu1 %vm535_vm1, %v491_v58  ;;  %v7027_v1 = vpop.trf.xlu1  ;;  %v2178_v58 = vld [vmem:[#allocation2 + $0x1a8] sm:$0xff] }
 0x1a4   : > { %726 = vmatprep.mubr.f32.mxu1 %v10480_v0 }
 0x1a6   : > { %v492_v60 = vpop.trf.xlu0 }
 0x1a7   : > { %5509 = vmatmul.mubr.msk.f32.gmra.mrb[16].mxu1 %vm535_vm1, %v492_v60  ;;  %v7032_v11 = vpop.trf.xlu1 }
 0x1a8   : > { %732 = vmatprep.mubr.f32.mxu1 %v10480_v0 }
 0x1aa   : > { %v493_v62 = vpop.trf.xlu0  ;;  %980 = vperm.xlu1 %5942, %v908_v61  }
 0x1ab   : > { %5510 = vmatmul.mubr.msk.f32.gmra.mrb[18].mxu1 %vm535_vm1, %v493_v62  ;;  %v7037_v51 = vpop.trf.xlu1  ;;  %v911_v62 = vld [vmem:[#allocation2 + $0xb0] sm:$0xff] }
 0x1ac   : > { %738 = vmatprep.mubr.f32.mxu1 %v10480_v0 }
 0x1ae   : > { %v494_v6 = vpop.trf.xlu0  ;;  %2246 = vperm.xlu1 %5942, %v2175_v63  }
 0x1af   : > { %5511 = vmatmul.mubr.msk.f32.gmra.mrb[20].mxu1 %vm535_vm1, %v494_v6  ;;  %v7042_v60 = vpop.trf.xlu1 }
 0x1b0   : > { %744 = vmatprep.mubr.f32.mxu1 %v10480_v0 }
 0x1b2   : > { %v495_v20 = vpop.trf.xlu0  ;;  %986 = vperm.xlu1 %5942, %v910_v7   ;;  %v2180_v7 = vld [vmem:[#allocation2 + $0x1b8] sm:$0xff] }
 0x1b3   : > { %5512 = vmatmul.mubr.msk.f32.gmra.mrb[22].mxu1 %vm535_vm1, %v495_v20  ;;  %v7047_v6 = vpop.trf.xlu1  ;;  %v7051_v20 = vpop.f32.mrb[0].mxu1 }
 0x1b4   : > { %977 = vperm.xlu0 %5941, %v907_v10   ;;  %750 = vmatprep.mubr.f32.mxu1 %v10480_v0  ;;  %10891 = vst [vmem:[#allocation17_spill] sm:$0xff] %v7051_v20 }
 0x1b6   : > { %v496_v26 = vpop.trf.xlu0  ;;  %2252 = vperm.xlu1 %5942, %v2177_v23   ;;  %v7054_v23 = vpop.f32.mrb[1].mxu1 }
 0x1b7   : > { %5513 = vmatmul.mubr.msk.f32.gmra.mrb[24].mxu1 %vm535_vm1, %v496_v26  ;;  %v7058_v26 = vpop.f32.mrb[2].mxu1 }
 0x1b8   : > { %2249 = vperm.xlu0 %5941, %v2176_v24   ;;  %756 = vmatprep.mubr.f32.mxu1 %v10480_v0  ;;  %v7056_v24 = vpop.trf.xlu1  ;;  %10892 = vst [vmem:[#allocation18_spill] sm:$0xff] %v7058_v26 }
 0x1ba   : > { %v497_v55 = vpop.trf.xlu0  ;;  %992 = vperm.xlu1 %5942, %v912_v28  }
 0x1bb   : > { %5514 = vmatmul.mubr.msk.f32.gmra.mrb[26].mxu1 %vm535_vm1, %v497_v55 }
 0x1bc   : > { %983 = vperm.xlu0 %5941, %v909_v53   ;;  %762 = vmatprep.mubr.f32.mxu1 %v10480_v0  ;;  %v7060_v53 = vpop.f32.mrb[3].mxu1 }
 0x1bd   : > { %10893 = vst [vmem:[#allocation19_spill] sm:$0xff] %v7060_v53  ;;  %v7063_v55 = vpop.f32.mrb[4].mxu1 }
 0x1be   : > { %v498_v61 = vpop.trf.xlu0  ;;  %2258 = vperm.xlu1 %5942, %v2179_v56   ;;  %10894 = vst [vmem:[#allocation20_spill] sm:$0xff] %v7063_v55  ;;  %v7066_v56 = vpop.f32.mrb[5].mxu1 }
 0x1bf   : > { %5515 = vmatmul.mubr.msk.f32.gmra.mrb[28].mxu1 %vm535_vm1, %v498_v61  ;;  %10895 = vst [vmem:[#allocation21_spill] sm:$0xff] %v7066_v56  ;;  %v529_v61 = vpop.trf.xlu1 }
 0x1c0   : > { %2255 = vperm.xlu0 %5941, %v2178_v58   ;;  %768 = vmatprep.mubr.f32.mxu1 %v10480_v0 }
 0x1c2   : > { %v499_v63 = vpop.trf.xlu0 }
 0x1c3   : > { %5516 = vmatmul.mubr.msk.f32.gmra.mrb[30].mxu1 %vm535_vm1, %v499_v63  ;;  %v530_v63 = vpop.trf.xlu1 }
 0x1c4   : > { %989 = vperm.xlu0 %5941, %v911_v62   ;;  %774 = vmatprep.mubr.f32.mxu1 %v10480_v0 }
 0x1c6   : > { %v500_v10 = vpop.trf.xlu0 }
 0x1c7   : > { %5517 = vmatmul.mubr.msk.f32.gmra.mrb[32].mxu1 %vm535_vm1, %v500_v10 }
 0x1c8   : > { %2261 = vperm.xlu0 %5941, %v2180_v7   ;;  %780 = vmatprep.mubr.f32.mxu1 %v10480_v0 }
 0x1ca   : > { %v501_v28 = vpop.trf.xlu0 }
 0x1cb   : > { %5518 = vmatmul.mubr.msk.f32.gmra.mrb[34].mxu1 %vm535_vm1, %v501_v28 }
 0x1cc   : > { %786 = vmatprep.mubr.f32.mxu1 %v10480_v0 }
 0x1ce   : > { %v502_v58 = vpop.trf.xlu0 }
 0x1cf   : > { %5519 = vmatmul.mubr.msk.f32.gmra.mrb[36].mxu1 %vm535_vm1, %v502_v58 }
 0x1d0   : > { %792 = vmatprep.mubr.f32.mxu1 %v10480_v0 }
 0x1d2   : > { %v1755_v62 = vpop.trf.xlu0 }
 0x1d3   : > { %5520 = vmatmul.mubr.msk.f32.gmra.mrb[38].mxu1 %vm535_vm1, %v7007_v52  ;;  %5536 = vmatmul.mubr.msk.f32.vlgmr.msra.gmra.mrb[18].mxu0 %vm535_vm1, %v1755_v62  ;;  %v531_v52 = vpop.trf.xlu1 }
 0x1d4   : > { %798 = vmatprep.mubr.f32.mxu1 %v10480_v0  ;;  %1969 = vmatprep.mubr.f32.mxu0 %v10480_v0 }
 0x1d6   : > { %v1756_v7 = vpop.trf.xlu0 }
 0x1d7   : > { %5521 = vmatmul.mubr.msk.f32.gmra.mrb[40].mxu1 %vm535_vm1, %v7012_v54  ;;  %5537 = vmatmul.mubr.msk.f32.gmra.mrb[20].mxu0 %vm535_vm1, %v1756_v7  ;;  %v532_v54 = vpop.trf.xlu1 }
 0x1d8   : > { %804 = vmatprep.mubr.f32.mxu1 %v10480_v0  ;;  %1975 = vmatprep.mubr.f32.mxu0 %v10480_v0 }
 0x1da   : > { %v1757_v10 = vpop.trf.xlu0 }
 0x1db   : > { %5522 = vmatmul.mubr.msk.f32.gmra.mrb[42].mxu1 %vm535_vm1, %v7017_v57  ;;  %5538 = vmatmul.mubr.msk.f32.gmra.mrb[22].mxu0 %vm535_vm1, %v1757_v10 }
 0x1dc   : > { %810 = vmatprep.mubr.f32.mxu1 %v10480_v0  ;;  %1981 = vmatprep.mubr.f32.mxu0 %v10480_v0 }
 0x1de   : > { %v1758_v28 = vpop.trf.xlu0 }
 0x1df   : > { %5523 = vmatmul.mubr.msk.f32.gmra.mrb[44].mxu1 %vm535_vm1, %v7022_v59  ;;  %5539 = vmatmul.mubr.msk.f32.gmra.mrb[24].mxu0 %vm535_vm1, %v1758_v28  ;;  %v533_v59 = vpop.trf.xlu1 }
 0x1e0   : > { %816 = vmatprep.mubr.f32.mxu1 %v10480_v0  ;;  %1987 = vmatprep.mubr.f32.mxu0 %v10480_v0 }
 0x1e2   : > { %v1759_v58 = vpop.trf.xlu0 }
 0x1e3   : > { %5524 = vmatmul.mubr.msk.f32.gmra.mrb[46].mxu1 %vm535_vm1, %v7027_v1  ;;  %5540 = vmatmul.mubr.msk.f32.gmra.mrb[26].mxu0 %vm535_vm1, %v1759_v58  ;;  %v534_v1 = vpop.trf.xlu1 }
 0x1e4   : > { %822 = vmatprep.mubr.f32.mxu1 %v10480_v0  ;;  %1993 = vmatprep.mubr.f32.mxu0 %v10480_v0 }
 0x1e6   : > { %v1760_v57 = vpop.trf.xlu0 }
 0x1e7   : > { %5525 = vmatmul.mubr.msk.f32.gmra.mrb[48].mxu1 %vm535_vm1, %v7032_v11  ;;  %5541 = vmatmul.mubr.msk.f32.gmra.mrb[28].mxu0 %vm535_vm1, %v1760_v57 }
 0x1e8   : > { %828 = vmatprep.mubr.f32.mxu1 %v10480_v0  ;;  %1999 = vmatprep.mubr.f32.mxu0 %v10480_v0 }
 0x1ea   : > { %v1761_v62 = vpop.trf.xlu0 }
 0x1eb   : > { %5526 = vmatmul.mubr.msk.f32.gmra.mrb[50].mxu1 %vm535_vm1, %v7037_v51  ;;  %5542 = vmatmul.mubr.msk.f32.gmra.mrb[30].mxu0 %vm535_vm1, %v1761_v62  ;;  %v1787_v51 = vpop.trf.xlu1 }
 0x1ec   : > { %834 = vmatprep.mubr.f32.mxu1 %v10480_v0  ;;  %2005 = vmatprep.mubr.f32.mxu0 %v10480_v0 }
 0x1ee   : > { %v1762_v7 = vpop.trf.xlu0 }
 0x1ef   : > { %5527 = vmatmul.mubr.msk.f32.gmra.mrb[52].mxu1 %vm535_vm1, %v7042_v60  ;;  %5543 = vmatmul.mubr.msk.f32.gmra.mrb[32].mxu0 %vm535_vm1, %v1762_v7  ;;  %v1788_v60 = vpop.trf.xlu1  ;;  %v7147_v7 = vpop.f32.mrb[12].mxu0 }
 0x1f0   : > { %2011 = vmatprep.mubr.f32.mxu0 %v10480_v0  ;;  %840 = vmatprep.mubr.f32.mxu1 %v10480_v0  ;;  %10896 = vst [vmem:[#allocation22_spill] sm:$0xff] %v7147_v7 }
 0x1f2   : > { %v1763_v11 = vpop.trf.xlu0 }
 0x1f3   : > { %5544 = vmatmul.mubr.msk.f32.gmra.mrb[34].mxu0 %vm535_vm1, %v1763_v11  ;;  %5528 = vmatmul.mubr.msk.f32.gmra.mrb[54].mxu1 %vm535_vm1, %v7047_v6  ;;  %v7149_v11 = vpop.f32.mrb[13].mxu0 }
 0x1f4   : > { %2017 = vmatprep.mubr.f32.mxu0 %v10480_v0  ;;  %846 = vmatprep.mubr.f32.mxu1 %v10480_v0  ;;  %10897 = vst [vmem:[#allocation23_spill] sm:$0xff] %v7149_v11 }
 0x1f6   : > { %v1764_v10 = vpop.trf.xlu0 }
 0x1f7   : > { %5545 = vmatmul.mubr.msk.f32.gmra.mrb[36].mxu0 %vm535_vm1, %v1764_v10  ;;  %5529 = vmatmul.mubr.msk.f32.gmra.mrb[56].mxu1 %vm535_vm1, %v7056_v24  ;;  %v1789_v24 = vpop.trf.xlu1 }
 0x1f8   : > { %2023 = vmatprep.mubr.f32.mxu0 %v10480_v0  ;;  %852 = vmatprep.mubr.f32.mxu1 %v10480_v0 }
 0x1fa   : > { %v1765_v28 = vpop.trf.xlu0 }
 0x1fb   : > { %5546 = vmatmul.mubr.msk.f32.gmra.mrb[38].mxu0 %vm535_vm1, %v1765_v28  ;;  %5530 = vmatmul.mubr.msk.f32.gmra.mrb[58].mxu1 %vm535_vm1, %v529_v61  ;;  %v1790_v61 = vpop.trf.xlu1 }
 0x1fc   : > { %2029 = vmatprep.mubr.f32.mxu0 %v10480_v0  ;;  %858 = vmatprep.mubr.f32.mxu1 %v10480_v0 }
 0x1fe   : > { %v1766_v6 = vpop.trf.xlu0 }
 0x1ff   : > { %5547 = vmatmul.mubr.msk.f32.gmra.mrb[40].mxu0 %vm535_vm1, %v1766_v6  ;;  %5531 = vmatmul.mubr.msk.f32.gmra.mrb[60].mxu1 %vm535_vm1, %v530_v63 }
 0x200   : > { %2035 = vmatprep.mubr.f32.mxu0 %v10480_v0  ;;  %864 = vmatprep.mubr.f32.mxu1 %v10480_v0 }
 0x202   : > { %v1767_v58 = vpop.trf.xlu0 }
 0x203   : > { %5548 = vmatmul.mubr.msk.f32.gmra.mrb[42].mxu0 %vm535_vm1, %v1767_v58  ;;  %5532 = vmatmul.mubr.msk.f32.gmra.mrb[62].mxu1 %vm535_vm1, %v531_v52  ;;  %v1791_v52 = vpop.trf.xlu1 }
 0x204   : > { %2041 = vmatprep.mubr.f32.mxu0 %v10480_v0  ;;  %870 = vmatprep.mubr.f32.mxu1 %v10480_v0 }
 0x206   : > { %v1768_v57 = vpop.trf.xlu0 }
 0x207   : > { %5549 = vmatmul.mubr.msk.f32.gmra.mrb[44].mxu0 %vm535_vm1, %v1768_v57  ;;  %5533 = vmatmul.mubr.msk.f32.gmra.mrb[64].mxu1 %vm535_vm1, %v532_v54  ;;  %v1792_v54 = vpop.trf.xlu1 }
 0x208   : > { %2047 = vmatprep.mubr.f32.mxu0 %v10480_v0  ;;  %876 = vmatprep.mubr.f32.mxu1 %v10480_v0 }
 0x20a   : > { %v1769_v63 = vpop.trf.xlu0 }
 0x20b   : > { %5550 = vmatmul.mubr.msk.f32.gmra.mrb[46].mxu0 %vm535_vm1, %v1769_v63  ;;  %5534 = vmatmul.mubr.msk.f32.gmra.mrb[66].mxu1 %vm535_vm1, %v533_v59  ;;  %v1793_v59 = vpop.trf.xlu1 }
 0x20c   : > { %2053 = vmatprep.mubr.f32.mxu0 %v10480_v0  ;;  %882 = vmatprep.mubr.f32.mxu1 %v10480_v0 }
 0x20e   : > { %v1770_v62 = vpop.trf.xlu0 }
 0x20f   : > { %5551 = vmatmul.mubr.msk.f32.gmra.mrb[48].mxu0 %vm535_vm1, %v1770_v62  ;;  %5535 = vmatmul.mubr.msk.f32.gmra.mrb[68].mxu1 %vm535_vm1, %v534_v1  ;;  %v7153_v1 = vpop.f32.mrb[14].mxu0  ;;  %v1794_v10 = vpop.trf.xlu1 }
 0x210   : > { %2059 = vmatprep.mubr.f32.mxu0 %v10480_v0  ;;  %10898 = vst [vmem:[#allocation24_spill] sm:$0xff] %v7153_v1  ;;  %v7155_v28 = vpop.f32.mrb[15].mxu0 }
 0x211   : > { %10899 = vst [vmem:[#allocation25_spill] sm:$0xff] %v7155_v28 }
 0x213   : > { %5552 = vmatmul.mubr.msk.f32.gmra.mrb[50].mxu0 %vm535_vm1, %v1787_v51  ;;  %v7159_v51 = vpop.f32.mrb[16].mxu0  ;;  %v1795_v6 = vpop.trf.xlu1 }
 0x214   : > { %2065 = vmatprep.mubr.f32.mxu0 %v10480_v0  ;;  %10900 = vst [vmem:[#allocation26_spill] sm:$0xff] %v7159_v51 }
 0x217   : > { %5553 = vmatmul.mubr.msk.f32.gmra.mrb[52].mxu0 %vm535_vm1, %v1788_v60  ;;  %v448_v60 = vpop.f32.mrb[17].mxu0 }
 0x218   : > { %2071 = vmatprep.mubr.f32.mxu0 %v10480_v0  ;;  %1730 = vmatprep.mubr.f32.mxu1 %v448_v60  ;;  %v921_v60 = vld [vmem:[%s10473_s2] sm:$0x3] }
 0x21b   : > { %5554 = vmatmul.mubr.msk.f32.gmra.mrb[54].mxu0 %vm535_vm1, %v1789_v24  ;;  %v1796_v24 = vpop.trf.xlu1 }
 0x21c   : > { %2077 = vmatprep.mubr.f32.mxu0 %v10480_v0 }
 0x21f   : > { %5555 = vmatmul.mubr.msk.f32.gmra.mrb[56].mxu0 %vm535_vm1, %v1790_v61  ;;  %v1797_v58 = vpop.trf.xlu1 }
 0x220   : > { %2083 = vmatprep.mubr.f32.mxu0 %v10480_v0 }
 0x223   : > { %5556 = vmatmul.mubr.msk.f32.gmra.mrb[58].mxu0 %vm535_vm1, %v1791_v52  ;;  %v1798_v61 = vpop.trf.xlu1 }
 0x224   : > { %2089 = vmatprep.mubr.f32.mxu0 %v10480_v0 }
 0x227   : > { %5557 = vmatmul.mubr.msk.f32.gmra.mrb[60].mxu0 %vm535_vm1, %v1792_v54  ;;  %v1799_v57 = vpop.trf.xlu1  ;;  %v1018_v54 = vlaneseq }
 0x228   : > { %2095 = vmatprep.mubr.f32.mxu0 %v10480_v0 }
 0x22b   : > { %5558 = vmatmul.mubr.msk.f32.gmra.mrb[62].mxu0 %vm535_vm1, %v1793_v59  ;;  %v1800_v63 = vpop.trf.xlu1  ;;  %v1019_v59 = vshrl.u32 %v1018_v54, 7 }
 0x22c   : > { %2101 = vmatprep.mubr.f32.mxu0 %v10480_v0 }
 0x22f   : > { %5559 = vmatmul.mubr.msk.f32.gmra.mrb[64].mxu0 %vm535_vm1, %v1794_v10  ;;  %v1801_v52 = vpop.trf.xlu1  ;;  %v7185_v10 = vsub.s32 0, %v1019_v59 }
 0x230   : > { %2107 = vmatprep.mubr.f32.mxu0 %v10480_v0 }
 0x231   : > { %10901 = vst [vmem:[#allocation27_spill] sm:$0xff] %v7185_v10  ;;  %v7270_v46 = vrot.slane %v5568_v50, %v7185_v10 }
 0x233   : > { %5560 = vmatmul.mubr.msk.f32.gmra.mrb[66].mxu0 %vm535_vm1, %v1795_v6  ;;  %v1802_v62 = vpop.trf.xlu1  ;;  %v7190_v6 = vsub.s32 1, %v1019_v59  ;;  %vm2295_vm6 = vcmp.eq.s32.totalorder %v6921_v9, %v7270_v46  ;;  %vm2297_vm10 = vcmp.eq.s32.totalorder %v6923_v12, %v7270_v46  ;;  %vm2299_vm14 = vcmp.eq.s32.totalorder %v6931_v16, %v7270_v46 }
 0x234   : > { %2113 = vmatprep.mubr.f32.mxu0 %v10480_v0 }
 0x235   : > { %10902 = vst [vmem:[#allocation28_spill] sm:$0xff] %v7190_v6  ;;  %v7273_v47 = vrot.slane %v5568_v50, %v7190_v6 }
 0x237   : > { %5561 = vmatmul.mubr.msk.f32.gmra.mrb[68].mxu0 %vm535_vm1, %v1796_v24  ;;  %v7193_v24 = vrot.slane %v921_v60, %v7185_v10  ;;  %vm2296_vm7 = vcmp.eq.s32.totalorder %v6921_v9, %v7273_v47  ;;  %vm2298_vm11 = vcmp.eq.s32.totalorder %v6923_v12, %v7273_v47  ;;  %vm2300_vm15 = vcmp.eq.s32.totalorder %v6931_v16, %v7273_v47 }
 0x238   : > { %2119 = vmatprep.mubr.f32.mxu0 %v10480_v0 }
 0x239   : > { %vm1026_vm2 = vcmp.eq.s32.totalorder %v6925_v13, %v7193_v24  ;;  %vm1028_vm4 = vcmp.eq.s32.totalorder %v6919_v8, %v7193_v24  ;;  %vm1032_vm8 = vcmp.eq.s32.totalorder %v6929_v15, %v7193_v24  ;;  %vm1030_vm12 = vcmp.eq.s32.totalorder %v6927_v14, %v7193_v24 }
 0x23b   : > { %5562 = vmatmul.mubr.msk.f32.gmra.mrb[70].mxu0 %vm535_vm1, %v1797_v58  ;;  %v7196_v58 = vrot.slane %v921_v60, %v7190_v6 }
 0x23c   : > { %2125 = vmatprep.mubr.f32.mxu0 %v10480_v0 }
 0x23d   : > { %vm1027_vm3 = vcmp.eq.s32.totalorder %v6925_v13, %v7196_v58  ;;  %vm1029_vm5 = vcmp.eq.s32.totalorder %v6919_v8, %v7196_v58  ;;  %vm1033_vm9 = vcmp.eq.s32.totalorder %v6929_v15, %v7196_v58  ;;  %vm1031_vm13 = vcmp.eq.s32.totalorder %v6927_v14, %v7196_v58 }
 0x23f   : > { %5563 = vmatmul.mubr.msk.f32.gmra.mrb[72].mxu0 %vm535_vm1, %v1798_v61 }
 0x240   : > { %2131 = vmatprep.mubr.f32.mxu0 %v10480_v0 }
 0x243   : > { %5564 = vmatmul.mubr.msk.f32.gmra.mrb[74].mxu0 %vm535_vm1, %v1799_v57 }
 0x244   : > { %2137 = vmatprep.mubr.f32.mxu0 %v10480_v0 }
 0x247   : > { %5565 = vmatmul.mubr.msk.f32.gmra.mrb[76].mxu0 %vm535_vm1, %v1800_v63 }
 0x248   : > { %2143 = vmatprep.mubr.f32.mxu0 %v10480_v0 }
 0x24b   : > { %5566 = vmatmul.mubr.msk.f32.gmra.mrb[78].mxu0 %vm535_vm1, %v1801_v52 }
 0x24c   : > { %2149 = vmatprep.mubr.f32.mxu0 %v10480_v0 }
 0x24f   : > { %5567 = vmatmul.mubr.msk.f32.gmra.mrb[80].mxu0 %vm535_vm1, %v1802_v62 }
 0x250   : > { %2999 = vmatprep.mubr.f32.mxu0 %v7054_v23 }
 0x266   : > { %v698_v61 = vpop.f32.mrb[6].mxu1 }
 0x267   : > { %v7200_v23 = vsel %vm1026_vm2, %v698_v61, -1e+30  ;;  %v700_v57 = vpop.f32.mrb[7].mxu1  ;;  %vm1036_vm2 = vcmp.eq.s32.totalorder %v6937_v19, %v7193_v24 }
 0x268   : > { %10903 = vst [vmem:[#allocation29_spill] sm:$0xff] %v7200_v23  ;;  %v7204_v63 = vsel %vm1027_vm3, %v700_v57, -1e+30  ;;  %vm1037_vm3 = vcmp.eq.s32.totalorder %v6937_v19, %v7196_v58 }
 0x269   : > { %10904 = vst [vmem:[#allocation30_spill] sm:$0xff] %v7204_v63  ;;  %v1154_v52 = vmax.f32 %v7200_v23, %v7204_v63 }
 0x26a   : > { %v704_v62 = vpop.f32.mrb[8].mxu1 }
 0x26b   : > { %v7210_v54 = vsel %vm1028_vm4, %v704_v62, -1e+30  ;;  %1155 = vmax.xlane.f32.xlu1 %v1154_v52  ;;  %v706_v59 = vpop.f32.mrb[9].mxu1  ;;  %vm2301_vm4 = vcmp.eq.s32.totalorder %v6933_v17, %v7270_v46 }
 0x26c   : > { %10905 = vst [vmem:[#allocation31_spill] sm:$0xff] %v7210_v54  ;;  %v7214_v60 = vsel %vm1029_vm5, %v706_v59, -1e+30  ;;  %vm2302_vm5 = vcmp.eq.s32.totalorder %v6933_v17, %v7273_v47 }
 0x26d   : > { %10906 = vst [vmem:[#allocation32_spill] sm:$0xff] %v7214_v60  ;;  %v1157_v13 = vmax.f32 %v7210_v54, %v7214_v60 }
 0x26e   : > { %v710_v61 = vpop.f32.mrb[10].mxu1 }
 0x26f   : > { %1158 = vmax.xlane.f32.xlu0 %v1157_v13  ;;  %v712_v57 = vpop.f32.mrb[11].mxu1 }
 0x272   : > { %v716_v0 = vpop.f32.mrb[12].mxu1 }
 0x273   : > { %v718_v55 = vpop.f32.mrb[13].mxu1  ;;  %v7293_v6 = vsel %vm1032_vm8, %v716_v0, -1e+30  ;;  %vm2303_vm8 = vcmp.eq.s32.totalorder %v6942_v21, %v7270_v46 }
 0x276   : > { %v7218_v26 = vpop.f32.mrb[14].mxu1 }
 0x277   : > { %v7220_v56 = vpop.f32.mrb[15].mxu1 }
 0x27a   : > { %v7222_v62 = vpop.f32.mrb[16].mxu1 }
 0x27b   : > { %v7224_v52 = vpop.f32.mrb[17].mxu1 }
 0x27e   : > { %v7226_v53 = vpop.f32.mrb[18].mxu1 }
 0x27f   : > { %v7228_v8 = vpop.f32.mrb[19].mxu1 }
 0x282   : > { %v7230_v59 = vpop.f32.mrb[20].mxu1 }
 0x283   : > { %v7232_v1 = vpop.f32.mrb[21].mxu1 }
 0x286   : > { %v7234_v13 = vpop.f32.mrb[22].mxu1 }
 0x287   : > { %v7236_v20 = vpop.f32.mrb[23].mxu1 }
 0x28a   : > { %v7238_v28 = vpop.f32.mrb[24].mxu1 }
 0x28b   : > { %v7240_v7 = vpop.f32.mrb[25].mxu1 }
 0x28e   : > { %v7242_v51 = vpop.f32.mrb[26].mxu1 }
 0x28f   : > { %v7244_v11 = vpop.f32.mrb[27].mxu1 }
 0x292   : > { %v7246_v5 = vpop.f32.mrb[28].mxu1 }
 0x293   : > { %v7248_v3 = vpop.f32.mrb[29].mxu1 }
 0x296   : > { %v7250_v4 = vpop.f32.mrb[30].mxu1 }
 0x297   : > { %v7252_v2 = vpop.f32.mrb[31].mxu1 }
 0x29a   : > { %v7254_v60 = vpop.f32.mrb[32].mxu1 }
 0x29b   : > { %v7256_v54 = vpop.f32.mrb[33].mxu1 }
 0x29e   : > { %v7258_v63 = vpop.f32.mrb[34].mxu1 }
 0x29f   : > { %10907 = vst [vmem:[#allocation33_spill] sm:$0xff] %v7258_v63  ;;  %v7260_v23 = vpop.f32.mrb[35].mxu1 }
 0x2a0   : > { %10908 = vst [vmem:[#allocation34_spill] sm:$0xff] %v7260_v23 }
 0x2a2   : > { %v7265_v49 = vpop.f32.mrb[36].mxu1 }
 0x2a3   : > { %v7267_v48 = vpop.f32.mrb[37].mxu1 }
 0x2a4   : > { %10909 = vst [vmem:[#allocation35_spill] sm:$0xff] %v7267_v48 }
 0x2a6   : > { %v7275_v45 = vpop.f32.mrb[38].mxu1  ;;  %v1965_v43 = vpop.f32.mrb[18].mxu0 }
 0x2a7   : > { %10910 = vst [vmem:[#allocation36_spill] sm:$0xff] %v7275_v45  ;;  %v7279_v23 = vsel %vm2295_vm6, %v1965_v43, -1e+30  ;;  %v7281_v63 = vpop.f32.mrb[39].mxu1  ;;  %v1967_v44 = vpop.f32.mrb[19].mxu0  ;;  %vm1034_vm6 = vcmp.eq.s32.totalorder %v6935_v18, %v7193_v24 }
 0x2a8   : > { %10911 = vst [vmem:[#allocation37_spill] sm:$0xff] %v7279_v23  ;;  %10912 = vst [vmem:[#allocation38_spill] sm:$0xff] %v7281_v63  ;;  %v7285_v48 = vsel %vm2296_vm7, %v1967_v44, -1e+30  ;;  %v7295_v43 = vsel %vm1033_vm9, %v718_v55, -1e+30  ;;  %vm1035_vm7 = vcmp.eq.s32.totalorder %v6935_v18, %v7196_v58  ;;  %vm2304_vm9 = vcmp.eq.s32.totalorder %v6942_v21, %v7273_v47 }
 0x2a9   : > { %10913 = vst [vmem:[#allocation39_spill] sm:$0xff] %v7285_v48  ;;  %v2423_v50 = vmax.f32 %v7279_v23, %v7285_v48  ;;  %10914 = vst [vmem:[#allocation40_spill] sm:$0xff] %v7295_v43  ;;  %v1163_v0 = vmax.f32 %v7293_v6, %v7295_v43 }
 0x2aa   : > { %v7297_v10 = vpop.f32.mrb[40].mxu1  ;;  %v1971_v63 = vpop.f32.mrb[20].mxu0 }
 0x2ab   : > { %v7301_v9 = vsel %vm2297_vm10, %v1971_v63, -1e+30  ;;  %v7303_v44 = vpop.f32.mrb[41].mxu1  ;;  %2424 = vmax.xlane.f32.xlu0 %v2423_v50  ;;  %v1973_v45 = vpop.f32.mrb[21].mxu0  ;;  %v7317_v63 = vsel %vm1030_vm12, %v710_v61, -1e+30  ;;  %vm1040_vm10 = vcmp.eq.s32.totalorder %v6958_v27, %v7193_v24  ;;  %vm2305_vm12 = vcmp.eq.s32.totalorder %v6945_v22, %v7270_v46 }
 0x2ac   : > { %v7307_v15 = vsel %vm2298_vm11, %v1973_v45, -1e+30  ;;  %v7319_v50 = vsel %vm1031_vm13, %v712_v57, -1e+30  ;;  %vm1041_vm11 = vcmp.eq.s32.totalorder %v6958_v27, %v7196_v58  ;;  %vm2306_vm13 = vcmp.eq.s32.totalorder %v6945_v22, %v7273_v47 }
 0x2ad   : > { %v2426_v55 = vmax.f32 %v7301_v9, %v7307_v15  ;;  %10915 = vst [vmem:[#allocation41_spill] sm:$0xff] %v7319_v50  ;;  %v1160_v57 = vmax.f32 %v7317_v63, %v7319_v50 }
 0x2ae   : > { %v7321_v48 = vpop.f32.mrb[42].mxu1  ;;  %v1977_v12 = vpop.f32.mrb[22].mxu0 }
 0x2af   : > { %v7325_v45 = vsel %vm2299_vm14, %v1977_v12, -1e+30  ;;  %v7327_v23 = vpop.f32.mrb[43].mxu1  ;;  %1164 = vmax.xlane.f32.xlu0 %v1163_v0  ;;  %2427 = vmax.xlane.f32.xlu1 %v2426_v55  ;;  %v1979_v14 = vpop.f32.mrb[23].mxu0  ;;  %v7342_v0 = vsel %vm1036_vm2, %v7222_v62, -1e+30  ;;  %vm1038_vm14 = vcmp.eq.s32.totalorder %v6953_v25, %v7193_v24  ;;  %vm2307_vm2 = vcmp.eq.s32.totalorder %v6962_v29, %v7270_v46 }
 0x2b0   : > { %10916 = vst [vmem:[#allocation42_spill] sm:$0xff] %v7325_v45  ;;  %v7331_v61 = vsel %vm2300_vm15, %v1979_v14, -1e+30  ;;  %10918 = vst [vmem:[#allocation44_spill] sm:$0xff] %v7342_v0  ;;  %v7345_v55 = vsel %vm1037_vm3, %v7224_v52, -1e+30  ;;  %vm1039_vm15 = vcmp.eq.s32.totalorder %v6953_v25, %v7196_v58  ;;  %vm2308_vm3 = vcmp.eq.s32.totalorder %v6962_v29, %v7273_v47 }
 0x2b1   : > { %10917 = vst [vmem:[#allocation43_spill] sm:$0xff] %v7331_v61  ;;  %v2429_v12 = vmax.f32 %v7325_v45, %v7331_v61  ;;  %10919 = vst [vmem:[#allocation45_spill] sm:$0xff] %v7345_v55  ;;  %v1169_v52 = vmax.f32 %v7342_v0, %v7345_v55 }
 0x2b2   : > { %v7347_v16 = vpop.f32.mrb[44].mxu1  ;;  %v1983_v14 = vpop.f32.mrb[24].mxu0 }
 0x2b3   : > { %v7351_v43 = vsel %vm2301_vm4, %v1983_v14, -1e+30  ;;  %v7353_v50 = vpop.f32.mrb[45].mxu1  ;;  %1161 = vmax.xlane.f32.xlu1 %v1160_v57  ;;  %2430 = vmax.xlane.f32.xlu0 %v2429_v12  ;;  %v1985_v19 = vpop.f32.mrb[25].mxu0  ;;  %v7368_v57 = vsel %vm1034_vm6, %v7218_v26, -1e+30  ;;  %vm1044_vm4 = vcmp.eq.s32.totalorder %v6968_v32, %v7193_v24  ;;  %vm2309_vm6 = vcmp.eq.s32.totalorder %v6964_v30, %v7270_v46 }
 0x2b4   : > { %10920 = vst [vmem:[#allocation46_spill] sm:$0xff] %v7351_v43  ;;  %v7357_v62 = vsel %vm2302_vm5, %v1985_v19, -1e+30  ;;  %10922 = vst [vmem:[#allocation48_spill] sm:$0xff] %v7368_v57  ;;  %v7371_v12 = vsel %vm1035_vm7, %v7220_v56, -1e+30  ;;  %vm1045_vm5 = vcmp.eq.s32.totalorder %v6968_v32, %v7196_v58  ;;  %vm2310_vm7 = vcmp.eq.s32.totalorder %v6964_v30, %v7273_v47 }
 0x2b5   : > { %10921 = vst [vmem:[#allocation47_spill] sm:$0xff] %v7357_v62  ;;  %v2432_v14 = vmax.f32 %v7351_v43, %v7357_v62  ;;  %10923 = vst [vmem:[#allocation49_spill] sm:$0xff] %v7371_v12  ;;  %v1166_v56 = vmax.f32 %v7368_v57, %v7371_v12 }
 0x2b6   : > { %v7373_v17 = vpop.f32.mrb[46].mxu1  ;;  %v1989_v19 = vpop.f32.mrb[26].mxu0 }
 0x2b7   : > { %v7377_v61 = vsel %vm2303_vm8, %v1989_v19, -1e+30  ;;  %v7379_v18 = vpop.f32.mrb[47].mxu1  ;;  %1170 = vmax.xlane.f32.xlu0 %v1169_v52  ;;  %2433 = vmax.xlane.f32.xlu1 %v2432_v14  ;;  %v1991_v55 = vpop.f32.mrb[27].mxu0  ;;  %v7394_v52 = vsel %vm1040_vm10, %v7230_v59, -1e+30  ;;  %vm1042_vm8 = vcmp.eq.s32.totalorder %v6966_v31, %v7193_v24  ;;  %vm2311_vm10 = vcmp.eq.s32.totalorder %v6970_v33, %v7270_v46 }
 0x2b8   : > { %10924 = vst [vmem:[#allocation50_spill] sm:$0xff] %v7377_v61  ;;  %v7383_v26 = vsel %vm2304_vm9, %v1991_v55, -1e+30  ;;  %10926 = vst [vmem:[#allocation52_spill] sm:$0xff] %v7394_v52  ;;  %v7397_v14 = vsel %vm1041_vm11, %v7232_v1, -1e+30  ;;  %vm1043_vm9 = vcmp.eq.s32.totalorder %v6966_v31, %v7196_v58  ;;  %vm2312_vm11 = vcmp.eq.s32.totalorder %v6970_v33, %v7273_v47 }
 0x2b9   : > { %10925 = vst [vmem:[#allocation51_spill] sm:$0xff] %v7383_v26  ;;  %v2435_v19 = vmax.f32 %v7377_v61, %v7383_v26  ;;  %10927 = vst [vmem:[#allocation53_spill] sm:$0xff] %v7397_v14  ;;  %v1175_v1 = vmax.f32 %v7394_v52, %v7397_v14  ;;  %v2188_v52 = vld [vmem:[#allocation2 + $0x1f8] sm:$0xff] }
 0x2ba   : > { %v7399_v21 = vpop.f32.mrb[48].mxu1  ;;  %v1995_v55 = vpop.f32.mrb[28].mxu0 }
 0x2bb   : > { %v7403_v12 = vsel %vm2305_vm12, %v1995_v55, -1e+30  ;;  %v7405_v57 = vpop.f32.mrb[49].mxu1  ;;  %1167 = vmax.xlane.f32.xlu1 %v1166_v56  ;;  %2436 = vmax.xlane.f32.xlu0 %v2435_v19  ;;  %v1997_v27 = vpop.f32.mrb[29].mxu0  ;;  %v7420_v56 = vsel %vm1038_vm14, %v7226_v53, -1e+30  ;;  %vm1048_vm12 = vcmp.eq.s32.totalorder %v6976_v36, %v7193_v24  ;;  %vm2313_vm14 = vcmp.eq.s32.totalorder %v6972_v34, %v7270_v46 }
 0x2bc   : > { %10928 = vst [vmem:[#allocation54_spill] sm:$0xff] %v7403_v12  ;;  %v7409_v59 = vsel %vm2306_vm13, %v1997_v27, -1e+30  ;;  %10930 = vst [vmem:[#allocation56_spill] sm:$0xff] %v7420_v56  ;;  %v7423_v19 = vsel %vm1039_vm15, %v7228_v8, -1e+30  ;;  %vm1049_vm13 = vcmp.eq.s32.totalorder %v6976_v36, %v7196_v58  ;;  %vm2314_vm15 = vcmp.eq.s32.totalorder %v6972_v34, %v7273_v47 }
 0x2bd   : > { %10929 = vst [vmem:[#allocation55_spill] sm:$0xff] %v7409_v59  ;;  %v2438_v55 = vmax.f32 %v7403_v12, %v7409_v59  ;;  %10931 = vst [vmem:[#allocation57_spill] sm:$0xff] %v7423_v19  ;;  %v1172_v8 = vmax.f32 %v7420_v56, %v7423_v19  ;;  %v7501_v33 = vsel %vm1049_vm13, %v7248_v3, -1e+30  ;;  %vm2320_vm13 = vcmp.eq.s32.totalorder %v6986_v41, %v7273_v47 }
 0x2be   : > { %v7425_v22 = vpop.f32.mrb[50].mxu1  ;;  %v2001_v27 = vpop.f32.mrb[30].mxu0  ;;  %10945 = vst [vmem:[#allocation71_spill] sm:$0xff] %v7501_v33 }
 0x2bf   : > { %v7429_v26 = vsel %vm2307_vm2, %v2001_v27, -1e+30  ;;  %v7431_v25 = vpop.f32.mrb[51].mxu1  ;;  %1176 = vmax.xlane.f32.xlu0 %v1175_v1  ;;  %2439 = vmax.xlane.f32.xlu1 %v2438_v55  ;;  %v2003_v14 = vpop.f32.mrb[31].mxu0  ;;  %v7446_v1 = vsel %vm1044_vm4, %v7238_v28, -1e+30  ;;  %vm1046_vm2 = vcmp.eq.s32.totalorder %v6974_v35, %v7193_v24  ;;  %vm2315_vm4 = vcmp.eq.s32.totalorder %v6978_v37, %v7270_v46 }
 0x2c0   : > { %10932 = vst [vmem:[#allocation58_spill] sm:$0xff] %v7429_v26  ;;  %v7435_v53 = vsel %vm2308_vm3, %v2003_v14, -1e+30  ;;  %10934 = vst [vmem:[#allocation60_spill] sm:$0xff] %v7446_v1  ;;  %v7449_v55 = vsel %vm1045_vm5, %v7240_v7, -1e+30  ;;  %vm1047_vm3 = vcmp.eq.s32.totalorder %v6974_v35, %v7196_v58  ;;  %vm2316_vm5 = vcmp.eq.s32.totalorder %v6978_v37, %v7273_v47 }
 0x2c1   : > { %10933 = vst [vmem:[#allocation59_spill] sm:$0xff] %v7435_v53  ;;  %v2441_v27 = vmax.f32 %v7429_v26, %v7435_v53  ;;  %10935 = vst [vmem:[#allocation61_spill] sm:$0xff] %v7449_v55  ;;  %v1181_v7 = vmax.f32 %v7446_v1, %v7449_v55  ;;  %v7527_v34 = vsel %vm1047_vm3, %v7244_v11, -1e+30  ;;  %v918_v1 = vld [vmem:[#allocation2 + $0xe8] sm:$0xff]  ;;  %v2185_v26 = vld [vmem:[#allocation2 + $0x1e0] sm:$0xff] }
 0x2c2   : > { %v7451_v29 = vpop.f32.mrb[52].mxu1  ;;  %v2007_v14 = vpop.f32.mrb[32].mxu0  ;;  %10951 = vst [vmem:[#allocation77_spill] sm:$0xff] %v7527_v34 }
 0x2c3   : > { %v7455_v19 = vsel %vm2309_vm6, %v2007_v14, -1e+30  ;;  %v7457_v56 = vpop.f32.mrb[53].mxu1  ;;  %1173 = vmax.xlane.f32.xlu1 %v1172_v8  ;;  %2442 = vmax.xlane.f32.xlu0 %v2441_v27  ;;  %v2009_v32 = vpop.f32.mrb[33].mxu0  ;;  %v7472_v8 = vsel %vm1042_vm8, %v7234_v13, -1e+30  ;;  %vm1052_vm6 = vcmp.eq.s32.totalorder %v6984_v40, %v7193_v24  ;;  %vm2317_vm8 = vcmp.eq.s32.totalorder %v6980_v38, %v7270_v46 }
 0x2c4   : > { %10936 = vst [vmem:[#allocation62_spill] sm:$0xff] %v7455_v19  ;;  %v7461_v28 = vsel %vm2310_vm7, %v2009_v32, -1e+30  ;;  %10938 = vst [vmem:[#allocation64_spill] sm:$0xff] %v7472_v8  ;;  %v7475_v27 = vsel %vm1043_vm9, %v7236_v20, -1e+30  ;;  %vm1053_vm7 = vcmp.eq.s32.totalorder %v6984_v40, %v7196_v58  ;;  %vm2318_vm9 = vcmp.eq.s32.totalorder %v6980_v38, %v7273_v47 }
 0x2c5   : > { %10937 = vst [vmem:[#allocation63_spill] sm:$0xff] %v7461_v28  ;;  %v2444_v14 = vmax.f32 %v7455_v19, %v7461_v28  ;;  %10939 = vst [vmem:[#allocation65_spill] sm:$0xff] %v7475_v27  ;;  %v1178_v20 = vmax.f32 %v7472_v8, %v7475_v27  ;;  %v7553_v37 = vsel %vm1053_vm7, %v7256_v54, -1e+30  ;;  %v915_v8 = vld [vmem:[#allocation2 + $0xd0] sm:$0xff] }
 0x2c6   : > { %v2013_v30 = vpop.f32.mrb[34].mxu0  ;;  %v7479_v32 = vpop.f32.mrb[54].mxu1  ;;  %10957 = vst [vmem:[#allocation83_spill] sm:$0xff] %v7553_v37 }
 0x2c7   : > { %10940 = vst [vmem:[#allocation66_spill] sm:$0xff] %v7479_v32  ;;  %v7481_v53 = vsel %vm2311_vm10, %v2013_v30, -1e+30  ;;  %1182 = vmax.xlane.f32.xlu0 %v1181_v7  ;;  %2445 = vmax.xlane.f32.xlu1 %v2444_v14  ;;  %v2015_v31 = vpop.f32.mrb[35].mxu0  ;;  %v7485_v55 = vpop.f32.mrb[55].mxu1  ;;  %vm1050_vm10 = vcmp.eq.s32.totalorder %v6982_v39, %v7193_v24  ;;  %v10999_v32 = vld [vmem:[#allocation34_spill] sm:$0xff] }
 0x2c8   : > { %10941 = vst [vmem:[#allocation67_spill] sm:$0xff] %v7481_v53  ;;  %10942 = vst [vmem:[#allocation68_spill] sm:$0xff] %v7485_v55  ;;  %v7487_v13 = vsel %vm2312_vm11, %v2015_v31, -1e+30  ;;  %v7498_v14 = vsel %vm1048_vm12, %v7246_v5, -1e+30  ;;  %vm1051_vm11 = vcmp.eq.s32.totalorder %v6982_v39, %v7196_v58  ;;  %vm2319_vm12 = vcmp.eq.s32.totalorder %v6986_v41, %v7270_v46 }
 0x2c9   : > { %10943 = vst [vmem:[#allocation69_spill] sm:$0xff] %v7487_v13  ;;  %v2447_v7 = vmax.f32 %v7481_v53, %v7487_v13  ;;  %10944 = vst [vmem:[#allocation70_spill] sm:$0xff] %v7498_v14  ;;  %v1187_v3 = vmax.f32 %v7498_v14, %v7501_v33  ;;  %v7579_v38 = vsel %vm1051_vm11, %v7252_v2, -1e+30 }
 0x2ca   : > { %v2019_v30 = vpop.f32.mrb[36].mxu0  ;;  %v7505_v31 = vpop.f32.mrb[56].mxu1  ;;  %10963 = vst [vmem:[#allocation89_spill] sm:$0xff] %v7579_v38 }
 0x2cb   : > { %10946 = vst [vmem:[#allocation72_spill] sm:$0xff] %v7505_v31  ;;  %v7507_v27 = vsel %vm2313_vm14, %v2019_v30, -1e+30  ;;  %1179 = vmax.xlane.f32.xlu1 %v1178_v20  ;;  %2448 = vmax.xlane.f32.xlu0 %v2447_v7  ;;  %v2021_v36 = vpop.f32.mrb[37].mxu0  ;;  %v7511_v13 = vpop.f32.mrb[57].mxu1  ;;  %vm2321_vm14 = vcmp.eq.s32.totalorder %v6988_v42, %v7270_v46 }
 0x2cc   : > { %10947 = vst [vmem:[#allocation73_spill] sm:$0xff] %v7507_v27  ;;  %10948 = vst [vmem:[#allocation74_spill] sm:$0xff] %v7511_v13  ;;  %v7513_v5 = vsel %vm2314_vm15, %v2021_v36, -1e+30  ;;  %v7524_v7 = vsel %vm1046_vm2, %v7242_v51, -1e+30  ;;  %vm2322_vm15 = vcmp.eq.s32.totalorder %v6988_v42, %v7273_v47 }
 0x2cd   : > { %10949 = vst [vmem:[#allocation75_spill] sm:$0xff] %v7513_v5  ;;  %v2450_v20 = vmax.f32 %v7507_v27, %v7513_v5  ;;  %10950 = vst [vmem:[#allocation76_spill] sm:$0xff] %v7524_v7  ;;  %v1184_v11 = vmax.f32 %v7524_v7, %v7527_v34 }
 0x2ce   : > { %v2025_v30 = vpop.f32.mrb[38].mxu0  ;;  %v7531_v36 = vpop.f32.mrb[58].mxu1 }
 0x2cf   : > { %10952 = vst [vmem:[#allocation78_spill] sm:$0xff] %v7531_v36  ;;  %v7533_v53 = vsel %vm2315_vm4, %v2025_v30, -1e+30  ;;  %1188 = vmax.xlane.f32.xlu0 %v1187_v3  ;;  %2451 = vmax.xlane.f32.xlu1 %v2450_v20  ;;  %v2027_v35 = vpop.f32.mrb[39].mxu0  ;;  %v7537_v5 = vpop.f32.mrb[59].mxu1  ;;  %v2187_v36 = vld [vmem:[#allocation2 + $0x1f0] sm:$0xff] }
 0x2d0   : > { %10953 = vst [vmem:[#allocation79_spill] sm:$0xff] %v7533_v53  ;;  %10954 = vst [vmem:[#allocation80_spill] sm:$0xff] %v7537_v5  ;;  %v7539_v51 = vsel %vm2316_vm5, %v2027_v35, -1e+30  ;;  %v7550_v20 = vsel %vm1052_vm6, %v7254_v60, -1e+30 }
 0x2d1   : > { %10955 = vst [vmem:[#allocation81_spill] sm:$0xff] %v7539_v51  ;;  %v2453_v3 = vmax.f32 %v7533_v53, %v7539_v51  ;;  %10956 = vst [vmem:[#allocation82_spill] sm:$0xff] %v7550_v20  ;;  %v1193_v54 = vmax.f32 %v7550_v20, %v7553_v37  ;;  %v919_v5 = vld [vmem:[#allocation2 + $0xf0] sm:$0xff] }
 0x2d2   : > { %v2031_v30 = vpop.f32.mrb[40].mxu0  ;;  %v7557_v35 = vpop.f32.mrb[60].mxu1 }
 0x2d3   : > { %10958 = vst [vmem:[#allocation84_spill] sm:$0xff] %v7557_v35  ;;  %v7559_v34 = vsel %vm2317_vm8, %v2031_v30, -1e+30  ;;  %1185 = vmax.xlane.f32.xlu1 %v1184_v11  ;;  %2454 = vmax.xlane.f32.xlu0 %v2453_v3  ;;  %v2033_v40 = vpop.f32.mrb[41].mxu0  ;;  %v7563_v51 = vpop.f32.mrb[61].mxu1  ;;  %v920_v35 = vld [vmem:[#allocation2 + $0xf8] sm:$0xff] }
 0x2d4   : > { %10959 = vst [vmem:[#allocation85_spill] sm:$0xff] %v7559_v34  ;;  %10960 = vst [vmem:[#allocation86_spill] sm:$0xff] %v7563_v51  ;;  %v7565_v60 = vsel %vm2318_vm9, %v2033_v40, -1e+30  ;;  %v7576_v3 = vsel %vm1050_vm10, %v7250_v4, -1e+30 }
 0x2d5   : > { %10961 = vst [vmem:[#allocation87_spill] sm:$0xff] %v7565_v60  ;;  %v2456_v11 = vmax.f32 %v7559_v34, %v7565_v60  ;;  %10962 = vst [vmem:[#allocation88_spill] sm:$0xff] %v7576_v3  ;;  %v1190_v2 = vmax.f32 %v7576_v3, %v7579_v38 }
 0x2d6   : > { %v2037_v30 = vpop.f32.mrb[42].mxu0  ;;  %v7583_v40 = vpop.f32.mrb[62].mxu1 }
 0x2d7   : > { %10964 = vst [vmem:[#allocation90_spill] sm:$0xff] %v7583_v40  ;;  %v7585_v53 = vsel %vm2319_vm12, %v2037_v30, -1e+30  ;;  %1194 = vmax.xlane.f32.xlu0 %v1193_v54  ;;  %2457 = vmax.xlane.f32.xlu1 %v2456_v11  ;;  %v2039_v39 = vpop.f32.mrb[43].mxu0  ;;  %v7589_v37 = vpop.f32.mrb[63].mxu1  ;;  %v2183_v40 = vld [vmem:[#allocation2 + $0x1d0] sm:$0xff] }
 0x2d8   : > { %10965 = vst [vmem:[#allocation91_spill] sm:$0xff] %v7585_v53  ;;  %10966 = vst [vmem:[#allocation92_spill] sm:$0xff] %v7589_v37  ;;  %v7591_v4 = vsel %vm2320_vm13, %v2039_v39, -1e+30 }
 0x2d9   : > { %10967 = vst [vmem:[#allocation93_spill] sm:$0xff] %v7591_v4  ;;  %v2459_v60 = vmax.f32 %v7585_v53, %v7591_v4 }
 0x2da   : > { %v2043_v20 = vpop.f32.mrb[44].mxu0  ;;  %v7599_v54 = vpop.f32.mrb[64].mxu1 }
 0x2db   : > { %10968 = vst [vmem:[#allocation94_spill] sm:$0xff] %v7599_v54  ;;  %v7601_v11 = vsel %vm2321_vm14, %v2043_v20, -1e+30  ;;  %1191 = vmax.xlane.f32.xlu1 %v1190_v2  ;;  %2460 = vmax.xlane.f32.xlu0 %v2459_v60  ;;  %v2045_v41 = vpop.f32.mrb[45].mxu0  ;;  %v7605_v30 = vpop.f32.mrb[65].mxu1 }
 0x2dc   : > { %10969 = vst [vmem:[#allocation95_spill] sm:$0xff] %v7601_v11  ;;  %10970 = vst [vmem:[#allocation96_spill] sm:$0xff] %v7605_v30  ;;  %v7607_v39 = vsel %vm2322_vm15, %v2045_v41, -1e+30  ;;  %v916_v30 = vld [vmem:[#allocation2 + $0xd8] sm:$0xff] }
 0x2dd   : > { %10971 = vst [vmem:[#allocation97_spill] sm:$0xff] %v7607_v39  ;;  %v2462_v4 = vmax.f32 %v7601_v11, %v7607_v39 }
 0x2de   : > { %v7611_v53 = vpop.f32.mrb[46].mxu0  ;;  %v7613_v38 = vpop.f32.mrb[66].mxu1 }
 0x2df   : > { %10972 = vst [vmem:[#allocation98_spill] sm:$0xff] %v7613_v38  ;;  %2463 = vmax.xlane.f32.xlu1 %v2462_v4  ;;  %v7615_v20 = vpop.f32.mrb[47].mxu0  ;;  %v7617_v2 = vpop.f32.mrb[67].mxu1  ;;  %v914_v4 = vld [vmem:[#allocation2 + $0xc8] sm:$0xff] }
 0x2e0   : > { %10973 = vst [vmem:[#allocation99_spill] sm:$0xff] %v7617_v2  ;;  %v913_v2 = vld [vmem:[#allocation2 + $0xc0] sm:$0xff] }
 0x2e2   : > { %v7619_v60 = vpop.f32.mrb[48].mxu0  ;;  %v7621_v3 = vpop.f32.mrb[68].mxu1 }
 0x2e3   : > { %10974 = vst [vmem:[#allocation100_spill] sm:$0xff] %v7621_v3  ;;  %v7623_v42 = vpop.f32.mrb[49].mxu0  ;;  %v7625_v41 = vpop.f32.mrb[69].mxu1  ;;  %v2181_v3 = vld [vmem:[#allocation2 + $0x1c0] sm:$0xff] }
 0x2e4   : > { %10975 = vst [vmem:[#allocation101_spill] sm:$0xff] %v7625_v41  ;;  %v2182_v41 = vld [vmem:[#allocation2 + $0x1c8] sm:$0xff] }
 0x2e6   : > { %v7627_v34 = vpop.f32.mrb[50].mxu0 }
 0x2e7   : > { %v7629_v39 = vpop.f32.mrb[51].mxu0 }
 0x2ea   : > { %v7631_v11 = vpop.f32.mrb[52].mxu0 }
 0x2eb   : > { %v7633_v38 = vpop.f32.mrb[53].mxu0 }
 0x2ee   : > { %v7635_v7 = vpop.f32.mrb[54].mxu0 }
 0x2ef   : > { %v7637_v27 = vpop.f32.mrb[55].mxu0 }
 0x2f0   : > { %998 = vperm.xlu1 %5942, %v914_v4  }
 0x2f1   : > { %995 = vperm.xlu0 %5941, %v913_v2   ;;  %v2184_v2 = vld [vmem:[#allocation2 + $0x1d8] sm:$0xff] }
 0x2f2   : > { %v7639_v33 = vpop.f32.mrb[56].mxu0 }
 0x2f3   : > { %v7641_v14 = vpop.f32.mrb[57].mxu0 }
 0x2f4   : > { %2264 = vperm.xlu1 %5942, %v2181_v3   ;;  %v917_v3 = vld [vmem:[#allocation2 + $0xe0] sm:$0xff] }
 0x2f5   : > { %2267 = vperm.xlu0 %5941, %v2182_v41  }
 0x2f6   : > { %v7643_v54 = vpop.f32.mrb[58].mxu0 }
 0x2f7   : > { %v7645_v37 = vpop.f32.mrb[59].mxu0 }
 0x2f8   : > { %1004 = vperm.xlu1 %5942, %v916_v30  }
 0x2f9   : > { %1001 = vperm.xlu0 %5941, %v915_v8   ;;  %v2186_v8 = vld [vmem:[#allocation2 + $0x1e8] sm:$0xff] }
 0x2fa   : > { %v7647_v28 = vpop.f32.mrb[60].mxu0 }
 0x2fb   : > { %v7649_v4 = vpop.f32.mrb[61].mxu0 }
 0x2fc   : > { %2270 = vperm.xlu1 %5942, %v2183_v40  }
 0x2fd   : > { %2273 = vperm.xlu0 %5941, %v2184_v2  }
 0x2fe   : > { %v7651_v19 = vpop.f32.mrb[62].mxu0 }
 0x2ff   : > { %v7653_v41 = vpop.f32.mrb[63].mxu0 }
 0x300   : > { %1010 = vperm.xlu1 %5942, %v918_v1  }
 0x301   : > { %1007 = vperm.xlu0 %5941, %v917_v3  }
 0x302   : > { %v7655_v51 = vpop.f32.mrb[64].mxu0 }
 0x303   : > { %v7657_v30 = vpop.f32.mrb[65].mxu0 }
 0x304   : > { %2276 = vperm.xlu1 %5942, %v2185_v26  }
 0x305   : > { %2279 = vperm.xlu0 %5941, %v2186_v8   ;;  %v7671_v8 = vpop.permute.xlu0 %977 }
 0x306   : > { %v7659_v40 = vpop.f32.mrb[66].mxu0 }
 0x307   : > { %10976 = vst [vmem:[#allocation102_spill] sm:$0xff] %v7659_v40  ;;  %v7661_v2 = vpop.f32.mrb[67].mxu0  ;;  %v7675_v40 = vpop.permute.xlu1 %980 }
 0x308   : > { %10977 = vst [vmem:[#allocation103_spill] sm:$0xff] %v7661_v2  ;;  %1016 = vperm.xlu1 %5942, %v920_v35  }
 0x309   : > { %1013 = vperm.xlu0 %5941, %v919_v5  }
 0x30a   : > { %v7663_v1 = vpop.f32.mrb[68].mxu0 }
 0x30b   : > { %10978 = vst [vmem:[#allocation104_spill] sm:$0xff] %v7663_v1  ;;  %v7665_v3 = vpop.f32.mrb[69].mxu0  ;;  %v7683_v1 = vpop.permute.xlu0 %2249 }
 0x30c   : > { %10979 = vst [vmem:[#allocation105_spill] sm:$0xff] %v7665_v3  ;;  %2282 = vperm.xlu1 %5942, %v2187_v36   ;;  %v7685_v36 = vpop.permute.xlu1 %2246 }
 0x30d   : > { %2285 = vperm.xlu0 %5941, %v2188_v52  }
 0x30e   : > { %v7667_v59 = vpop.f32.mrb[70].mxu0 }
 0x30f   : > { %10980 = vst [vmem:[#allocation106_spill] sm:$0xff] %v7667_v59  ;;  %v7669_v26 = vpop.f32.mrb[71].mxu0 }
 0x310   : > { %10981 = vst [vmem:[#allocation107_spill] sm:$0xff] %v7669_v26  ;;  %v7691_v26 = vpop.permute.xlu0 %983 }
 0x312   : > { %v7673_v12 = vpop.f32.mrb[72].mxu0 }
 0x313   : > { %10982 = vst [vmem:[#allocation108_spill] sm:$0xff] %v7673_v12  ;;  %v7677_v35 = vpop.f32.mrb[73].mxu0  ;;  %v7695_v12 = vpop.permute.xlu1 %986 }
 0x314   : > { %10983 = vst [vmem:[#allocation109_spill] sm:$0xff] %v7677_v35 }
 0x316   : > { %v7679_v5 = vpop.f32.mrb[74].mxu0 }
 0x317   : > { %10984 = vst [vmem:[#allocation110_spill] sm:$0xff] %v7679_v5  ;;  %v7681_v2 = vpop.f32.mrb[75].mxu0  ;;  %v7705_v13 = vpop.permute.xlu1 %2252 }
 0x318   : > { %10985 = vst [vmem:[#allocation111_spill] sm:$0xff] %v7681_v2  ;;  %v7703_v2 = vpop.permute.xlu0 %2255 }
 0x31a   : > { %v7687_v52 = vpop.f32.mrb[76].mxu0 }
 0x31b   : > { %10986 = vst [vmem:[#allocation112_spill] sm:$0xff] %v7687_v52  ;;  %v7689_v59 = vpop.f32.mrb[77].mxu0  ;;  %v10992_v52 = vld [vmem:[#allocation10_spill] sm:$0xff] }
 0x31c   : > { %10987 = vst [vmem:[#allocation113_spill] sm:$0xff] %v7689_v59  ;;  %vm1056_vm2 = vcmp.eq.s32.totalorder %v10992_v52, %v7193_v24  ;;  %vm1057_vm3 = vcmp.eq.s32.totalorder %v10992_v52, %v7196_v58  ;;  %v10994_v59 = vld [vmem:[#allocation35_spill] sm:$0xff] }
 0x31d   : > { %v7715_v31 = vsel %vm1057_vm3, %v10994_v59, -1e+30  ;;  %v7732_v59 = vpop.permute.xlu1 %992 }
 0x31e   : > { %v7693_v3 = vpop.f32.mrb[78].mxu0  ;;  %10995 = vst [vmem:[#allocation35_spill] sm:$0xff] %v7715_v31 }
 0x31f   : > { %10988 = vst [vmem:[#allocation114_spill] sm:$0xff] %v7693_v3  ;;  %v7697_v61 = vpop.f32.mrb[79].mxu0  ;;  %v7712_v3 = vsel %vm1056_vm2, %v7265_v49, -1e+30  ;;  %v10998_v49 = vld [vmem:[#allocation11_spill] sm:$0xff]  ;;  %vm1062_vm2 = vcmp.eq.s32.totalorder %v7671_v8, %v7193_v24 }
 0x320   : > { %10989 = vst [vmem:[#allocation115_spill] sm:$0xff] %v7697_v61  ;;  %10993 = vst [vmem:[#allocation10_spill] sm:$0xff] %v7712_v3  ;;  %v10997_v61 = vld [vmem:[#allocation33_spill] sm:$0xff]  ;;  %v1199_v52 = vmax.f32 %v7712_v3, %v7715_v31  ;;  %vm2323_vm6 = vcmp.eq.s32.totalorder %v10998_v49, %v7270_v46  ;;  %vm2324_vm7 = vcmp.eq.s32.totalorder %v10998_v49, %v7273_v47  ;;  %v11003_v3 = vld [vmem:[#allocation12_spill] sm:$0xff] }
 0x321   : > { %v11002_v31 = vld [vmem:[#allocation13_spill] sm:$0xff]  ;;  %vm2325_vm9 = vcmp.eq.s32.totalorder %v11003_v3, %v7270_v46  ;;  %vm2326_vm10 = vcmp.eq.s32.totalorder %v11003_v3, %v7273_v47  ;;  %v11004_v49 = vld [vmem:[#allocation36_spill] sm:$0xff] }
 0x322   : > { %v7699_v35 = vpop.f32.mrb[80].mxu0  ;;  %vm1058_vm8 = vcmp.eq.s32.totalorder %v11002_v31, %v7193_v24  ;;  %vm1059_vm11 = vcmp.eq.s32.totalorder %v11002_v31, %v7196_v58  ;;  %v7762_v43 = vsel %vm2325_vm9, %v7619_v60, -1e+30  ;;  %v7765_v3 = vsel %vm2326_vm10, %v7623_v42, -1e+30  ;;  %v11007_v31 = vld [vmem:[#allocation14_spill] sm:$0xff] }
 0x323   : > { %10990 = vst [vmem:[#allocation116_spill] sm:$0xff] %v7699_v35  ;;  %v7701_v5 = vpop.f32.mrb[81].mxu0  ;;  %v10996_v35 = vld [vmem:[#allocation9_spill] sm:$0xff]  ;;  %v7752_v62 = vsel %vm1058_vm8, %v11004_v49, -1e+30  ;;  %11006 = vst [vmem:[#allocation11_spill] sm:$0xff] %v7765_v3  ;;  %v7769_v49 = vpop.permute.xlu1 %2258  ;;  %vm1060_vm12 = vcmp.eq.s32.totalorder %v11007_v31, %v7193_v24  ;;  %vm1061_vm13 = vcmp.eq.s32.totalorder %v11007_v31, %v7196_v58  ;;  %vm2331_vm8 = vcmp.eq.s32.totalorder %v7685_v36, %v7270_v46 }
 0x324   : > { %10991 = vst [vmem:[#allocation117_spill] sm:$0xff] %v7701_v5  ;;  %vm1054_vm4 = vcmp.eq.s32.totalorder %v10996_v35, %v7193_v24  ;;  %vm1055_vm5 = vcmp.eq.s32.totalorder %v10996_v35, %v7196_v58  ;;  %v7721_v5 = vpop.permute.xlu0 %989  ;;  %v7738_v35 = vsel %vm2323_vm6, %v7611_v53, -1e+30  ;;  %v7780_v42 = vsel %vm1060_vm12, %v7297_v10, -1e+30  ;;  %v11011_v10 = vld [vmem:[#allocation16_spill] sm:$0xff] }
 0x325   : > { %v7724_v55 = vsel %vm1054_vm4, %v10997_v61, -1e+30  ;;  %v7735_v0 = vsel %vm1055_vm5, %v10999_v32, -1e+30  ;;  %11000 = vst [vmem:[#allocation9_spill] sm:$0xff] %v7738_v35  ;;  %11009 = vst [vmem:[#allocation34_spill] sm:$0xff] %v7780_v42  ;;  %vm2329_vm3 = vcmp.eq.s32.totalorder %v11011_v10, %v7270_v46  ;;  %vm2330_vm4 = vcmp.eq.s32.totalorder %v11011_v10, %v7273_v47 }
 0x326   : > { %v7741_v61 = vsel %vm2324_vm7, %v7615_v20, -1e+30  ;;  %v1196_v32 = vmax.f32 %v7724_v55, %v7735_v0  ;;  %v11005_v20 = vld [vmem:[#allocation38_spill] sm:$0xff]  ;;  %vm1063_vm5 = vcmp.eq.s32.totalorder %v7671_v8, %v7196_v58  ;;  %v7817_v10 = vsel %vm2330_vm4, %v7633_v38, -1e+30 }
 0x327   : > { %11001 = vst [vmem:[#allocation33_spill] sm:$0xff] %v7741_v61  ;;  %v2465_v53 = vmax.f32 %v7738_v35, %v7741_v61  ;;  %11012 = vst [vmem:[#allocation12_spill] sm:$0xff] %v7817_v10  ;;  %vm1064_vm6 = vcmp.eq.s32.totalorder %v7675_v40, %v7193_v24  ;;  %vm1065_vm7 = vcmp.eq.s32.totalorder %v7675_v40, %v7196_v58  ;;  %v7842_v40 = vsel %vm2331_vm8, %v7635_v7, -1e+30 }
 0x328   : > { %v7767_v45 = vpop.permute.xlu0 %2261  ;;  %vm2332_vm9 = vcmp.eq.s32.totalorder %v7685_v36, %v7273_v47  ;;  %vm2333_vm10 = vcmp.eq.s32.totalorder %v7683_v1, %v7270_v46  ;;  %vm2334_vm12 = vcmp.eq.s32.totalorder %v7683_v1, %v7273_v47  ;;  %vm2337_vm4 = vcmp.eq.s32.totalorder %v7703_v2, %v7270_v46 }
 0x329   : > { %vm1072_vm8 = vcmp.eq.s32.totalorder %v7732_v59, %v7193_v24 }
 0x32c   : > { %1200 = vmax.xlane.f32.xlu0 %v1199_v52  ;;  %v7759_v52 = vsel %vm1059_vm11, %v11005_v20, -1e+30  ;;  %v11008_v20 = vld [vmem:[#allocation15_spill] sm:$0xff]  ;;  %v1159_v35 = vpop.xlane.xlu0 %1158  ;;  %vm1066_vm11 = vcmp.eq.s32.totalorder %v7691_v26, %v7193_v24 }
 0x32d   : > { %vm2327_vm14 = vcmp.eq.s32.totalorder %v11008_v20, %v7270_v46  ;;  %v1202_v60 = vmax.f32 %v7752_v62, %v7759_v52  ;;  %vm2328_vm15 = vcmp.eq.s32.totalorder %v11008_v20, %v7273_v47  ;;  %v7804_v20 = vsel %vm1062_vm2, %v7321_v48, -1e+30  ;;  %v11014_v48 = vld [vmem:[#allocation30_spill] sm:$0xff] }
 0x32e   : > { %v7790_v31 = vsel %vm2327_vm14, %v7627_v34, -1e+30  ;;  %v7793_v61 = vsel %vm2328_vm15, %v7629_v39, -1e+30  ;;  %vm1068_vm14 = vcmp.eq.s32.totalorder %v7695_v12, %v7193_v24  ;;  %vm1069_vm15 = vcmp.eq.s32.totalorder %v7695_v12, %v7196_v58 }
 0x32f   : > { %v2471_v39 = vmax.f32 %v7790_v31, %v7793_v61  ;;  %vm2335_vm2 = vcmp.eq.s32.totalorder %v7705_v13, %v7270_v46 }
 0x330   : > { %1197 = vmax.xlane.f32.xlu1 %v1196_v32  ;;  %2466 = vmax.xlane.f32.xlu0 %v2465_v53  ;;  %v2468_v32 = vmax.f32 %v7762_v43, %v7765_v3  ;;  %v7787_v53 = vsel %vm1061_vm13, %v7303_v44, -1e+30  ;;  %v1156_v44 = vpop.xlane.xlu1 %1155  ;;  %v11013_v3 = vld [vmem:[#allocation29_spill] sm:$0xff]  ;;  %vm1067_vm13 = vcmp.eq.s32.totalorder %v7691_v26, %v7196_v58 }
 0x331   : > { %11010 = vst [vmem:[#allocation13_spill] sm:$0xff] %v7787_v53  ;;  %v1205_v34 = vmax.f32 %v7780_v42, %v7787_v53  ;;  %v1250_v53 = vsub.f32 %v11013_v3, %v1156_v44  ;;  %v7839_v3 = vsel %vm1065_vm7, %v7353_v50, -1e+30  ;;  %vm1071_vm7 = vcmp.eq.s32.totalorder %v7721_v5, %v7196_v58 }
 0x334   : > { %1203 = vmax.xlane.f32.xlu0 %v1202_v60  ;;  %2469 = vmax.xlane.f32.xlu1 %v2468_v32  ;;  %v7811_v60 = vsel %vm1063_vm5, %v7327_v23, -1e+30  ;;  %v7814_v32 = vsel %vm2329_vm3, %v7631_v11, -1e+30  ;;  %v1251_v23 = vsub.f32 %v11014_v48, %v1156_v44  ;;  %v7832_v11 = vsel %vm1064_vm6, %v7347_v16, -1e+30 }
 0x335   : > { %v1208_v38 = vmax.f32 %v7804_v20, %v7811_v60  ;;  %v2474_v8 = vmax.f32 %v7814_v32, %v7817_v10  ;;  %v7845_v44 = vsel %vm2332_vm9, %v7637_v27, -1e+30  ;;  %v1314_v16 = vmul.f32 1.442695, %v1250_v53  ;;  %v11016_v27 = vld [vmem:[#allocation32_spill] sm:$0xff] }
 0x336   : > { %v1316_v50 = vmul.f32 1.442695, %v1251_v23  ;;  %v1253_v7 = vsub.f32 %v11016_v27, %v1159_v35  ;;  %v1211_v36 = vmax.f32 %v7832_v11, %v7839_v3  ;;  %v7860_v53 = vsel %vm1066_vm11, %v7373_v17, -1e+30 }
 0x337   : > { %v7878_v17 = vsel %vm2334_vm12, %v7641_v14, -1e+30  ;;  %5943 = vpow2.f32 %v1314_v16  ;;  %vm2336_vm3 = vcmp.eq.s32.totalorder %v7705_v13, %v7273_v47  ;;  %vm2338_vm5 = vcmp.eq.s32.totalorder %v7703_v2, %v7273_v47 }
 0x338   : > { %v7820_v42 = vpop.xlane.xlu0 %2424  ;;  %1206 = vmax.xlane.f32.xlu1 %v1205_v34  ;;  %2472 = vmax.xlane.f32.xlu0 %v2471_v39  ;;  %v11015_v34 = vld [vmem:[#allocation31_spill] sm:$0xff]  ;;  %5945 = vpow2.f32 %v1316_v50  ;;  %v1320_v14 = vmul.f32 1.442695, %v1253_v7  ;;  %v7911_v50 = vsel %vm2335_vm2, %v7643_v54, -1e+30  ;;  %vm1070_vm6 = vcmp.eq.s32.totalorder %v7721_v5, %v7193_v24 }
 0x339   : > { %v1252_v39 = vsub.f32 %v11015_v34, %v1159_v35  ;;  %v7875_v35 = vsel %vm2333_vm10, %v7639_v33, -1e+30  ;;  %v11018_v33 = vld [vmem:[#allocation39_spill] sm:$0xff]  ;;  %v7914_v7 = vsel %vm2336_vm3, %v7645_v37, -1e+30  ;;  %vm1073_vm9 = vcmp.eq.s32.totalorder %v7732_v59, %v7196_v58 }
 0x33a   : > { %v2520_v1 = vsub.f32 %v11018_v33, %v7820_v42  ;;  %11019 = vst [vmem:[#allocation36_spill] sm:$0xff] %v7914_v7  ;;  %v7969_v33 = vsel %vm1072_vm8, %v7451_v29, -1e+30  ;;  %vm2339_vm10 = vcmp.eq.s32.totalorder %v7769_v49, %v7270_v46  ;;  %vm2340_vm11 = vcmp.eq.s32.totalorder %v7769_v49, %v7273_v47 }
 0x33b   : > { %v1318_v26 = vmul.f32 1.442695, %v1252_v39  ;;  %v7898_v39 = vsel %vm1068_vm14, %v7399_v21, -1e+30  ;;  %11026 = vst [vmem:[#allocation31_spill] sm:$0xff] %v7969_v33  ;;  %vm2341_vm12 = vcmp.eq.s32.totalorder %v7767_v45, %v7270_v46 }
 0x33c   : > { %v7850_v48 = vpop.xlane.xlu0 %1164  ;;  %v2428_v10 = vpop.xlane.xlu1 %2427  ;;  %1209 = vmax.xlane.f32.xlu0 %v1208_v38  ;;  %2475 = vmax.xlane.f32.xlu1 %v2474_v8  ;;  %v2477_v38 = vmax.f32 %v7842_v40, %v7845_v44  ;;  %v7867_v8 = vsel %vm1067_vm13, %v7379_v18, -1e+30  ;;  %v11017_v18 = vld [vmem:[#allocation37_spill] sm:$0xff]  ;;  %v2585_v12 = vmul.f32 1.442695, %v2520_v1  ;;  %vm2342_vm13 = vcmp.eq.s32.totalorder %v7767_v45, %v7273_v47 }
 0x33d   : > { %v2519_v23 = vsub.f32 %v11017_v18, %v7820_v42  ;;  %v1214_v16 = vmax.f32 %v7860_v53, %v7867_v8  ;;  %v7908_v42 = vsel %vm1069_vm15, %v7405_v57, -1e+30  ;;  %5947 = vpow2.f32 %v1318_v26 }
 0x33e   : > { %v2521_v13 = vsub.f32 %v7301_v9, %v2428_v10  ;;  %5949 = vpow2.f32 %v1320_v14  ;;  %v2522_v37 = vsub.f32 %v7307_v15, %v2428_v10  ;;  %v1217_v54 = vmax.f32 %v7898_v39, %v7908_v42 }
 0x33f   : > { %v2583_v21 = vmul.f32 1.442695, %v2519_v23  ;;  %v7931_v26 = vsel %vm1070_vm6, %v7425_v22, -1e+30  ;;  %v2483_v9 = vmax.f32 %v7911_v50, %v7914_v7  ;;  %v7938_v18 = vsel %vm1071_vm7, %v7431_v25, -1e+30 }
 0x340   : > { %v7884_v34 = vpop.xlane.xlu1 %1161  ;;  %v7886_v27 = vpop.xlane.xlu0 %2430  ;;  %1212 = vmax.xlane.f32.xlu1 %v1211_v36  ;;  %2478 = vmax.xlane.f32.xlu0 %v2477_v38  ;;  %v2480_v36 = vmax.f32 %v7875_v35, %v7878_v17  ;;  %11020 = vst [vmem:[#allocation38_spill] sm:$0xff] %v7931_v26  ;;  %11021 = vst [vmem:[#allocation14_spill] sm:$0xff] %v7938_v18  ;;  %v7944_v15 = vsel %vm2337_vm4, %v7647_v28, -1e+30  ;;  %v7950_v22 = vsel %vm2338_vm5, %v7649_v4, -1e+30 }
 0x341   : > { %11022 = vst [vmem:[#allocation15_spill] sm:$0xff] %v7944_v15  ;;  %11023 = vst [vmem:[#allocation16_spill] sm:$0xff] %v7950_v22  ;;  %5951 = vpow2.f32 %v2583_v21  ;;  %v2587_v5 = vmul.f32 1.442695, %v2521_v13  ;;  %v2589_v25 = vmul.f32 1.442695, %v2522_v37  ;;  %v7956_v14 = vpop.eup %5943  ;;  %v1220_v28 = vmax.f32 %v7931_v26, %v7938_v18 }
 0x342   : > { %5953 = vpow2.f32 %v2585_v12  ;;  %11024 = vst [vmem:[#allocation29_spill] sm:$0xff] %v7956_v14  ;;  %v2486_v4 = vmax.f32 %v7944_v15, %v7950_v22  ;;  %v7966_v2 = vpop.eup %5945  ;;  %v7972_v1 = vsel %vm1073_vm9, %v7457_v56, -1e+30  ;;  %v7991_v13 = vsel %vm2339_vm10, %v7651_v19, -1e+30 }
 0x343   : > { %11025 = vst [vmem:[#allocation30_spill] sm:$0xff] %v7966_v2  ;;  %11027 = vst [vmem:[#allocation32_spill] sm:$0xff] %v7972_v1  ;;  %5955 = vpow2.f32 %v2587_v5  ;;  %v1223_v21 = vmax.f32 %v7969_v33, %v7972_v1  ;;  %v1442_v56 = vadd.f32 %v7966_v2, %v7956_v14  ;;  %v7994_v12 = vsel %vm2340_vm11, %v7653_v41, -1e+30  ;;  %v11040_v1 = vld [vmem:[#allocation42_spill] sm:$0xff] }
 0x344   : > { %v7921_v38 = vpop.xlane.xlu0 %1170  ;;  %v7923_v57 = vpop.xlane.xlu1 %2433  ;;  %1215 = vmax.xlane.f32.xlu0 %v1214_v16  ;;  %2481 = vmax.xlane.f32.xlu1 %v2480_v36  ;;  %5957 = vpow2.f32 %v2589_v25  ;;  %11030 = vst [vmem:[#allocation118_spill] sm:$0xff] %v7991_v13  ;;  %11031 = vst [vmem:[#allocation119_spill] sm:$0xff] %v7994_v12  ;;  %v2489_v49 = vmax.f32 %v7991_v13, %v7994_v12  ;;  %v8013_v5 = vsel %vm2341_vm12, %v7655_v51, -1e+30  ;;  %v8016_v25 = vsel %vm2342_vm13, %v7657_v30, -1e+30 }
 0x345   : > { %11034 = vst [vmem:[#allocation122_spill] sm:$0xff] %v8013_v5  ;;  %11035 = vst [vmem:[#allocation123_spill] sm:$0xff] %v8016_v25  ;;  %v2492_v45 = vmax.f32 %v8013_v5, %v8016_v25  ;;  %v1254_v2 = vsub.f32 %v7317_v63, %v7884_v34  ;;  %v2523_v33 = vsub.f32 %v11040_v1, %v7886_v27  ;;  %v11041_v63 = vld [vmem:[#allocation43_spill] sm:$0xff] }
 0x346   : > { %v2524_v22 = vsub.f32 %v11041_v63, %v7886_v27 }
 0x347   : > { %v7978_v59 = vpop.eup %5947 }
 0x348   : > { %v7952_v10 = vpop.xlane.xlu1 %1167  ;;  %v7954_v23 = vpop.xlane.xlu0 %2436  ;;  %1218 = vmax.xlane.f32.xlu1 %v1217_v54  ;;  %2484 = vmax.xlane.f32.xlu0 %v2483_v9  ;;  %11028 = vst [vmem:[#allocation37_spill] sm:$0xff] %v7978_v59 }
 0x349   : > { %v7988_v29 = vpop.eup %5949 }
 0x34a   : > { %11029 = vst [vmem:[#allocation39_spill] sm:$0xff] %v7988_v29  ;;  %v1445_v19 = vadd.f32 %v7988_v29, %v7978_v59  ;;  %v1256_v29 = vsub.f32 %v7293_v6, %v7850_v48 }
 0x34b   : > { %v8000_v9 = vpop.eup %5951 }
 0x34c   : > { %v7974_v16 = vpop.xlane.xlu0 %1176  ;;  %v7976_v36 = vpop.xlane.xlu1 %2439  ;;  %1221 = vmax.xlane.f32.xlu0 %v1220_v28  ;;  %2487 = vmax.xlane.f32.xlu1 %v2486_v4  ;;  %11032 = vst [vmem:[#allocation120_spill] sm:$0xff] %v8000_v9  ;;  %v1326_v25 = vmul.f32 1.442695, %v1256_v29  ;;  %v11043_v29 = vld [vmem:[#allocation47_spill] sm:$0xff] }
 0x34d   : > { %v8010_v41 = vpop.eup %5953 }
 0x34e   : > { %11033 = vst [vmem:[#allocation121_spill] sm:$0xff] %v8010_v41  ;;  %5959 = vpow2.f32 %v1326_v25 }
 0x350   : > { %v7996_v37 = vpop.xlane.xlu1 %1173  ;;  %v7998_v54 = vpop.xlane.xlu0 %2442  ;;  %1443 = vadd.xlane.f32.xlu0 %v1442_v56  ;;  %1224 = vmax.xlane.f32.xlu1 %v1223_v21  ;;  %v2711_v56 = vadd.f32 %v8010_v41, %v8000_v9 }
 0x351   : > { %v8022_v21 = vpop.eup %5955 }
 0x352   : > { %11036 = vst [vmem:[#allocation124_spill] sm:$0xff] %v8022_v21  ;;  %v8028_v59 = vpop.eup %5957 }
 0x353   : > { %11037 = vst [vmem:[#allocation125_spill] sm:$0xff] %v8028_v59 }
 0x354   : > { %v8018_v28 = vpop.xlane.xlu0 %1182  ;;  %v8020_v4 = vpop.xlane.xlu1 %2445  ;;  %1446 = vadd.xlane.f32.xlu1 %v1445_v19  ;;  %2490 = vmax.xlane.f32.xlu0 %v2489_v49  ;;  %v2714_v19 = vadd.f32 %v8028_v59, %v8022_v21  ;;  %v11039_v21 = vld [vmem:[#allocation40_spill] sm:$0xff] }
 0x355   : > { %v1257_v59 = vsub.f32 %v11039_v21, %v7850_v48  ;;  %v11042_v48 = vld [vmem:[#allocation46_spill] sm:$0xff]  ;;  %v2526_v21 = vsub.f32 %v11043_v29, %v7923_v57  ;;  %v11047_v29 = vld [vmem:[#allocation49_spill] sm:$0xff] }
 0x357   : > { %v1328_v6 = vmul.f32 1.442695, %v1257_v59  ;;  %v2593_v59 = vmul.f32 1.442695, %v2524_v22 }
 0x358   : > { %v8030_v51 = vpop.xlane.xlu1 %1179  ;;  %v8032_v30 = vpop.xlane.xlu0 %2448  ;;  %2712 = vadd.xlane.f32.xlu0 %v2711_v56  ;;  %2493 = vmax.xlane.f32.xlu1 %v2492_v45  ;;  %v11038_v45 = vld [vmem:[#allocation41_spill] sm:$0xff] }
 0x359   : > { %v1255_v56 = vsub.f32 %v11038_v45, %v7884_v34  ;;  %v2525_v34 = vsub.f32 %v11042_v48, %v7923_v57  ;;  %v11044_v45 = vld [vmem:[#allocation44_spill] sm:$0xff] }
 0x35a   : > { %v1260_v1 = vsub.f32 %v11044_v45, %v7921_v38  ;;  %v1259_v45 = vsub.f32 %v11047_v29, %v7952_v10 }
 0x35b   : > { %v1324_v12 = vmul.f32 1.442695, %v1255_v56  ;;  %v2595_v27 = vmul.f32 1.442695, %v2525_v34  ;;  %v8081_v34 = vpop.eup %5959 }
 0x35c   : > { %v8036_v49 = vpop.xlane.xlu0 %1188  ;;  %v8038_v14 = vpop.xlane.xlu1 %2451  ;;  %2715 = vadd.xlane.f32.xlu1 %v2714_v19  ;;  %v1322_v19 = vmul.f32 1.442695, %v1254_v2  ;;  %v2591_v2 = vmul.f32 1.442695, %v2523_v33  ;;  %v11046_v33 = vld [vmem:[#allocation48_spill] sm:$0xff]  ;;  %11048 = vst [vmem:[#allocation41_spill] sm:$0xff] %v8081_v34 }
 0x35d   : > { %v1258_v48 = vsub.f32 %v11046_v33, %v7952_v10  ;;  %v11054_v10 = vld [vmem:[#allocation72_spill] sm:$0xff]  ;;  %v11056_v33 = vld [vmem:[#allocation74_spill] sm:$0xff] }
 0x35e   : > { %5961 = vpow2.f32 %v1322_v19  ;;  %v2597_v19 = vmul.f32 1.442695, %v2526_v21  ;;  %v11051_v21 = vld [vmem:[#allocation68_spill] sm:$0xff] }
 0x35f   : > { %5963 = vpow2.f32 %v1324_v12  ;;  %v11045_v12 = vld [vmem:[#allocation45_spill] sm:$0xff]  ;;  %v1330_v26 = vmul.f32 1.442695, %v1258_v48  ;;  %v11061_v48 = vld [vmem:[#allocation102_spill] sm:$0xff] }
 0x360   : > { %v8042_v9 = vpop.xlane.xlu1 %1185  ;;  %v8044_v41 = vpop.xlane.xlu0 %2454  ;;  %5965 = vpow2.f32 %v1328_v6  ;;  %v1261_v63 = vsub.f32 %v11045_v12, %v7921_v38  ;;  %v1334_v6 = vmul.f32 1.442695, %v1260_v1 }
 0x361   : > { %5967 = vpow2.f32 %v2591_v2  ;;  %v11049_v2 = vld [vmem:[#allocation66_spill] sm:$0xff] }
 0x362   : > { %5969 = vpow2.f32 %v2593_v59 }
 0x363   : > { %5971 = vpow2.f32 %v2595_v27 }
 0x364   : > { %v8052_v5 = vpop.xlane.xlu1 %2457  ;;  %v8054_v13 = vpop.xlane.xlu0 %1194  ;;  %5973 = vpow2.f32 %v2597_v19  ;;  %v1332_v19 = vmul.f32 1.442695, %v1259_v45 }
 0x365   : > { %5975 = vpow2.f32 %v1334_v6 }
 0x366   : > { %5977 = vpow2.f32 %v1330_v26  ;;  %v11071_v26 = vld [vmem:[#allocation55_spill] sm:$0xff] }
 0x367   : > { %5979 = vpow2.f32 %v1332_v19 }
 0x368   : > { %v8060_v15 = vpop.xlane.xlu1 %1191  ;;  %v8068_v25 = vpop.xlane.xlu0 %2460 }
 0x369   : > { %v8090_v1 = vpop.eup %5961 }
 0x36a   : > { %11053 = vst [vmem:[#allocation43_spill] sm:$0xff] %v8090_v1  ;;  %v8100_v29 = vpop.eup %5963 }
 0x36b   : > { %11058 = vst [vmem:[#allocation44_spill] sm:$0xff] %v8100_v29 }
 0x36c   : > { %v8070_v56 = vpop.xlane.xlu1 %2463 }
 0x370   : > { %v996_v57 = vpop.permute.xlu0 %995  ;;  %v999_v22 = vpop.permute.xlu1 %998 }
 0x371   : > { %vm1074_vm14 = vcmp.eq.s32.totalorder %v996_v57, %v7193_v24  ;;  %vm1075_vm15 = vcmp.eq.s32.totalorder %v996_v57, %v7196_v58  ;;  %vm1076_vm2 = vcmp.eq.s32.totalorder %v999_v22, %v7193_v24  ;;  %vm1077_vm3 = vcmp.eq.s32.totalorder %v999_v22, %v7196_v58  ;;  %v8104_v22 = vpop.eup %5965 }
 0x372   : > { %v8084_v38 = vsel %vm1074_vm14, %v11049_v2, -1e+30  ;;  %v8087_v59 = vsel %vm1075_vm15, %v11051_v21, -1e+30  ;;  %v8093_v12 = vsel %vm1076_vm2, %v11054_v10, -1e+30  ;;  %v1451_v45 = vadd.f32 %v8104_v22, %v8081_v34 }
 0x373   : > { %11050 = vst [vmem:[#allocation40_spill] sm:$0xff] %v8084_v38  ;;  %11052 = vst [vmem:[#allocation42_spill] sm:$0xff] %v8087_v59  ;;  %v8096_v57 = vsel %vm1077_vm3, %v11056_v33, -1e+30  ;;  %v1226_v27 = vmax.f32 %v8084_v38, %v8087_v59  ;;  %v1336_v10 = vmul.f32 1.442695, %v1261_v63  ;;  %v1448_v33 = vadd.f32 %v8100_v29, %v8090_v1 }
 0x374   : > { %11055 = vst [vmem:[#allocation46_spill] sm:$0xff] %v8093_v12  ;;  %11057 = vst [vmem:[#allocation47_spill] sm:$0xff] %v8096_v57  ;;  %v2268_v2 = vpop.permute.xlu0 %2267  ;;  %v2265_v18 = vpop.permute.xlu1 %2264  ;;  %v1229_v21 = vmax.f32 %v8093_v12, %v8096_v57  ;;  %v11060_v57 = vld [vmem:[#allocation50_spill] sm:$0xff]  ;;  %v11062_v38 = vld [vmem:[#allocation103_spill] sm:$0xff] }
 0x375   : > { %11059 = vst [vmem:[#allocation45_spill] sm:$0xff] %v8104_v22  ;;  %vm2343_vm4 = vcmp.eq.s32.totalorder %v2265_v18, %v7270_v46  ;;  %vm2344_vm5 = vcmp.eq.s32.totalorder %v2265_v18, %v7273_v47  ;;  %1227 = vmax.xlane.f32.xlu0 %v1226_v27  ;;  %vm2345_vm6 = vcmp.eq.s32.totalorder %v2268_v2, %v7270_v46  ;;  %v8122_v27 = vpop.eup %5967  ;;  %v11064_v63 = vld [vmem:[#allocation51_spill] sm:$0xff]  ;;  %v11067_v1 = vld [vmem:[#allocation105_spill] sm:$0xff]  ;;  %5981 = vpow2.f32 %v1336_v10 }
 0x376   : > { %1230 = vmax.xlane.f32.xlu1 %v1229_v21  ;;  %vm2346_vm7 = vcmp.eq.s32.totalorder %v2268_v2, %v7273_v47  ;;  %v2527_v12 = vsub.f32 %v11060_v57, %v7954_v23  ;;  %v8115_v59 = vsel %vm2343_vm4, %v11061_v48, -1e+30  ;;  %v8118_v18 = vsel %vm2344_vm5, %v11062_v38, -1e+30  ;;  %11063 = vst [vmem:[#allocation48_spill] sm:$0xff] %v8122_v27  ;;  %v11065_v2 = vld [vmem:[#allocation104_spill] sm:$0xff]  ;;  %v8132_v48 = vpop.eup %5969 }
 0x377   : > { %v2528_v6 = vsub.f32 %v11064_v63, %v7954_v23  ;;  %v8127_v21 = vsel %vm2345_vm6, %v11065_v2, -1e+30  ;;  %v8130_v57 = vsel %vm2346_vm7, %v11067_v1, -1e+30  ;;  %11069 = vst [vmem:[#allocation68_spill] sm:$0xff] %v8132_v48  ;;  %v11070_v38 = vld [vmem:[#allocation54_spill] sm:$0xff]  ;;  %v2530_v22 = vsub.f32 %v11071_v26, %v7976_v36  ;;  %v8140_v2 = vpop.eup %5971 }
 0x378   : > { %11066 = vst [vmem:[#allocation49_spill] sm:$0xff] %v8127_v21  ;;  %11068 = vst [vmem:[#allocation66_spill] sm:$0xff] %v8130_v57  ;;  %v2529_v29 = vsub.f32 %v11070_v38, %v7976_v36  ;;  %v1002_v34 = vpop.permute.xlu0 %1001  ;;  %v1005_v23 = vpop.permute.xlu1 %1004  ;;  %v2495_v63 = vmax.f32 %v8115_v59, %v8118_v18  ;;  %v2599_v1 = vmul.f32 1.442695, %v2527_v12  ;;  %v11074_v36 = vld [vmem:[#allocation52_spill] sm:$0xff] }
 0x379   : > { %1449 = vadd.xlane.f32.xlu0 %v1448_v33  ;;  %11072 = vst [vmem:[#allocation72_spill] sm:$0xff] %v8140_v2  ;;  %v2498_v33 = vmax.f32 %v8127_v21, %v8130_v57  ;;  %v8144_v19 = vpop.eup %5973  ;;  %v2601_v7 = vmul.f32 1.442695, %v2528_v6  ;;  %vm1078_vm8 = vcmp.eq.s32.totalorder %v1002_v34, %v7193_v24  ;;  %vm1079_vm9 = vcmp.eq.s32.totalorder %v1002_v34, %v7196_v58  ;;  %v11076_v57 = vld [vmem:[#allocation78_spill] sm:$0xff] }
 0x37a   : > { %1452 = vadd.xlane.f32.xlu1 %v1451_v45  ;;  %11073 = vst [vmem:[#allocation74_spill] sm:$0xff] %v8144_v19  ;;  %v2603_v10 = vmul.f32 1.442695, %v2529_v29  ;;  %vm1080_vm10 = vcmp.eq.s32.totalorder %v1005_v23, %v7193_v24  ;;  %vm1081_vm11 = vcmp.eq.s32.totalorder %v1005_v23, %v7196_v58  ;;  %v1264_v12 = vsub.f32 %v11074_v36, %v7974_v16  ;;  %v11075_v45 = vld [vmem:[#allocation53_spill] sm:$0xff]  ;;  %v11077_v29 = vld [vmem:[#allocation80_spill] sm:$0xff] }
 0x37b   : > { %v1265_v38 = vsub.f32 %v11075_v45, %v7974_v16  ;;  %v2605_v26 = vmul.f32 1.442695, %v2530_v22  ;;  %v2717_v6 = vadd.f32 %v8132_v48, %v8122_v27  ;;  %5983 = vpow2.f32 %v2599_v1  ;;  %v11079_v36 = vld [vmem:[#allocation56_spill] sm:$0xff]  ;;  %v11082_v27 = vld [vmem:[#allocation86_spill] sm:$0xff] }
 0x37c   : > { %v8157_v34 = vsel %vm1078_vm8, %v11076_v57, -1e+30  ;;  %v2720_v23 = vadd.f32 %v8144_v19, %v8140_v2  ;;  %5985 = vpow2.f32 %v2601_v7  ;;  %v1262_v16 = vsub.f32 %v11079_v36, %v7996_v37  ;;  %v11080_v22 = vld [vmem:[#allocation84_spill] sm:$0xff]  ;;  %v11084_v57 = vld [vmem:[#allocation57_spill] sm:$0xff]  ;;  %v2271_v48 = vpop.permute.xlu1 %2270  ;;  %v2274_v7 = vpop.permute.xlu0 %2273 }
 0x37d   : > { %2496 = vmax.xlane.f32.xlu0 %v2495_v63  ;;  %v8160_v63 = vsel %vm1079_vm9, %v11077_v29, -1e+30  ;;  %v8169_v45 = vsel %vm1080_vm10, %v11080_v22, -1e+30  ;;  %v8172_v1 = vsel %vm1081_vm11, %v11082_v27, -1e+30  ;;  %5987 = vpow2.f32 %v2603_v10 }
 0x37e   : > { %2499 = vmax.xlane.f32.xlu1 %v2498_v33  ;;  %v8164_v33 = vpop.eup %5975  ;;  %11081 = vst [vmem:[#allocation102_spill] sm:$0xff] %v8169_v45  ;;  %11083 = vst [vmem:[#allocation103_spill] sm:$0xff] %v8172_v1  ;;  %v1263_v29 = vsub.f32 %v11084_v57, %v7996_v37  ;;  %v1342_v19 = vmul.f32 1.442695, %v1264_v12  ;;  %5989 = vpow2.f32 %v2605_v26  ;;  %v1232_v36 = vmax.f32 %v8157_v34, %v8160_v63  ;;  %v11088_v12 = vld [vmem:[#allocation58_spill] sm:$0xff]  ;;  %v11090_v57 = vld [vmem:[#allocation107_spill] sm:$0xff] }
 0x37f   : > { %11078 = vst [vmem:[#allocation50_spill] sm:$0xff] %v8164_v33  ;;  %v8176_v2 = vpop.eup %5977  ;;  %v1344_v21 = vmul.f32 1.442695, %v1265_v38  ;;  %v1235_v27 = vmax.f32 %v8169_v45, %v8172_v1  ;;  %vm2347_vm12 = vcmp.eq.s32.totalorder %v2271_v48, %v7270_v46  ;;  %vm2348_vm13 = vcmp.eq.s32.totalorder %v2271_v48, %v7273_v47 }
 0x380   : > { %11085 = vst [vmem:[#allocation51_spill] sm:$0xff] %v8176_v2  ;;  %v8180_v22 = vpop.eup %5979  ;;  %v1340_v37 = vmul.f32 1.442695, %v1263_v29  ;;  %vm2349_vm14 = vcmp.eq.s32.totalorder %v2274_v7, %v7270_v46  ;;  %vm2350_vm15 = vcmp.eq.s32.totalorder %v2274_v7, %v7273_v47  ;;  %5991 = vpow2.f32 %v1342_v19  ;;  %v11092_v7 = vld [vmem:[#allocation59_spill] sm:$0xff] }
 0x381   : > { %2718 = vadd.xlane.f32.xlu0 %v2717_v6  ;;  %11086 = vst [vmem:[#allocation104_spill] sm:$0xff] %v8180_v22  ;;  %v8184_v10 = vpop.eup %5981  ;;  %v1338_v6 = vmul.f32 1.442695, %v1262_v16  ;;  %v2531_v38 = vsub.f32 %v11088_v12, %v7998_v54  ;;  %v1454_v26 = vadd.f32 %v8180_v22, %v8176_v2  ;;  %5993 = vpow2.f32 %v1344_v21  ;;  %v11095_v12 = vld [vmem:[#allocation109_spill] sm:$0xff]  ;;  %v1008_v2 = vpop.permute.xlu0 %1007 }
 0x382   : > { %2721 = vadd.xlane.f32.xlu1 %v2720_v23  ;;  %11087 = vst [vmem:[#allocation105_spill] sm:$0xff] %v8184_v10  ;;  %v11089_v23 = vld [vmem:[#allocation106_spill] sm:$0xff]  ;;  %v8198_v48 = vsel %vm2348_vm13, %v11090_v57, -1e+30  ;;  %v1457_v29 = vadd.f32 %v8184_v10, %v8164_v33  ;;  %v2532_v19 = vsub.f32 %v11092_v7, %v7998_v54  ;;  %v8208_v1 = vsel %vm2350_vm15, %v11095_v12, -1e+30  ;;  %v1011_v12 = vpop.permute.xlu1 %1010 }
 0x383   : > { %v8195_v16 = vsel %vm2347_vm12, %v11089_v23, -1e+30  ;;  %11091 = vst [vmem:[#allocation54_spill] sm:$0xff] %v8198_v48  ;;  %5995 = vpow2.f32 %v1338_v6  ;;  %11096 = vst [vmem:[#allocation52_spill] sm:$0xff] %v8208_v1  ;;  %v11098_v23 = vld [vmem:[#allocation62_spill] sm:$0xff]  ;;  %v11100_v54 = vld [vmem:[#allocation60_spill] sm:$0xff]  ;;  %vm1082_vm2 = vcmp.eq.s32.totalorder %v1008_v2, %v7193_v24  ;;  %vm1083_vm3 = vcmp.eq.s32.totalorder %v1008_v2, %v7196_v58 }
 0x384   : > { %5997 = vpow2.f32 %v1340_v37  ;;  %v2533_v57 = vsub.f32 %v11098_v23, %v8020_v4  ;;  %v2607_v6 = vmul.f32 1.442695, %v2531_v38  ;;  %v1268_v7 = vsub.f32 %v11100_v54, %v8018_v28  ;;  %v11103_v37 = vld [vmem:[#allocation61_spill] sm:$0xff] }
 0x385   : > { %1233 = vmax.xlane.f32.xlu0 %v1232_v36  ;;  %v11093_v36 = vld [vmem:[#allocation108_spill] sm:$0xff]  ;;  %v8210_v21 = vpop.eup %5983  ;;  %v1269_v23 = vsub.f32 %v11103_v37, %v8018_v28  ;;  %v2609_v38 = vmul.f32 1.442695, %v2532_v19  ;;  %vm1084_vm4 = vcmp.eq.s32.totalorder %v1011_v12, %v7193_v24  ;;  %vm1085_vm5 = vcmp.eq.s32.totalorder %v1011_v12, %v7196_v58 }
 0x386   : > { %1236 = vmax.xlane.f32.xlu1 %v1235_v27  ;;  %v8205_v27 = vsel %vm2349_vm14, %v11093_v36, -1e+30  ;;  %11097 = vst [vmem:[#allocation53_spill] sm:$0xff] %v8210_v21  ;;  %v8214_v33 = vpop.eup %5985  ;;  %v11101_v36 = vld [vmem:[#allocation63_spill] sm:$0xff]  ;;  %5999 = vpow2.f32 %v2607_v6  ;;  %v1350_v54 = vmul.f32 1.442695, %v1268_v7 }
 0x387   : > { %11094 = vst [vmem:[#allocation55_spill] sm:$0xff] %v8205_v27  ;;  %11099 = vst [vmem:[#allocation78_spill] sm:$0xff] %v8214_v33  ;;  %v2534_v10 = vsub.f32 %v11101_v36, %v8020_v4  ;;  %v8222_v22 = vpop.eup %5987  ;;  %v2611_v4 = vmul.f32 1.442695, %v2533_v57  ;;  %v2723_v36 = vadd.f32 %v8214_v33, %v8210_v21  ;;  %v1352_v37 = vmul.f32 1.442695, %v1269_v23 }
 0x388   : > { %11102 = vst [vmem:[#allocation80_spill] sm:$0xff] %v8222_v22  ;;  %v8228_v45 = vpop.eup %5989  ;;  %6001 = vpow2.f32 %v2609_v38  ;;  %v11108_v6 = vld [vmem:[#allocation64_spill] sm:$0xff]  ;;  %v11116_v38 = vld [vmem:[#allocation67_spill] sm:$0xff] }
 0x389   : > { %1455 = vadd.xlane.f32.xlu0 %v1454_v26  ;;  %v2501_v26 = vmax.f32 %v8195_v16, %v8198_v48  ;;  %11104 = vst [vmem:[#allocation56_spill] sm:$0xff] %v8228_v45  ;;  %v2613_v28 = vmul.f32 1.442695, %v2534_v10  ;;  %v2726_v2 = vadd.f32 %v8228_v45, %v8222_v22  ;;  %v1266_v7 = vsub.f32 %v11108_v6, %v8030_v51  ;;  %v11109_v10 = vld [vmem:[#allocation94_spill] sm:$0xff]  ;;  %v2277_v22 = vpop.permute.xlu1 %2276 }
 0x38a   : > { %1458 = vadd.xlane.f32.xlu1 %v1457_v29  ;;  %v2504_v29 = vmax.f32 %v8205_v27, %v8208_v1  ;;  %v11105_v1 = vld [vmem:[#allocation90_spill] sm:$0xff]  ;;  %v11106_v27 = vld [vmem:[#allocation92_spill] sm:$0xff]  ;;  %v8244_v57 = vpop.eup %5991  ;;  %v8249_v12 = vsel %vm1084_vm4, %v11109_v10, -1e+30  ;;  %6003 = vpow2.f32 %v2611_v4  ;;  %v2535_v6 = vsub.f32 %v11116_v38, %v8032_v30  ;;  %v11117_v10 = vld [vmem:[#allocation69_spill] sm:$0xff] }
 0x38b   : > { %v8237_v19 = vsel %vm1082_vm2, %v11105_v1, -1e+30  ;;  %v8240_v48 = vsel %vm1083_vm3, %v11106_v27, -1e+30  ;;  %11107 = vst [vmem:[#allocation84_spill] sm:$0xff] %v8244_v57  ;;  %11110 = vst [vmem:[#allocation86_spill] sm:$0xff] %v8249_v12  ;;  %v8254_v1 = vpop.eup %5993  ;;  %6005 = vpow2.f32 %v2613_v28  ;;  %v2536_v21 = vsub.f32 %v11117_v10, %v8032_v30 }
 0x38c   : > { %11113 = vst [vmem:[#allocation58_spill] sm:$0xff] %v8254_v1  ;;  %v11114_v27 = vld [vmem:[#allocation65_spill] sm:$0xff]  ;;  %6007 = vpow2.f32 %v1350_v54  ;;  %v1346_v4 = vmul.f32 1.442695, %v1266_v7  ;;  %vm2351_vm6 = vcmp.eq.s32.totalorder %v2277_v22, %v7270_v46  ;;  %vm2352_vm7 = vcmp.eq.s32.totalorder %v2277_v22, %v7273_v47  ;;  %v11119_v30 = vld [vmem:[#allocation70_spill] sm:$0xff]  ;;  %v11120_v38 = vld [vmem:[#allocation71_spill] sm:$0xff] }
 0x38d   : > { %2502 = vmax.xlane.f32.xlu0 %v2501_v26  ;;  %v11111_v26 = vld [vmem:[#allocation96_spill] sm:$0xff]  ;;  %v8258_v45 = vpop.eup %5995  ;;  %6009 = vpow2.f32 %v1352_v37  ;;  %v2615_v54 = vmul.f32 1.442695, %v2535_v6  ;;  %v1273_v37 = vsub.f32 %v11120_v38, %v8036_v49  ;;  %v11121_v22 = vld [vmem:[#allocation73_spill] sm:$0xff] }
 0x38e   : > { %2505 = vmax.xlane.f32.xlu1 %v2504_v29  ;;  %v8252_v23 = vsel %vm1085_vm5, %v11111_v26, -1e+30  ;;  %v1267_v29 = vsub.f32 %v11114_v27, %v8030_v51  ;;  %11115 = vst [vmem:[#allocation106_spill] sm:$0xff] %v8258_v45  ;;  %v2280_v26 = vpop.permute.xlu0 %2279  ;;  %v8266_v33 = vpop.eup %5997  ;;  %v2617_v27 = vmul.f32 1.442695, %v2536_v21  ;;  %v2537_v10 = vsub.f32 %v11121_v22, %v8038_v14 }
 0x38f   : > { %11112 = vst [vmem:[#allocation57_spill] sm:$0xff] %v8252_v23  ;;  %11118 = vst [vmem:[#allocation107_spill] sm:$0xff] %v8266_v33  ;;  %v1241_v51 = vmax.f32 %v8249_v12, %v8252_v23  ;;  %vm2353_vm8 = vcmp.eq.s32.totalorder %v2280_v26, %v7270_v46  ;;  %vm2354_vm9 = vcmp.eq.s32.totalorder %v2280_v26, %v7273_v47  ;;  %6011 = vpow2.f32 %v1346_v4  ;;  %v1017_v12 = vpop.permute.xlu1 %1016 }
 0x390   : > { %v1348_v28 = vmul.f32 1.442695, %v1267_v29  ;;  %v1460_v7 = vadd.f32 %v8266_v33, %v8258_v45  ;;  %v11122_v29 = vld [vmem:[#allocation110_spill] sm:$0xff]  ;;  %v1463_v26 = vadd.f32 %v8254_v1, %v8244_v57  ;;  %v8290_v6 = vpop.eup %5999  ;;  %v11127_v45 = vld [vmem:[#allocation113_spill] sm:$0xff]  ;;  %v1360_v57 = vmul.f32 1.442695, %v1273_v37 }
 0x391   : > { %2724 = vadd.xlane.f32.xlu0 %v2723_v36  ;;  %v1238_v36 = vmax.f32 %v8237_v19, %v8240_v48  ;;  %11124 = vst [vmem:[#allocation59_spill] sm:$0xff] %v8290_v6  ;;  %v8298_v22 = vsel %vm2354_vm9, %v11127_v45, -1e+30  ;;  %v11130_v1 = vld [vmem:[#allocation76_spill] sm:$0xff]  ;;  %v2619_v45 = vmul.f32 1.442695, %v2537_v10  ;;  %vm1088_vm12 = vcmp.eq.s32.totalorder %v1017_v12, %v7193_v24 }
 0x392   : > { %2727 = vadd.xlane.f32.xlu1 %v2726_v2  ;;  %v1272_v2 = vsub.f32 %v11119_v30, %v8036_v49  ;;  %v11123_v30 = vld [vmem:[#allocation111_spill] sm:$0xff]  ;;  %11128 = vst [vmem:[#allocation108_spill] sm:$0xff] %v8298_v22  ;;  %6013 = vpow2.f32 %v1348_v28  ;;  %v8300_v33 = vpop.eup %6001  ;;  %v1270_v4 = vsub.f32 %v11130_v1, %v8042_v9  ;;  %vm1089_vm13 = vcmp.eq.s32.totalorder %v1017_v12, %v7196_v58  ;;  %v11141_v12 = vld [vmem:[#allocation101_spill] sm:$0xff] }
 0x393   : > { %v8286_v23 = vsel %vm2352_vm7, %v11123_v30, -1e+30  ;;  %v11125_v49 = vld [vmem:[#allocation75_spill] sm:$0xff]  ;;  %v1014_v30 = vpop.permute.xlu0 %1013  ;;  %11129 = vst [vmem:[#allocation109_spill] sm:$0xff] %v8300_v33  ;;  %6015 = vpow2.f32 %v2615_v54 }
 0x394   : > { %v2538_v21 = vsub.f32 %v11125_v49, %v8038_v14  ;;  %v8306_v49 = vpop.eup %6003  ;;  %6017 = vpow2.f32 %v2617_v27  ;;  %vm1086_vm10 = vcmp.eq.s32.totalorder %v1014_v30, %v7193_v24  ;;  %vm1087_vm11 = vcmp.eq.s32.totalorder %v1014_v30, %v7196_v58  ;;  %v11135_v54 = vld [vmem:[#allocation79_spill] sm:$0xff]  ;;  %v11140_v58 = vld [vmem:[#allocation100_spill] sm:$0xff] }
 0x395   : > { %1239 = vmax.xlane.f32.xlu0 %v1238_v36  ;;  %v8283_v36 = vsel %vm2351_vm6, %v11122_v29, -1e+30  ;;  %v1358_v29 = vmul.f32 1.442695, %v1272_v2  ;;  %11131 = vst [vmem:[#allocation62_spill] sm:$0xff] %v8306_v49  ;;  %v2539_v10 = vsub.f32 %v11135_v54, %v8044_v41  ;;  %v2729_v30 = vadd.f32 %v8300_v33, %v8290_v6  ;;  %v11139_v54 = vld [vmem:[#allocation99_spill] sm:$0xff] }
 0x396   : > { %1242 = vmax.xlane.f32.xlu1 %v1241_v51  ;;  %v11126_v51 = vld [vmem:[#allocation112_spill] sm:$0xff]  ;;  %v2507_v14 = vmax.f32 %v8283_v36, %v8286_v23  ;;  %v2621_v37 = vmul.f32 1.442695, %v2538_v21  ;;  %v1354_v27 = vmul.f32 1.442695, %v1270_v4  ;;  %v11137_v21 = vld [vmem:[#allocation81_spill] sm:$0xff] }
 0x397   : > { %v8295_v38 = vsel %vm2353_vm8, %v11126_v51, -1e+30  ;;  %6019 = vpow2.f32 %v1358_v29  ;;  %v2540_v51 = vsub.f32 %v11137_v21, %v8044_v41  ;;  %v11138_v29 = vld [vmem:[#allocation98_spill] sm:$0xff]  ;;  %v8340_v4 = vsel %vm1089_vm13, %v11141_v12, -1e+30  ;;  %v2283_v21 = vpop.permute.xlu1 %2282  ;;  %v11148_v12 = vld [vmem:[#allocation83_spill] sm:$0xff] }
 0x398   : > { %v2510_v2 = vmax.f32 %v8295_v38, %v8298_v22  ;;  %6021 = vpow2.f32 %v1360_v57  ;;  %v8332_v22 = vsel %vm1087_vm11, %v11139_v54, -1e+30  ;;  %v8337_v57 = vsel %vm1088_vm12, %v11140_v58, -1e+30  ;;  %11142 = vst [vmem:[#allocation90_spill] sm:$0xff] %v8340_v4  ;;  %v11145_v54 = vld [vmem:[#allocation82_spill] sm:$0xff] }
 0x399   : > { %1461 = vadd.xlane.f32.xlu0 %v1460_v7  ;;  %v11132_v7 = vld [vmem:[#allocation77_spill] sm:$0xff]  ;;  %6023 = vpow2.f32 %v2619_v45  ;;  %v2623_v41 = vmul.f32 1.442695, %v2539_v10  ;;  %v1276_v45 = vsub.f32 %v11145_v54, %v8054_v13  ;;  %v11146_v58 = vld [vmem:[#allocation87_spill] sm:$0xff]  ;;  %v2625_v10 = vmul.f32 1.442695, %v2540_v51 }
 0x39a   : > { %1464 = vadd.xlane.f32.xlu1 %v1463_v26  ;;  %v1271_v28 = vsub.f32 %v11132_v7, %v8042_v9  ;;  %v8312_v26 = vpop.eup %6005  ;;  %v8329_v7 = vsel %vm1086_vm10, %v11138_v29, -1e+30  ;;  %6025 = vpow2.f32 %v2621_v37  ;;  %vm2355_vm14 = vcmp.eq.s32.totalorder %v2283_v21, %v7270_v46  ;;  %v11158_v33 = vld [vmem:[#allocation117_spill] sm:$0xff] }
 0x39b   : > { %11133 = vst [vmem:[#allocation60_spill] sm:$0xff] %v8312_v26  ;;  %v8316_v1 = vpop.eup %6007  ;;  %v2732_v24 = vadd.f32 %v8312_v26, %v8306_v49  ;;  %6027 = vpow2.f32 %v1354_v27  ;;  %v2542_v49 = vsub.f32 %v11146_v58, %v8052_v5  ;;  %v2286_v26 = vpop.permute.xlu0 %2285  ;;  %v1247_v27 = vmax.f32 %v8337_v57, %v8340_v4 }
 0x39c   : > { %11134 = vst [vmem:[#allocation63_spill] sm:$0xff] %v8316_v1  ;;  %v8322_v9 = vpop.eup %6009  ;;  %vm2356_vm15 = vcmp.eq.s32.totalorder %v2283_v21, %v7273_v47  ;;  %vm2357_vm2 = vcmp.eq.s32.totalorder %v2286_v26, %v7270_v46  ;;  %vm2358_vm3 = vcmp.eq.s32.totalorder %v2286_v26, %v7273_v47  ;;  %v11160_v46 = vld [vmem:[#allocation97_spill] sm:$0xff] }
 0x39d   : > { %2508 = vmax.xlane.f32.xlu0 %v2507_v14  ;;  %11136 = vst [vmem:[#allocation61_spill] sm:$0xff] %v8322_v9  ;;  %v1356_v14 = vmul.f32 1.442695, %v1271_v28  ;;  %v11143_v28 = vld [vmem:[#allocation85_spill] sm:$0xff]  ;;  %v8344_v29 = vpop.eup %6011  ;;  %v2629_v6 = vmul.f32 1.442695, %v2542_v49 }
 0x39e   : > { %2511 = vmax.xlane.f32.xlu1 %v2510_v2  ;;  %v2541_v2 = vsub.f32 %v11143_v28, %v8052_v5  ;;  %11144 = vst [vmem:[#allocation92_spill] sm:$0xff] %v8344_v29  ;;  %v8352_v37 = vpop.eup %6013  ;;  %v11149_v28 = vld [vmem:[#allocation88_spill] sm:$0xff]  ;;  %v1469_v5 = vadd.f32 %v8322_v9, %v8316_v1 }
 0x39f   : > { %11147 = vst [vmem:[#allocation64_spill] sm:$0xff] %v8352_v37  ;;  %6029 = vpow2.f32 %v1356_v14  ;;  %v1274_v54 = vsub.f32 %v11149_v28, %v8060_v15  ;;  %v8364_v58 = vpop.eup %6015  ;;  %v11150_v14 = vld [vmem:[#allocation89_spill] sm:$0xff]  ;;  %v1366_v28 = vmul.f32 1.442695, %v1276_v45 }
 0x3a0   : > { %v2627_v51 = vmul.f32 1.442695, %v2541_v2  ;;  %6031 = vpow2.f32 %v2623_v41  ;;  %v11152_v2 = vld [vmem:[#allocation91_spill] sm:$0xff] }
 0x3a1   : > { %2730 = vadd.xlane.f32.xlu0 %v2729_v30  ;;  %v1244_v30 = vmax.f32 %v8329_v7, %v8332_v22  ;;  %6033 = vpow2.f32 %v2625_v10  ;;  %v2543_v9 = vsub.f32 %v11152_v2, %v8068_v25  ;;  %v1362_v45 = vmul.f32 1.442695, %v1274_v54  ;;  %v11157_v10 = vld [vmem:[#allocation116_spill] sm:$0xff] }
 0x3a2   : > { %2733 = vadd.xlane.f32.xlu1 %v2732_v24  ;;  %v1277_v24 = vsub.f32 %v11148_v12, %v8054_v13  ;;  %v1275_v13 = vsub.f32 %v11150_v14, %v8060_v15  ;;  %v8370_v12 = vpop.eup %6017  ;;  %v11153_v15 = vld [vmem:[#allocation114_spill] sm:$0xff]  ;;  %v8395_v2 = vsel %vm2357_vm2, %v11157_v10, -1e+30  ;;  %6035 = vpow2.f32 %v2627_v51 }
 0x3a3   : > { %v8374_v1 = vpop.eup %6019  ;;  %v8381_v14 = vsel %vm2355_vm14, %v11153_v15, -1e+30  ;;  %v8400_v15 = vsel %vm2358_vm3, %v11158_v33, -1e+30  ;;  %6037 = vpow2.f32 %v2629_v6  ;;  %v2631_v33 = vmul.f32 1.442695, %v2543_v9 }
 0x3a4   : > { %11151 = vst [vmem:[#allocation94_spill] sm:$0xff] %v8374_v1  ;;  %v8388_v49 = vpop.eup %6021  ;;  %v1364_v21 = vmul.f32 1.442695, %v1275_v13  ;;  %6039 = vpow2.f32 %v1366_v28  ;;  %v2516_v26 = vmax.f32 %v8395_v2, %v8400_v15  ;;  %v2735_v13 = vadd.f32 %v8370_v12, %v8364_v58 }
 0x3a5   : > { %1245 = vmax.xlane.f32.xlu0 %v1244_v30  ;;  %v1466_v30 = vadd.f32 %v8352_v37, %v8344_v29  ;;  %11155 = vst [vmem:[#allocation96_spill] sm:$0xff] %v8388_v49  ;;  %v11156_v29 = vld [vmem:[#allocation93_spill] sm:$0xff]  ;;  %v8404_v54 = vpop.eup %6023  ;;  %6041 = vpow2.f32 %v1362_v45  ;;  %v1475_v45 = vadd.f32 %v8388_v49, %v8374_v1 }
 0x3a6   : > { %1248 = vmax.xlane.f32.xlu1 %v1247_v27  ;;  %v11154_v27 = vld [vmem:[#allocation115_spill] sm:$0xff]  ;;  %v2544_v37 = vsub.f32 %v11156_v29, %v8068_v25  ;;  %v1368_v25 = vmul.f32 1.442695, %v1277_v24  ;;  %v2546_v29 = vsub.f32 %v11160_v46, %v8070_v56  ;;  %v8410_v47 = vpop.eup %6025  ;;  %6043 = vpow2.f32 %v1364_v21 }
 0x3a7   : > { %v8386_v41 = vsel %vm2356_vm15, %v11154_v27, -1e+30  ;;  %v11159_v27 = vld [vmem:[#allocation95_spill] sm:$0xff]  ;;  %v8414_v51 = vpop.eup %6027  ;;  %v2738_v9 = vadd.f32 %v8410_v47, %v8404_v54 }
 0x3a8   : > { %v2545_v4 = vsub.f32 %v11159_v27, %v8070_v56  ;;  %v2513_v10 = vmax.f32 %v8381_v14, %v8386_v41  ;;  %11161 = vst [vmem:[#allocation65_spill] sm:$0xff] %v8414_v51  ;;  %6045 = vpow2.f32 %v1368_v25  ;;  %v2637_v56 = vmul.f32 1.442695, %v2546_v29 }
 0x3a9   : > { %1467 = vadd.xlane.f32.xlu0 %v1466_v30  ;;  %v8416_v24 = vpop.eup %6029  ;;  %6047 = vpow2.f32 %v2631_v33 }
 0x3aa   : > { %1470 = vadd.xlane.f32.xlu1 %v1469_v5  ;;  %v2633_v5 = vmul.f32 1.442695, %v2544_v37  ;;  %v2635_v6 = vmul.f32 1.442695, %v2545_v4  ;;  %v8422_v28 = vpop.eup %6031  ;;  %v1472_v4 = vadd.f32 %v8416_v24, %v8414_v51 }
 0x3ab   : > { %11162 = vst [vmem:[#allocation67_spill] sm:$0xff] %v8422_v28  ;;  %v8424_v37 = vpop.eup %6033 }
 0x3ac   : > { %6049 = vpow2.f32 %v2633_v5  ;;  %11163 = vst [vmem:[#allocation69_spill] sm:$0xff] %v8424_v37  ;;  %v8428_v30 = vpop.eup %6035  ;;  %v2741_v46 = vadd.f32 %v8424_v37, %v8422_v28 }
 0x3ad   : > { %2514 = vmax.xlane.f32.xlu0 %v2513_v10  ;;  %6051 = vpow2.f32 %v2635_v6  ;;  %11164 = vst [vmem:[#allocation70_spill] sm:$0xff] %v8428_v30  ;;  %v8432_v21 = vpop.eup %6037  ;;  %v11170_v6 = vld [vmem:[#allocation10_spill] sm:$0xff] }
 0x3ae   : > { %2517 = vmax.xlane.f32.xlu1 %v2516_v26  ;;  %6053 = vpow2.f32 %v2637_v56  ;;  %11165 = vst [vmem:[#allocation71_spill] sm:$0xff] %v8432_v21  ;;  %v8434_v27 = vpop.eup %6039  ;;  %v2744_v10 = vadd.f32 %v8432_v21, %v8428_v30 }
 0x3af   : > { %11166 = vst [vmem:[#allocation73_spill] sm:$0xff] %v8434_v27  ;;  %v8436_v25 = vpop.eup %6041 }
 0x3b0   : > { %11167 = vst [vmem:[#allocation110_spill] sm:$0xff] %v8436_v25  ;;  %v8440_v29 = vpop.eup %6043 }
 0x3b1   : > { %2736 = vadd.xlane.f32.xlu0 %v2735_v13  ;;  %11168 = vst [vmem:[#allocation111_spill] sm:$0xff] %v8440_v29  ;;  %v11171_v13 = vld [vmem:[#allocation35_spill] sm:$0xff] }
 0x3b2   : > { %2739 = vadd.xlane.f32.xlu1 %v2738_v9  ;;  %v8444_v33 = vpop.eup %6045 }
 0x3b3   : > { %11169 = vst [vmem:[#allocation75_spill] sm:$0xff] %v8444_v33  ;;  %v8446_v5 = vpop.eup %6047  ;;  %v1481_v21 = vadd.f32 %v8444_v33, %v8434_v27 }
 0x3b5   : > { %1473 = vadd.xlane.f32.xlu0 %v1472_v4 }
 0x3b6   : > { %1476 = vadd.xlane.f32.xlu1 %v1475_v45  ;;  %v8450_v4 = vpop.eup %6049  ;;  %v1478_v45 = vadd.f32 %v8440_v29, %v8436_v25  ;;  %v11174_v25 = vld [vmem:[#allocation33_spill] sm:$0xff] }
 0x3b7   : > { %v8454_v28 = vpop.eup %6051 }
 0x3b8   : > { %11172 = vst [vmem:[#allocation112_spill] sm:$0xff] %v8454_v28 }
 0x3b9   : > { %v1201_v26 = vpop.xlane.xlu0 %1200  ;;  %2742 = vadd.xlane.f32.xlu0 %v2741_v46  ;;  %v8458_v46 = vpop.eup %6053 }
 0x3ba   : > { %v1280_v56 = vsub.f32 %v11170_v6, %v1201_v26  ;;  %v1281_v9 = vsub.f32 %v11171_v13, %v1201_v26  ;;  %2745 = vadd.xlane.f32.xlu1 %v2744_v10  ;;  %v11173_v6 = vld [vmem:[#allocation9_spill] sm:$0xff] }
 0x3bc   : > { %v1374_v37 = vmul.f32 1.442695, %v1280_v56  ;;  %v1376_v30 = vmul.f32 1.442695, %v1281_v9  ;;  %v2747_v9 = vadd.f32 %v8450_v4, %v8446_v5 }
 0x3bd   : > { %v1198_v1 = vpop.xlane.xlu1 %1197  ;;  %v2467_v49 = vpop.xlane.xlu0 %2466  ;;  %1479 = vadd.xlane.f32.xlu0 %v1478_v45  ;;  %v2750_v45 = vadd.f32 %v8458_v46, %v8454_v28 }
 0x3be   : > { %6055 = vpow2.f32 %v1374_v37  ;;  %v1278_v10 = vsub.f32 %v7724_v55, %v1198_v1  ;;  %v1279_v26 = vsub.f32 %v7735_v0, %v1198_v1  ;;  %v2547_v13 = vsub.f32 %v11173_v6, %v2467_v49  ;;  %1482 = vadd.xlane.f32.xlu1 %v1481_v21 }
 0x3bf   : > { %6057 = vpow2.f32 %v1376_v30  ;;  %v2548_v56 = vsub.f32 %v11174_v25, %v2467_v49  ;;  %v11175_v30 = vld [vmem:[#allocation11_spill] sm:$0xff] }
 0x3c0   : > { %v1370_v27 = vmul.f32 1.442695, %v1278_v10  ;;  %v1372_v33 = vmul.f32 1.442695, %v1279_v26  ;;  %v2639_v29 = vmul.f32 1.442695, %v2547_v13 }
 0x3c1   : > { %v2641_v37 = vmul.f32 1.442695, %v2548_v56  ;;  %v1204_v51 = vpop.xlane.xlu0 %1203  ;;  %v2470_v55 = vpop.xlane.xlu1 %2469  ;;  %2748 = vadd.xlane.f32.xlu0 %v2747_v9 }
 0x3c2   : > { %6059 = vpow2.f32 %v1370_v27  ;;  %v1282_v0 = vsub.f32 %v7752_v62, %v1204_v51  ;;  %v1283_v1 = vsub.f32 %v7759_v52, %v1204_v51  ;;  %v2549_v49 = vsub.f32 %v7762_v43, %v2470_v55  ;;  %2751 = vadd.xlane.f32.xlu1 %v2750_v45  ;;  %v11176_v27 = vld [vmem:[#allocation34_spill] sm:$0xff]  ;;  %v11177_v62 = vld [vmem:[#allocation13_spill] sm:$0xff] }
 0x3c3   : > { %6061 = vpow2.f32 %v1372_v33  ;;  %v2550_v21 = vsub.f32 %v11175_v30, %v2470_v55 }
 0x3c4   : > { %6063 = vpow2.f32 %v2639_v29  ;;  %v1378_v25 = vmul.f32 1.442695, %v1282_v0  ;;  %v1380_v10 = vmul.f32 1.442695, %v1283_v1  ;;  %v2643_v26 = vmul.f32 1.442695, %v2549_v49 }
 0x3c5   : > { %6065 = vpow2.f32 %v2641_v37  ;;  %v2645_v6 = vmul.f32 1.442695, %v2550_v21  ;;  %v1207_v13 = vpop.xlane.xlu1 %1206  ;;  %v2473_v56 = vpop.xlane.xlu0 %2472 }
 0x3c6   : > { %6067 = vpow2.f32 %v1378_v25  ;;  %v1284_v9 = vsub.f32 %v11176_v27, %v1207_v13  ;;  %v1285_v28 = vsub.f32 %v11177_v62, %v1207_v13  ;;  %v2551_v52 = vsub.f32 %v7790_v31, %v2473_v56 }
 0x3c7   : > { %6069 = vpow2.f32 %v1380_v10  ;;  %v2552_v43 = vsub.f32 %v7793_v61, %v2473_v56  ;;  %v11178_v61 = vld [vmem:[#allocation12_spill] sm:$0xff] }
 0x3c8   : > { %v8476_v51 = vpop.eup %6055  ;;  %6071 = vpow2.f32 %v2643_v26  ;;  %v1382_v29 = vmul.f32 1.442695, %v1284_v9  ;;  %v1384_v33 = vmul.f32 1.442695, %v1285_v28  ;;  %v2647_v45 = vmul.f32 1.442695, %v2551_v52 }
 0x3c9   : > { %v8478_v37 = vpop.eup %6057  ;;  %6073 = vpow2.f32 %v2645_v6  ;;  %v2649_v55 = vmul.f32 1.442695, %v2552_v43  ;;  %v1210_v0 = vpop.xlane.xlu0 %1209 }
 0x3ca   : > { %v2476_v1 = vpop.xlane.xlu1 %2475  ;;  %6075 = vpow2.f32 %v1382_v29  ;;  %v1286_v49 = vsub.f32 %v7804_v20, %v1210_v0  ;;  %v1287_v31 = vsub.f32 %v7811_v60, %v1210_v0  ;;  %v1487_v28 = vadd.f32 %v8478_v37, %v8476_v51 }
 0x3cb   : > { %v2553_v30 = vsub.f32 %v7814_v32, %v2476_v1  ;;  %6077 = vpow2.f32 %v1384_v33  ;;  %v2554_v21 = vsub.f32 %v11178_v61, %v2476_v1 }
 0x3cc   : > { %v8486_v25 = vpop.eup %6059  ;;  %6079 = vpow2.f32 %v2647_v45  ;;  %v1386_v10 = vmul.f32 1.442695, %v1286_v49  ;;  %v1388_v26 = vmul.f32 1.442695, %v1287_v31  ;;  %1488 = vadd.xlane.f32.xlu1 %v1487_v28 }
 0x3cd   : > { %v2651_v6 = vmul.f32 1.442695, %v2553_v30  ;;  %v8488_v13 = vpop.eup %6061  ;;  %6081 = vpow2.f32 %v2649_v55  ;;  %v2653_v20 = vmul.f32 1.442695, %v2554_v21  ;;  %v2479_v56 = vpop.xlane.xlu0 %2478 }
 0x3ce   : > { %v1213_v60 = vpop.xlane.xlu1 %1212  ;;  %v8490_v32 = vpop.eup %6063  ;;  %6083 = vpow2.f32 %v1386_v10  ;;  %v2555_v62 = vsub.f32 %v7842_v40, %v2479_v56  ;;  %v2556_v43 = vsub.f32 %v7845_v44, %v2479_v56  ;;  %v1484_v29 = vadd.f32 %v8488_v13, %v8486_v25 }
 0x3cf   : > { %v1288_v27 = vsub.f32 %v7832_v11, %v1213_v60  ;;  %v1289_v9 = vsub.f32 %v7839_v3, %v1213_v60  ;;  %v8495_v52 = vpop.eup %6065  ;;  %6085 = vpow2.f32 %v1388_v26 }
 0x3d0   : > { %v8500_v33 = vpop.eup %6067  ;;  %6087 = vpow2.f32 %v2651_v6  ;;  %v2655_v0 = vmul.f32 1.442695, %v2555_v62  ;;  %v2657_v11 = vmul.f32 1.442695, %v2556_v43  ;;  %1485 = vadd.xlane.f32.xlu0 %v1484_v29  ;;  %v2753_v28 = vadd.f32 %v8495_v52, %v8490_v32  ;;  %v11179_v29 = vld [vmem:[#allocation36_spill] sm:$0xff] }
 0x3d1   : > { %v1390_v45 = vmul.f32 1.442695, %v1288_v27  ;;  %v1392_v55 = vmul.f32 1.442695, %v1289_v9  ;;  %v8502_v1 = vpop.eup %6069  ;;  %6089 = vpow2.f32 %v2653_v20  ;;  %v1216_v3 = vpop.xlane.xlu0 %1215 }
 0x3d2   : > { %v2482_v40 = vpop.xlane.xlu1 %2481  ;;  %v8504_v49 = vpop.eup %6071  ;;  %v1290_v44 = vsub.f32 %v7860_v53, %v1216_v3  ;;  %v1291_v31 = vsub.f32 %v7867_v8, %v1216_v3 }
 0x3d3   : > { %6091 = vpow2.f32 %v1390_v45  ;;  %v2557_v30 = vsub.f32 %v7875_v35, %v2482_v40  ;;  %v8509_v61 = vpop.eup %6073  ;;  %v2558_v21 = vsub.f32 %v7878_v17, %v2482_v40 }
 0x3d4   : > { %6093 = vpow2.f32 %v1392_v55  ;;  %v8514_v10 = vpop.eup %6075  ;;  %v1394_v26 = vmul.f32 1.442695, %v1290_v44  ;;  %v1396_v6 = vmul.f32 1.442695, %v1291_v31  ;;  %2754 = vadd.xlane.f32.xlu0 %v2753_v28  ;;  %v2756_v8 = vadd.f32 %v8509_v61, %v8504_v49 }
 0x3d5   : > { %6095 = vpow2.f32 %v2655_v0  ;;  %v2659_v20 = vmul.f32 1.442695, %v2557_v30  ;;  %v8516_v60 = vpop.eup %6077  ;;  %v2661_v53 = vmul.f32 1.442695, %v2558_v21  ;;  %v2485_v56 = vpop.xlane.xlu0 %2484  ;;  %v1490_v55 = vadd.f32 %v8502_v1, %v8500_v33  ;;  %v11182_v21 = vld [vmem:[#allocation38_spill] sm:$0xff] }
 0x3d6   : > { %6097 = vpow2.f32 %v2657_v11  ;;  %v1219_v35 = vpop.xlane.xlu1 %1218  ;;  %v8520_v17 = vpop.eup %6079  ;;  %v2559_v62 = vsub.f32 %v7911_v50, %v2485_v56  ;;  %2757 = vadd.xlane.f32.xlu1 %v2756_v8  ;;  %v2560_v45 = vsub.f32 %v11179_v29, %v2485_v56  ;;  %v1493_v0 = vadd.f32 %v8516_v60, %v8514_v10  ;;  %v11184_v8 = vld [vmem:[#allocation15_spill] sm:$0xff]  ;;  %v11185_v56 = vld [vmem:[#allocation16_spill] sm:$0xff] }
 0x3d7   : > { %6099 = vpow2.f32 %v1394_v26  ;;  %v1292_v27 = vsub.f32 %v7898_v39, %v1219_v35  ;;  %v1293_v9 = vsub.f32 %v7908_v42, %v1219_v35  ;;  %v8525_v43 = vpop.eup %6081  ;;  %v11183_v26 = vld [vmem:[#allocation14_spill] sm:$0xff] }
 0x3d8   : > { %6101 = vpow2.f32 %v1396_v6  ;;  %v8532_v11 = vpop.eup %6083  ;;  %v2663_v42 = vmul.f32 1.442695, %v2559_v62  ;;  %v2665_v50 = vmul.f32 1.442695, %v2560_v45  ;;  %1491 = vadd.xlane.f32.xlu0 %v1490_v55 }
 0x3d9   : > { %11180 = vst [vmem:[#allocation113_spill] sm:$0xff] %v8532_v11  ;;  %6103 = vpow2.f32 %v2659_v20  ;;  %v1398_v39 = vmul.f32 1.442695, %v1292_v27  ;;  %v1400_v3 = vmul.f32 1.442695, %v1293_v9  ;;  %v8534_v40 = vpop.eup %6085  ;;  %v1222_v44 = vpop.xlane.xlu0 %1221 }
 0x3da   : > { %11181 = vst [vmem:[#allocation76_spill] sm:$0xff] %v8534_v40  ;;  %6105 = vpow2.f32 %v2661_v53  ;;  %v2488_v31 = vpop.xlane.xlu1 %2487  ;;  %v8536_v30 = vpop.eup %6087  ;;  %v1294_v28 = vsub.f32 %v11182_v21, %v1222_v44  ;;  %v1295_v6 = vsub.f32 %v11183_v26, %v1222_v44  ;;  %1494 = vadd.xlane.f32.xlu1 %v1493_v0  ;;  %v2759_v53 = vadd.f32 %v8525_v43, %v8520_v17  ;;  %v11189_v21 = vld [vmem:[#allocation31_spill] sm:$0xff] }
 0x3db   : > { %6107 = vpow2.f32 %v1398_v39  ;;  %v2561_v35 = vsub.f32 %v11184_v8, %v2488_v31  ;;  %v8541_v20 = vpop.eup %6089  ;;  %v2562_v27 = vsub.f32 %v11185_v56, %v2488_v31  ;;  %v11190_v8 = vld [vmem:[#allocation32_spill] sm:$0xff] }
 0x3dc   : > { %6109 = vpow2.f32 %v1400_v3  ;;  %v1402_v62 = vmul.f32 1.442695, %v1294_v28  ;;  %v1404_v29 = vmul.f32 1.442695, %v1295_v6  ;;  %2760 = vadd.xlane.f32.xlu0 %v2759_v53  ;;  %v2762_v3 = vadd.f32 %v8541_v20, %v8536_v30 }
 0x3dd   : > { %v8546_v9 = vpop.eup %6091  ;;  %6111 = vpow2.f32 %v2663_v42  ;;  %v2667_v45 = vmul.f32 1.442695, %v2561_v35  ;;  %v2669_v39 = vmul.f32 1.442695, %v2562_v27  ;;  %v1444_v0 = vpop.xlane.xlu0 %1443 }
 0x3de   : > { %11186 = vst [vmem:[#allocation77_spill] sm:$0xff] %v8546_v9  ;;  %v8548_v55 = vpop.eup %6093  ;;  %6113 = vpow2.f32 %v2665_v50  ;;  %v1225_v44 = vpop.xlane.xlu1 %1224  ;;  %2763 = vadd.xlane.f32.xlu1 %v2762_v3  ;;  %v1496_v50 = vadd.f32 %v8534_v40, %v8532_v11 }
 0x3df   : > { %11187 = vst [vmem:[#allocation79_spill] sm:$0xff] %v8548_v55  ;;  %v8552_v31 = vpop.eup %6095  ;;  %6115 = vpow2.f32 %v1402_v62  ;;  %v1296_v26 = vsub.f32 %v11189_v21, %v1225_v44  ;;  %v1297_v42 = vsub.f32 %v11190_v8, %v1225_v44  ;;  %v1499_v6 = vadd.f32 %v8548_v55, %v8546_v9  ;;  %v11196_v8 = vld [vmem:[#allocation119_spill] sm:$0xff] }
 0x3e0   : > { %11188 = vst [vmem:[#allocation81_spill] sm:$0xff] %v8552_v31  ;;  %v8556_v28 = vpop.eup %6097  ;;  %6117 = vpow2.f32 %v1404_v29  ;;  %1497 = vadd.xlane.f32.xlu0 %v1496_v50  ;;  %v11195_v29 = vld [vmem:[#allocation118_spill] sm:$0xff] }
 0x3e1   : > { %11191 = vst [vmem:[#allocation98_spill] sm:$0xff] %v8556_v28  ;;  %v8562_v35 = vpop.eup %6099  ;;  %6119 = vpow2.f32 %v2667_v45  ;;  %v1406_v56 = vmul.f32 1.442695, %v1296_v26  ;;  %v1408_v27 = vmul.f32 1.442695, %v1297_v42  ;;  %v2491_v44 = vpop.xlane.xlu0 %2490  ;;  %v2765_v45 = vadd.f32 %v8556_v28, %v8552_v31  ;;  %v11202_v31 = vld [vmem:[#allocation123_spill] sm:$0xff] }
 0x3e2   : > { %11192 = vst [vmem:[#allocation99_spill] sm:$0xff] %v8562_v35  ;;  %v8564_v53 = vpop.eup %6101  ;;  %6121 = vpow2.f32 %v2669_v39  ;;  %v1447_v62 = vpop.xlane.xlu1 %1446  ;;  %v2563_v3 = vsub.f32 %v11195_v29, %v2491_v44  ;;  %v2564_v11 = vsub.f32 %v11196_v8, %v2491_v44  ;;  %1500 = vadd.xlane.f32.xlu1 %v1499_v6 }
 0x3e3   : > { %11193 = vst [vmem:[#allocation100_spill] sm:$0xff] %v8564_v53  ;;  %v8566_v21 = vpop.eup %6103  ;;  %6123 = vrcp.f32 %v1444_v0 }
 0x3e4   : > { %11194 = vst [vmem:[#allocation101_spill] sm:$0xff] %v8566_v21  ;;  %v8570_v40 = vpop.eup %6105  ;;  %6125 = vpow2.f32 %v1406_v56  ;;  %v2671_v39 = vmul.f32 1.442695, %v2563_v3  ;;  %v2673_v42 = vmul.f32 1.442695, %v2564_v11  ;;  %2766 = vadd.xlane.f32.xlu0 %v2765_v45  ;;  %v11201_v56 = vld [vmem:[#allocation122_spill] sm:$0xff]  ;;  %v1502_v11 = vadd.f32 %v8564_v53, %v8562_v35 }
 0x3e5   : > { %11197 = vst [vmem:[#allocation85_spill] sm:$0xff] %v8570_v40  ;;  %v8574_v26 = vpop.eup %6107  ;;  %6127 = vpow2.f32 %v1408_v27  ;;  %v2768_v50 = vadd.f32 %v8570_v40, %v8566_v21  ;;  %v2713_v6 = vpop.xlane.xlu0 %2712 }
 0x3e6   : > { %11198 = vst [vmem:[#allocation82_spill] sm:$0xff] %v8574_v26  ;;  %v8578_v0 = vpop.eup %6109  ;;  %6129 = vrcp.f32 %v1447_v62  ;;  %v2494_v44 = vpop.xlane.xlu1 %2493 }
 0x3e7   : > { %11199 = vst [vmem:[#allocation87_spill] sm:$0xff] %v8578_v0  ;;  %v8580_v29 = vpop.eup %6111  ;;  %6131 = vpow2.f32 %v2671_v39  ;;  %v2565_v8 = vsub.f32 %v11201_v56, %v2494_v44  ;;  %v2566_v28 = vsub.f32 %v11202_v31, %v2494_v44  ;;  %2769 = vadd.xlane.f32.xlu1 %v2768_v50  ;;  %v1505_v27 = vadd.f32 %v8578_v0, %v8574_v26  ;;  %v11214_v0 = vld [vmem:[#allocation37_spill] sm:$0xff] }
 0x3e8   : > { %11200 = vst [vmem:[#allocation83_spill] sm:$0xff] %v8580_v29  ;;  %v8584_v9 = vpop.eup %6113  ;;  %6133 = vpow2.f32 %v2673_v42  ;;  %1503 = vadd.xlane.f32.xlu0 %v1502_v11 }
 0x3e9   : > { %11203 = vst [vmem:[#allocation88_spill] sm:$0xff] %v8584_v9  ;;  %v8590_v62 = vpop.eup %6115  ;;  %v2675_v3 = vmul.f32 1.442695, %v2565_v8  ;;  %v2677_v45 = vmul.f32 1.442695, %v2566_v28  ;;  %6135 = vrcp.f32 %v2713_v6  ;;  %v2771_v50 = vadd.f32 %v8584_v9, %v8580_v29  ;;  %v11211_v29 = vld [vmem:[#allocation30_spill] sm:$0xff] }
 0x3ea   : > { %11204 = vst [vmem:[#allocation89_spill] sm:$0xff] %v8590_v62  ;;  %v8592_v39 = vpop.eup %6117  ;;  %v2716_v56 = vpop.xlane.xlu1 %2715  ;;  %v11212_v9 = vld [vmem:[#allocation39_spill] sm:$0xff] }
 0x3eb   : > { %11205 = vst [vmem:[#allocation91_spill] sm:$0xff] %v8592_v39  ;;  %v8594_v31 = vpop.eup %6119  ;;  %6137 = vpow2.f32 %v2675_v3  ;;  %1506 = vadd.xlane.f32.xlu1 %v1505_v27  ;;  %v1508_v3 = vadd.f32 %v8592_v39, %v8590_v62 }
 0x3ec   : > { %11206 = vst [vmem:[#allocation114_spill] sm:$0xff] %v8594_v31  ;;  %v8596_v42 = vpop.eup %6121  ;;  %6139 = vpow2.f32 %v2677_v45  ;;  %2772 = vadd.xlane.f32.xlu0 %v2771_v50 }
 0x3ed   : > { %11207 = vst [vmem:[#allocation115_spill] sm:$0xff] %v8596_v42  ;;  %v6124_v44 = vpop.eup %6123  ;;  %6141 = vrcp.f32 %v2716_v56  ;;  %v2774_v28 = vadd.f32 %v8596_v42, %v8594_v31  ;;  %v11213_v31 = vld [vmem:[#allocation29_spill] sm:$0xff] }
 0x3ee   : > { %v8602_v8 = vpop.eup %6125  ;;  %v1603_v56 = vmul.f32 %v6124_v44, %v11211_v29  ;;  %v1602_v42 = vmul.f32 %v6124_v44, %v11213_v31  ;;  %v11218_v31 = vld [vmem:[#allocation121_spill] sm:$0xff] }
 0x3ef   : > { %11208 = vst [vmem:[#allocation93_spill] sm:$0xff] %v8602_v8  ;;  %v8604_v6 = vpop.eup %6127  ;;  %2775 = vadd.xlane.f32.xlu1 %v2774_v28 }
 0x3f0   : > { %11209 = vst [vmem:[#allocation116_spill] sm:$0xff] %v8604_v6  ;;  %v6130_v11 = vpop.eup %6129  ;;  %v1511_v27 = vadd.f32 %v8604_v6, %v8602_v8  ;;  %1509 = vadd.xlane.f32.xlu0 %v1508_v3 }
 0x3f1   : > { %v8610_v45 = vpop.eup %6131  ;;  %v1605_v26 = vmul.f32 %v6130_v11, %v11212_v9  ;;  %v1604_v50 = vmul.f32 %v6130_v11, %v11214_v0  ;;  %v11220_v11 = vld [vmem:[#allocation120_spill] sm:$0xff] }
 0x3f2   : > { %11210 = vst [vmem:[#allocation117_spill] sm:$0xff] %v8610_v45  ;;  %v8616_v35 = vpop.eup %6133 }
 0x3f3   : > { %11215 = vst [vmem:[#allocation95_spill] sm:$0xff] %v8616_v35  ;;  %v5650_v28 = vpack.c.bf16 %v1605_v26, %v1603_v56  ;;  %v5652_v53 = vpack.c.bf16 %v1604_v50, %v1602_v42  ;;  %v2777_v62 = vadd.f32 %v8616_v35, %v8610_v45  ;;  %v6136_v39 = vpop.eup %6135  ;;  %1512 = vadd.xlane.f32.xlu1 %v1511_v27  ;;  %v11219_v26 = vld [vmem:[#allocation125_spill] sm:$0xff]  ;;  %v11221_v56 = vld [vmem:[#allocation124_spill] sm:$0xff]  ;;  %v11223_v35 = vld [vmem:[#allocation42_spill] sm:$0xff] }
 0x3f4   : > { %v2872_v44 = vmul.f32 %v6136_v39, %v11218_v31  ;;  %v2871_v3 = vmul.f32 %v6136_v39, %v11220_v11  ;;  %v11225_v31 = vld [vmem:[#allocation47_spill] sm:$0xff] }
 0x3f5   : > { %v8620_v8 = vpop.eup %6137  ;;  %5651 = vmatprep.subr.bf16.mxu1 %v5650_v28  ;;  %2778 = vadd.xlane.f32.xlu0 %v2777_v62 }
 0x3f6   : > { %11216 = vst [vmem:[#allocation97_spill] sm:$0xff] %v8620_v8  ;;  %v8622_v29 = vpop.eup %6139  ;;  %5653 = vmatpush1.bf16.xpose.msra.mxu1 %v5652_v53  ;;  %v11222_v53 = vld [vmem:[#allocation40_spill] sm:$0xff] }
 0x3f7   : > { %11217 = vst [vmem:[#allocation10_spill] sm:$0xff] %v8622_v29  ;;  %v6142_v9 = vpop.eup %6141  ;;  %v2780_v0 = vadd.f32 %v8622_v29, %v8620_v8  ;;  %v11224_v8 = vld [vmem:[#allocation46_spill] sm:$0xff] }
 0x3f8   : > { %v2874_v42 = vmul.f32 %v6142_v9, %v11219_v26  ;;  %v2873_v50 = vmul.f32 %v6142_v9, %v11221_v56 }
 0x3f9   : > { %2781 = vadd.xlane.f32.xlu1 %v2780_v0 }
 0x3fa   : > { %v5714_v27 = vpack.c.bf16 %v2874_v42, %v2872_v44  ;;  %v5716_v45 = vpack.c.bf16 %v2873_v50, %v2871_v3  ;;  %v11227_v3 = vld [vmem:[#allocation66_spill] sm:$0xff] }
 0x3fc   : > { %5715 = vmatprep.subr.bf16.mxu0 %v5714_v27 }
 0x3fd   : > { %5717 = vmatpush1.bf16.xpose.msra.mxu0 %v5716_v45 }
 0x402   : > { %v1228_v28 = vpop.xlane.xlu0 %1227 }
 0x403   : > { %v1298_v62 = vsub.f32 %v11222_v53, %v1228_v28  ;;  %v1299_v6 = vsub.f32 %v11223_v35, %v1228_v28  ;;  %v1231_v21 = vpop.xlane.xlu1 %1230 }
 0x404   : > { %v1300_v29 = vsub.f32 %v11224_v8, %v1231_v21  ;;  %v1301_v40 = vsub.f32 %v11225_v31, %v1231_v21  ;;  %v11226_v8 = vld [vmem:[#allocation49_spill] sm:$0xff] }
 0x405   : > { %v1410_v26 = vmul.f32 1.442695, %v1298_v62  ;;  %v1412_v55 = vmul.f32 1.442695, %v1299_v6 }
 0x406   : > { %v1414_v39 = vmul.f32 1.442695, %v1300_v29  ;;  %v1416_v11 = vmul.f32 1.442695, %v1301_v40  ;;  %v1450_v9 = vpop.xlane.xlu0 %1449 }
 0x407   : > { %6143 = vpow2.f32 %v1410_v26  ;;  %v1453_v0 = vpop.xlane.xlu1 %1452 }
 0x408   : > { %6145 = vpow2.f32 %v1412_v55 }
 0x409   : > { %6147 = vpow2.f32 %v1414_v39 }
 0x40a   : > { %6149 = vpow2.f32 %v1416_v11  ;;  %v2497_v45 = vpop.xlane.xlu0 %2496 }
 0x40b   : > { %6151 = vrcp.f32 %v1450_v9  ;;  %v2567_v44 = vsub.f32 %v8115_v59, %v2497_v45  ;;  %v2568_v35 = vsub.f32 %v8118_v18, %v2497_v45  ;;  %v2500_v42 = vpop.xlane.xlu1 %2499  ;;  %v11228_v9 = vld [vmem:[#allocation102_spill] sm:$0xff]  ;;  %v11229_v45 = vld [vmem:[#allocation103_spill] sm:$0xff] }
 0x40c   : > { %6153 = vrcp.f32 %v1453_v0  ;;  %v2569_v21 = vsub.f32 %v11226_v8, %v2500_v42  ;;  %v2570_v6 = vsub.f32 %v11227_v3, %v2500_v42 }
 0x40d   : > { %v2679_v29 = vmul.f32 1.442695, %v2567_v44  ;;  %v2681_v40 = vmul.f32 1.442695, %v2568_v35 }
 0x40e   : > { %v2683_v56 = vmul.f32 1.442695, %v2569_v21  ;;  %v2685_v50 = vmul.f32 1.442695, %v2570_v6  ;;  %v2719_v27 = vpop.xlane.xlu0 %2718  ;;  %v11230_v6 = vld [vmem:[#allocation44_spill] sm:$0xff] }
 0x40f   : > { %6155 = vpow2.f32 %v2679_v29  ;;  %v2722_v55 = vpop.xlane.xlu1 %2721 }
 0x410   : > { %6157 = vpow2.f32 %v2681_v40 }
 0x411   : > { %v8638_v28 = vpop.eup %6143  ;;  %6159 = vpow2.f32 %v2683_v56  ;;  %v11231_v56 = vld [vmem:[#allocation43_spill] sm:$0xff] }
 0x412   : > { %v8640_v59 = vpop.eup %6145  ;;  %6161 = vpow2.f32 %v2685_v50  ;;  %v1234_v18 = vpop.xlane.xlu0 %1233 }
 0x413   : > { %v8642_v53 = vpop.eup %6147  ;;  %6163 = vrcp.f32 %v2719_v27  ;;  %v1302_v62 = vsub.f32 %v8157_v34, %v1234_v18  ;;  %v1303_v31 = vsub.f32 %v8160_v63, %v1234_v18  ;;  %v1237_v26 = vpop.xlane.xlu1 %1236  ;;  %v1514_v39 = vadd.f32 %v8640_v59, %v8638_v28  ;;  %v11232_v27 = vld [vmem:[#allocation45_spill] sm:$0xff] }
 0x414   : > { %v8648_v11 = vpop.eup %6149  ;;  %6165 = vrcp.f32 %v2722_v55  ;;  %v1304_v0 = vsub.f32 %v11228_v9, %v1237_v26  ;;  %v1305_v44 = vsub.f32 %v11229_v45, %v1237_v26  ;;  %v11233_v26 = vld [vmem:[#allocation41_spill] sm:$0xff] }
 0x415   : > { %v6152_v35 = vpop.eup %6151  ;;  %v1418_v42 = vmul.f32 1.442695, %v1302_v62  ;;  %v1420_v8 = vmul.f32 1.442695, %v1303_v31  ;;  %1515 = vadd.xlane.f32.xlu0 %v1514_v39  ;;  %v1517_v34 = vadd.f32 %v8648_v11, %v8642_v53 }
 0x416   : > { %v6154_v21 = vpop.eup %6153  ;;  %v1422_v63 = vmul.f32 1.442695, %v1304_v0  ;;  %v1424_v3 = vmul.f32 1.442695, %v1305_v44  ;;  %v1607_v29 = vmul.f32 %v6152_v35, %v11230_v6  ;;  %v1456_v40 = vpop.xlane.xlu0 %1455  ;;  %v1606_v50 = vmul.f32 %v6152_v35, %v11231_v56 }
 0x417   : > { %6167 = vpow2.f32 %v1418_v42  ;;  %1518 = vadd.xlane.f32.xlu1 %v1517_v34  ;;  %v1609_v55 = vmul.f32 %v6154_v21, %v11232_v27  ;;  %v1459_v18 = vpop.xlane.xlu1 %1458  ;;  %v1608_v62 = vmul.f32 %v6154_v21, %v11233_v26  ;;  %v11236_v42 = vld [vmem:[#allocation54_spill] sm:$0xff] }
 0x418   : > { %6169 = vpow2.f32 %v1420_v8 }
 0x419   : > { %v8658_v31 = vpop.eup %6155  ;;  %6171 = vpow2.f32 %v1422_v63  ;;  %v5654_v39 = vpack.c.bf16 %v1609_v55, %v1607_v29  ;;  %v5656_v9 = vpack.c.bf16 %v1608_v62, %v1606_v50  ;;  %v11237_v63 = vld [vmem:[#allocation55_spill] sm:$0xff] }
 0x41a   : > { %11234 = vst [vmem:[#allocation35_spill] sm:$0xff] %v8658_v31  ;;  %v8660_v0 = vpop.eup %6157  ;;  %6173 = vpow2.f32 %v1424_v3  ;;  %v2503_v45 = vpop.xlane.xlu0 %2502  ;;  %v11238_v3 = vld [vmem:[#allocation52_spill] sm:$0xff] }
 0x41b   : > { %v8662_v44 = vpop.eup %6159  ;;  %5655 = vmatprep.subr.bf16.mxu1 %v5654_v39  ;;  %6175 = vrcp.f32 %v1456_v40  ;;  %v2571_v35 = vsub.f32 %v8195_v16, %v2503_v45  ;;  %v2572_v34 = vsub.f32 %v11236_v42, %v2503_v45  ;;  %v2506_v6 = vpop.xlane.xlu1 %2505  ;;  %v2783_v8 = vadd.f32 %v8660_v0, %v8658_v31  ;;  %v11239_v39 = vld [vmem:[#allocation68_spill] sm:$0xff] }
 0x41c   : > { %11235 = vst [vmem:[#allocation9_spill] sm:$0xff] %v8662_v44  ;;  %v8668_v21 = vpop.eup %6161  ;;  %6177 = vrcp.f32 %v1459_v18  ;;  %5657 = vmatpush1.bf16.xpose.msra.mxu1 %v5656_v9  ;;  %v2573_v29 = vsub.f32 %v11237_v63, %v2506_v6  ;;  %v2574_v56 = vsub.f32 %v11238_v3, %v2506_v6  ;;  %v11240_v31 = vld [vmem:[#allocation48_spill] sm:$0xff]  ;;  %v11241_v9 = vld [vmem:[#allocation74_spill] sm:$0xff] }
 0x41d   : > { %v6164_v50 = vpop.eup %6163  ;;  %v2687_v27 = vmul.f32 1.442695, %v2571_v35  ;;  %v2689_v55 = vmul.f32 1.442695, %v2572_v34  ;;  %2784 = vadd.xlane.f32.xlu0 %v2783_v8  ;;  %v2786_v16 = vadd.f32 %v8668_v21, %v8662_v44  ;;  %v11242_v3 = vld [vmem:[#allocation72_spill] sm:$0xff] }
 0x41e   : > { %v6166_v40 = vpop.eup %6165  ;;  %v2691_v26 = vmul.f32 1.442695, %v2573_v29  ;;  %v2693_v62 = vmul.f32 1.442695, %v2574_v56  ;;  %v2876_v45 = vmul.f32 %v6164_v50, %v11239_v39  ;;  %v2725_v42 = vpop.xlane.xlu0 %2724  ;;  %v2875_v18 = vmul.f32 %v6164_v50, %v11240_v31 }
 0x41f   : > { %6179 = vpow2.f32 %v2687_v27  ;;  %2787 = vadd.xlane.f32.xlu1 %v2786_v16  ;;  %v2878_v63 = vmul.f32 %v6166_v40, %v11241_v9  ;;  %v2728_v6 = vpop.xlane.xlu1 %2727  ;;  %v2877_v35 = vmul.f32 %v6166_v40, %v11242_v3  ;;  %v11245_v40 = vld [vmem:[#allocation86_spill] sm:$0xff] }
 0x420   : > { %6181 = vpow2.f32 %v2689_v55 }
 0x421   : > { %v8678_v34 = vpop.eup %6167  ;;  %6183 = vpow2.f32 %v2691_v26  ;;  %v5718_v8 = vpack.c.bf16 %v2878_v63, %v2876_v45  ;;  %v5720_v44 = vpack.c.bf16 %v2877_v35, %v2875_v18  ;;  %v11247_v35 = vld [vmem:[#allocation104_spill] sm:$0xff] }
 0x422   : > { %11243 = vst [vmem:[#allocation33_spill] sm:$0xff] %v8678_v34  ;;  %v8680_v29 = vpop.eup %6169  ;;  %6185 = vpow2.f32 %v2693_v62  ;;  %v1240_v56 = vpop.xlane.xlu0 %1239  ;;  %v11246_v62 = vld [vmem:[#allocation57_spill] sm:$0xff] }
 0x423   : > { %v8682_v39 = vpop.eup %6171  ;;  %5719 = vmatprep.subr.bf16.mxu0 %v5718_v8  ;;  %6187 = vrcp.f32 %v2725_v42  ;;  %v1306_v31 = vsub.f32 %v8237_v19, %v1240_v56  ;;  %v1307_v50 = vsub.f32 %v8240_v48, %v1240_v56  ;;  %v1243_v27 = vpop.xlane.xlu1 %1242  ;;  %v1520_v55 = vadd.f32 %v8680_v29, %v8678_v34  ;;  %v11248_v34 = vld [vmem:[#allocation51_spill] sm:$0xff] }
 0x424   : > { %11244 = vst [vmem:[#allocation11_spill] sm:$0xff] %v8682_v39  ;;  %v8688_v16 = vpop.eup %6173  ;;  %6189 = vrcp.f32 %v2728_v6  ;;  %5721 = vmatpush1.bf16.xpose.msra.mxu0 %v5720_v44  ;;  %v1308_v26 = vsub.f32 %v11245_v40, %v1243_v27  ;;  %v1309_v45 = vsub.f32 %v11246_v62, %v1243_v27  ;;  %v11249_v44 = vld [vmem:[#allocation105_spill] sm:$0xff]  ;;  %v11250_v62 = vld [vmem:[#allocation50_spill] sm:$0xff] }
 0x425   : > { %v6176_v18 = vpop.eup %6175  ;;  %v1426_v9 = vmul.f32 1.442695, %v1306_v31  ;;  %v1428_v63 = vmul.f32 1.442695, %v1307_v50  ;;  %1521 = vadd.xlane.f32.xlu0 %v1520_v55  ;;  %v1523_v19 = vadd.f32 %v8688_v16, %v8682_v39 }
 0x426   : > { %v6178_v48 = vpop.eup %6177  ;;  %v1430_v42 = vmul.f32 1.442695, %v1308_v26  ;;  %v1432_v3 = vmul.f32 1.442695, %v1309_v45  ;;  %v1611_v8 = vmul.f32 %v6176_v18, %v11247_v35  ;;  %v1462_v56 = vpop.xlane.xlu0 %1461  ;;  %v1610_v6 = vmul.f32 %v6176_v18, %v11248_v34 }
 0x427   : > { %6191 = vpow2.f32 %v1426_v9  ;;  %1524 = vadd.xlane.f32.xlu1 %v1523_v19  ;;  %v1613_v40 = vmul.f32 %v6178_v48, %v11249_v44  ;;  %v1465_v27 = vpop.xlane.xlu1 %1464  ;;  %v1612_v31 = vmul.f32 %v6178_v48, %v11250_v62  ;;  %v11253_v62 = vld [vmem:[#allocation78_spill] sm:$0xff] }
 0x428   : > { %6193 = vpow2.f32 %v1428_v63 }
 0x429   : > { %v8698_v50 = vpop.eup %6179  ;;  %6195 = vpow2.f32 %v1430_v42  ;;  %v5658_v55 = vpack.c.bf16 %v1613_v40, %v1611_v8  ;;  %v5660_v39 = vpack.c.bf16 %v1612_v31, %v1610_v6  ;;  %v11252_v42 = vld [vmem:[#allocation108_spill] sm:$0xff] }
 0x42a   : > { %v8700_v26 = vpop.eup %6181  ;;  %6197 = vpow2.f32 %v1432_v3  ;;  %v2509_v45 = vpop.xlane.xlu0 %2508 }
 0x42b   : > { %v8702_v35 = vpop.eup %6183  ;;  %5659 = vmatprep.subr.bf16.mxu1 %v5658_v55  ;;  %6199 = vrcp.f32 %v1462_v56  ;;  %v2575_v34 = vsub.f32 %v8283_v36, %v2509_v45  ;;  %v2576_v18 = vsub.f32 %v8286_v23, %v2509_v45  ;;  %v2512_v9 = vpop.xlane.xlu1 %2511  ;;  %v2789_v63 = vadd.f32 %v8700_v26, %v8698_v50  ;;  %v11254_v45 = vld [vmem:[#allocation53_spill] sm:$0xff] }
 0x42c   : > { %11251 = vst [vmem:[#allocation34_spill] sm:$0xff] %v8702_v35  ;;  %v8708_v19 = vpop.eup %6185  ;;  %6201 = vrcp.f32 %v1465_v27  ;;  %5661 = vmatpush1.bf16.xpose.msra.mxu1 %v5660_v39  ;;  %v2577_v48 = vsub.f32 %v8295_v38, %v2512_v9  ;;  %v2578_v3 = vsub.f32 %v11252_v42, %v2512_v9  ;;  %v11255_v38 = vld [vmem:[#allocation56_spill] sm:$0xff] }
 0x42d   : > { %v6188_v8 = vpop.eup %6187  ;;  %v2695_v6 = vmul.f32 1.442695, %v2575_v34  ;;  %v2697_v44 = vmul.f32 1.442695, %v2576_v18  ;;  %2790 = vadd.xlane.f32.xlu0 %v2789_v63  ;;  %v2792_v36 = vadd.f32 %v8708_v19, %v8702_v35  ;;  %v11256_v42 = vld [vmem:[#allocation80_spill] sm:$0xff] }
 0x42e   : > { %v6190_v23 = vpop.eup %6189  ;;  %v2699_v56 = vmul.f32 1.442695, %v2577_v48  ;;  %v2701_v40 = vmul.f32 1.442695, %v2578_v3  ;;  %v2880_v31 = vmul.f32 %v6188_v8, %v11253_v62  ;;  %v2731_v55 = vpop.xlane.xlu0 %2730  ;;  %v2879_v27 = vmul.f32 %v6188_v8, %v11254_v45 }
 0x42f   : > { %6203 = vpow2.f32 %v2695_v6  ;;  %2793 = vadd.xlane.f32.xlu1 %v2792_v36  ;;  %v2882_v39 = vmul.f32 %v6190_v23, %v11255_v38  ;;  %v2734_v9 = vpop.xlane.xlu1 %2733  ;;  %v2881_v34 = vmul.f32 %v6190_v23, %v11256_v42  ;;  %v11259_v42 = vld [vmem:[#allocation107_spill] sm:$0xff] }
 0x430   : > { %6205 = vpow2.f32 %v2697_v44 }
 0x431   : > { %v8718_v18 = vpop.eup %6191  ;;  %6207 = vpow2.f32 %v2699_v56  ;;  %v5722_v63 = vpack.c.bf16 %v2882_v39, %v2880_v31  ;;  %v5724_v35 = vpack.c.bf16 %v2881_v34, %v2879_v27 }
 0x432   : > { %v8720_v48 = vpop.eup %6193  ;;  %6209 = vpow2.f32 %v2701_v40  ;;  %v1246_v3 = vpop.xlane.xlu0 %1245  ;;  %v11258_v40 = vld [vmem:[#allocation90_spill] sm:$0xff] }
 0x433   : > { %v8722_v62 = vpop.eup %6195  ;;  %5723 = vmatprep.subr.bf16.mxu0 %v5722_v63  ;;  %6211 = vrcp.f32 %v2731_v55  ;;  %v1310_v8 = vsub.f32 %v8329_v7, %v1246_v3  ;;  %v1311_v6 = vsub.f32 %v8332_v22, %v1246_v3  ;;  %v1249_v36 = vpop.xlane.xlu1 %1248  ;;  %v1526_v44 = vadd.f32 %v8720_v48, %v8718_v18  ;;  %v11260_v3 = vld [vmem:[#allocation106_spill] sm:$0xff] }
 0x434   : > { %11257 = vst [vmem:[#allocation13_spill] sm:$0xff] %v8722_v62  ;;  %v8728_v23 = vpop.eup %6197  ;;  %6213 = vrcp.f32 %v2734_v9  ;;  %5725 = vmatpush1.bf16.xpose.msra.mxu0 %v5724_v35  ;;  %v1312_v56 = vsub.f32 %v8337_v57, %v1249_v36  ;;  %v1313_v31 = vsub.f32 %v11258_v40, %v1249_v36  ;;  %v11261_v57 = vld [vmem:[#allocation58_spill] sm:$0xff]  ;;  %v11262_v40 = vld [vmem:[#allocation84_spill] sm:$0xff] }
 0x435   : > { %v6200_v45 = vpop.eup %6199  ;;  %v1434_v27 = vmul.f32 1.442695, %v1310_v8  ;;  %v1436_v38 = vmul.f32 1.442695, %v1311_v6  ;;  %1527 = vadd.xlane.f32.xlu0 %v1526_v44  ;;  %v1529_v7 = vadd.f32 %v8728_v23, %v8722_v62 }
 0x436   : > { %v6202_v22 = vpop.eup %6201  ;;  %v1438_v55 = vmul.f32 1.442695, %v1312_v56  ;;  %v1440_v39 = vmul.f32 1.442695, %v1313_v31  ;;  %v1615_v34 = vmul.f32 %v6200_v45, %v11259_v42  ;;  %v1468_v63 = vpop.xlane.xlu0 %1467  ;;  %v1614_v9 = vmul.f32 %v6200_v45, %v11260_v3 }
 0x437   : > { %6215 = vpow2.f32 %v1434_v27  ;;  %1530 = vadd.xlane.f32.xlu1 %v1529_v7  ;;  %v1617_v35 = vmul.f32 %v6202_v22, %v11261_v57  ;;  %v1471_v36 = vpop.xlane.xlu1 %1470  ;;  %v1616_v8 = vmul.f32 %v6202_v22, %v11262_v40 }
 0x438   : > { %6217 = vpow2.f32 %v1436_v38 }
 0x439   : > { %v8738_v6 = vpop.eup %6203  ;;  %6219 = vpow2.f32 %v1438_v55  ;;  %v5662_v44 = vpack.c.bf16 %v1617_v35, %v1615_v34  ;;  %v5664_v62 = vpack.c.bf16 %v1616_v8, %v1614_v9  ;;  %v11263_v35 = vld [vmem:[#allocation109_spill] sm:$0xff] }
 0x43a   : > { %v8740_v56 = vpop.eup %6205  ;;  %6221 = vpow2.f32 %v1440_v39  ;;  %v2515_v31 = vpop.xlane.xlu0 %2514 }
 0x43b   : > { %v8742_v42 = vpop.eup %6207  ;;  %5663 = vmatprep.subr.bf16.mxu1 %v5662_v44  ;;  %6223 = vrcp.f32 %v1468_v63  ;;  %v2579_v45 = vsub.f32 %v8381_v14, %v2515_v31  ;;  %v2580_v27 = vsub.f32 %v8386_v41, %v2515_v31  ;;  %v2518_v7 = vpop.xlane.xlu1 %2517  ;;  %v2795_v38 = vadd.f32 %v8740_v56, %v8738_v6  ;;  %v11264_v44 = vld [vmem:[#allocation59_spill] sm:$0xff]  ;;  %v11266_v31 = vld [vmem:[#allocation62_spill] sm:$0xff] }
 0x43c   : > { %v8748_v22 = vpop.eup %6209  ;;  %6225 = vrcp.f32 %v1471_v36  ;;  %5665 = vmatpush1.bf16.xpose.msra.mxu1 %v5664_v62  ;;  %v2581_v55 = vsub.f32 %v8395_v2, %v2518_v7  ;;  %v2582_v39 = vsub.f32 %v8400_v15, %v2518_v7  ;;  %v11265_v2 = vld [vmem:[#allocation60_spill] sm:$0xff] }
 0x43d   : > { %v6212_v34 = vpop.eup %6211  ;;  %v2703_v3 = vmul.f32 1.442695, %v2579_v45  ;;  %v2705_v9 = vmul.f32 1.442695, %v2580_v27  ;;  %2796 = vadd.xlane.f32.xlu0 %v2795_v38  ;;  %v2798_v14 = vadd.f32 %v8748_v22, %v8742_v42 }
 0x43e   : > { %v6214_v41 = vpop.eup %6213  ;;  %v2707_v63 = vmul.f32 1.442695, %v2581_v55  ;;  %v2709_v57 = vmul.f32 1.442695, %v2582_v39  ;;  %v2884_v40 = vmul.f32 %v6212_v34, %v11263_v35  ;;  %v2737_v8 = vpop.xlane.xlu0 %2736  ;;  %v2883_v36 = vmul.f32 %v6212_v34, %v11264_v44 }
 0x43f   : > { %6227 = vpow2.f32 %v2703_v3  ;;  %2799 = vadd.xlane.f32.xlu1 %v2798_v14  ;;  %v2886_v62 = vmul.f32 %v6214_v41, %v11265_v2  ;;  %v2740_v15 = vpop.xlane.xlu1 %2739  ;;  %v2885_v45 = vmul.f32 %v6214_v41, %v11266_v31  ;;  %v11272_v2 = vld [vmem:[#allocation61_spill] sm:$0xff] }
 0x440   : > { %6229 = vpow2.f32 %v2705_v9 }
 0x441   : > { %v8758_v27 = vpop.eup %6215  ;;  %6231 = vpow2.f32 %v2707_v63  ;;  %v5726_v7 = vpack.c.bf16 %v2886_v62, %v2884_v40  ;;  %v5728_v38 = vpack.c.bf16 %v2885_v45, %v2883_v36 }
 0x442   : > { %11267 = vst [vmem:[#allocation12_spill] sm:$0xff] %v8758_v27  ;;  %v8760_v55 = vpop.eup %6217  ;;  %6233 = vpow2.f32 %v2709_v57  ;;  %v1474_v39 = vpop.xlane.xlu0 %1473  ;;  %v11270_v57 = vld [vmem:[#allocation64_spill] sm:$0xff] }
 0x443   : > { %v8762_v35 = vpop.eup %6219  ;;  %5727 = vmatprep.subr.bf16.mxu0 %v5726_v7  ;;  %6235 = vrcp.f32 %v2737_v8  ;;  %v1477_v34 = vpop.xlane.xlu1 %1476  ;;  %v1532_v3 = vadd.f32 %v8760_v55, %v8758_v27  ;;  %v11271_v8 = vld [vmem:[#allocation92_spill] sm:$0xff]  ;;  %v11284_v27 = vld [vmem:[#allocation70_spill] sm:$0xff] }
 0x444   : > { %11268 = vst [vmem:[#allocation36_spill] sm:$0xff] %v8762_v35  ;;  %v8766_v14 = vpop.eup %6221  ;;  %6237 = vrcp.f32 %v2740_v15  ;;  %5729 = vmatpush1.bf16.xpose.msra.mxu0 %v5728_v38  ;;  %v11273_v15 = vld [vmem:[#allocation63_spill] sm:$0xff] }
 0x445   : > { %11269 = vst [vmem:[#allocation38_spill] sm:$0xff] %v8766_v14  ;;  %v6224_v9 = vpop.eup %6223  ;;  %6239 = vrcp.f32 %v1474_v39  ;;  %1533 = vadd.xlane.f32.xlu0 %v1532_v3  ;;  %v1535_v41 = vadd.f32 %v8766_v14, %v8762_v35 }
 0x446   : > { %v6226_v63 = vpop.eup %6225  ;;  %6241 = vrcp.f32 %v1477_v34  ;;  %v1619_v40 = vmul.f32 %v6224_v9, %v11270_v57  ;;  %v2743_v44 = vpop.xlane.xlu0 %2742  ;;  %v1618_v36 = vmul.f32 %v6224_v9, %v11271_v8 }
 0x447   : > { %1536 = vadd.xlane.f32.xlu1 %v1535_v41  ;;  %v1621_v62 = vmul.f32 %v6226_v63, %v11272_v2  ;;  %6243 = vrcp.f32 %v2743_v44  ;;  %v2746_v31 = vpop.xlane.xlu1 %2745  ;;  %v1620_v45 = vmul.f32 %v6226_v63, %v11273_v15 }
 0x448   : > { %6245 = vrcp.f32 %v2746_v31 }
 0x449   : > { %v8774_v7 = vpop.eup %6227  ;;  %v5666_v38 = vpack.c.bf16 %v1621_v62, %v1619_v40  ;;  %v5668_v39 = vpack.c.bf16 %v1620_v45, %v1618_v36 }
 0x44a   : > { %11274 = vst [vmem:[#allocation14_spill] sm:$0xff] %v8774_v7  ;;  %v8776_v3 = vpop.eup %6229  ;;  %v1480_v34 = vpop.xlane.xlu0 %1479 }
 0x44b   : > { %11275 = vst [vmem:[#allocation15_spill] sm:$0xff] %v8776_v3  ;;  %v8778_v35 = vpop.eup %6231  ;;  %5667 = vmatprep.subr.bf16.mxu1 %v5666_v38  ;;  %6247 = vrcp.f32 %v1480_v34  ;;  %v1483_v9 = vpop.xlane.xlu1 %1482  ;;  %v2801_v41 = vadd.f32 %v8776_v3, %v8774_v7  ;;  %v11278_v34 = vld [vmem:[#allocation65_spill] sm:$0xff] }
 0x44c   : > { %11276 = vst [vmem:[#allocation16_spill] sm:$0xff] %v8778_v35  ;;  %v8782_v57 = vpop.eup %6233  ;;  %5669 = vmatpush1.bf16.xpose.msra.mxu1 %v5668_v39  ;;  %6249 = vrcp.f32 %v1483_v9 }
 0x44d   : > { %11277 = vst [vmem:[#allocation31_spill] sm:$0xff] %v8782_v57  ;;  %v6236_v63 = vpop.eup %6235  ;;  %2802 = vadd.xlane.f32.xlu0 %v2801_v41  ;;  %v2804_v40 = vadd.f32 %v8782_v57, %v8778_v35 }
 0x44e   : > { %v6238_v44 = vpop.eup %6237  ;;  %v2749_v8 = vpop.xlane.xlu0 %2748  ;;  %v2888_v36 = vmul.f32 %v6236_v63, %v8370_v12  ;;  %v2887_v2 = vmul.f32 %v6236_v63, %v8364_v58  ;;  %v11279_v12 = vld [vmem:[#allocation96_spill] sm:$0xff]  ;;  %v11280_v58 = vld [vmem:[#allocation94_spill] sm:$0xff] }
 0x44f   : > { %v6240_v62 = vpop.eup %6239  ;;  %2805 = vadd.xlane.f32.xlu1 %v2804_v40  ;;  %6251 = vrcp.f32 %v2749_v8  ;;  %v2890_v31 = vmul.f32 %v6238_v44, %v8410_v47  ;;  %v2752_v15 = vpop.xlane.xlu1 %2751  ;;  %v2889_v45 = vmul.f32 %v6238_v44, %v8404_v54  ;;  %v11281_v8 = vld [vmem:[#allocation69_spill] sm:$0xff]  ;;  %v11282_v54 = vld [vmem:[#allocation71_spill] sm:$0xff] }
 0x450   : > { %v6242_v38 = vpop.eup %6241  ;;  %6253 = vrcp.f32 %v2752_v15  ;;  %v1623_v39 = vmul.f32 %v6240_v62, %v8416_v24  ;;  %v1622_v9 = vmul.f32 %v6240_v62, %v11278_v34  ;;  %v11283_v15 = vld [vmem:[#allocation67_spill] sm:$0xff] }
 0x451   : > { %v6244_v41 = vpop.eup %6243  ;;  %v5730_v35 = vpack.c.bf16 %v2890_v31, %v2888_v36  ;;  %v5732_v57 = vpack.c.bf16 %v2889_v45, %v2887_v2  ;;  %v1625_v7 = vmul.f32 %v6242_v38, %v11279_v12  ;;  %v1624_v63 = vmul.f32 %v6242_v38, %v11280_v58  ;;  %v11285_v31 = vld [vmem:[#allocation111_spill] sm:$0xff]  ;;  %v11286_v38 = vld [vmem:[#allocation110_spill] sm:$0xff] }
 0x452   : > { %v6246_v40 = vpop.eup %6245  ;;  %v2892_v3 = vmul.f32 %v6244_v41, %v11281_v8  ;;  %v2891_v24 = vmul.f32 %v6244_v41, %v11283_v15 }
 0x453   : > { %5731 = vmatprep.subr.bf16.mxu0 %v5730_v35  ;;  %v5670_v47 = vpack.c.bf16 %v1625_v7, %v1623_v39  ;;  %v5672_v14 = vpack.c.bf16 %v1624_v63, %v1622_v9  ;;  %v2894_v44 = vmul.f32 %v6246_v40, %v11282_v54  ;;  %v2893_v62 = vmul.f32 %v6246_v40, %v11284_v27  ;;  %v11287_v35 = vld [vmem:[#allocation75_spill] sm:$0xff]  ;;  %v11288_v39 = vld [vmem:[#allocation73_spill] sm:$0xff] }
 0x454   : > { %5733 = vmatpush1.bf16.xpose.msra.mxu0 %v5732_v57 }
 0x455   : > { %v6248_v34 = vpop.eup %6247  ;;  %5671 = vmatprep.subr.bf16.mxu1 %v5670_v47  ;;  %v5734_v36 = vpack.c.bf16 %v2894_v44, %v2892_v3  ;;  %v5736_v58 = vpack.c.bf16 %v2893_v62, %v2891_v24  ;;  %v11289_v47 = vld [vmem:[#allocation112_spill] sm:$0xff] }
 0x456   : > { %v6250_v2 = vpop.eup %6249  ;;  %5673 = vmatpush1.bf16.xpose.msra.mxu1 %v5672_v14  ;;  %v1627_v45 = vmul.f32 %v6248_v34, %v11285_v31  ;;  %v1626_v12 = vmul.f32 %v6248_v34, %v11286_v38 }
 0x457   : > { %5735 = vmatprep.subr.bf16.mxu0 %v5734_v36  ;;  %v1629_v7 = vmul.f32 %v6250_v2, %v11287_v35  ;;  %v1628_v9 = vmul.f32 %v6250_v2, %v11288_v39 }
 0x459   : > { %v6252_v57 = vpop.eup %6251  ;;  %v5674_v63 = vpack.c.bf16 %v1629_v7, %v1627_v45  ;;  %v1489_v8 = vpop.xlane.xlu1 %1488  ;;  %v5676_v27 = vpack.c.bf16 %v1628_v9, %v1626_v12 }
 0x45a   : > { %v6254_v41 = vpop.eup %6253  ;;  %v2896_v40 = vmul.f32 %v6252_v57, %v8450_v4  ;;  %v2895_v3 = vmul.f32 %v6252_v57, %v8446_v5  ;;  %6255 = vrcp.f32 %v1489_v8 }
 0x45b   : > { %5675 = vmatprep.subr.bf16.mxu1 %v5674_v63  ;;  %v2898_v14 = vmul.f32 %v6254_v41, %v8458_v46  ;;  %v2897_v54 = vmul.f32 %v6254_v41, %v11289_v47 }
 0x45c   : > { %5737 = vmatpush1.bf16.xpose.msra.mxu0 %v5736_v58 }
 0x45d   : > { %v5738_v44 = vpack.c.bf16 %v2898_v14, %v2896_v40  ;;  %v1486_v15 = vpop.xlane.xlu0 %1485  ;;  %v5740_v24 = vpack.c.bf16 %v2897_v54, %v2895_v3 }
 0x45e   : > { %5677 = vmatpush1.bf16.xpose.msra.mxu1 %v5676_v27  ;;  %6257 = vrcp.f32 %v1486_v15 }
 0x45f   : > { %5739 = vmatprep.subr.bf16.mxu0 %v5738_v44 }
 0x461   : > { %v2755_v62 = vpop.xlane.xlu0 %2754 }
 0x462   : > { %6259 = vrcp.f32 %v2755_v62 }
 0x463   : > { %v2758_v34 = vpop.xlane.xlu1 %2757 }
 0x464   : > { %5741 = vmatpush1.bf16.xpose.msra.mxu0 %v5740_v24  ;;  %6261 = vrcp.f32 %v2758_v34  ;;  %v6256_v36 = vpop.eup %6255 }
 0x465   : > { %v1492_v4 = vpop.xlane.xlu0 %1491  ;;  %v1633_v45 = vmul.f32 %v6256_v36, %v8478_v37  ;;  %v1632_v12 = vmul.f32 %v6256_v36, %v8476_v51 }
 0x466   : > { %6263 = vrcp.f32 %v1492_v4 }
 0x467   : > { %v1495_v46 = vpop.xlane.xlu1 %1494 }
 0x468   : > { %v6258_v2 = vpop.eup %6257  ;;  %6265 = vrcp.f32 %v1495_v46 }
 0x469   : > { %v2761_v5 = vpop.xlane.xlu0 %2760  ;;  %v1631_v31 = vmul.f32 %v6258_v2, %v8488_v13  ;;  %v1630_v38 = vmul.f32 %v6258_v2, %v8486_v25 }
 0x46a   : > { %6267 = vrcp.f32 %v2761_v5 }
 0x46b   : > { %v2764_v35 = vpop.xlane.xlu1 %2763  ;;  %v5678_v7 = vpack.c.bf16 %v1633_v45, %v1631_v31  ;;  %v5680_v39 = vpack.c.bf16 %v1632_v12, %v1630_v38 }
 0x46c   : > { %v6260_v9 = vpop.eup %6259  ;;  %6269 = vrcp.f32 %v2764_v35  ;;  %v11293_v35 = vld [vmem:[#allocation79_spill] sm:$0xff] }
 0x46d   : > { %v1498_v58 = vpop.xlane.xlu0 %1497  ;;  %5679 = vmatprep.subr.bf16.mxu1 %v5678_v7  ;;  %v2900_v57 = vmul.f32 %v6260_v9, %v8495_v52  ;;  %v2899_v63 = vmul.f32 %v6260_v9, %v8490_v32 }
 0x46e   : > { %v6262_v41 = vpop.eup %6261  ;;  %6271 = vrcp.f32 %v1498_v58  ;;  %5681 = vmatpush1.bf16.xpose.msra.mxu1 %v5680_v39 }
 0x46f   : > { %v1501_v37 = vpop.xlane.xlu1 %1500  ;;  %v2902_v25 = vmul.f32 %v6262_v41, %v8509_v61  ;;  %v2901_v51 = vmul.f32 %v6262_v41, %v8504_v49 }
 0x470   : > { %v6264_v13 = vpop.eup %6263  ;;  %6273 = vrcp.f32 %v1501_v37  ;;  %v11296_v37 = vld [vmem:[#allocation81_spill] sm:$0xff] }
 0x471   : > { %v2767_v8 = vpop.xlane.xlu0 %2766  ;;  %v5742_v27 = vpack.c.bf16 %v2902_v25, %v2900_v57  ;;  %v5744_v40 = vpack.c.bf16 %v2901_v51, %v2899_v63  ;;  %v1635_v14 = vmul.f32 %v6264_v13, %v8502_v1  ;;  %v1634_v3 = vmul.f32 %v6264_v13, %v8500_v33  ;;  %v11290_v33 = vld [vmem:[#allocation5_spill] sm:$0xff]  ;;  %v11295_v63 = vld [vmem:[#allocation98_spill] sm:$0xff]  ;;  %v11297_v13 = vld [vmem:[#allocation7_spill] sm:$0xff] }
 0x472   : > { %v6266_v52 = vpop.eup %6265  ;;  %6275 = vrcp.f32 %v2767_v8  ;;  %v3006_v34 = vmul.f32 0.35355338, %v11290_v33  ;;  %v4275_v8 = vmul.f32 0.35355338, %v11297_v13 }
 0x473   : > { %5743 = vmatprep.subr.bf16.mxu0 %v5742_v27  ;;  %v1637_v47 = vmul.f32 %v6266_v52, %v8516_v60  ;;  %v1636_v54 = vmul.f32 %v6266_v52, %v8514_v10 }
 0x474   : > { %v2770_v32 = vpop.xlane.xlu1 %2769  ;;  %v6268_v61 = vpop.eup %6267  ;;  %5745 = vmatpush1.bf16.xpose.msra.mxu0 %v5744_v40  ;;  %v11298_v40 = vld [vmem:[#allocation85_spill] sm:$0xff] }
 0x475   : > { %6277 = vrcp.f32 %v2770_v32  ;;  %v1504_v49 = vpop.xlane.xlu0 %1503  ;;  %v5682_v44 = vpack.c.bf16 %v1637_v47, %v1635_v14  ;;  %v5684_v15 = vpack.c.bf16 %v1636_v54, %v1634_v3  ;;  %v2904_v24 = vmul.f32 %v6268_v61, %v8525_v43  ;;  %v11291_v43 = vld [vmem:[#allocation76_spill] sm:$0xff]  ;;  %v11299_v3 = vld [vmem:[#allocation101_spill] sm:$0xff] }
 0x476   : > { %v2903_v1 = vmul.f32 %v6268_v61, %v8520_v17  ;;  %v6270_v62 = vpop.eup %6269  ;;  %6279 = vrcp.f32 %v1504_v49  ;;  %v11292_v17 = vld [vmem:[#allocation113_spill] sm:$0xff]  ;;  %v11300_v49 = vld [vmem:[#allocation100_spill] sm:$0xff] }
 0x477   : > { %5683 = vmatprep.subr.bf16.mxu1 %v5682_v44  ;;  %v2906_v60 = vmul.f32 %v6270_v62, %v8541_v20  ;;  %v2905_v10 = vmul.f32 %v6270_v62, %v8536_v30  ;;  %v11294_v20 = vld [vmem:[#allocation77_spill] sm:$0xff]  ;;  %v11302_v62 = vld [vmem:[#allocation87_spill] sm:$0xff] }
 0x478   : > { %v1507_v4 = vpop.xlane.xlu1 %1506  ;;  %v6272_v36 = vpop.eup %6271  ;;  %5685 = vmatpush1.bf16.xpose.msra.mxu1 %v5684_v15  ;;  %v11301_v15 = vld [vmem:[#allocation99_spill] sm:$0xff] }
 0x479   : > { %6281 = vrcp.f32 %v1507_v4  ;;  %v2773_v46 = vpop.xlane.xlu0 %2772  ;;  %v5746_v2 = vpack.c.bf16 %v2906_v60, %v2904_v24  ;;  %v5748_v5 = vpack.c.bf16 %v2905_v10, %v2903_v1  ;;  %v1639_v31 = vmul.f32 %v6272_v36, %v11291_v43 }
 0x47a   : > { %3008 = vxpose.xlu0.b32.start.end [1/1] (short) %v3006_v34, 128  ;;  %v1638_v45 = vmul.f32 %v6272_v36, %v11292_v17  ;;  %v6274_v38 = vpop.eup %6273  ;;  %6283 = vrcp.f32 %v2773_v46  ;;  %v11303_v34 = vld [vmem:[#allocation82_spill] sm:$0xff] }
 0x47b   : > { %5747 = vmatprep.subr.bf16.mxu0 %v5746_v2  ;;  %v1641_v7 = vmul.f32 %v6274_v38, %v11293_v35  ;;  %v1640_v39 = vmul.f32 %v6274_v38, %v11294_v20  ;;  %v11304_v2 = vld [vmem:[#allocation88_spill] sm:$0xff] }
 0x47c   : > { %v2776_v12 = vpop.xlane.xlu1 %2775  ;;  %v6276_v30 = vpop.eup %6275  ;;  %5749 = vmatpush1.bf16.xpose.msra.mxu0 %v5748_v5 }
 0x47d   : > { %6285 = vrcp.f32 %v2776_v12  ;;  %v1510_v9 = vpop.xlane.xlu0 %1509  ;;  %v5686_v58 = vpack.c.bf16 %v1641_v7, %v1639_v31  ;;  %v5688_v57 = vpack.c.bf16 %v1640_v39, %v1638_v45  ;;  %v2908_v41 = vmul.f32 %v6276_v30, %v11295_v63  ;;  %v11305_v31 = vld [vmem:[#allocation83_spill] sm:$0xff]  ;;  %v11307_v12 = vld [vmem:[#allocation114_spill] sm:$0xff] }
 0x47e   : > { %v2907_v25 = vmul.f32 %v6276_v30, %v11296_v37  ;;  %6287 = vrcp.f32 %v1510_v9  ;;  %v11306_v45 = vld [vmem:[#allocation115_spill] sm:$0xff] }
 0x47f   : > { %v6278_v51 = vpop.eup %6277  ;;  %5687 = vmatprep.subr.bf16.mxu1 %v5686_v58  ;;  %v11308_v30 = vld [vmem:[#allocation91_spill] sm:$0xff]  ;;  %v11309_v58 = vld [vmem:[#allocation89_spill] sm:$0xff] }
 0x480   : > { %v1513_v27 = vpop.xlane.xlu1 %1512  ;;  %v2910_v14 = vmul.f32 %v6278_v51, %v11298_v40  ;;  %v2909_v52 = vmul.f32 %v6278_v51, %v11299_v3  ;;  %v6280_v32 = vpop.eup %6279  ;;  %5689 = vmatpush1.bf16.xpose.msra.mxu1 %v5688_v57 }
 0x481   : > { %6289 = vrcp.f32 %v1513_v27  ;;  %v1643_v44 = vmul.f32 %v6280_v32, %v11300_v49  ;;  %v1642_v24 = vmul.f32 %v6280_v32, %v11301_v15 }
 0x482   : > { %4277 = vxpose.xlu1.b32.start.end [1/1] (short) %v4275_v8, 128  ;;  %v2779_v47 = vpop.xlane.xlu0 %2778  ;;  %v5750_v54 = vpack.c.bf16 %v2910_v14, %v2908_v41  ;;  %v5752_v61 = vpack.c.bf16 %v2909_v52, %v2907_v25  ;;  %v11310_v41 = vld [vmem:[#allocation116_spill] sm:$0xff]  ;;  %v11311_v25 = vld [vmem:[#allocation93_spill] sm:$0xff]  ;;  %v11312_v14 = vld [vmem:[#allocation95_spill] sm:$0xff] }
 0x483   : > { %v6282_v1 = vpop.eup %6281  ;;  %6291 = vrcp.f32 %v2779_v47  ;;  %v11313_v52 = vld [vmem:[#allocation10_spill] sm:$0xff]  ;;  %v11314_v47 = vld [vmem:[#allocation117_spill] sm:$0xff] }
 0x484   : > { %5751 = vmatprep.subr.bf16.mxu0 %v5750_v54  ;;  %v1645_v33 = vmul.f32 %v6282_v1, %v11302_v62  ;;  %v1644_v4 = vmul.f32 %v6282_v1, %v11303_v34  ;;  %v6284_v60 = vpop.eup %6283 }
 0x485   : > { %5753 = vmatpush1.bf16.xpose.msra.mxu0 %v5752_v61  ;;  %v2912_v5 = vmul.f32 %v6284_v60, %v11304_v2  ;;  %v2911_v17 = vmul.f32 %v6284_v60, %v11305_v31  ;;  %v11315_v61 = vld [vmem:[#allocation97_spill] sm:$0xff] }
 0x486   : > { %v2782_v10 = vpop.xlane.xlu1 %2781  ;;  %v5690_v36 = vpack.c.bf16 %v1645_v33, %v1643_v44  ;;  %v5692_v46 = vpack.c.bf16 %v1644_v4, %v1642_v24 }
 0x487   : > { %6293 = vrcp.f32 %v2782_v10  ;;  %v6286_v43 = vpop.eup %6285 }
 0x488   : > { %5691 = vmatprep.subr.bf16.mxu1 %v5690_v36  ;;  %v2914_v38 = vmul.f32 %v6286_v43, %v11306_v45  ;;  %v2913_v35 = vmul.f32 %v6286_v43, %v11307_v12  ;;  %v6288_v7 = vpop.eup %6287  ;;  %v11316_v45 = vld [vmem:[#allocation6_spill] sm:$0xff]  ;;  %v11317_v12 = vld [vmem:[#allocation35_spill] sm:$0xff] }
 0x489   : > { %5693 = vmatpush1.bf16.xpose.msra.mxu1 %v5692_v46  ;;  %v1647_v9 = vmul.f32 %v6288_v7, %v11308_v30  ;;  %v1646_v57 = vmul.f32 %v6288_v7, %v11309_v58 }
 0x48a   : > { %v5754_v20 = vpack.c.bf16 %v2914_v38, %v2912_v5  ;;  %v5756_v39 = vpack.c.bf16 %v2913_v35, %v2911_v17  ;;  %v3007_v38 = vmul.f32 0.35355338, %v11316_v45 }
 0x48b   : > { %v6290_v63 = vpop.eup %6289 }
 0x48c   : > { %5755 = vmatprep.subr.bf16.mxu0 %v5754_v20  ;;  %v1649_v37 = vmul.f32 %v6290_v63, %v11310_v41  ;;  %v1648_v51 = vmul.f32 %v6290_v63, %v11311_v25  ;;  %v11320_v41 = vld [vmem:[#allocation33_spill] sm:$0xff] }
 0x48d   : > { %5757 = vmatpush1.bf16.xpose.msra.mxu0 %v5756_v39  ;;  %v6292_v13 = vpop.eup %6291 }
 0x48e   : > { %v5694_v8 = vpack.c.bf16 %v1649_v37, %v1647_v9  ;;  %v5696_v27 = vpack.c.bf16 %v1648_v51, %v1646_v57  ;;  %v2916_v3 = vmul.f32 %v6292_v13, %v11312_v14  ;;  %v2915_v54 = vmul.f32 %v6292_v13, %v11314_v47  ;;  %v11319_v57 = vld [vmem:[#allocation8_spill] sm:$0xff]  ;;  %v11321_v51 = vld [vmem:[#allocation11_spill] sm:$0xff] }
 0x48f   : > { %v4276_v63 = vmul.f32 0.35355338, %v11319_v57 }
 0x490   : > { %5695 = vmatprep.subr.bf16.mxu1 %v5694_v8 }
 0x491   : > { %v6294_v40 = vpop.eup %6293  ;;  %5697 = vmatpush1.bf16.xpose.msra.mxu1 %v5696_v27 }
 0x492   : > { %v2918_v32 = vmul.f32 %v6294_v40, %v11313_v52  ;;  %v2917_v49 = vmul.f32 %v6294_v40, %v11315_v61 }
 0x494   : > { %v5758_v44 = vpack.c.bf16 %v2918_v32, %v2916_v3  ;;  %v5760_v15 = vpack.c.bf16 %v2917_v49, %v2915_v54  ;;  %v11322_v54 = vld [vmem:[#allocation34_spill] sm:$0xff] }
 0x496   : > { %5759 = vmatprep.subr.bf16.mxu0 %v5758_v44 }
 0x497   : > { %5761 = vmatpush1.bf16.xpose.msra.mxu0 %v5760_v15 }
 0x4a2   : > { %v1516_v24 = vpop.xlane.xlu0 %1515 }
 0x4a3   : > { %6295 = vrcp.f32 %v1516_v24 }
 0x4a4   : > { %v1519_v1 = vpop.xlane.xlu1 %1518 }
 0x4a5   : > { %6297 = vrcp.f32 %v1519_v1 }
 0x4aa   : > { %v2785_v62 = vpop.xlane.xlu0 %2784 }
 0x4ab   : > { %6299 = vrcp.f32 %v2785_v62 }
 0x4ac   : > { %v2788_v33 = vpop.xlane.xlu1 %2787 }
 0x4ad   : > { %v6296_v34 = vpop.eup %6295  ;;  %6301 = vrcp.f32 %v2788_v33  ;;  %v11323_v33 = vld [vmem:[#allocation13_spill] sm:$0xff] }
 0x4ae   : > { %v1651_v4 = vmul.f32 %v6296_v34, %v8640_v59  ;;  %v1650_v60 = vmul.f32 %v6296_v34, %v8638_v28 }
 0x4af   : > { %v6298_v10 = vpop.eup %6297 }
 0x4b0   : > { %v1653_v36 = vmul.f32 %v6298_v10, %v8648_v11  ;;  %v1652_v46 = vmul.f32 %v6298_v10, %v8642_v53  ;;  %v11318_v53 = vld [vmem:[#allocation9_spill] sm:$0xff] }
 0x4b2   : > { %v1522_v2 = vpop.xlane.xlu0 %1521  ;;  %v5698_v5 = vpack.c.bf16 %v1653_v36, %v1651_v4  ;;  %v5700_v43 = vpack.c.bf16 %v1652_v46, %v1650_v60 }
 0x4b3   : > { %6303 = vrcp.f32 %v1522_v2 }
 0x4b4   : > { %5699 = vmatprep.subr.bf16.mxu1 %v5698_v5  ;;  %v1525_v31 = vpop.xlane.xlu1 %1524 }
 0x4b5   : > { %v6300_v17 = vpop.eup %6299  ;;  %6305 = vrcp.f32 %v1525_v31  ;;  %5701 = vmatpush1.bf16.xpose.msra.mxu1 %v5700_v43 }
 0x4b6   : > { %v2920_v59 = vmul.f32 %v6300_v17, %v8660_v0  ;;  %v2919_v28 = vmul.f32 %v6300_v17, %v11317_v12 }
 0x4b7   : > { %v6302_v35 = vpop.eup %6301  ;;  %3040 = vxpose.xlu0.b32.start.end [1/1] (short) %v3007_v38, 128 }
 0x4b8   : > { %v2922_v11 = vmul.f32 %v6302_v35, %v8668_v21  ;;  %v2921_v7 = vmul.f32 %v6302_v35, %v11318_v53  ;;  %v11326_v35 = vld [vmem:[#allocation36_spill] sm:$0xff] }
 0x4ba   : > { %v2791_v20 = vpop.xlane.xlu0 %2790  ;;  %v5762_v39 = vpack.c.bf16 %v2922_v11, %v2920_v59  ;;  %v5764_v30 = vpack.c.bf16 %v2921_v7, %v2919_v28  ;;  %v11324_v59 = vld [vmem:[#allocation12_spill] sm:$0xff]  ;;  %v11327_v7 = vld [vmem:[#allocation23_spill] sm:$0xff] }
 0x4bb   : > { %6307 = vrcp.f32 %v2791_v20  ;;  %v11328_v20 = vld [vmem:[#allocation15_spill] sm:$0xff] }
 0x4bc   : > { %5763 = vmatprep.subr.bf16.mxu0 %v5762_v39  ;;  %v2794_v9 = vpop.xlane.xlu1 %2793 }
 0x4bd   : > { %v6304_v58 = vpop.eup %6303  ;;  %6309 = vrcp.f32 %v2794_v9  ;;  %5765 = vmatpush1.bf16.xpose.msra.mxu0 %v5764_v30  ;;  %v11329_v30 = vld [vmem:[#allocation14_spill] sm:$0xff] }
 0x4be   : > { %v1655_v0 = vmul.f32 %v6304_v58, %v8680_v29  ;;  %v1654_v37 = vmul.f32 %v6304_v58, %v11320_v41 }
 0x4bf   : > { %v6306_v25 = vpop.eup %6305  ;;  %4309 = vxpose.xlu1.b32.start.end [1/1] (short) %v4276_v63, 128  ;;  %v11331_v63 = vld [vmem:[#allocation16_spill] sm:$0xff] }
 0x4c0   : > { %v1657_v21 = vmul.f32 %v6306_v25, %v8688_v16  ;;  %v1656_v13 = vmul.f32 %v6306_v25, %v11321_v51  ;;  %v11332_v25 = vld [vmem:[#allocation26_spill] sm:$0xff]  ;;  %v11334_v51 = vld [vmem:[#allocation25_spill] sm:$0xff] }
 0x4c2   : > { %v1528_v8 = vpop.xlane.xlu0 %1527  ;;  %v5702_v27 = vpack.c.bf16 %v1657_v21, %v1655_v0  ;;  %v5704_v40 = vpack.c.bf16 %v1656_v13, %v1654_v37  ;;  %v11333_v21 = vld [vmem:[#allocation22_spill] sm:$0xff]  ;;  %v11335_v13 = vmov 0.0  }
 0x4c3   : > { %6311 = vrcp.f32 %v1528_v8  ;;  %v11336_v8 = vld [vmem:[#allocation17_spill] sm:$0xff] }
 0x4c4   : > { %5703 = vmatprep.subr.bf16.mxu1 %v5702_v27  ;;  %v1531_v14 = vpop.xlane.xlu1 %1530  ;;  %v11337_v27 = vld [vmem:[#allocation24_spill] sm:$0xff] }
 0x4c5   : > { %v6308_v3 = vpop.eup %6307  ;;  %6313 = vrcp.f32 %v1531_v14  ;;  %5705 = vmatpush1.bf16.xpose.msra.mxu1 %v5704_v40 }
 0x4c6   : > { %v2924_v52 = vmul.f32 %v6308_v3, %v8700_v26  ;;  %v2923_v29 = vmul.f32 %v6308_v3, %v8698_v50 }
 0x4c7   : > { %v6310_v32 = vpop.eup %6309 }
 0x4c8   : > { %v2926_v47 = vmul.f32 %v6310_v32, %v8708_v19  ;;  %v2925_v16 = vmul.f32 %v6310_v32, %v11322_v54 }
 0x4ca   : > { %v2797_v61 = vpop.xlane.xlu0 %2796  ;;  %v5766_v49 = vpack.c.bf16 %v2926_v47, %v2924_v52  ;;  %v5768_v44 = vpack.c.bf16 %v2925_v16, %v2923_v29 }
 0x4cb   : > { %6315 = vrcp.f32 %v2797_v61 }
 0x4cc   : > { %5767 = vmatprep.subr.bf16.mxu0 %v5766_v49  ;;  %v2800_v15 = vpop.xlane.xlu1 %2799 }
 0x4cd   : > { %v6312_v24 = vpop.eup %6311  ;;  %6317 = vrcp.f32 %v2800_v15  ;;  %5769 = vmatpush1.bf16.xpose.msra.mxu0 %v5768_v44 }
 0x4ce   : > { %v1659_v1 = vmul.f32 %v6312_v24, %v8720_v48  ;;  %v1658_v26 = vmul.f32 %v6312_v24, %v8718_v18 }
 0x4cf   : > { %v6314_v62 = vpop.eup %6313 }
 0x4d0   : > { %v1661_v50 = vmul.f32 %v6314_v62, %v8728_v23  ;;  %v1660_v19 = vmul.f32 %v6314_v62, %v11323_v33  ;;  %v3428_v33 = vld [vmem:[#allocation2 + $0x210] sm:$0xff] }
 0x4d2   : > { %v1534_v34 = vpop.xlane.xlu0 %1533  ;;  %v5706_v4 = vpack.c.bf16 %v1661_v50, %v1659_v1  ;;  %v5708_v60 = vpack.c.bf16 %v1660_v19, %v1658_v26  ;;  %v3427_v1 = vld [vmem:[#allocation2 + $0x208] sm:$0xff]  ;;  %v3426_v26 = vld [vmem:[#allocation2 + $0x200] sm:$0xff]  ;;  %v3429_v19 = vld [vmem:[#allocation2 + $0x218] sm:$0xff] }
 0x4d3   : > { %6319 = vrcp.f32 %v1534_v34 }
 0x4d4   : > { %5707 = vmatprep.subr.bf16.mxu1 %v5706_v4  ;;  %v1537_v10 = vpop.xlane.xlu1 %1536 }
 0x4d5   : > { %v6316_v36 = vpop.eup %6315  ;;  %6321 = vrcp.f32 %v1537_v10  ;;  %5709 = vmatpush1.bf16.xpose.msra.mxu1 %v5708_v60  ;;  %v3430_v60 = vld [vmem:[#allocation2 + $0x220] sm:$0xff]  ;;  %v3431_v10 = vld [vmem:[#allocation2 + $0x228] sm:$0xff] }
 0x4d6   : > { %v2928_v46 = vmul.f32 %v6316_v36, %v8740_v56  ;;  %v2927_v48 = vmul.f32 %v6316_v36, %v8738_v6  ;;  %v11325_v6 = vld [vmem:[#allocation38_spill] sm:$0xff] }
 0x4d7   : > { %v6318_v2 = vpop.eup %6317 }
 0x4d8   : > { %v2930_v18 = vmul.f32 %v6318_v2, %v8748_v22  ;;  %v2929_v23 = vmul.f32 %v6318_v2, %v8742_v42  ;;  %v3433_v2 = vld [vmem:[#allocation2 + $0x238] sm:$0xff] }
 0x4da   : > { %v2803_v5 = vpop.xlane.xlu0 %2802  ;;  %v5770_v43 = vpack.c.bf16 %v2930_v18, %v2928_v46  ;;  %v5772_v31 = vpack.c.bf16 %v2929_v23, %v2927_v48  ;;  %v3432_v48 = vld [vmem:[#allocation2 + $0x230] sm:$0xff] }
 0x4db   : > { %6323 = vrcp.f32 %v2803_v5  ;;  %v3434_v5 = vld [vmem:[#allocation2 + $0x240] sm:$0xff] }
 0x4dc   : > { %5771 = vmatprep.subr.bf16.mxu0 %v5770_v43  ;;  %v2806_v17 = vpop.xlane.xlu1 %2805  ;;  %v3435_v43 = vld [vmem:[#allocation2 + $0x248] sm:$0xff] }
 0x4dd   : > { %v6320_v45 = vpop.eup %6319  ;;  %6325 = vrcp.f32 %v2806_v17  ;;  %5773 = vmatpush1.bf16.xpose.msra.mxu0 %v5772_v31 }
 0x4de   : > { %v1663_v38 = vmul.f32 %v6320_v45, %v8760_v55  ;;  %v1662_v56 = vmul.f32 %v6320_v45, %v11324_v59  ;;  %v11330_v55 = vld [vmem:[#allocation31_spill] sm:$0xff] }
 0x4df   : > { %v6322_v12 = vpop.eup %6321  ;;  %v3436_v45 = vld [vmem:[#allocation2 + $0x250] sm:$0xff] }
 0x4e0   : > { %v1665_v28 = vmul.f32 %v6322_v12, %v11325_v6  ;;  %v1664_v22 = vmul.f32 %v6322_v12, %v11326_v35  ;;  %v3438_v12 = vld [vmem:[#allocation2 + $0x260] sm:$0xff]  ;;  %v3439_v6 = vld [vmem:[#allocation2 + $0x268] sm:$0xff] }
 0x4e2   : > { %v5710_v11 = vpack.c.bf16 %v1665_v28, %v1663_v38  ;;  %v5712_v42 = vpack.c.bf16 %v1664_v22, %v1662_v56  ;;  %v3437_v38 = vld [vmem:[#allocation2 + $0x258] sm:$0xff] }
 0x4e4   : > { %5711 = vmatprep.subr.bf16.mxu1 %v5710_v11 }
 0x4e5   : > { %v6324_v53 = vpop.eup %6323  ;;  %5713 = vmatpush1.bf16.xpose.msra.mxu1 %v5712_v42 }
 0x4e6   : > { %3168 = vmatprep.subr.mxu1 %v11327_v7  ;;  %v2932_v39 = vmul.f32 %v6324_v53, %v11328_v20  ;;  %v2931_v9 = vmul.f32 %v6324_v53, %v11329_v30 }
 0x4e7   : > { %v6326_v58 = vpop.eup %6325 }
 0x4e8   : > { %v2934_v57 = vmul.f32 %v6326_v58, %v11330_v55  ;;  %v2933_v0 = vmul.f32 %v6326_v58, %v11331_v63 }
 0x4ea   : > { %v5774_v41 = vpack.c.bf16 %v2934_v57, %v2932_v39  ;;  %v5776_v37 = vpack.c.bf16 %v2933_v0, %v2931_v9 }
 0x4ec   : > { %1731 = vmatmul.mubr.f32.vlgmr.msra.gmra.mrb[70].mxu1 %v11332_v25  ;;  %5775 = vmatprep.subr.bf16.mxu0 %v5774_v41 }
 0x4ed   : > { %5777 = vmatpush1.bf16.xpose.msra.mxu0 %v5776_v37  ;;  %3169 = vmatpush1.msra.mxu1 %v11333_v21 }
 0x4ee   : > { %4437 = vmatprep.subr.mxu0 %v11334_v51  ;;  %3232 = vmatprep.mubr.f32.mxu1 %v11335_v13 }
 0x4f4   : > { %3000 = vmatmul.mubr.f32.vlgmr.msra.gmra.mrb[82].mxu0 %v11336_v8 }
 0x4f5   : > { %4438 = vmatpush1.msra.mxu0 %v11337_v27  ;;  %4501 = vmatprep.mubr.f32.mxu0 %v11335_v13 }
 0x4fa   : > { %v3024_v40 = vpop.trf.xlu0 }
 0x4fb   : > { %5569 = vmatmul.mubr.msk.f32.vlgmr.msra.gmra.mrb[72].mxu1 %vm535_vm1, %v3024_v40 }
 0x4fc   : > { %3238 = vmatprep.mubr.f32.mxu1 %v11335_v13 }
 0x4fe   : > { %v3025_v14 = vpop.trf.xlu0 }
 0x4ff   : > { %5570 = vmatmul.mubr.msk.f32.gmra.mrb[74].mxu1 %vm535_vm1, %v3025_v14 }
 0x500   : > { %3244 = vmatprep.mubr.f32.mxu1 %v11335_v13 }
 0x502   : > { %v4293_v3 = vpop.trf.xlu1  ;;  %v3026_v52 = vpop.trf.xlu0 }
 0x503   : > { %5602 = vmatmul.mubr.msk.f32.vlgmr.msra.gmra.mrb[84].mxu0 %vm535_vm1, %v4293_v3  ;;  %5571 = vmatmul.mubr.msk.f32.gmra.mrb[76].mxu1 %vm535_vm1, %v3026_v52 }
 0x504   : > { %4507 = vmatprep.mubr.f32.mxu0 %v11335_v13  ;;  %3250 = vmatprep.mubr.f32.mxu1 %v11335_v13 }
 0x506   : > { %v4294_v29 = vpop.trf.xlu1  ;;  %v3027_v32 = vpop.trf.xlu0 }
 0x507   : > { %5603 = vmatmul.mubr.msk.f32.gmra.mrb[86].mxu0 %vm535_vm1, %v4294_v29  ;;  %5572 = vmatmul.mubr.msk.f32.gmra.mrb[78].mxu1 %vm535_vm1, %v3027_v32 }
 0x508   : > { %4513 = vmatprep.mubr.f32.mxu0 %v11335_v13  ;;  %3256 = vmatprep.mubr.f32.mxu1 %v11335_v13 }
 0x50a   : > { %v4295_v47 = vpop.trf.xlu1  ;;  %v3028_v54 = vpop.trf.xlu0 }
 0x50b   : > { %5604 = vmatmul.mubr.msk.f32.gmra.mrb[88].mxu0 %vm535_vm1, %v4295_v47  ;;  %5573 = vmatmul.mubr.msk.f32.gmra.mrb[80].mxu1 %vm535_vm1, %v3028_v54 }
 0x50c   : > { %4519 = vmatprep.mubr.f32.mxu0 %v11335_v13  ;;  %3262 = vmatprep.mubr.f32.mxu1 %v11335_v13 }
 0x50e   : > { %v4296_v16 = vpop.trf.xlu1  ;;  %v3029_v61 = vpop.trf.xlu0 }
 0x50f   : > { %5605 = vmatmul.mubr.msk.f32.gmra.mrb[90].mxu0 %vm535_vm1, %v4296_v16  ;;  %5574 = vmatmul.mubr.msk.f32.gmra.mrb[82].mxu1 %vm535_vm1, %v3029_v61 }
 0x510   : > { %4525 = vmatprep.mubr.f32.mxu0 %v11335_v13  ;;  %3268 = vmatprep.mubr.f32.mxu1 %v11335_v13 }
 0x512   : > { %v4297_v49 = vpop.trf.xlu1  ;;  %v3030_v44 = vpop.trf.xlu0 }
 0x513   : > { %5606 = vmatmul.mubr.msk.f32.gmra.mrb[92].mxu0 %vm535_vm1, %v4297_v49  ;;  %5575 = vmatmul.mubr.msk.f32.gmra.mrb[84].mxu1 %vm535_vm1, %v3030_v44 }
 0x514   : > { %4531 = vmatprep.mubr.f32.mxu0 %v11335_v13  ;;  %3274 = vmatprep.mubr.f32.mxu1 %v11335_v13 }
 0x516   : > { %v4298_v15 = vpop.trf.xlu1  ;;  %v3031_v24 = vpop.trf.xlu0 }
 0x517   : > { %5607 = vmatmul.mubr.msk.f32.gmra.mrb[94].mxu0 %vm535_vm1, %v4298_v15  ;;  %5576 = vmatmul.mubr.msk.f32.gmra.mrb[86].mxu1 %vm535_vm1, %v3031_v24  ;;  %v11338_v24 = vld [vmem:[#allocation19_spill] sm:$0xff] }
 0x518   : > { %4537 = vmatprep.mubr.f32.mxu0 %v11335_v13  ;;  %3280 = vmatprep.mubr.f32.mxu1 %v11335_v13 }
 0x519   : > { %3464 = vperm.xlu1 %5942, %v3427_v1  }
 0x51a   : > { %v4299_v62 = vpop.trf.xlu1  ;;  %v3032_v50 = vpop.trf.xlu0 }
 0x51b   : > { %5608 = vmatmul.mubr.msk.f32.gmra.mrb[96].mxu0 %vm535_vm1, %v4299_v62  ;;  %5577 = vmatmul.mubr.msk.f32.gmra.mrb[88].mxu1 %vm535_vm1, %v3032_v50  ;;  %v11339_v62 = vld [vmem:[#allocation21_spill] sm:$0xff] }
 0x51c   : > { %3461 = vperm.xlu0 %5941, %v3426_v26   ;;  %4543 = vmatprep.mubr.f32.mxu0 %v11335_v13 }
 0x51d   : > { %3467 = vperm.xlu1 %5942, %v3428_v33   ;;  %3286 = vmatprep.mubr.f32.mxu1 %v11335_v13 }
 0x51e   : > { %v4300_v34 = vpop.trf.xlu1  ;;  %v3033_v4 = vpop.trf.xlu0 }
 0x51f   : > { %5609 = vmatmul.mubr.msk.f32.gmra.mrb[98].mxu0 %vm535_vm1, %v4300_v34  ;;  %5578 = vmatmul.mubr.msk.f32.gmra.mrb[90].mxu1 %vm535_vm1, %v3033_v4 }
 0x520   : > { %3470 = vperm.xlu0 %5941, %v3429_v19   ;;  %4549 = vmatprep.mubr.f32.mxu0 %v11335_v13 }
 0x521   : > { %3473 = vperm.xlu1 %5942, %v3430_v60   ;;  %3292 = vmatprep.mubr.f32.mxu1 %v11335_v13 }
 0x522   : > { %v4301_v36 = vpop.trf.xlu1  ;;  %v3034_v46 = vpop.trf.xlu0 }
 0x523   : > { %5610 = vmatmul.mubr.msk.f32.gmra.mrb[100].mxu0 %vm535_vm1, %v4301_v36  ;;  %5579 = vmatmul.mubr.msk.f32.gmra.mrb[92].mxu1 %vm535_vm1, %v3034_v46  ;;  %v11344_v46 = vld [vmem:[#allocation27_spill] sm:$0xff] }
 0x524   : > { %3476 = vperm.xlu0 %5941, %v3431_v10   ;;  %4555 = vmatprep.mubr.f32.mxu0 %v11335_v13  ;;  %v5601_v10 = vld [vmem:[%s10473_s2 + $0x4] sm:$0x3] }
 0x525   : > { %3479 = vperm.xlu1 %5942, %v3432_v48   ;;  %3298 = vmatprep.mubr.f32.mxu1 %v11335_v13  ;;  %v9034_v48 = vrot.slane %v5601_v10, %v11344_v46 }
 0x526   : > { %v4302_v18 = vpop.trf.xlu1  ;;  %v3035_v23 = vpop.trf.xlu0 }
 0x527   : > { %5611 = vmatmul.mubr.msk.f32.gmra.mrb[102].mxu0 %vm535_vm1, %v4302_v18  ;;  %5580 = vmatmul.mubr.msk.f32.gmra.mrb[94].mxu1 %vm535_vm1, %v3035_v23 }
 0x528   : > { %3482 = vperm.xlu0 %5941, %v3433_v2   ;;  %4561 = vmatprep.mubr.f32.mxu0 %v11335_v13  ;;  %v11345_v2 = vld [vmem:[#allocation28_spill] sm:$0xff] }
 0x529   : > { %3485 = vperm.xlu1 %5942, %v3434_v5   ;;  %3304 = vmatprep.mubr.f32.mxu1 %v11335_v13  ;;  %v9037_v18 = vrot.slane %v5601_v10, %v11345_v2 }
 0x52a   : > { %v4303_v31 = vpop.trf.xlu1  ;;  %v3036_v17 = vpop.trf.xlu0 }
 0x52b   : > { %5612 = vmatmul.mubr.msk.f32.gmra.mrb[104].mxu0 %vm535_vm1, %v4303_v31  ;;  %5581 = vmatmul.mubr.msk.f32.gmra.mrb[96].mxu1 %vm535_vm1, %v3036_v17 }
 0x52c   : > { %3488 = vperm.xlu0 %5941, %v3435_v43   ;;  %4567 = vmatprep.mubr.f32.mxu0 %v11335_v13 }
 0x52d   : > { %3491 = vperm.xlu1 %5942, %v3436_v45   ;;  %3310 = vmatprep.mubr.f32.mxu1 %v11335_v13 }
 0x52e   : > { %v4304_v59 = vpop.trf.xlu1  ;;  %v3037_v56 = vpop.trf.xlu0 }
 0x52f   : > { %5613 = vmatmul.mubr.msk.f32.gmra.mrb[106].mxu0 %vm535_vm1, %v4304_v59  ;;  %5582 = vmatmul.mubr.msk.f32.gmra.mrb[98].mxu1 %vm535_vm1, %v3037_v56 }
 0x530   : > { %3494 = vperm.xlu0 %5941, %v3437_v38   ;;  %4573 = vmatprep.mubr.f32.mxu0 %v11335_v13 }
 0x531   : > { %3497 = vperm.xlu1 %5942, %v3438_v12   ;;  %3316 = vmatprep.mubr.f32.mxu1 %v11335_v13 }
 0x532   : > { %v4305_v28 = vpop.trf.xlu1  ;;  %v3038_v35 = vpop.trf.xlu0 }
 0x533   : > { %5614 = vmatmul.mubr.msk.f32.gmra.mrb[108].mxu0 %vm535_vm1, %v4305_v28  ;;  %5583 = vmatmul.mubr.msk.f32.gmra.mrb[100].mxu1 %vm535_vm1, %v3038_v35 }
 0x534   : > { %3500 = vperm.xlu0 %5941, %v3439_v6   ;;  %4579 = vmatprep.mubr.f32.mxu0 %v11335_v13 }
 0x535   : > { %3322 = vmatprep.mubr.f32.mxu1 %v11335_v13 }
 0x536   : > { %v4306_v22 = vpop.trf.xlu1  ;;  %v3039_v11 = vpop.trf.xlu0 }
 0x537   : > { %5615 = vmatmul.mubr.msk.f32.gmra.mrb[110].mxu0 %vm535_vm1, %v4306_v22  ;;  %5584 = vmatmul.mubr.msk.f32.gmra.mrb[102].mxu1 %vm535_vm1, %v3039_v11 }
 0x538   : > { %4585 = vmatprep.mubr.f32.mxu0 %v11335_v13  ;;  %3328 = vmatprep.mubr.f32.mxu1 %v11335_v13 }
 0x53a   : > { %v4307_v42 = vpop.trf.xlu1  ;;  %v3056_v53 = vpop.trf.xlu0 }
 0x53b   : > { %5616 = vmatmul.mubr.msk.f32.gmra.mrb[112].mxu0 %vm535_vm1, %v4307_v42  ;;  %5585 = vmatmul.mubr.msk.f32.gmra.mrb[104].mxu1 %vm535_vm1, %v3056_v53 }
 0x53c   : > { %4591 = vmatprep.mubr.f32.mxu0 %v11335_v13  ;;  %3334 = vmatprep.mubr.f32.mxu1 %v11335_v13 }
 0x53e   : > { %v4308_v7 = vpop.trf.xlu1  ;;  %v3057_v20 = vpop.trf.xlu0 }
 0x53f   : > { %5617 = vmatmul.mubr.msk.f32.gmra.mrb[114].mxu0 %vm535_vm1, %v4308_v7  ;;  %5586 = vmatmul.mubr.msk.f32.gmra.mrb[106].mxu1 %vm535_vm1, %v3057_v20 }
 0x540   : > { %4597 = vmatprep.mubr.f32.mxu0 %v11335_v13  ;;  %3340 = vmatprep.mubr.f32.mxu1 %v11335_v13 }
 0x542   : > { %v4325_v39 = vpop.trf.xlu1  ;;  %v3058_v30 = vpop.trf.xlu0 }
 0x543   : > { %5618 = vmatmul.mubr.msk.f32.gmra.mrb[116].mxu0 %vm535_vm1, %v4325_v39  ;;  %5587 = vmatmul.mubr.msk.f32.gmra.mrb[108].mxu1 %vm535_vm1, %v3058_v30 }
 0x544   : > { %4603 = vmatprep.mubr.f32.mxu0 %v11335_v13  ;;  %3346 = vmatprep.mubr.f32.mxu1 %v11335_v13 }
 0x546   : > { %v4326_v9 = vpop.trf.xlu1  ;;  %v3059_v58 = vpop.trf.xlu0 }
 0x547   : > { %5619 = vmatmul.mubr.msk.f32.gmra.mrb[118].mxu0 %vm535_vm1, %v4326_v9  ;;  %5588 = vmatmul.mubr.msk.f32.gmra.mrb[110].mxu1 %vm535_vm1, %v3059_v58 }
 0x548   : > { %4609 = vmatprep.mubr.f32.mxu0 %v11335_v13  ;;  %3352 = vmatprep.mubr.f32.mxu1 %v11335_v13 }
 0x54a   : > { %v4327_v55 = vpop.trf.xlu1  ;;  %v3060_v57 = vpop.trf.xlu0 }
 0x54b   : > { %5620 = vmatmul.mubr.msk.f32.gmra.mrb[120].mxu0 %vm535_vm1, %v4327_v55  ;;  %5589 = vmatmul.mubr.msk.f32.gmra.mrb[112].mxu1 %vm535_vm1, %v3060_v57 }
 0x54c   : > { %4615 = vmatprep.mubr.f32.mxu0 %v11335_v13  ;;  %3358 = vmatprep.mubr.f32.mxu1 %v11335_v13 }
 0x54e   : > { %v4328_v63 = vpop.trf.xlu1  ;;  %v3061_v0 = vpop.trf.xlu0 }
 0x54f   : > { %5621 = vmatmul.mubr.msk.f32.gmra.mrb[122].mxu0 %vm535_vm1, %v4328_v63  ;;  %5590 = vmatmul.mubr.msk.f32.gmra.mrb[114].mxu1 %vm535_vm1, %v3061_v0 }
 0x550   : > { %4621 = vmatprep.mubr.f32.mxu0 %v11335_v13  ;;  %3364 = vmatprep.mubr.f32.mxu1 %v11335_v13 }
 0x552   : > { %v4329_v41 = vpop.trf.xlu1  ;;  %v3062_v37 = vpop.trf.xlu0 }
 0x553   : > { %5622 = vmatmul.mubr.msk.f32.gmra.mrb[124].mxu0 %vm535_vm1, %v4329_v41  ;;  %5591 = vmatmul.mubr.msk.f32.gmra.mrb[116].mxu1 %vm535_vm1, %v3062_v37 }
 0x554   : > { %4627 = vmatprep.mubr.f32.mxu0 %v11335_v13  ;;  %3370 = vmatprep.mubr.f32.mxu1 %v11335_v13 }
 0x556   : > { %v4330_v25 = vpop.trf.xlu1  ;;  %v3063_v21 = vpop.trf.xlu0 }
 0x557   : > { %5623 = vmatmul.mubr.msk.f32.gmra.mrb[126].mxu0 %vm535_vm1, %v4330_v25  ;;  %5592 = vmatmul.mubr.msk.f32.gmra.mrb[118].mxu1 %vm535_vm1, %v3063_v21 }
 0x558   : > { %4633 = vmatprep.mubr.f32.mxu0 %v11335_v13  ;;  %3376 = vmatprep.mubr.f32.mxu1 %v11335_v13 }
 0x55a   : > { %v4331_v51 = vpop.trf.xlu1  ;;  %v3064_v8 = vpop.trf.xlu0 }
 0x55b   : > { %5624 = vmatmul.mubr.msk.f32.gmra.mrb[128].mxu0 %vm535_vm1, %v4331_v51  ;;  %5593 = vmatmul.mubr.msk.f32.gmra.mrb[120].mxu1 %vm535_vm1, %v3064_v8 }
 0x55c   : > { %4639 = vmatprep.mubr.f32.mxu0 %v11335_v13  ;;  %3382 = vmatprep.mubr.f32.mxu1 %v11335_v13 }
 0x55e   : > { %v4332_v27 = vpop.trf.xlu1  ;;  %v3065_v40 = vpop.trf.xlu0 }
 0x55f   : > { %5625 = vmatmul.mubr.msk.f32.gmra.mrb[130].mxu0 %vm535_vm1, %v4332_v27  ;;  %5594 = vmatmul.mubr.msk.f32.gmra.mrb[122].mxu1 %vm535_vm1, %v3065_v40 }
 0x560   : > { %4645 = vmatprep.mubr.f32.mxu0 %v11335_v13  ;;  %3388 = vmatprep.mubr.f32.mxu1 %v11335_v13 }
 0x562   : > { %v4333_v14 = vpop.trf.xlu1  ;;  %v3066_v3 = vpop.trf.xlu0 }
 0x563   : > { %5626 = vmatmul.mubr.msk.f32.gmra.mrb[132].mxu0 %vm535_vm1, %v4333_v14  ;;  %5595 = vmatmul.mubr.msk.f32.gmra.mrb[124].mxu1 %vm535_vm1, %v3066_v3 }
 0x564   : > { %4651 = vmatprep.mubr.f32.mxu0 %v11335_v13  ;;  %3394 = vmatprep.mubr.f32.mxu1 %v11335_v13 }
 0x566   : > { %v4334_v52 = vpop.trf.xlu1  ;;  %v3067_v29 = vpop.trf.xlu0 }
 0x567   : > { %5627 = vmatmul.mubr.msk.f32.gmra.mrb[134].mxu0 %vm535_vm1, %v4334_v52  ;;  %5596 = vmatmul.mubr.msk.f32.gmra.mrb[126].mxu1 %vm535_vm1, %v3067_v29 }
 0x568   : > { %4657 = vmatprep.mubr.f32.mxu0 %v11335_v13  ;;  %3400 = vmatprep.mubr.f32.mxu1 %v11335_v13 }
 0x56a   : > { %v4335_v32 = vpop.trf.xlu1  ;;  %v3068_v47 = vpop.trf.xlu0 }
 0x56b   : > { %5628 = vmatmul.mubr.msk.f32.gmra.mrb[136].mxu0 %vm535_vm1, %v4335_v32  ;;  %5597 = vmatmul.mubr.msk.f32.gmra.mrb[128].mxu1 %vm535_vm1, %v3068_v47 }
 0x56c   : > { %4663 = vmatprep.mubr.f32.mxu0 %v11335_v13  ;;  %3406 = vmatprep.mubr.f32.mxu1 %v11335_v13 }
 0x56e   : > { %v4336_v54 = vpop.trf.xlu1  ;;  %v3069_v16 = vpop.trf.xlu0 }
 0x56f   : > { %5629 = vmatmul.mubr.msk.f32.gmra.mrb[138].mxu0 %vm535_vm1, %v4336_v54  ;;  %5598 = vmatmul.mubr.msk.f32.gmra.mrb[130].mxu1 %vm535_vm1, %v3069_v16 }
 0x570   : > { %4669 = vmatprep.mubr.f32.mxu0 %v11335_v13  ;;  %3412 = vmatprep.mubr.f32.mxu1 %v11335_v13 }
 0x572   : > { %v4337_v61 = vpop.trf.xlu1  ;;  %v3070_v49 = vpop.trf.xlu0 }
 0x573   : > { %5630 = vmatmul.mubr.msk.f32.gmra.mrb[140].mxu0 %vm535_vm1, %v4337_v61  ;;  %5599 = vmatmul.mubr.msk.f32.gmra.mrb[132].mxu1 %vm535_vm1, %v3070_v49 }
 0x574   : > { %4675 = vmatprep.mubr.f32.mxu0 %v11335_v13  ;;  %3418 = vmatprep.mubr.f32.mxu1 %v11335_v13 }
 0x576   : > { %v4338_v44 = vpop.trf.xlu1  ;;  %v3071_v15 = vpop.trf.xlu0 }
 0x577   : > { %5631 = vmatmul.mubr.msk.f32.gmra.mrb[142].mxu0 %vm535_vm1, %v4338_v44  ;;  %5600 = vmatmul.mubr.msk.f32.gmra.mrb[134].mxu1 %vm535_vm1, %v3071_v15 }
 0x578   : > { %4681 = vmatprep.mubr.f32.mxu0 %v11335_v13  ;;  %4268 = vmatprep.mubr.f32.mxu1 %v11338_v24 }
 0x57a   : > { %v4339_v1 = vpop.trf.xlu1 }
 0x57b   : > { %5632 = vmatmul.mubr.msk.f32.gmra.mrb[144].mxu0 %vm535_vm1, %v4339_v1 }
 0x57c   : > { %4687 = vmatprep.mubr.f32.mxu0 %v11335_v13 }
 0x57e   : > { %v4340_v26 = vpop.trf.xlu1 }
 0x57f   : > { %5633 = vmatmul.mubr.msk.f32.gmra.mrb[146].mxu0 %vm535_vm1, %v4340_v26 }
 0x580   : > { %5270 = vmatprep.mubr.f32.mxu0 %v11339_v62 }
 0x598   : > { %v3465_v38 = vpop.permute.xlu1 %3464 }
 0x599   : > { %vm3566_vm5 = vcmp.eq.s32.totalorder %v3465_v38, %v9034_v48  ;;  %vm3567_vm6 = vcmp.eq.s32.totalorder %v3465_v38, %v9037_v18 }
 0x59b   : > { %v3462_v36 = vpop.permute.xlu0 %3461 }
 0x59c   : > { %vm3564_vm1 = vcmp.eq.s32.totalorder %v3462_v36, %v9034_v48  ;;  %vm3565_vm4 = vcmp.eq.s32.totalorder %v3462_v36, %v9037_v18  ;;  %v3468_v11 = vpop.permute.xlu1 %3467 }
 0x59d   : > { %vm3568_vm7 = vcmp.eq.s32.totalorder %v3468_v11, %v9034_v48  ;;  %vm3569_vm8 = vcmp.eq.s32.totalorder %v3468_v11, %v9037_v18 }
 0x59f   : > { %v3471_v56 = vpop.permute.xlu0 %3470 }
 0x5a0   : > { %v3474_v21 = vpop.permute.xlu1 %3473  ;;  %vm3570_vm9 = vcmp.eq.s32.totalorder %v3471_v56, %v9034_v48  ;;  %vm3571_vm10 = vcmp.eq.s32.totalorder %v3471_v56, %v9037_v18 }
 0x5a1   : > { %vm3572_vm12 = vcmp.eq.s32.totalorder %v3474_v21, %v9034_v48  ;;  %vm3573_vm14 = vcmp.eq.s32.totalorder %v3474_v21, %v9037_v18 }
 0x5a3   : > { %v3477_v55 = vpop.permute.xlu0 %3476 }
 0x5a4   : > { %vm3574_vm11 = vcmp.eq.s32.totalorder %v3477_v55, %v9034_v48  ;;  %vm3575_vm13 = vcmp.eq.s32.totalorder %v3477_v55, %v9037_v18  ;;  %v3480_v46 = vpop.permute.xlu1 %3479 }
 0x5a5   : > { %vm3576_vm3 = vcmp.eq.s32.totalorder %v3480_v46, %v9034_v48 }
 0x5a7   : > { %v3483_v61 = vpop.permute.xlu0 %3482 }
 0x5a8   : > { %vm3578_vm15 = vcmp.eq.s32.totalorder %v3483_v61, %v9034_v48  ;;  %vm3579_vm2 = vcmp.eq.s32.totalorder %v3483_v61, %v9037_v18 }
 0x5ab   : > { %v3489_v56 = vpop.permute.xlu0 %3488 }
 0x5bf   : > { %v9018_v50 = vpop.f32.mrb[70].mxu1 }
 0x5c0   : > { %11340 = vst [vmem:[#allocation32_spill] sm:$0xff] %v9018_v50  ;;  %v9020_v33 = vpop.f32.mrb[71].mxu1 }
 0x5c1   : > { %11341 = vst [vmem:[#allocation118_spill] sm:$0xff] %v9020_v33 }
 0x5c7   : > { %v9022_v19 = vpop.f32.mrb[82].mxu0 }
 0x5c8   : > { %11342 = vst [vmem:[#allocation119_spill] sm:$0xff] %v9022_v19  ;;  %v9026_v4 = vpop.f32.mrb[83].mxu0 }
 0x5c9   : > { %11343 = vst [vmem:[#allocation122_spill] sm:$0xff] %v9026_v4 }
 0x5ce   : > { %v3234_v23 = vpop.f32.mrb[72].mxu1 }
 0x5cf   : > { %v9040_v5 = vsel %vm3564_vm1, %v3234_v23, -1e+30  ;;  %v3236_v43 = vpop.f32.mrb[73].mxu1  ;;  %vm3577_vm1 = vcmp.eq.s32.totalorder %v3480_v46, %v9037_v18 }
 0x5d0   : > { %v9043_v31 = vsel %vm3565_vm4, %v3236_v43, -1e+30  ;;  %vm3582_vm4 = vcmp.eq.s32.totalorder %v3489_v56, %v9034_v48 }
 0x5d1   : > { %v3692_v17 = vmax.f32 %v9040_v5, %v9043_v31 }
 0x5d2   : > { %v3240_v45 = vpop.f32.mrb[74].mxu1 }
 0x5d3   : > { %3693 = vmax.xlane.f32.xlu1 %v3692_v17  ;;  %v3242_v59 = vpop.f32.mrb[75].mxu1  ;;  %v9055_v42 = vsel %vm3566_vm5, %v3240_v45, -1e+30  ;;  %vm3583_vm5 = vcmp.eq.s32.totalorder %v3489_v56, %v9037_v18 }
 0x5d4   : > { %v9057_v53 = vsel %vm3567_vm6, %v3242_v59, -1e+30 }
 0x5d5   : > { %v3695_v9 = vmax.f32 %v9055_v42, %v9057_v53 }
 0x5d6   : > { %v9047_v12 = vpop.f32.mrb[84].mxu0  ;;  %v3246_v6 = vpop.f32.mrb[76].mxu1 }
 0x5d7   : > { %v9049_v28 = vpop.f32.mrb[85].mxu0  ;;  %v3248_v35 = vpop.f32.mrb[77].mxu1  ;;  %v9069_v57 = vsel %vm3568_vm7, %v3246_v6, -1e+30 }
 0x5d8   : > { %v4694_v22 = vmax.f32 %v9047_v12, %v9049_v28  ;;  %11346 = vst [vmem:[#allocation123_spill] sm:$0xff] %v9069_v57  ;;  %v9071_v63 = vsel %vm3569_vm8, %v3248_v35, -1e+30 }
 0x5d9   : > { %11347 = vst [vmem:[#allocation30_spill] sm:$0xff] %v9071_v63  ;;  %v3698_v51 = vmax.f32 %v9069_v57, %v9071_v63 }
 0x5da   : > { %4695 = vmax.xlane.f32.xlu0 %v4694_v22  ;;  %v9059_v7 = vpop.f32.mrb[86].mxu0  ;;  %v3252_v20 = vpop.f32.mrb[78].mxu1 }
 0x5db   : > { %v9061_v39 = vpop.f32.mrb[87].mxu0  ;;  %v3254_v30 = vpop.f32.mrb[79].mxu1  ;;  %v9083_v27 = vsel %vm3570_vm9, %v3252_v20, -1e+30 }
 0x5dc   : > { %v4697_v58 = vmax.f32 %v9059_v7, %v9061_v39  ;;  %v9085_v40 = vsel %vm3571_vm10, %v3254_v30, -1e+30 }
 0x5dd   : > { %v3701_v47 = vmax.f32 %v9083_v27, %v9085_v40 }
 0x5de   : > { %v9073_v0 = vpop.f32.mrb[88].mxu0  ;;  %4698 = vmax.xlane.f32.xlu1 %v4697_v58  ;;  %3696 = vmax.xlane.f32.xlu0 %v3695_v9  ;;  %v3258_v41 = vpop.f32.mrb[80].mxu1 }
 0x5df   : > { %11348 = vst [vmem:[#allocation39_spill] sm:$0xff] %v9073_v0  ;;  %v9075_v37 = vpop.f32.mrb[89].mxu0  ;;  %v3260_v25 = vpop.f32.mrb[81].mxu1  ;;  %v9103_v49 = vsel %vm3572_vm12, %v3258_v41, -1e+30 }
 0x5e0   : > { %11349 = vst [vmem:[#allocation29_spill] sm:$0xff] %v9075_v37  ;;  %v4700_v8 = vmax.f32 %v9073_v0, %v9075_v37  ;;  %11354 = vst [vmem:[#allocation124_spill] sm:$0xff] %v9103_v49  ;;  %v9105_v44 = vsel %vm3573_vm14, %v3260_v25, -1e+30  ;;  %v3486_v41 = vpop.permute.xlu1 %3485 }
 0x5e1   : > { %11355 = vst [vmem:[#allocation40_spill] sm:$0xff] %v9105_v44  ;;  %v3704_v10 = vmax.f32 %v9103_v49, %v9105_v44  ;;  %vm3580_vm6 = vcmp.eq.s32.totalorder %v3486_v41, %v9034_v48  ;;  %vm3581_vm7 = vcmp.eq.s32.totalorder %v3486_v41, %v9037_v18 }
 0x5e2   : > { %v9087_v14 = vpop.f32.mrb[90].mxu0  ;;  %4701 = vmax.xlane.f32.xlu0 %v4700_v8  ;;  %3699 = vmax.xlane.f32.xlu1 %v3698_v51  ;;  %v3264_v3 = vpop.f32.mrb[82].mxu1 }
 0x5e3   : > { %11350 = vst [vmem:[#allocation37_spill] sm:$0xff] %v9087_v14  ;;  %v9091_v52 = vpop.f32.mrb[91].mxu0  ;;  %v9093_v29 = vsel %vm3574_vm11, %v3264_v3, -1e+30  ;;  %v3266_v32 = vpop.f32.mrb[83].mxu1 }
 0x5e4   : > { %11351 = vst [vmem:[#allocation121_spill] sm:$0xff] %v9091_v52  ;;  %11352 = vst [vmem:[#allocation125_spill] sm:$0xff] %v9093_v29  ;;  %v4703_v54 = vmax.f32 %v9087_v14, %v9091_v52  ;;  %v9101_v16 = vsel %vm3575_vm13, %v3266_v32, -1e+30 }
 0x5e5   : > { %11353 = vst [vmem:[#allocation120_spill] sm:$0xff] %v9101_v16  ;;  %v3707_v15 = vmax.f32 %v9093_v29, %v9101_v16 }
 0x5e6   : > { %4704 = vmax.xlane.f32.xlu1 %v4703_v54  ;;  %3702 = vmax.xlane.f32.xlu0 %v3701_v47  ;;  %v3270_v24 = vpop.f32.mrb[84].mxu1  ;;  %v9109_v1 = vpop.f32.mrb[92].mxu0 }
 0x5e7   : > { %11356 = vst [vmem:[#allocation42_spill] sm:$0xff] %v9109_v1  ;;  %v3272_v26 = vpop.f32.mrb[85].mxu1  ;;  %v9111_v62 = vpop.f32.mrb[93].mxu0  ;;  %v9131_v6 = vsel %vm3576_vm3, %v3270_v24, -1e+30 }
 0x5e8   : > { %11357 = vst [vmem:[#allocation46_spill] sm:$0xff] %v9111_v62  ;;  %v4706_v36 = vmax.f32 %v9109_v1, %v9111_v62  ;;  %11362 = vst [vmem:[#allocation103_spill] sm:$0xff] %v9131_v6  ;;  %v9133_v35 = vsel %vm3577_vm1, %v3272_v26, -1e+30  ;;  %v3495_v54 = vpop.permute.xlu0 %3494 }
 0x5e9   : > { %11363 = vst [vmem:[#allocation44_spill] sm:$0xff] %v9133_v35  ;;  %v3710_v58 = vmax.f32 %v9131_v6, %v9133_v35  ;;  %vm3586_vm8 = vcmp.eq.s32.totalorder %v3495_v54, %v9034_v48  ;;  %vm3587_vm9 = vcmp.eq.s32.totalorder %v3495_v54, %v9037_v18 }
 0x5ea   : > { %v9117_v2 = vpop.f32.mrb[94].mxu0  ;;  %3705 = vmax.xlane.f32.xlu1 %v3704_v10  ;;  %3708 = vmax.xlane.f32.xlu0 %v3707_v15  ;;  %v3276_v23 = vpop.f32.mrb[86].mxu1 }
 0x5eb   : > { %11358 = vst [vmem:[#allocation47_spill] sm:$0xff] %v9117_v2  ;;  %v9120_v43 = vpop.f32.mrb[95].mxu0  ;;  %v9122_v17 = vsel %vm3578_vm15, %v3276_v23, -1e+30  ;;  %v3278_v45 = vpop.f32.mrb[87].mxu1 }
 0x5ec   : > { %11359 = vst [vmem:[#allocation49_spill] sm:$0xff] %v9120_v43  ;;  %11360 = vst [vmem:[#allocation66_spill] sm:$0xff] %v9122_v17  ;;  %v4709_v38 = vmax.f32 %v9117_v2, %v9120_v43  ;;  %v9129_v59 = vsel %vm3579_vm2, %v3278_v45, -1e+30 }
 0x5ed   : > { %11361 = vst [vmem:[#allocation102_spill] sm:$0xff] %v9129_v59  ;;  %v3713_v22 = vmax.f32 %v9122_v17, %v9129_v59 }
 0x5ee   : > { %4710 = vmax.xlane.f32.xlu1 %v4709_v38  ;;  %4707 = vmax.xlane.f32.xlu0 %v4706_v36  ;;  %v3282_v11 = vpop.f32.mrb[88].mxu1  ;;  %v9137_v20 = vpop.f32.mrb[96].mxu0 }
 0x5ef   : > { %11364 = vst [vmem:[#allocation43_spill] sm:$0xff] %v9137_v20  ;;  %v3284_v30 = vpop.f32.mrb[89].mxu1  ;;  %v9139_v9 = vpop.f32.mrb[97].mxu0  ;;  %v9159_v61 = vsel %vm3580_vm6, %v3282_v11, -1e+30 }
 0x5f0   : > { %11365 = vst [vmem:[#allocation45_spill] sm:$0xff] %v9139_v9  ;;  %v4712_v55 = vmax.f32 %v9137_v20, %v9139_v9  ;;  %11370 = vst [vmem:[#allocation68_spill] sm:$0xff] %v9159_v61  ;;  %v9161_v15 = vsel %vm3581_vm7, %v3284_v30, -1e+30  ;;  %v3492_v38 = vpop.permute.xlu1 %3491 }
 0x5f1   : > { %11371 = vst [vmem:[#allocation48_spill] sm:$0xff] %v9161_v15  ;;  %v3716_v23 = vmax.f32 %v9159_v61, %v9161_v15  ;;  %vm3584_vm10 = vcmp.eq.s32.totalorder %v3492_v38, %v9034_v48  ;;  %vm3585_vm11 = vcmp.eq.s32.totalorder %v3492_v38, %v9037_v18  ;;  %v3441_v15 = vld [vmem:[#allocation2 + $0x278] sm:$0xff] }
 0x5f2   : > { %v9145_v25 = vpop.f32.mrb[98].mxu0  ;;  %3711 = vmax.xlane.f32.xlu1 %v3710_v58  ;;  %3714 = vmax.xlane.f32.xlu0 %v3713_v22  ;;  %v3288_v21 = vpop.f32.mrb[90].mxu1 }
 0x5f3   : > { %11366 = vst [vmem:[#allocation41_spill] sm:$0xff] %v9145_v25  ;;  %v9148_v51 = vpop.f32.mrb[99].mxu0  ;;  %v9150_v8 = vsel %vm3582_vm4, %v3288_v21, -1e+30  ;;  %v3290_v3 = vpop.f32.mrb[91].mxu1 }
 0x5f4   : > { %11367 = vst [vmem:[#allocation54_spill] sm:$0xff] %v9148_v51  ;;  %11368 = vst [vmem:[#allocation55_spill] sm:$0xff] %v9150_v8  ;;  %v4715_v32 = vmax.f32 %v9145_v25, %v9148_v51  ;;  %v9157_v47 = vsel %vm3583_vm5, %v3290_v3, -1e+30  ;;  %v3501_v21 = vpop.permute.xlu0 %3500  ;;  %v3498_v34 = vpop.permute.xlu1 %3497  ;;  %v3443_v25 = vld [vmem:[#allocation2 + $0x288] sm:$0xff] }
 0x5f5   : > { %11369 = vst [vmem:[#allocation52_spill] sm:$0xff] %v9157_v47  ;;  %v3719_v24 = vmax.f32 %v9150_v8, %v9157_v47  ;;  %vm3590_vm12 = vcmp.eq.s32.totalorder %v3501_v21, %v9034_v48  ;;  %vm3591_vm13 = vcmp.eq.s32.totalorder %v3501_v21, %v9037_v18  ;;  %vm3588_vm14 = vcmp.eq.s32.totalorder %v3498_v34, %v9034_v48  ;;  %v3442_v47 = vld [vmem:[#allocation2 + $0x280] sm:$0xff] }
 0x5f6   : > { %4716 = vmax.xlane.f32.xlu1 %v4715_v32  ;;  %4713 = vmax.xlane.f32.xlu0 %v4712_v55  ;;  %v3294_v26 = vpop.f32.mrb[92].mxu1  ;;  %v9165_v10 = vpop.f32.mrb[100].mxu0  ;;  %vm3589_vm15 = vcmp.eq.s32.totalorder %v3498_v34, %v9037_v18 }
 0x5f7   : > { %11372 = vst [vmem:[#allocation74_spill] sm:$0xff] %v9165_v10  ;;  %v3296_v36 = vpop.f32.mrb[93].mxu1  ;;  %v9167_v46 = vpop.f32.mrb[101].mxu0  ;;  %v9187_v3 = vsel %vm3584_vm10, %v3294_v26, -1e+30 }
 0x5f8   : > { %11373 = vst [vmem:[#allocation72_spill] sm:$0xff] %v9167_v46  ;;  %v4718_v45 = vmax.f32 %v9165_v10, %v9167_v46  ;;  %11378 = vst [vmem:[#allocation105_spill] sm:$0xff] %v9187_v3  ;;  %v9189_v32 = vsel %vm3585_vm11, %v3296_v36, -1e+30 }
 0x5f9   : > { %11379 = vst [vmem:[#allocation50_spill] sm:$0xff] %v9189_v32 }
 0x5fa   : > { %v9173_v56 = vpop.f32.mrb[102].mxu0  ;;  %3717 = vmax.xlane.f32.xlu1 %v3716_v23  ;;  %3720 = vmax.xlane.f32.xlu0 %v3719_v24  ;;  %v3300_v22 = vpop.f32.mrb[94].mxu1 }
 0x5fb   : > { %11374 = vst [vmem:[#allocation86_spill] sm:$0xff] %v9173_v56  ;;  %v9176_v11 = vpop.f32.mrb[103].mxu0  ;;  %v9178_v30 = vsel %vm3586_vm8, %v3300_v22, -1e+30  ;;  %v3302_v58 = vpop.f32.mrb[95].mxu1 }
 0x5fc   : > { %11375 = vst [vmem:[#allocation57_spill] sm:$0xff] %v9176_v11  ;;  %11376 = vst [vmem:[#allocation104_spill] sm:$0xff] %v9178_v30  ;;  %v4721_v55 = vmax.f32 %v9173_v56, %v9176_v11  ;;  %v9185_v41 = vsel %vm3587_vm9, %v3302_v58, -1e+30  ;;  %v3722_v58 = vmax.f32 %v9187_v3, %v9189_v32 }
 0x5fd   : > { %11377 = vst [vmem:[#allocation51_spill] sm:$0xff] %v9185_v41  ;;  %v3725_v24 = vmax.f32 %v9178_v30, %v9185_v41 }
 0x5fe   : > { %4722 = vmax.xlane.f32.xlu1 %v4721_v55  ;;  %4719 = vmax.xlane.f32.xlu0 %v4718_v45  ;;  %v3306_v54 = vpop.f32.mrb[96].mxu1  ;;  %v9193_v23 = vpop.f32.mrb[104].mxu0 }
 0x5ff   : > { %11380 = vst [vmem:[#allocation108_spill] sm:$0xff] %v9193_v23  ;;  %v3308_v22 = vpop.f32.mrb[97].mxu1  ;;  %v9195_v38 = vpop.f32.mrb[105].mxu0 }
 0x600   : > { %11381 = vst [vmem:[#allocation78_spill] sm:$0xff] %v9195_v38  ;;  %v4724_v26 = vmax.f32 %v9193_v23, %v9195_v38 }
 0x602   : > { %v9201_v36 = vpop.f32.mrb[106].mxu0  ;;  %3723 = vmax.xlane.f32.xlu1 %v3722_v58  ;;  %3726 = vmax.xlane.f32.xlu0 %v3725_v24  ;;  %v3312_v60 = vpop.f32.mrb[98].mxu1  ;;  %v9215_v24 = vsel %vm3588_vm14, %v3306_v54, -1e+30  ;;  %v9217_v58 = vsel %vm3589_vm15, %v3308_v22, -1e+30 }
 0x603   : > { %11382 = vst [vmem:[#allocation53_spill] sm:$0xff] %v9201_v36  ;;  %v9204_v45 = vpop.f32.mrb[107].mxu0  ;;  %v9206_v55 = vsel %vm3590_vm12, %v3312_v60, -1e+30  ;;  %v3314_v13 = vpop.f32.mrb[99].mxu1  ;;  %11386 = vst [vmem:[#allocation107_spill] sm:$0xff] %v9215_v24 }
 0x604   : > { %11383 = vst [vmem:[#allocation56_spill] sm:$0xff] %v9204_v45  ;;  %11384 = vst [vmem:[#allocation80_spill] sm:$0xff] %v9206_v55  ;;  %v4727_v50 = vmax.f32 %v9201_v36, %v9204_v45  ;;  %v9213_v19 = vsel %vm3591_vm13, %v3314_v13, -1e+30  ;;  %v3728_v13 = vmax.f32 %v9215_v24, %v9217_v58 }
 0x605   : > { %11385 = vst [vmem:[#allocation90_spill] sm:$0xff] %v9213_v19  ;;  %11387 = vst [vmem:[#allocation106_spill] sm:$0xff] %v9217_v58  ;;  %v3731_v60 = vmax.f32 %v9206_v55, %v9213_v19 }
 0x606   : > { %4728 = vmax.xlane.f32.xlu1 %v4727_v50  ;;  %4725 = vmax.xlane.f32.xlu0 %v4724_v26  ;;  %v9221_v33 = vpop.f32.mrb[108].mxu0  ;;  %v9223_v21 = vpop.f32.mrb[100].mxu1 }
 0x607   : > { %11388 = vst [vmem:[#allocation58_spill] sm:$0xff] %v9221_v33  ;;  %v9225_v4 = vpop.f32.mrb[109].mxu0  ;;  %v9227_v34 = vpop.f32.mrb[101].mxu1 }
 0x608   : > { %11389 = vst [vmem:[#allocation84_spill] sm:$0xff] %v9225_v4  ;;  %v4730_v54 = vmax.f32 %v9221_v33, %v9225_v4 }
 0x60a   : > { %v9233_v22 = vpop.f32.mrb[110].mxu0  ;;  %3729 = vmax.xlane.f32.xlu1 %v3728_v13  ;;  %3732 = vmax.xlane.f32.xlu0 %v3731_v60  ;;  %v9235_v50 = vpop.f32.mrb[102].mxu1 }
 0x60b   : > { %11390 = vst [vmem:[#allocation109_spill] sm:$0xff] %v9233_v22  ;;  %v9237_v26 = vpop.f32.mrb[111].mxu0  ;;  %v9239_v19 = vpop.f32.mrb[103].mxu1 }
 0x60c   : > { %11391 = vst [vmem:[#allocation59_spill] sm:$0xff] %v9237_v26  ;;  %v4733_v55 = vmax.f32 %v9233_v22, %v9237_v26 }
 0x60e   : > { %4734 = vmax.xlane.f32.xlu1 %v4733_v55  ;;  %4731 = vmax.xlane.f32.xlu0 %v4730_v54  ;;  %v9243_v38 = vpop.f32.mrb[112].mxu0  ;;  %v9245_v58 = vpop.f32.mrb[104].mxu1  ;;  %v3440_v55 = vld [vmem:[#allocation2 + $0x270] sm:$0xff] }
 0x60f   : > { %v9247_v4 = vpop.f32.mrb[113].mxu0  ;;  %v9249_v33 = vpop.f32.mrb[105].mxu1 }
 0x612   : > { %v9253_v13 = vpop.f32.mrb[114].mxu0  ;;  %v9255_v24 = vpop.f32.mrb[106].mxu1 }
 0x613   : > { %v9257_v23 = vpop.f32.mrb[115].mxu0  ;;  %v9259_v26 = vpop.f32.mrb[107].mxu1 }
 0x616   : > { %v9263_v54 = vpop.f32.mrb[116].mxu0  ;;  %v9265_v22 = vpop.f32.mrb[108].mxu1 }
 0x617   : > { %v9267_v45 = vpop.f32.mrb[117].mxu0  ;;  %v9269_v36 = vpop.f32.mrb[109].mxu1 }
 0x61a   : > { %v9273_v32 = vpop.f32.mrb[118].mxu0  ;;  %v9275_v41 = vpop.f32.mrb[110].mxu1 }
 0x61b   : > { %v9277_v3 = vpop.f32.mrb[119].mxu0  ;;  %v9279_v30 = vpop.f32.mrb[111].mxu1 }
 0x61e   : > { %v9283_v10 = vpop.f32.mrb[120].mxu0  ;;  %v9285_v11 = vpop.f32.mrb[112].mxu1 }
 0x61f   : > { %3503 = vperm.xlu1 %5942, %v3440_v55   ;;  %v9287_v56 = vpop.f32.mrb[121].mxu0  ;;  %v9289_v60 = vpop.f32.mrb[113].mxu1  ;;  %v3445_v55 = vld [vmem:[#allocation2 + $0x298] sm:$0xff] }
 0x622   : > { %v9293_v61 = vpop.f32.mrb[122].mxu0  ;;  %v9295_v9 = vpop.f32.mrb[114].mxu1 }
 0x623   : > { %3509 = vperm.xlu1 %5942, %v3442_v47   ;;  %v9297_v46 = vpop.f32.mrb[123].mxu0  ;;  %v9299_v20 = vpop.f32.mrb[115].mxu1  ;;  %v3447_v47 = vld [vmem:[#allocation2 + $0x2a8] sm:$0xff] }
 0x624   : > { %3506 = vperm.xlu0 %5941, %v3441_v15   ;;  %v3444_v15 = vld [vmem:[#allocation2 + $0x290] sm:$0xff] }
 0x626   : > { %v9303_v35 = vpop.f32.mrb[124].mxu0  ;;  %v9305_v6 = vpop.f32.mrb[116].mxu1 }
 0x627   : > { %3518 = vperm.xlu1 %5942, %v3445_v55   ;;  %v9307_v8 = vpop.f32.mrb[125].mxu0  ;;  %v9309_v59 = vpop.f32.mrb[117].mxu1  ;;  %v3449_v55 = vld [vmem:[#allocation2 + $0x2b8] sm:$0xff] }
 0x628   : > { %3512 = vperm.xlu0 %5941, %v3443_v25   ;;  %v3446_v25 = vld [vmem:[#allocation2 + $0x2a0] sm:$0xff] }
 0x62a   : > { %v9313_v62 = vpop.f32.mrb[126].mxu0  ;;  %v9315_v1 = vpop.f32.mrb[118].mxu1 }
 0x62b   : > { %3524 = vperm.xlu1 %5942, %v3447_v47   ;;  %v9317_v51 = vpop.f32.mrb[127].mxu0  ;;  %v9319_v43 = vpop.f32.mrb[119].mxu1  ;;  %v3451_v47 = vld [vmem:[#allocation2 + $0x2c8] sm:$0xff] }
 0x62c   : > { %3515 = vperm.xlu0 %5941, %v3444_v15   ;;  %v3448_v15 = vld [vmem:[#allocation2 + $0x2b0] sm:$0xff] }
 0x62e   : > { %v9323_v44 = vpop.f32.mrb[128].mxu0  ;;  %v9325_v49 = vpop.f32.mrb[120].mxu1 }
 0x62f   : > { %11392 = vst [vmem:[#allocation60_spill] sm:$0xff] %v9323_v44  ;;  %11393 = vst [vmem:[#allocation62_spill] sm:$0xff] %v9325_v49  ;;  %3530 = vperm.xlu1 %5942, %v3449_v55   ;;  %v9327_v17 = vpop.f32.mrb[129].mxu0  ;;  %v9329_v16 = vpop.f32.mrb[121].mxu1  ;;  %v3453_v55 = vld [vmem:[#allocation2 + $0x2d8] sm:$0xff] }
 0x630   : > { %11394 = vst [vmem:[#allocation64_spill] sm:$0xff] %v9327_v17  ;;  %11395 = vst [vmem:[#allocation92_spill] sm:$0xff] %v9329_v16  ;;  %3521 = vperm.xlu0 %5941, %v3446_v25   ;;  %v3450_v25 = vld [vmem:[#allocation2 + $0x2c0] sm:$0xff] }
 0x632   : > { %v9333_v37 = vpop.f32.mrb[130].mxu0  ;;  %v9335_v0 = vpop.f32.mrb[122].mxu1 }
 0x633   : > { %11396 = vst [vmem:[#allocation61_spill] sm:$0xff] %v9333_v37  ;;  %11397 = vst [vmem:[#allocation63_spill] sm:$0xff] %v9335_v0  ;;  %3536 = vperm.xlu1 %5942, %v3451_v47   ;;  %v9337_v2 = vpop.f32.mrb[131].mxu0  ;;  %v9339_v52 = vpop.f32.mrb[123].mxu1  ;;  %v3455_v47 = vld [vmem:[#allocation2 + $0x2e8] sm:$0xff] }
 0x634   : > { %11398 = vst [vmem:[#allocation65_spill] sm:$0xff] %v9337_v2  ;;  %11399 = vst [vmem:[#allocation96_spill] sm:$0xff] %v9339_v52  ;;  %3527 = vperm.xlu0 %5941, %v3448_v15   ;;  %v3452_v15 = vld [vmem:[#allocation2 + $0x2d0] sm:$0xff] }
 0x636   : > { %v9343_v49 = vpop.f32.mrb[132].mxu0  ;;  %v9345_v14 = vpop.f32.mrb[124].mxu1 }
 0x637   : > { %11400 = vst [vmem:[#allocation94_spill] sm:$0xff] %v9343_v49  ;;  %11401 = vst [vmem:[#allocation69_spill] sm:$0xff] %v9345_v14  ;;  %3542 = vperm.xlu1 %5942, %v3453_v55   ;;  %v9347_v29 = vpop.f32.mrb[133].mxu0  ;;  %v9349_v17 = vpop.f32.mrb[125].mxu1  ;;  %v3457_v55 = vld [vmem:[#allocation2 + $0x2f8] sm:$0xff] }
 0x638   : > { %11402 = vst [vmem:[#allocation71_spill] sm:$0xff] %v9347_v29  ;;  %11403 = vst [vmem:[#allocation67_spill] sm:$0xff] %v9349_v17  ;;  %3533 = vperm.xlu0 %5941, %v3450_v25   ;;  %v3454_v25 = vld [vmem:[#allocation2 + $0x2e0] sm:$0xff] }
 0x63a   : > { %v9353_v0 = vpop.f32.mrb[134].mxu0  ;;  %v9355_v44 = vpop.f32.mrb[126].mxu1 }
 0x63b   : > { %11404 = vst [vmem:[#allocation70_spill] sm:$0xff] %v9353_v0  ;;  %11405 = vst [vmem:[#allocation111_spill] sm:$0xff] %v9355_v44  ;;  %3548 = vperm.xlu1 %5942, %v3455_v47   ;;  %v9357_v16 = vpop.f32.mrb[135].mxu0  ;;  %v9359_v2 = vpop.f32.mrb[127].mxu1 }
 0x63c   : > { %11406 = vst [vmem:[#allocation110_spill] sm:$0xff] %v9357_v16  ;;  %11407 = vst [vmem:[#allocation75_spill] sm:$0xff] %v9359_v2  ;;  %3539 = vperm.xlu0 %5941, %v3452_v15   ;;  %v3456_v2 = vld [vmem:[#allocation2 + $0x2f0] sm:$0xff] }
 0x63e   : > { %v9363_v14 = vpop.f32.mrb[136].mxu0  ;;  %v9365_v37 = vpop.f32.mrb[128].mxu1 }
 0x63f   : > { %11408 = vst [vmem:[#allocation73_spill] sm:$0xff] %v9363_v14  ;;  %11409 = vst [vmem:[#allocation112_spill] sm:$0xff] %v9365_v37  ;;  %3554 = vperm.xlu1 %5942, %v3457_v55   ;;  %v9367_v52 = vpop.f32.mrb[137].mxu0  ;;  %v9369_v29 = vpop.f32.mrb[129].mxu1 }
 0x640   : > { %11410 = vst [vmem:[#allocation5_spill] sm:$0xff] %v9367_v52  ;;  %11411 = vst [vmem:[#allocation76_spill] sm:$0xff] %v9369_v29  ;;  %3545 = vperm.xlu0 %5941, %v3454_v25  }
 0x642   : > { %v9373_v15 = vpop.f32.mrb[138].mxu0  ;;  %v9375_v44 = vpop.f32.mrb[130].mxu1 }
 0x643   : > { %11412 = vst [vmem:[#allocation113_spill] sm:$0xff] %v9373_v15  ;;  %11413 = vst [vmem:[#allocation79_spill] sm:$0xff] %v9375_v44  ;;  %v9377_v17 = vpop.f32.mrb[139].mxu0  ;;  %v9379_v49 = vpop.f32.mrb[131].mxu1 }
 0x644   : > { %11414 = vst [vmem:[#allocation77_spill] sm:$0xff] %v9377_v17  ;;  %11415 = vst [vmem:[#allocation98_spill] sm:$0xff] %v9379_v49  ;;  %3551 = vperm.xlu0 %5941, %v3456_v2  }
 0x646   : > { %v9383_v37 = vpop.f32.mrb[140].mxu0  ;;  %v9385_v29 = vpop.f32.mrb[132].mxu1 }
 0x647   : > { %11416 = vst [vmem:[#allocation81_spill] sm:$0xff] %v9383_v37  ;;  %11417 = vst [vmem:[#allocation7_spill] sm:$0xff] %v9385_v29  ;;  %v9387_v25 = vpop.f32.mrb[141].mxu0  ;;  %v9389_v47 = vpop.f32.mrb[133].mxu1 }
 0x648   : > { %11418 = vst [vmem:[#allocation85_spill] sm:$0xff] %v9387_v25  ;;  %11419 = vst [vmem:[#allocation101_spill] sm:$0xff] %v9389_v47 }
 0x64a   : > { %v9393_v44 = vpop.f32.mrb[142].mxu0  ;;  %v9395_v14 = vpop.f32.mrb[134].mxu1 }
 0x64b   : > { %11420 = vst [vmem:[#allocation100_spill] sm:$0xff] %v9393_v44  ;;  %11421 = vst [vmem:[#allocation99_spill] sm:$0xff] %v9395_v14  ;;  %v9397_v49 = vpop.f32.mrb[143].mxu0  ;;  %v9399_v2 = vpop.f32.mrb[135].mxu1 }
 0x64c   : > { %11422 = vst [vmem:[#allocation87_spill] sm:$0xff] %v9397_v49  ;;  %11423 = vst [vmem:[#allocation82_spill] sm:$0xff] %v9399_v2 }
 0x64e   : > { %v9403_v17 = vpop.f32.mrb[144].mxu0 }
 0x64f   : > { %11424 = vst [vmem:[#allocation88_spill] sm:$0xff] %v9403_v17  ;;  %v9405_v29 = vpop.f32.mrb[145].mxu0 }
 0x650   : > { %11425 = vst [vmem:[#allocation83_spill] sm:$0xff] %v9405_v29 }
 0x652   : > { %v9409_v15 = vpop.f32.mrb[146].mxu0 }
 0x653   : > { %11426 = vst [vmem:[#allocation115_spill] sm:$0xff] %v9409_v15  ;;  %v9411_v52 = vpop.f32.mrb[147].mxu0 }
 0x654   : > { %11427 = vst [vmem:[#allocation114_spill] sm:$0xff] %v9411_v52 }
 0x660   : > { %v9415_v25 = vpop.xlane.xlu1 %3693 }
 0x667   : > { %v9417_v2 = vpop.xlane.xlu0 %4695 }
 0x66b   : > { %v9419_v37 = vpop.xlane.xlu1 %4698  ;;  %v9421_v55 = vpop.xlane.xlu0 %3696 }
 0x66f   : > { %v9423_v49 = vpop.xlane.xlu0 %4701  ;;  %v9425_v44 = vpop.xlane.xlu1 %3699 }
 0x670   : > { %11428 = vst [vmem:[#allocation91_spill] sm:$0xff] %v9423_v49  ;;  %11429 = vst [vmem:[#allocation89_spill] sm:$0xff] %v9425_v44 }
 0x673   : > { %v9427_v47 = vpop.xlane.xlu1 %4704  ;;  %v9429_v29 = vpop.xlane.xlu0 %3702 }
 0x674   : > { %11430 = vst [vmem:[#allocation116_spill] sm:$0xff] %v9427_v47 }
 0x677   : > { %v9431_v17 = vpop.xlane.xlu1 %3705  ;;  %v9433_v16 = vpop.xlane.xlu0 %3708 }
 0x678   : > { %11431 = vst [vmem:[#allocation93_spill] sm:$0xff] %v9431_v17  ;;  %11432 = vst [vmem:[#allocation95_spill] sm:$0xff] %v9433_v16 }
 0x67b   : > { %v9435_v14 = vpop.xlane.xlu1 %4710  ;;  %v9437_v52 = vpop.xlane.xlu0 %4707 }
 0x67c   : > { %11433 = vst [vmem:[#allocation10_spill] sm:$0xff] %v9435_v14  ;;  %11434 = vst [vmem:[#allocation117_spill] sm:$0xff] %v9437_v52 }
 0x67f   : > { %v9439_v15 = vpop.xlane.xlu1 %3711  ;;  %v9441_v0 = vpop.xlane.xlu0 %3714 }
 0x680   : > { %11435 = vst [vmem:[#allocation97_spill] sm:$0xff] %v9439_v15  ;;  %11436 = vst [vmem:[#allocation6_spill] sm:$0xff] %v9441_v0 }
 0x683   : > { %v9443_v63 = vpop.xlane.xlu1 %4716  ;;  %v9445_v49 = vpop.xlane.xlu0 %4713 }
 0x684   : > { %11437 = vst [vmem:[#allocation35_spill] sm:$0xff] %v9443_v63  ;;  %11438 = vst [vmem:[#allocation9_spill] sm:$0xff] %v9445_v49 }
 0x687   : > { %v9447_v57 = vpop.xlane.xlu1 %3717  ;;  %v9449_v47 = vpop.xlane.xlu0 %3720 }
 0x688   : > { %11439 = vst [vmem:[#allocation8_spill] sm:$0xff] %v9447_v57  ;;  %11440 = vst [vmem:[#allocation33_spill] sm:$0xff] %v9449_v47 }
 0x68b   : > { %v9451_v44 = vpop.xlane.xlu1 %4722  ;;  %v9453_v17 = vpop.xlane.xlu0 %4719 }
 0x68f   : > { %v9455_v16 = vpop.xlane.xlu1 %3723  ;;  %v9457_v14 = vpop.xlane.xlu0 %3726 }
 0x690   : > { %11441 = vst [vmem:[#allocation11_spill] sm:$0xff] %v9455_v16 }
 0x693   : > { %v9459_v52 = vpop.xlane.xlu1 %4728  ;;  %v9461_v15 = vpop.xlane.xlu0 %4725 }
 0x694   : > { %11442 = vst [vmem:[#allocation34_spill] sm:$0xff] %v9459_v52  ;;  %11443 = vst [vmem:[#allocation13_spill] sm:$0xff] %v9461_v15 }
 0x697   : > { %v9463_v0 = vpop.xlane.xlu1 %3729  ;;  %v9465_v63 = vpop.xlane.xlu0 %3732 }
 0x698   : > { %11444 = vst [vmem:[#allocation12_spill] sm:$0xff] %v9463_v0  ;;  %11445 = vst [vmem:[#allocation38_spill] sm:$0xff] %v9465_v63 }
 0x69b   : > { %v9467_v49 = vpop.xlane.xlu1 %4734  ;;  %v9469_v57 = vpop.xlane.xlu0 %4731 }
 0x69c   : > { %11446 = vst [vmem:[#allocation36_spill] sm:$0xff] %v9469_v57 }
 0x69f   : > { %v3504_v47 = vpop.permute.xlu1 %3503 }
 0x6a0   : > { %vm3592_vm2 = vcmp.eq.s32.totalorder %v3504_v47, %v9034_v48  ;;  %vm3593_vm3 = vcmp.eq.s32.totalorder %v3504_v47, %v9037_v18 }
 0x6a1   : > { %v9474_v16 = vsel %vm3592_vm2, %v9223_v21, -1e+30  ;;  %v9477_v52 = vsel %vm3593_vm3, %v9227_v34, -1e+30 }
 0x6a2   : > { %11447 = vst [vmem:[#allocation23_spill] sm:$0xff] %v9477_v52  ;;  %v3734_v0 = vmax.f32 %v9474_v16, %v9477_v52  ;;  %v11448_v52 = vmax.f32 %v9253_v13, %v9257_v23 }
 0x6a3   : > { %v3507_v15 = vpop.permute.xlu0 %3506  ;;  %v3510_v63 = vpop.permute.xlu1 %3509 }
 0x6a4   : > { %vm3594_vm1 = vcmp.eq.s32.totalorder %v3507_v15, %v9034_v48  ;;  %vm3595_vm4 = vcmp.eq.s32.totalorder %v3507_v15, %v9037_v18  ;;  %3735 = vmax.xlane.f32.xlu1 %v3734_v0  ;;  %vm3596_vm7 = vcmp.eq.s32.totalorder %v3510_v63, %v9034_v48  ;;  %vm3597_vm8 = vcmp.eq.s32.totalorder %v3510_v63, %v9037_v18 }
 0x6a5   : > { %v9484_v57 = vsel %vm3594_vm1, %v9235_v50, -1e+30  ;;  %v9487_v47 = vsel %vm3595_vm4, %v9239_v19, -1e+30  ;;  %v11449_v63 = vmax.f32 %v9243_v38, %v9247_v4 }
 0x6a6   : > { %v3737_v34 = vmax.f32 %v9484_v57, %v9487_v47 }
 0x6a7   : > { %v3513_v21 = vpop.permute.xlu0 %3512  ;;  %v3519_v19 = vpop.permute.xlu1 %3518 }
 0x6a8   : > { %vm3598_vm5 = vcmp.eq.s32.totalorder %v3513_v21, %v9034_v48  ;;  %vm3599_vm6 = vcmp.eq.s32.totalorder %v3513_v21, %v9037_v18  ;;  %4740 = vmax.xlane.f32.xlu1 %v11448_v52  ;;  %3738 = vmax.xlane.f32.xlu0 %v3737_v34  ;;  %v9507_v21 = vsel %vm3596_vm7, %v9245_v58, -1e+30  ;;  %v9510_v52 = vsel %vm3597_vm8, %v9249_v33, -1e+30 }
 0x6a9   : > { %v9499_v0 = vsel %vm3598_vm5, %v9255_v24, -1e+30  ;;  %v9502_v50 = vsel %vm3599_vm6, %v9259_v26, -1e+30  ;;  %vm3602_vm9 = vcmp.eq.s32.totalorder %v3519_v19, %v9034_v48  ;;  %vm3603_vm10 = vcmp.eq.s32.totalorder %v3519_v19, %v9037_v18 }
 0x6aa   : > { %v3743_v15 = vmax.f32 %v9499_v0, %v9502_v50  ;;  %v3740_v26 = vmax.f32 %v9507_v21, %v9510_v52  ;;  %v9520_v34 = vsel %vm3602_vm9, %v9275_v41, -1e+30  ;;  %v9523_v58 = vsel %vm3603_vm10, %v9279_v30, -1e+30 }
 0x6ab   : > { %v3516_v24 = vpop.permute.xlu0 %3515  ;;  %11450 = vst [vmem:[#allocation15_spill] sm:$0xff] %v9523_v58  ;;  %v11451_v33 = vmax.f32 %v9273_v32, %v9277_v3  ;;  %v3525_v19 = vpop.permute.xlu1 %3524  ;;  %v3790_v30 = vsub.f32 %v9055_v42, %v9421_v55  ;;  %v3789_v42 = vsub.f32 %v9043_v31, %v9415_v25  ;;  %v4793_v31 = vsub.f32 %v9061_v39, %v9419_v37 }
 0x6ac   : > { %4737 = vmax.xlane.f32.xlu0 %v11449_v63  ;;  %3744 = vmax.xlane.f32.xlu1 %v3743_v15  ;;  %vm3600_vm11 = vcmp.eq.s32.totalorder %v3516_v24, %v9034_v48  ;;  %vm3601_vm12 = vcmp.eq.s32.totalorder %v3516_v24, %v9037_v18  ;;  %v3749_v15 = vmax.f32 %v9520_v34, %v9523_v58 }
 0x6ad   : > { %v9533_v63 = vsel %vm3600_vm11, %v9265_v22, -1e+30  ;;  %v9536_v41 = vsel %vm3601_vm12, %v9269_v36, -1e+30  ;;  %vm3606_vm13 = vcmp.eq.s32.totalorder %v3525_v19, %v9034_v48  ;;  %vm3607_vm14 = vcmp.eq.s32.totalorder %v3525_v19, %v9037_v18 }
 0x6ae   : > { %v11452_v24 = vmax.f32 %v9263_v54, %v9267_v45  ;;  %v3788_v36 = vsub.f32 %v9040_v5, %v9415_v25  ;;  %v9554_v19 = vsel %vm3606_vm13, %v9295_v9, -1e+30  ;;  %v9557_v58 = vsel %vm3607_vm14, %v9299_v20, -1e+30 }
 0x6af   : > { %v3522_v22 = vpop.permute.xlu0 %3521  ;;  %v11453_v5 = vmax.f32 %v9293_v61, %v9297_v46  ;;  %v3755_v25 = vmax.f32 %v9554_v19, %v9557_v58  ;;  %v11454_v39 = vmax.f32 %v9283_v10, %v9287_v56 }
 0x6b0   : > { %3741 = vmax.xlane.f32.xlu0 %v3740_v26  ;;  %4746 = vmax.xlane.f32.xlu1 %v11451_v33  ;;  %v3791_v26 = vsub.f32 %v9057_v53, %v9421_v55  ;;  %v3746_v33 = vmax.f32 %v9533_v63, %v9536_v41  ;;  %v3856_v53 = vmul.f32 1.442695, %v3790_v30  ;;  %vm3604_vm15 = vcmp.eq.s32.totalorder %v3522_v22, %v9034_v48  ;;  %v3531_v55 = vpop.permute.xlu1 %3530 }
 0x6b1   : > { %vm3605_vm2 = vcmp.eq.s32.totalorder %v3522_v22, %v9037_v18  ;;  %v3852_v20 = vmul.f32 1.442695, %v3788_v36  ;;  %v4790_v30 = vsub.f32 %v9047_v12, %v9417_v2  ;;  %vm3610_vm3 = vcmp.eq.s32.totalorder %v3531_v55, %v9034_v48 }
 0x6b2   : > { %v3858_v9 = vmul.f32 1.442695, %v3791_v26  ;;  %v9576_v22 = vsel %vm3605_vm2, %v9289_v60, -1e+30  ;;  %6327 = vpow2.f32 %v3856_v53  ;;  %vm3611_vm1 = vcmp.eq.s32.totalorder %v3531_v55, %v9037_v18  ;;  %v11460_v55 = vld [vmem:[#allocation123_spill] sm:$0xff] }
 0x6b3   : > { %v4791_v12 = vsub.f32 %v9049_v28, %v9417_v2  ;;  %v9588_v26 = vsel %vm3610_vm3, %v9315_v1, -1e+30  ;;  %v9591_v36 = vsel %vm3611_vm1, %v9319_v43, -1e+30  ;;  %v11455_v28 = vmax.f32 %v9313_v62, %v9317_v51 }
 0x6b4   : > { %4743 = vmax.xlane.f32.xlu0 %v11452_v24  ;;  %3750 = vmax.xlane.f32.xlu1 %v3749_v15  ;;  %v4792_v15 = vsub.f32 %v9059_v7, %v9419_v37  ;;  %v3854_v7 = vmul.f32 1.442695, %v3789_v42  ;;  %v9573_v24 = vsel %vm3604_vm15, %v9285_v11, -1e+30  ;;  %v4860_v37 = vmul.f32 1.442695, %v4793_v31  ;;  %v3528_v11 = vpop.permute.xlu0 %3527 }
 0x6b5   : > { %6329 = vpow2.f32 %v3858_v9  ;;  %v3752_v60 = vmax.f32 %v9573_v24, %v9576_v22  ;;  %v4854_v42 = vmul.f32 1.442695, %v4790_v30  ;;  %vm3608_vm4 = vcmp.eq.s32.totalorder %v3528_v11, %v9034_v48 }
 0x6b6   : > { %6331 = vpow2.f32 %v3852_v20  ;;  %vm3609_vm5 = vcmp.eq.s32.totalorder %v3528_v11, %v9037_v18  ;;  %v4856_v2 = vmul.f32 1.442695, %v4791_v12  ;;  %v3761_v1 = vmax.f32 %v9588_v26, %v9591_v36 }
 0x6b7   : > { %6333 = vpow2.f32 %v3854_v7  ;;  %v9604_v43 = vsel %vm3609_vm5, %v9309_v59, -1e+30  ;;  %v3794_v53 = vsub.f32 %v9083_v27, %v9429_v29  ;;  %v3795_v31 = vsub.f32 %v9085_v40, %v9429_v29  ;;  %v11462_v27 = vld [vmem:[#allocation30_spill] sm:$0xff]  ;;  %v11466_v40 = vld [vmem:[#allocation61_spill] sm:$0xff] }
 0x6b8   : > { %3747 = vmax.xlane.f32.xlu0 %v3746_v33  ;;  %4752 = vmax.xlane.f32.xlu1 %v11453_v5  ;;  %v4858_v33 = vmul.f32 1.442695, %v4792_v15  ;;  %v9601_v15 = vsel %vm3608_vm4, %v9305_v6, -1e+30  ;;  %11456 = vst [vmem:[#allocation14_spill] sm:$0xff] %v9604_v43  ;;  %v11457_v5 = vmax.f32 %v9303_v35, %v9307_v8  ;;  %v11459_v6 = vld [vmem:[#allocation89_spill] sm:$0xff] }
 0x6b9   : > { %v3792_v20 = vsub.f32 %v11460_v55, %v11459_v6  ;;  %v3758_v59 = vmax.f32 %v9601_v15, %v9604_v43  ;;  %v3793_v7 = vsub.f32 %v11462_v27, %v11459_v6  ;;  %v11467_v29 = vld [vmem:[#allocation65_spill] sm:$0xff] }
 0x6ba   : > { %6335 = vpow2.f32 %v4858_v33  ;;  %v11464_v33 = vld [vmem:[#allocation116_spill] sm:$0xff]  ;;  %v11468_v11 = vmax.f32 %v11466_v40, %v11467_v29  ;;  %v3534_v40 = vpop.permute.xlu0 %3533 }
 0x6bb   : > { %6337 = vpow2.f32 %v4860_v37  ;;  %v3864_v37 = vmul.f32 1.442695, %v3794_v53  ;;  %v3860_v6 = vmul.f32 1.442695, %v3792_v20  ;;  %v11473_v53 = vld [vmem:[#allocation91_spill] sm:$0xff]  ;;  %v11478_v20 = vld [vmem:[#allocation29_spill] sm:$0xff]  ;;  %vm3612_vm8 = vcmp.eq.s32.totalorder %v3534_v40, %v9034_v48 }
 0x6bc   : > { %4749 = vmax.xlane.f32.xlu0 %v11454_v39  ;;  %3756 = vmax.xlane.f32.xlu1 %v3755_v25  ;;  %6339 = vpow2.f32 %v4854_v42  ;;  %v9613_v9 = vpop.eup %6327  ;;  %v11465_v39 = vld [vmem:[#allocation37_spill] sm:$0xff]  ;;  %v3862_v29 = vmul.f32 1.442695, %v3793_v7  ;;  %vm3613_vm9 = vcmp.eq.s32.totalorder %v3534_v40, %v9037_v18 }
 0x6bd   : > { %6341 = vpow2.f32 %v4856_v2  ;;  %11458 = vst [vmem:[#allocation31_spill] sm:$0xff] %v9613_v9  ;;  %v4796_v12 = vsub.f32 %v11465_v39, %v11464_v33  ;;  %v11470_v42 = vld [vmem:[#allocation121_spill] sm:$0xff]  ;;  %v3866_v2 = vmul.f32 1.442695, %v3795_v31  ;;  %v11475_v31 = vld [vmem:[#allocation60_spill] sm:$0xff] }
 0x6be   : > { %6343 = vpow2.f32 %v3864_v37 }
 0x6bf   : > { %v9619_v25 = vpop.eup %6329  ;;  %6345 = vpow2.f32 %v3866_v2 }
 0x6c0   : > { %3753 = vmax.xlane.f32.xlu0 %v3752_v60  ;;  %4758 = vmax.xlane.f32.xlu1 %v11455_v28  ;;  %11461 = vst [vmem:[#allocation16_spill] sm:$0xff] %v9619_v25  ;;  %v9623_v30 = vpop.eup %6331  ;;  %v4797_v28 = vsub.f32 %v11470_v42, %v11464_v33  ;;  %v3983_v55 = vadd.f32 %v9619_v25, %v9613_v9  ;;  %v11476_v33 = vld [vmem:[#allocation64_spill] sm:$0xff]  ;;  %6347 = vpow2.f32 %v3860_v6 }
 0x6c1   : > { %11463 = vst [vmem:[#allocation26_spill] sm:$0xff] %v9623_v30  ;;  %v9630_v60 = vpop.eup %6333  ;;  %v11477_v42 = vmax.f32 %v11475_v31, %v11476_v33  ;;  %v4795_v9 = vsub.f32 %v11478_v20, %v11473_v53  ;;  %6349 = vpow2.f32 %v3862_v29  ;;  %v11508_v33 = vld [vmem:[#allocation42_spill] sm:$0xff] }
 0x6c2   : > { %11469 = vst [vmem:[#allocation22_spill] sm:$0xff] %v9630_v60  ;;  %v4868_v25 = vmul.f32 1.442695, %v4797_v28  ;;  %v3980_v7 = vadd.f32 %v9630_v60, %v9623_v30 }
 0x6c3   : > { %v4864_v2 = vmul.f32 1.442695, %v4795_v9  ;;  %v11491_v9 = vld [vmem:[#allocation120_spill] sm:$0xff] }
 0x6c4   : > { %4755 = vmax.xlane.f32.xlu0 %v11457_v5  ;;  %3762 = vmax.xlane.f32.xlu1 %v3761_v1  ;;  %v3537_v1 = vpop.permute.xlu1 %3536  ;;  %v9634_v5 = vpop.eup %6335 }
 0x6c5   : > { %11471 = vst [vmem:[#allocation25_spill] sm:$0xff] %v9634_v5  ;;  %v9638_v27 = vpop.eup %6337  ;;  %vm3614_vm6 = vcmp.eq.s32.totalorder %v3537_v1, %v9034_v48  ;;  %vm3615_vm7 = vcmp.eq.s32.totalorder %v3537_v1, %v9037_v18  ;;  %v11481_v1 = vld [vmem:[#allocation63_spill] sm:$0xff] }
 0x6c6   : > { %11472 = vst [vmem:[#allocation17_spill] sm:$0xff] %v9638_v27  ;;  %v9649_v43 = vpop.eup %6339 }
 0x6c7   : > { %11479 = vst [vmem:[#allocation24_spill] sm:$0xff] %v9649_v43  ;;  %v9655_v37 = vpop.eup %6341 }
 0x6c8   : > { %3759 = vmax.xlane.f32.xlu0 %v3758_v59  ;;  %4764 = vmax.xlane.f32.xlu1 %v11468_v11  ;;  %v11474_v59 = vld [vmem:[#allocation39_spill] sm:$0xff]  ;;  %v4866_v11 = vmul.f32 1.442695, %v4796_v12  ;;  %v4985_v12 = vadd.f32 %v9638_v27, %v9634_v5  ;;  %11480 = vst [vmem:[#allocation19_spill] sm:$0xff] %v9655_v37  ;;  %v4982_v6 = vadd.f32 %v9655_v37, %v9649_v43  ;;  %v11494_v43 = vld [vmem:[#allocation124_spill] sm:$0xff] }
 0x6c9   : > { %v4794_v39 = vsub.f32 %v11474_v59, %v11473_v53  ;;  %v11483_v59 = vld [vmem:[#allocation96_spill] sm:$0xff] }
 0x6ca   : > { %v9661_v53 = vsel %vm3615_vm7, %v11483_v59, -1e+30  ;;  %6351 = vpow2.f32 %v4866_v11  ;;  %v11489_v11 = vld [vmem:[#allocation95_spill] sm:$0xff]  ;;  %v11490_v59 = vld [vmem:[#allocation125_spill] sm:$0xff] }
 0x6cb   : > { %11484 = vst [vmem:[#allocation27_spill] sm:$0xff] %v9661_v53  ;;  %v4862_v28 = vmul.f32 1.442695, %v4794_v39  ;;  %6353 = vpow2.f32 %v4868_v25  ;;  %v3798_v40 = vsub.f32 %v11490_v59, %v11489_v11  ;;  %v3799_v25 = vsub.f32 %v11491_v9, %v11489_v11  ;;  %v11500_v11 = vld [vmem:[#allocation70_spill] sm:$0xff] }
 0x6cc   : > { %4761 = vmax.xlane.f32.xlu0 %v11477_v42  ;;  %3984 = vadd.xlane.f32.xlu1 %v3983_v55  ;;  %v9658_v55 = vsel %vm3614_vm6, %v11481_v1, -1e+30  ;;  %v11485_v42 = vld [vmem:[#allocation62_spill] sm:$0xff]  ;;  %v11487_v1 = vld [vmem:[#allocation92_spill] sm:$0xff] }
 0x6cd   : > { %11482 = vst [vmem:[#allocation21_spill] sm:$0xff] %v9658_v55  ;;  %v3767_v29 = vmax.f32 %v9658_v55, %v9661_v53  ;;  %v9670_v20 = vsel %vm3612_vm8, %v11485_v42, -1e+30  ;;  %v9673_v39 = vsel %vm3613_vm9, %v11487_v1, -1e+30  ;;  %6355 = vpow2.f32 %v4862_v28  ;;  %v11496_v28 = vld [vmem:[#allocation40_spill] sm:$0xff]  ;;  %v3543_v53 = vpop.permute.xlu1 %3542 }
 0x6ce   : > { %11486 = vst [vmem:[#allocation28_spill] sm:$0xff] %v9670_v20  ;;  %11488 = vst [vmem:[#allocation89_spill] sm:$0xff] %v9673_v39  ;;  %6357 = vpow2.f32 %v4864_v2  ;;  %v3764_v42 = vmax.f32 %v9670_v20, %v9673_v39  ;;  %v11498_v2 = vld [vmem:[#allocation10_spill] sm:$0xff]  ;;  %v3874_v60 = vmul.f32 1.442695, %v3799_v25  ;;  %v11504_v39 = vld [vmem:[#allocation49_spill] sm:$0xff]  ;;  %vm3618_vm10 = vcmp.eq.s32.totalorder %v3543_v53, %v9034_v48 }
 0x6cf   : > { %v11501_v9 = vld [vmem:[#allocation110_spill] sm:$0xff]  ;;  %v4801_v20 = vsub.f32 %v11504_v39, %v11498_v2  ;;  %vm3619_vm11 = vcmp.eq.s32.totalorder %v3543_v53, %v9037_v18  ;;  %v11510_v25 = vld [vmem:[#allocation71_spill] sm:$0xff] }
 0x6d0   : > { %3981 = vadd.xlane.f32.xlu0 %v3980_v7  ;;  %4986 = vadd.xlane.f32.xlu1 %v4985_v12  ;;  %v9679_v7 = vpop.eup %6343  ;;  %v11493_v12 = vld [vmem:[#allocation93_spill] sm:$0xff]  ;;  %v11502_v30 = vmax.f32 %v11500_v11, %v11501_v9  ;;  %v11509_v39 = vld [vmem:[#allocation94_spill] sm:$0xff] }
 0x6d1   : > { %11492 = vst [vmem:[#allocation123_spill] sm:$0xff] %v9679_v7  ;;  %v3796_v37 = vsub.f32 %v11494_v43, %v11493_v12  ;;  %v9685_v1 = vpop.eup %6345  ;;  %v3797_v5 = vsub.f32 %v11496_v28, %v11493_v12 }
 0x6d2   : > { %11495 = vst [vmem:[#allocation30_spill] sm:$0xff] %v9685_v1  ;;  %v9689_v59 = vpop.eup %6347 }
 0x6d3   : > { %11497 = vst [vmem:[#allocation116_spill] sm:$0xff] %v9689_v59  ;;  %v9696_v43 = vpop.eup %6349  ;;  %v3868_v12 = vmul.f32 1.442695, %v3796_v37  ;;  %v4876_v37 = vmul.f32 1.442695, %v4801_v20 }
 0x6d4   : > { %4983 = vadd.xlane.f32.xlu0 %v4982_v6  ;;  %3768 = vmax.xlane.f32.xlu1 %v3767_v29  ;;  %v3872_v6 = vmul.f32 1.442695, %v3798_v40  ;;  %v11499_v29 = vld [vmem:[#allocation47_spill] sm:$0xff]  ;;  %11503 = vst [vmem:[#allocation37_spill] sm:$0xff] %v9696_v43  ;;  %v9700_v55 = vpop.eup %6351  ;;  %v3989_v40 = vadd.f32 %v9685_v1, %v9679_v7  ;;  %v11512_v7 = vld [vmem:[#allocation46_spill] sm:$0xff] }
 0x6d5   : > { %v4800_v27 = vsub.f32 %v11499_v29, %v11498_v2  ;;  %11505 = vst [vmem:[#allocation121_spill] sm:$0xff] %v9700_v55  ;;  %v9704_v28 = vpop.eup %6353  ;;  %v11507_v29 = vld [vmem:[#allocation117_spill] sm:$0xff]  ;;  %v11511_v2 = vmax.f32 %v11509_v39, %v11510_v25  ;;  %v11542_v39 = vld [vmem:[#allocation43_spill] sm:$0xff] }
 0x6d6   : > { %11506 = vst [vmem:[#allocation91_spill] sm:$0xff] %v9704_v28  ;;  %v4798_v9 = vsub.f32 %v11508_v33, %v11507_v29  ;;  %6359 = vpow2.f32 %v3872_v6  ;;  %v4799_v1 = vsub.f32 %v11512_v7, %v11507_v29  ;;  %v4991_v33 = vadd.f32 %v9704_v28, %v9700_v55  ;;  %v11515_v6 = vld [vmem:[#allocation111_spill] sm:$0xff]  ;;  %v11524_v55 = vld [vmem:[#allocation66_spill] sm:$0xff] }
 0x6d7   : > { %6361 = vpow2.f32 %v3874_v60  ;;  %v9715_v11 = vpop.eup %6355  ;;  %v11517_v60 = vld [vmem:[#allocation75_spill] sm:$0xff] }
 0x6d8   : > { %3765 = vmax.xlane.f32.xlu0 %v3764_v42  ;;  %4770 = vmax.xlane.f32.xlu1 %v11502_v30  ;;  %v3870_v42 = vmul.f32 1.442695, %v3797_v5  ;;  %v4874_v30 = vmul.f32 1.442695, %v4800_v27  ;;  %v3540_v5 = vpop.permute.xlu0 %3539  ;;  %11513 = vst [vmem:[#allocation39_spill] sm:$0xff] %v9715_v11  ;;  %6363 = vpow2.f32 %v3868_v12  ;;  %v3986_v27 = vadd.f32 %v9696_v43, %v9689_v59  ;;  %v9721_v53 = vpop.eup %6357 }
 0x6d9   : > { %11514 = vst [vmem:[#allocation60_spill] sm:$0xff] %v9721_v53  ;;  %v9727_v20 = vsel %vm3619_vm11, %v11517_v60, -1e+30  ;;  %v4870_v7 = vmul.f32 1.442695, %v4798_v9  ;;  %vm3616_vm12 = vcmp.eq.s32.totalorder %v3540_v5, %v9034_v48  ;;  %vm3617_vm13 = vcmp.eq.s32.totalorder %v3540_v5, %v9037_v18  ;;  %v11521_v60 = vld [vmem:[#allocation67_spill] sm:$0xff] }
 0x6da   : > { %6365 = vpow2.f32 %v3870_v42  ;;  %11518 = vst [vmem:[#allocation63_spill] sm:$0xff] %v9727_v20  ;;  %v4872_v12 = vmul.f32 1.442695, %v4799_v1  ;;  %v4988_v29 = vadd.f32 %v9721_v53, %v9715_v11  ;;  %v11523_v9 = vld [vmem:[#allocation6_spill] sm:$0xff]  ;;  %v11528_v11 = vld [vmem:[#allocation103_spill] sm:$0xff] }
 0x6db   : > { %6367 = vpow2.f32 %v4874_v30  ;;  %v9739_v30 = vsel %vm3617_vm13, %v11521_v60, -1e+30  ;;  %v3802_v5 = vsub.f32 %v11524_v55, %v11523_v9  ;;  %v11525_v1 = vld [vmem:[#allocation102_spill] sm:$0xff] }
 0x6dc   : > { %4767 = vmax.xlane.f32.xlu0 %v11511_v2  ;;  %3990 = vadd.xlane.f32.xlu1 %v3989_v40  ;;  %v9724_v40 = vsel %vm3618_vm10, %v11515_v6, -1e+30  ;;  %6369 = vpow2.f32 %v4876_v37  ;;  %v11519_v2 = vld [vmem:[#allocation69_spill] sm:$0xff]  ;;  %11522 = vst [vmem:[#allocation62_spill] sm:$0xff] %v9739_v30  ;;  %v3803_v37 = vsub.f32 %v11525_v1, %v11523_v9 }
 0x6dd   : > { %11516 = vst [vmem:[#allocation29_spill] sm:$0xff] %v9724_v40  ;;  %v3773_v42 = vmax.f32 %v9724_v40, %v9727_v20  ;;  %v9736_v6 = vsel %vm3616_vm12, %v11519_v2, -1e+30  ;;  %6371 = vpow2.f32 %v4870_v7  ;;  %v11530_v7 = vld [vmem:[#allocation44_spill] sm:$0xff]  ;;  %v11534_v9 = vld [vmem:[#allocation113_spill] sm:$0xff]  ;;  %v3549_v40 = vpop.permute.xlu1 %3548 }
 0x6de   : > { %11520 = vst [vmem:[#allocation96_spill] sm:$0xff] %v9736_v6  ;;  %6373 = vpow2.f32 %v4872_v12  ;;  %v3770_v2 = vmax.f32 %v9736_v6, %v9739_v30  ;;  %v11532_v12 = vld [vmem:[#allocation35_spill] sm:$0xff]  ;;  %v11535_v1 = vld [vmem:[#allocation77_spill] sm:$0xff]  ;;  %v3882_v20 = vmul.f32 1.442695, %v3803_v37  ;;  %v11538_v30 = vld [vmem:[#allocation54_spill] sm:$0xff]  ;;  %vm3622_vm14 = vcmp.eq.s32.totalorder %v3549_v40, %v9034_v48 }
 0x6df   : > { %v11536_v43 = vmax.f32 %v11534_v9, %v11535_v1  ;;  %v4805_v6 = vsub.f32 %v11538_v30, %v11532_v12  ;;  %vm3623_vm15 = vcmp.eq.s32.totalorder %v3549_v40, %v9037_v18  ;;  %v11543_v30 = vld [vmem:[#allocation73_spill] sm:$0xff] }
 0x6e0   : > { %3987 = vadd.xlane.f32.xlu0 %v3986_v27  ;;  %4992 = vadd.xlane.f32.xlu1 %v4991_v33  ;;  %v9745_v27 = vpop.eup %6359  ;;  %v11527_v33 = vld [vmem:[#allocation97_spill] sm:$0xff] }
 0x6e1   : > { %11526 = vst [vmem:[#allocation92_spill] sm:$0xff] %v9745_v27  ;;  %v3800_v53 = vsub.f32 %v11528_v11, %v11527_v33  ;;  %v9751_v60 = vpop.eup %6361  ;;  %v3801_v28 = vsub.f32 %v11530_v7, %v11527_v33  ;;  %v11544_v37 = vld [vmem:[#allocation5_spill] sm:$0xff] }
 0x6e2   : > { %11529 = vst [vmem:[#allocation95_spill] sm:$0xff] %v9751_v60  ;;  %v9755_v55 = vpop.eup %6363 }
 0x6e3   : > { %11531 = vst [vmem:[#allocation125_spill] sm:$0xff] %v9755_v55  ;;  %v3876_v33 = vmul.f32 1.442695, %v3800_v53  ;;  %v4884_v53 = vmul.f32 1.442695, %v4805_v6 }
 0x6e4   : > { %4989 = vadd.xlane.f32.xlu0 %v4988_v29  ;;  %3774 = vmax.xlane.f32.xlu1 %v3773_v42  ;;  %v3880_v29 = vmul.f32 1.442695, %v3802_v5  ;;  %v11533_v42 = vld [vmem:[#allocation41_spill] sm:$0xff]  ;;  %v9762_v11 = vpop.eup %6365  ;;  %v3995_v5 = vadd.f32 %v9751_v60, %v9745_v27 }
 0x6e5   : > { %v4804_v59 = vsub.f32 %v11533_v42, %v11532_v12  ;;  %11537 = vst [vmem:[#allocation120_spill] sm:$0xff] %v9762_v11  ;;  %v9766_v25 = vpop.eup %6367  ;;  %v11541_v42 = vld [vmem:[#allocation9_spill] sm:$0xff]  ;;  %v11545_v12 = vmax.f32 %v11543_v30, %v11544_v37 }
 0x6e6   : > { %11539 = vst [vmem:[#allocation93_spill] sm:$0xff] %v9766_v25  ;;  %v9770_v7 = vpop.eup %6369  ;;  %v4802_v1 = vsub.f32 %v11542_v39, %v11541_v42  ;;  %6375 = vpow2.f32 %v3880_v29  ;;  %v11546_v27 = vld [vmem:[#allocation45_spill] sm:$0xff]  ;;  %v11549_v29 = vld [vmem:[#allocation79_spill] sm:$0xff] }
 0x6e7   : > { %11540 = vst [vmem:[#allocation124_spill] sm:$0xff] %v9770_v7  ;;  %6377 = vpow2.f32 %v3882_v20  ;;  %v4803_v60 = vsub.f32 %v11546_v27, %v11541_v42  ;;  %v9781_v9 = vpop.eup %6371  ;;  %v4997_v39 = vadd.f32 %v9770_v7, %v9766_v25  ;;  %v11551_v20 = vld [vmem:[#allocation98_spill] sm:$0xff]  ;;  %v11553_v42 = vld [vmem:[#allocation8_spill] sm:$0xff] }
 0x6e8   : > { %3771 = vmax.xlane.f32.xlu0 %v3770_v2  ;;  %4776 = vmax.xlane.f32.xlu1 %v11536_v43  ;;  %v3878_v2 = vmul.f32 1.442695, %v3801_v28  ;;  %v4882_v43 = vmul.f32 1.442695, %v4804_v59  ;;  %v3546_v28 = vpop.permute.xlu0 %3545  ;;  %11547 = vst [vmem:[#allocation40_spill] sm:$0xff] %v9781_v9  ;;  %6379 = vpow2.f32 %v3876_v33  ;;  %v3992_v59 = vadd.f32 %v9762_v11, %v9755_v55  ;;  %v9787_v40 = vpop.eup %6373 }
 0x6e9   : > { %11548 = vst [vmem:[#allocation10_spill] sm:$0xff] %v9787_v40  ;;  %v9793_v6 = vsel %vm3623_vm15, %v11551_v20, -1e+30  ;;  %v4878_v27 = vmul.f32 1.442695, %v4802_v1  ;;  %vm3620_vm2 = vcmp.eq.s32.totalorder %v3546_v28, %v9034_v48  ;;  %vm3621_vm3 = vcmp.eq.s32.totalorder %v3546_v28, %v9037_v18  ;;  %v11556_v20 = vld [vmem:[#allocation112_spill] sm:$0xff] }
 0x6ea   : > { %6381 = vpow2.f32 %v3878_v2  ;;  %11552 = vst [vmem:[#allocation49_spill] sm:$0xff] %v9793_v6  ;;  %v4880_v33 = vmul.f32 1.442695, %v4803_v60  ;;  %v4994_v2 = vadd.f32 %v9787_v40, %v9781_v9  ;;  %v9806_v7 = vsel %vm3620_vm2, %v11556_v20, -1e+30  ;;  %v11558_v28 = vld [vmem:[#allocation76_spill] sm:$0xff] }
 0x6eb   : > { %6383 = vpow2.f32 %v4882_v43  ;;  %v11555_v43 = vld [vmem:[#allocation48_spill] sm:$0xff]  ;;  %11557 = vst [vmem:[#allocation117_spill] sm:$0xff] %v9806_v7  ;;  %v11560_v60 = vld [vmem:[#allocation33_spill] sm:$0xff] }
 0x6ec   : > { %4773 = vmax.xlane.f32.xlu0 %v11545_v12  ;;  %3996 = vadd.xlane.f32.xlu1 %v3995_v5  ;;  %v9790_v5 = vsel %vm3622_vm14, %v11549_v29, -1e+30  ;;  %6385 = vpow2.f32 %v4884_v53  ;;  %v11554_v12 = vld [vmem:[#allocation68_spill] sm:$0xff]  ;;  %v3805_v1 = vsub.f32 %v11555_v43, %v11553_v42  ;;  %v11561_v53 = vld [vmem:[#allocation55_spill] sm:$0xff] }
 0x6ed   : > { %11550 = vst [vmem:[#allocation47_spill] sm:$0xff] %v9790_v5  ;;  %v3804_v25 = vsub.f32 %v11554_v12, %v11553_v42  ;;  %v3779_v29 = vmax.f32 %v9790_v5, %v9793_v6  ;;  %6387 = vpow2.f32 %v4878_v27  ;;  %v11562_v12 = vld [vmem:[#allocation52_spill] sm:$0xff]  ;;  %v11564_v42 = vld [vmem:[#allocation86_spill] sm:$0xff] }
 0x6ee   : > { %6389 = vpow2.f32 %v4880_v33  ;;  %v3807_v9 = vsub.f32 %v11562_v12, %v11560_v60  ;;  %v4808_v43 = vsub.f32 %v11564_v42, %v9451_v44  ;;  %v3886_v27 = vmul.f32 1.442695, %v3805_v1  ;;  %v11569_v12 = vld [vmem:[#allocation87_spill] sm:$0xff]  ;;  %v11572_v6 = vld [vmem:[#allocation74_spill] sm:$0xff] }
 0x6ef   : > { %v3884_v55 = vmul.f32 1.442695, %v3804_v25 }
 0x6f0   : > { %3993 = vadd.xlane.f32.xlu0 %v3992_v59  ;;  %4998 = vadd.xlane.f32.xlu1 %v4997_v39  ;;  %v9809_v59 = vsel %vm3621_vm3, %v11558_v28, -1e+30  ;;  %v3806_v39 = vsub.f32 %v11561_v53, %v11560_v60  ;;  %v9815_v40 = vpop.eup %6375  ;;  %v11566_v53 = vld [vmem:[#allocation57_spill] sm:$0xff]  ;;  %v11568_v60 = vld [vmem:[#allocation100_spill] sm:$0xff]  ;;  %v3890_v42 = vmul.f32 1.442695, %v3807_v9 }
 0x6f1   : > { %11559 = vst [vmem:[#allocation42_spill] sm:$0xff] %v9809_v59  ;;  %11563 = vst [vmem:[#allocation46_spill] sm:$0xff] %v9815_v40  ;;  %v3776_v20 = vmax.f32 %v9806_v7, %v9809_v59  ;;  %v9821_v28 = vpop.eup %6377  ;;  %v11570_v11 = vmax.f32 %v11568_v60, %v11569_v12  ;;  %v4806_v59 = vsub.f32 %v11572_v6, %v9453_v17  ;;  %v3555_v7 = vpop.permute.xlu1 %3554  ;;  %6391 = vpow2.f32 %v3884_v55  ;;  %v11576_v9 = vld [vmem:[#allocation104_spill] sm:$0xff]  ;;  %v11577_v55 = vld [vmem:[#allocation81_spill] sm:$0xff] }
 0x6f2   : > { %11565 = vst [vmem:[#allocation111_spill] sm:$0xff] %v9821_v28  ;;  %v3888_v33 = vmul.f32 1.442695, %v3806_v39  ;;  %v4890_v1 = vmul.f32 1.442695, %v4808_v43  ;;  %6393 = vpow2.f32 %v3886_v27  ;;  %v3810_v12 = vsub.f32 %v11576_v9, %v9457_v14  ;;  %v11578_v6 = vld [vmem:[#allocation85_spill] sm:$0xff] }
 0x6f3   : > { %vm3626_vm1 = vcmp.eq.s32.totalorder %v3555_v7, %v9034_v48  ;;  %vm3627_vm4 = vcmp.eq.s32.totalorder %v3555_v7, %v9037_v18  ;;  %v11579_v43 = vmax.f32 %v11577_v55, %v11578_v6  ;;  %v11580_v27 = vld [vmem:[#allocation11_spill] sm:$0xff]  ;;  %v11584_v9 = vld [vmem:[#allocation50_spill] sm:$0xff]  ;;  %v11592_v7 = vld [vmem:[#allocation13_spill] sm:$0xff] }
 0x6f4   : > { %4995 = vadd.xlane.f32.xlu0 %v4994_v2  ;;  %3780 = vmax.xlane.f32.xlu1 %v3779_v29  ;;  %v4809_v2 = vsub.f32 %v11566_v53, %v9451_v44  ;;  %v9825_v29 = vpop.eup %6379  ;;  %v4001_v44 = vadd.f32 %v9821_v28, %v9815_v40  ;;  %6395 = vpow2.f32 %v3888_v33  ;;  %v4886_v40 = vmul.f32 1.442695, %v4806_v59 }
 0x6f5   : > { %11567 = vst [vmem:[#allocation75_spill] sm:$0xff] %v9825_v29  ;;  %v9830_v25 = vpop.eup %6381  ;;  %6397 = vpow2.f32 %v3890_v42  ;;  %v3809_v37 = vsub.f32 %v11584_v9, %v11580_v27  ;;  %v11590_v9 = vld [vmem:[#allocation53_spill] sm:$0xff] }
 0x6f6   : > { %11571 = vst [vmem:[#allocation69_spill] sm:$0xff] %v9830_v25  ;;  %v9834_v5 = vpop.eup %6383  ;;  %6399 = vpow2.f32 %v4890_v1  ;;  %v3998_v6 = vadd.f32 %v9830_v25, %v9825_v29 }
 0x6f7   : > { %11573 = vst [vmem:[#allocation67_spill] sm:$0xff] %v9834_v5  ;;  %v9838_v39 = vpop.eup %6385 }
 0x6f8   : > { %3777 = vmax.xlane.f32.xlu0 %v3776_v20  ;;  %4782 = vmax.xlane.f32.xlu1 %v11570_v11  ;;  %11574 = vst [vmem:[#allocation6_spill] sm:$0xff] %v9838_v39  ;;  %v4892_v20 = vmul.f32 1.442695, %v4809_v2  ;;  %v11575_v11 = vld [vmem:[#allocation72_spill] sm:$0xff]  ;;  %v11581_v2 = vld [vmem:[#allocation105_spill] sm:$0xff]  ;;  %v9853_v60 = vpop.eup %6387  ;;  %v5003_v42 = vadd.f32 %v9838_v39, %v9834_v5 }
 0x6f9   : > { %v4807_v53 = vsub.f32 %v11575_v11, %v9453_v17  ;;  %v3808_v28 = vsub.f32 %v11581_v2, %v11580_v27  ;;  %v11582_v17 = vld [vmem:[#allocation51_spill] sm:$0xff]  ;;  %v3552_v11 = vpop.permute.xlu0 %3551  ;;  %11583 = vst [vmem:[#allocation66_spill] sm:$0xff] %v9853_v60  ;;  %v9861_v59 = vpop.eup %6389  ;;  %v11587_v2 = vld [vmem:[#allocation82_spill] sm:$0xff]  ;;  %v3896_v27 = vmul.f32 1.442695, %v3810_v12 }
 0x6fa   : > { %v3811_v33 = vsub.f32 %v11582_v17, %v9457_v14  ;;  %11585 = vst [vmem:[#allocation102_spill] sm:$0xff] %v9861_v59  ;;  %6401 = vpow2.f32 %v4892_v20  ;;  %v9871_v1 = vsel %vm3627_vm4, %v11587_v2, -1e+30  ;;  %v11589_v17 = vld [vmem:[#allocation34_spill] sm:$0xff]  ;;  %vm3624_vm5 = vcmp.eq.s32.totalorder %v3552_v11, %v9034_v48  ;;  %v11593_v2 = vld [vmem:[#allocation108_spill] sm:$0xff] }
 0x6fb   : > { %11588 = vst [vmem:[#allocation97_spill] sm:$0xff] %v9871_v1  ;;  %v4812_v29 = vsub.f32 %v11590_v9, %v11589_v17  ;;  %vm3625_vm6 = vcmp.eq.s32.totalorder %v3552_v11, %v9037_v18  ;;  %6403 = vpow2.f32 %v4886_v40  ;;  %v3892_v20 = vmul.f32 1.442695, %v3808_v28  ;;  %v11594_v18 = vld [vmem:[#allocation78_spill] sm:$0xff]  ;;  %v11595_v40 = vld [vmem:[#allocation7_spill] sm:$0xff]  ;;  %v11600_v9 = vld [vmem:[#allocation80_spill] sm:$0xff] }
 0x6fc   : > { %4779 = vmax.xlane.f32.xlu0 %v11579_v43  ;;  %4002 = vadd.xlane.f32.xlu1 %v4001_v44  ;;  %v4888_v44 = vmul.f32 1.442695, %v4807_v53  ;;  %v11586_v43 = vld [vmem:[#allocation99_spill] sm:$0xff]  ;;  %v3898_v53 = vmul.f32 1.442695, %v3811_v33  ;;  %v4810_v25 = vsub.f32 %v11593_v2, %v11592_v7  ;;  %v5000_v12 = vadd.f32 %v9861_v59, %v9853_v60  ;;  %v11597_v33 = vld [vmem:[#allocation101_spill] sm:$0xff] }
 0x6fd   : > { %v9866_v14 = vsel %vm3626_vm1, %v11586_v43, -1e+30  ;;  %v11591_v43 = vld [vmem:[#allocation56_spill] sm:$0xff]  ;;  %v3894_v39 = vmul.f32 1.442695, %v3809_v37  ;;  %v9893_v37 = vpop.eup %6391  ;;  %v11604_v59 = vld [vmem:[#allocation107_spill] sm:$0xff] }
 0x6fe   : > { %v4813_v5 = vsub.f32 %v11591_v43, %v11589_v17  ;;  %v3785_v48 = vmax.f32 %v9866_v14, %v9871_v1  ;;  %6405 = vpow2.f32 %v4888_v44  ;;  %v9888_v28 = vsel %vm3624_vm5, %v11595_v40, -1e+30  ;;  %v11599_v17 = vld [vmem:[#allocation38_spill] sm:$0xff]  ;;  %v9897_v2 = vpop.eup %6393  ;;  %v11603_v60 = vld [vmem:[#allocation12_spill] sm:$0xff] }
 0x6ff   : > { %11596 = vst [vmem:[#allocation103_spill] sm:$0xff] %v9888_v28  ;;  %v9891_v11 = vsel %vm3625_vm6, %v11597_v33, -1e+30  ;;  %6407 = vpow2.f32 %v3896_v27  ;;  %v3814_v43 = vsub.f32 %v11600_v9, %v11599_v17  ;;  %v9901_v40 = vpop.eup %6395  ;;  %v4894_v33 = vmul.f32 1.442695, %v4810_v25 }
 0x700   : > { %3999 = vadd.xlane.f32.xlu0 %v3998_v6  ;;  %5004 = vadd.xlane.f32.xlu1 %v5003_v42  ;;  %v4811_v6 = vsub.f32 %v11594_v18, %v11592_v7  ;;  %11598 = vst [vmem:[#allocation44_spill] sm:$0xff] %v9891_v11  ;;  %v4898_v42 = vmul.f32 1.442695, %v4812_v29  ;;  %6409 = vpow2.f32 %v3898_v53  ;;  %v4900_v44 = vmul.f32 1.442695, %v4813_v5  ;;  %v11601_v7 = vld [vmem:[#allocation90_spill] sm:$0xff]  ;;  %v9907_v9 = vpop.eup %6397 }
 0x701   : > { %v3815_v18 = vsub.f32 %v11601_v7, %v11599_v17  ;;  %11602 = vst [vmem:[#allocation35_spill] sm:$0xff] %v9901_v40  ;;  %6411 = vpow2.f32 %v3892_v20  ;;  %v3812_v27 = vsub.f32 %v11604_v59, %v11603_v60  ;;  %v3782_v29 = vmax.f32 %v9888_v28, %v9891_v11  ;;  %v11605_v53 = vld [vmem:[#allocation106_spill] sm:$0xff]  ;;  %v11606_v20 = vld [vmem:[#allocation109_spill] sm:$0xff]  ;;  %v11607_v7 = vld [vmem:[#allocation115_spill] sm:$0xff] }
 0x702   : > { %6413 = vpow2.f32 %v3894_v39  ;;  %v3813_v5 = vsub.f32 %v11605_v53, %v11603_v60  ;;  %v3904_v17 = vmul.f32 1.442695, %v3814_v43  ;;  %v4816_v25 = vsub.f32 %v11606_v20, %v9467_v49  ;;  %v11608_v59 = vld [vmem:[#allocation114_spill] sm:$0xff]  ;;  %v11611_v20 = vld [vmem:[#allocation36_spill] sm:$0xff] }
 0x703   : > { %6415 = vpow2.f32 %v4898_v42  ;;  %v11609_v1 = vmax.f32 %v11607_v7, %v11608_v59  ;;  %v3906_v39 = vmul.f32 1.442695, %v3815_v18  ;;  %v3900_v60 = vmul.f32 1.442695, %v3812_v27  ;;  %v11613_v7 = vld [vmem:[#allocation88_spill] sm:$0xff] }
 0x704   : > { %5001 = vadd.xlane.f32.xlu0 %v5000_v12  ;;  %3786 = vmax.xlane.f32.xlu1 %v3785_v48  ;;  %v4896_v12 = vmul.f32 1.442695, %v4811_v6  ;;  %v9911_v48 = vpop.eup %6399  ;;  %6417 = vpow2.f32 %v4900_v44  ;;  %v11610_v6 = vld [vmem:[#allocation59_spill] sm:$0xff]  ;;  %v4007_v42 = vadd.f32 %v9907_v9, %v9901_v40  ;;  %v4906_v53 = vmul.f32 1.442695, %v4816_v25  ;;  %v11616_v27 = vld [vmem:[#allocation84_spill] sm:$0xff] }
 0x705   : > { %v9918_v11 = vpop.eup %6401  ;;  %v4817_v28 = vsub.f32 %v11610_v6, %v9467_v49  ;;  %6419 = vpow2.f32 %v4894_v33  ;;  %v11614_v44 = vld [vmem:[#allocation83_spill] sm:$0xff]  ;;  %v4815_v6 = vsub.f32 %v11616_v27, %v11611_v20 }
 0x706   : > { %v9924_v43 = vpop.eup %6403  ;;  %6421 = vpow2.f32 %v4896_v12  ;;  %v11615_v18 = vmax.f32 %v11613_v7, %v11614_v44  ;;  %v4004_v12 = vadd.f32 %v9897_v2, %v9893_v37 }
 0x707   : > { %6423 = vpow2.f32 %v3904_v17  ;;  %v4908_v33 = vmul.f32 1.442695, %v4817_v28 }
 0x708   : > { %3783 = vmax.xlane.f32.xlu0 %v3782_v29  ;;  %4788 = vmax.xlane.f32.xlu1 %v11609_v1  ;;  %v3902_v29 = vmul.f32 1.442695, %v3813_v5  ;;  %v11612_v1 = vld [vmem:[#allocation58_spill] sm:$0xff]  ;;  %v9931_v49 = vpop.eup %6405  ;;  %6425 = vpow2.f32 %v3906_v39  ;;  %v5009_v5 = vadd.f32 %v9918_v11, %v9911_v48 }
 0x709   : > { %v4814_v59 = vsub.f32 %v11612_v1, %v11611_v20  ;;  %v9935_v40 = vpop.eup %6407  ;;  %6427 = vpow2.f32 %v3900_v60  ;;  %v5006_v20 = vadd.f32 %v9931_v49, %v9924_v43 }
 0x70a   : > { %11617 = vst [vmem:[#allocation41_spill] sm:$0xff] %v9935_v40  ;;  %v9941_v17 = vpop.eup %6409  ;;  %6429 = vpow2.f32 %v3902_v29 }
 0x70b   : > { %v9943_v25 = vpop.eup %6411  ;;  %6431 = vpow2.f32 %v4906_v53  ;;  %v4902_v39 = vmul.f32 1.442695, %v4814_v59  ;;  %v4013_v1 = vadd.f32 %v9941_v17, %v9935_v40 }
 0x70c   : > { %4785 = vmax.xlane.f32.xlu0 %v11615_v18  ;;  %4008 = vadd.xlane.f32.xlu1 %v4007_v42  ;;  %11618 = vst [vmem:[#allocation54_spill] sm:$0xff] %v9943_v25  ;;  %v9945_v28 = vpop.eup %6413  ;;  %6433 = vpow2.f32 %v4908_v33  ;;  %v4904_v42 = vmul.f32 1.442695, %v4815_v6 }
 0x70d   : > { %v9947_v60 = vpop.eup %6415  ;;  %6435 = vpow2.f32 %v4902_v39  ;;  %v4010_v33 = vadd.f32 %v9945_v28, %v9943_v25 }
 0x70e   : > { %11619 = vst [vmem:[#allocation9_spill] sm:$0xff] %v9947_v60  ;;  %v9953_v18 = vpop.eup %6417  ;;  %6437 = vpow2.f32 %v4904_v42 }
 0x70f   : > { %11620 = vst [vmem:[#allocation43_spill] sm:$0xff] %v9953_v18  ;;  %v9955_v29 = vpop.eup %6419  ;;  %v5015_v27 = vadd.f32 %v9953_v18, %v9947_v60 }
 0x710   : > { %4005 = vadd.xlane.f32.xlu0 %v4004_v12  ;;  %5010 = vadd.xlane.f32.xlu1 %v5009_v5  ;;  %11621 = vst [vmem:[#allocation73_spill] sm:$0xff] %v9955_v29  ;;  %v9957_v59 = vpop.eup %6421 }
 0x711   : > { %11622 = vst [vmem:[#allocation45_spill] sm:$0xff] %v9957_v59  ;;  %v9959_v53 = vpop.eup %6423  ;;  %v5012_v42 = vadd.f32 %v9957_v59, %v9955_v29 }
 0x712   : > { %11623 = vst [vmem:[#allocation79_spill] sm:$0xff] %v9959_v53  ;;  %v9965_v6 = vpop.eup %6425 }
 0x713   : > { %11624 = vst [vmem:[#allocation98_spill] sm:$0xff] %v9965_v6  ;;  %v9967_v12 = vpop.eup %6427 }
 0x714   : > { %5007 = vadd.xlane.f32.xlu0 %v5006_v20  ;;  %4014 = vadd.xlane.f32.xlu1 %v4013_v1  ;;  %11625 = vst [vmem:[#allocation8_spill] sm:$0xff] %v9967_v12  ;;  %v9969_v5 = vpop.eup %6429  ;;  %v4019_v20 = vadd.f32 %v9965_v6, %v9959_v53 }
 0x715   : > { %11626 = vst [vmem:[#allocation68_spill] sm:$0xff] %v9969_v5  ;;  %v9971_v39 = vpop.eup %6431 }
 0x716   : > { %11627 = vst [vmem:[#allocation48_spill] sm:$0xff] %v9971_v39  ;;  %v9977_v1 = vpop.eup %6433 }
 0x717   : > { %11628 = vst [vmem:[#allocation112_spill] sm:$0xff] %v9977_v1  ;;  %v9979_v60 = vpop.eup %6435 }
 0x718   : > { %4011 = vadd.xlane.f32.xlu0 %v4010_v33  ;;  %5016 = vadd.xlane.f32.xlu1 %v5015_v27  ;;  %11629 = vst [vmem:[#allocation76_spill] sm:$0xff] %v9979_v60  ;;  %v4016_v33 = vadd.f32 %v9969_v5, %v9967_v12  ;;  %v5021_v27 = vadd.f32 %v9977_v1, %v9971_v39  ;;  %v9985_v18 = vpop.eup %6437 }
 0x719   : > { %11630 = vst [vmem:[#allocation33_spill] sm:$0xff] %v9985_v18  ;;  %v5018_v29 = vadd.f32 %v9985_v18, %v9979_v60 }
 0x71c   : > { %5013 = vadd.xlane.f32.xlu0 %v5012_v42  ;;  %4020 = vadd.xlane.f32.xlu1 %v4019_v20  ;;  %v11631_v20 = vld [vmem:[#allocation23_spill] sm:$0xff] }
 0x720   : > { %4017 = vadd.xlane.f32.xlu0 %v4016_v33  ;;  %5022 = vadd.xlane.f32.xlu1 %v5021_v27 }
 0x724   : > { %5019 = vadd.xlane.f32.xlu0 %v5018_v29 }
 0x731   : > { %v3736_v53 = vpop.xlane.xlu1 %3735 }
 0x732   : > { %v3816_v42 = vsub.f32 %v9474_v16, %v3736_v53  ;;  %v3817_v6 = vsub.f32 %v11631_v20, %v3736_v53 }
 0x734   : > { %v3908_v59 = vmul.f32 1.442695, %v3816_v42  ;;  %v3910_v40 = vmul.f32 1.442695, %v3817_v6 }
 0x735   : > { %v4741_v25 = vpop.xlane.xlu1 %4740  ;;  %v3739_v1 = vpop.xlane.xlu0 %3738 }
 0x736   : > { %6439 = vpow2.f32 %v3908_v59  ;;  %v4820_v12 = vsub.f32 %v9253_v13, %v4741_v25  ;;  %v4821_v39 = vsub.f32 %v9257_v23, %v4741_v25  ;;  %v3818_v33 = vsub.f32 %v9484_v57, %v3739_v1 }
 0x737   : > { %6441 = vpow2.f32 %v3910_v40  ;;  %v3819_v27 = vsub.f32 %v9487_v47, %v3739_v1 }
 0x738   : > { %v4914_v29 = vmul.f32 1.442695, %v4820_v12  ;;  %v3912_v60 = vmul.f32 1.442695, %v3818_v33  ;;  %v4916_v16 = vmul.f32 1.442695, %v4821_v39 }
 0x739   : > { %v3914_v18 = vmul.f32 1.442695, %v3819_v27  ;;  %v4738_v5 = vpop.xlane.xlu0 %4737  ;;  %v3745_v53 = vpop.xlane.xlu1 %3744 }
 0x73a   : > { %6443 = vpow2.f32 %v4914_v29  ;;  %v4818_v6 = vsub.f32 %v9243_v38, %v4738_v5  ;;  %v4819_v59 = vsub.f32 %v9247_v4, %v4738_v5  ;;  %v3822_v13 = vsub.f32 %v9499_v0, %v3745_v53  ;;  %v11632_v29 = vld [vmem:[#allocation15_spill] sm:$0xff] }
 0x73b   : > { %6445 = vpow2.f32 %v3912_v60  ;;  %v3823_v23 = vsub.f32 %v9502_v50, %v3745_v53 }
 0x73c   : > { %6447 = vpow2.f32 %v3914_v18  ;;  %v4910_v57 = vmul.f32 1.442695, %v4818_v6  ;;  %v4912_v40 = vmul.f32 1.442695, %v4819_v59  ;;  %v3920_v47 = vmul.f32 1.442695, %v3822_v13 }
 0x73d   : > { %6449 = vpow2.f32 %v4916_v16  ;;  %v3922_v25 = vmul.f32 1.442695, %v3823_v23  ;;  %v3742_v12 = vpop.xlane.xlu0 %3741  ;;  %v4747_v39 = vpop.xlane.xlu1 %4746 }
 0x73e   : > { %6451 = vpow2.f32 %v4910_v57  ;;  %v3820_v1 = vsub.f32 %v9507_v21, %v3742_v12  ;;  %v3821_v38 = vsub.f32 %v9510_v52, %v3742_v12  ;;  %v4824_v4 = vsub.f32 %v9273_v32, %v4747_v39 }
 0x73f   : > { %6453 = vpow2.f32 %v4912_v40  ;;  %v4825_v0 = vsub.f32 %v9277_v3, %v4747_v39 }
 0x740   : > { %v10002_v5 = vpop.eup %6439  ;;  %6455 = vpow2.f32 %v3920_v47  ;;  %v3916_v60 = vmul.f32 1.442695, %v3820_v1  ;;  %v3918_v18 = vmul.f32 1.442695, %v3821_v38  ;;  %v4922_v42 = vmul.f32 1.442695, %v4824_v4 }
 0x741   : > { %v10005_v50 = vpop.eup %6441  ;;  %6457 = vpow2.f32 %v3922_v25  ;;  %v4924_v20 = vmul.f32 1.442695, %v4825_v0  ;;  %v4744_v33 = vpop.xlane.xlu0 %4743 }
 0x742   : > { %v3751_v27 = vpop.xlane.xlu1 %3750  ;;  %v4022_v21 = vadd.f32 %v10005_v50, %v10002_v5  ;;  %6459 = vpow2.f32 %v3916_v60  ;;  %v4822_v32 = vsub.f32 %v9263_v54, %v4744_v33  ;;  %v4823_v52 = vsub.f32 %v9267_v45, %v4744_v33 }
 0x743   : > { %v3826_v3 = vsub.f32 %v9520_v34, %v3751_v27  ;;  %6461 = vpow2.f32 %v3918_v18  ;;  %v3827_v16 = vsub.f32 %v11632_v29, %v3751_v27 }
 0x744   : > { %4023 = vadd.xlane.f32.xlu0 %v4022_v21  ;;  %v10013_v53 = vpop.eup %6443  ;;  %6463 = vpow2.f32 %v4922_v42  ;;  %v4918_v6 = vmul.f32 1.442695, %v4822_v32  ;;  %v4920_v59 = vmul.f32 1.442695, %v4823_v52 }
 0x745   : > { %v3928_v13 = vmul.f32 1.442695, %v3826_v3  ;;  %v10015_v23 = vpop.eup %6445  ;;  %6465 = vpow2.f32 %v4924_v20  ;;  %v3930_v57 = vmul.f32 1.442695, %v3827_v16  ;;  %v3748_v40 = vpop.xlane.xlu0 %3747 }
 0x746   : > { %v4753_v54 = vpop.xlane.xlu1 %4752  ;;  %v10017_v47 = vpop.eup %6447  ;;  %6467 = vpow2.f32 %v4918_v6  ;;  %v3824_v45 = vsub.f32 %v9533_v63, %v3748_v40  ;;  %v3825_v34 = vsub.f32 %v9536_v41, %v3748_v40 }
 0x747   : > { %v4828_v25 = vsub.f32 %v9293_v61, %v4753_v54  ;;  %v10022_v12 = vpop.eup %6449  ;;  %6469 = vpow2.f32 %v4920_v59  ;;  %v4829_v39 = vsub.f32 %v9297_v46, %v4753_v54  ;;  %v4025_v1 = vadd.f32 %v10017_v47, %v10015_v23 }
 0x748   : > { %v10027_v38 = vpop.eup %6451  ;;  %6471 = vpow2.f32 %v3928_v13  ;;  %v3924_v4 = vmul.f32 1.442695, %v3824_v45  ;;  %v3926_v0 = vmul.f32 1.442695, %v3825_v34  ;;  %v5027_v52 = vadd.f32 %v10022_v12, %v10013_v53 }
 0x749   : > { %v4930_v60 = vmul.f32 1.442695, %v4828_v25  ;;  %v10029_v18 = vpop.eup %6453  ;;  %6473 = vpow2.f32 %v3930_v57  ;;  %v4932_v63 = vmul.f32 1.442695, %v4829_v39  ;;  %4026 = vadd.xlane.f32.xlu1 %v4025_v1  ;;  %v4750_v61 = vpop.xlane.xlu0 %4749 }
 0x74a   : > { %v3757_v41 = vpop.xlane.xlu1 %3756  ;;  %v10031_v42 = vpop.eup %6455  ;;  %6475 = vpow2.f32 %v3924_v4  ;;  %v4826_v46 = vsub.f32 %v9283_v10, %v4750_v61  ;;  %v4827_v20 = vsub.f32 %v9287_v56, %v4750_v61  ;;  %v5024_v32 = vadd.f32 %v10029_v18, %v10027_v38 }
 0x74b   : > { %v3830_v33 = vsub.f32 %v9554_v19, %v3757_v41  ;;  %v10036_v27 = vpop.eup %6457  ;;  %6477 = vpow2.f32 %v3926_v0  ;;  %v3831_v21 = vsub.f32 %v9557_v58, %v3757_v41 }
 0x74c   : > { %v10043_v3 = vpop.eup %6459  ;;  %6479 = vpow2.f32 %v4930_v60  ;;  %v4926_v29 = vmul.f32 1.442695, %v4826_v46  ;;  %v4928_v10 = vmul.f32 1.442695, %v4827_v20  ;;  %5025 = vadd.xlane.f32.xlu0 %v5024_v32  ;;  %v4031_v25 = vadd.f32 %v10036_v27, %v10031_v42 }
 0x74d   : > { %v3936_v16 = vmul.f32 1.442695, %v3830_v33  ;;  %v10045_v56 = vpop.eup %6461  ;;  %6481 = vpow2.f32 %v4932_v63  ;;  %v3938_v19 = vmul.f32 1.442695, %v3831_v21  ;;  %5028 = vadd.xlane.f32.xlu1 %v5027_v52  ;;  %v3754_v6 = vpop.xlane.xlu0 %3753 }
 0x74e   : > { %v4759_v58 = vpop.xlane.xlu1 %4758  ;;  %v10047_v59 = vpop.eup %6463  ;;  %6483 = vpow2.f32 %v4926_v29  ;;  %v3828_v13 = vsub.f32 %v9573_v24, %v3754_v6  ;;  %v3829_v57 = vsub.f32 %v9576_v22, %v3754_v6  ;;  %v4028_v34 = vadd.f32 %v10045_v56, %v10043_v3  ;;  %v11634_v6 = vld [vmem:[#allocation14_spill] sm:$0xff] }
 0x74f   : > { %v4832_v40 = vsub.f32 %v9313_v62, %v4759_v58  ;;  %v10052_v54 = vpop.eup %6465  ;;  %6485 = vpow2.f32 %v4928_v10  ;;  %v4833_v45 = vsub.f32 %v9317_v51, %v4759_v58 }
 0x750   : > { %v10059_v39 = vpop.eup %6467  ;;  %6487 = vpow2.f32 %v3936_v16  ;;  %v3932_v1 = vmul.f32 1.442695, %v3828_v13  ;;  %v3934_v24 = vmul.f32 1.442695, %v3829_v57  ;;  %4029 = vadd.xlane.f32.xlu0 %v4028_v34  ;;  %v5033_v21 = vadd.f32 %v10052_v54, %v10047_v59  ;;  %v11635_v13 = vld [vmem:[#allocation61_spill] sm:$0xff] }
 0x751   : > { %v4938_v4 = vmul.f32 1.442695, %v4832_v40  ;;  %v10061_v22 = vpop.eup %6469  ;;  %6489 = vpow2.f32 %v3938_v19  ;;  %v4940_v62 = vmul.f32 1.442695, %v4833_v45  ;;  %4032 = vadd.xlane.f32.xlu1 %v4031_v25  ;;  %v4756_v0 = vpop.xlane.xlu0 %4755  ;;  %v11636_v45 = vld [vmem:[#allocation65_spill] sm:$0xff] }
 0x752   : > { %v3763_v51 = vpop.xlane.xlu1 %3762  ;;  %v10063_v60 = vpop.eup %6471  ;;  %6491 = vpow2.f32 %v3932_v1  ;;  %v4830_v63 = vsub.f32 %v9303_v35, %v4756_v0  ;;  %v4831_v61 = vsub.f32 %v9307_v8, %v4756_v0  ;;  %v5030_v33 = vadd.f32 %v10061_v22, %v10059_v39 }
 0x753   : > { %v3834_v41 = vsub.f32 %v9588_v26, %v3763_v51  ;;  %v10068_v46 = vpop.eup %6473  ;;  %6493 = vpow2.f32 %v3934_v24  ;;  %v3835_v20 = vsub.f32 %v9591_v36, %v3763_v51 }
 0x754   : > { %v10075_v32 = vpop.eup %6475  ;;  %6495 = vpow2.f32 %v4938_v4  ;;  %v4934_v52 = vmul.f32 1.442695, %v4830_v63  ;;  %v4936_v35 = vmul.f32 1.442695, %v4831_v61  ;;  %5031 = vadd.xlane.f32.xlu0 %v5030_v33  ;;  %v4037_v1 = vadd.f32 %v10068_v46, %v10063_v60  ;;  %v11638_v33 = vld [vmem:[#allocation64_spill] sm:$0xff] }
 0x755   : > { %v3944_v29 = vmul.f32 1.442695, %v3834_v41  ;;  %v10077_v8 = vpop.eup %6477  ;;  %6497 = vpow2.f32 %v4940_v62  ;;  %v3946_v26 = vmul.f32 1.442695, %v3835_v20  ;;  %5034 = vadd.xlane.f32.xlu1 %v5033_v21  ;;  %v3760_v10 = vpop.xlane.xlu0 %3759 }
 0x756   : > { %v4765_v36 = vpop.xlane.xlu1 %4764  ;;  %v10079_v16 = vpop.eup %6479  ;;  %6499 = vpow2.f32 %v4934_v52  ;;  %v3832_v19 = vsub.f32 %v9601_v15, %v3760_v10  ;;  %v3833_v58 = vsub.f32 %v11634_v6, %v3760_v10  ;;  %v4034_v25 = vadd.f32 %v10077_v8, %v10075_v32 }
 0x757   : > { %11633 = vst [vmem:[#allocation55_spill] sm:$0xff] %v10079_v16  ;;  %v4836_v57 = vsub.f32 %v11635_v13, %v4765_v36  ;;  %v10084_v40 = vpop.eup %6481  ;;  %6501 = vpow2.f32 %v4936_v35  ;;  %v4837_v34 = vsub.f32 %v11636_v45, %v4765_v36 }
 0x758   : > { %v10091_v24 = vpop.eup %6483  ;;  %6503 = vpow2.f32 %v3944_v29  ;;  %v3940_v4 = vmul.f32 1.442695, %v3832_v19  ;;  %v3942_v15 = vmul.f32 1.442695, %v3833_v58  ;;  %4035 = vadd.xlane.f32.xlu0 %v4034_v25  ;;  %v5039_v29 = vadd.f32 %v10084_v40, %v10079_v16 }
 0x759   : > { %v4946_v62 = vmul.f32 1.442695, %v4836_v57  ;;  %v10093_v0 = vpop.eup %6485  ;;  %6505 = vpow2.f32 %v3946_v26  ;;  %v4948_v51 = vmul.f32 1.442695, %v4837_v34  ;;  %4038 = vadd.xlane.f32.xlu1 %v4037_v1  ;;  %v4762_v63 = vpop.xlane.xlu0 %4761 }
 0x75a   : > { %v3985_v61 = vpop.xlane.xlu1 %3984  ;;  %v10095_v41 = vpop.eup %6487  ;;  %6507 = vpow2.f32 %v3940_v4  ;;  %v4834_v20 = vsub.f32 %v11475_v31, %v4762_v63  ;;  %v4835_v21 = vsub.f32 %v11638_v33, %v4762_v63  ;;  %v5036_v52 = vadd.f32 %v10093_v0, %v10091_v24  ;;  %v11648_v63 = vld [vmem:[#allocation27_spill] sm:$0xff] }
 0x75b   : > { %11637 = vst [vmem:[#allocation52_spill] sm:$0xff] %v10095_v41  ;;  %v10101_v35 = vpop.eup %6489  ;;  %6509 = vpow2.f32 %v3942_v15 }
 0x75c   : > { %11639 = vst [vmem:[#allocation86_spill] sm:$0xff] %v10101_v35  ;;  %v10105_v26 = vpop.eup %6491  ;;  %6511 = vpow2.f32 %v4946_v62  ;;  %v4942_v10 = vmul.f32 1.442695, %v4834_v20  ;;  %v4944_v36 = vmul.f32 1.442695, %v4835_v21  ;;  %5037 = vadd.xlane.f32.xlu0 %v5036_v52  ;;  %v4043_v45 = vadd.f32 %v10101_v35, %v10095_v41  ;;  %v11647_v62 = vld [vmem:[#allocation21_spill] sm:$0xff] }
 0x75d   : > { %11640 = vst [vmem:[#allocation57_spill] sm:$0xff] %v10105_v26  ;;  %v10107_v19 = vpop.eup %6493  ;;  %6513 = vpow2.f32 %v4948_v51  ;;  %5040 = vadd.xlane.f32.xlu1 %v5039_v29  ;;  %v3982_v31 = vpop.xlane.xlu0 %3981 }
 0x75e   : > { %11641 = vst [vmem:[#allocation74_spill] sm:$0xff] %v10107_v19  ;;  %v4987_v6 = vpop.xlane.xlu1 %4986  ;;  %v10109_v58 = vpop.eup %6495  ;;  %6515 = vpow2.f32 %v4942_v10  ;;  %v4040_v13 = vadd.f32 %v10107_v19, %v10105_v26  ;;  %v11664_v26 = vld [vmem:[#allocation22_spill] sm:$0xff] }
 0x75f   : > { %11642 = vst [vmem:[#allocation72_spill] sm:$0xff] %v10109_v58  ;;  %v10113_v57 = vpop.eup %6497  ;;  %6517 = vpow2.f32 %v4944_v36 }
 0x760   : > { %11643 = vst [vmem:[#allocation104_spill] sm:$0xff] %v10113_v57  ;;  %v10117_v34 = vpop.eup %6499  ;;  %6519 = vrcp.f32 %v3985_v61  ;;  %4041 = vadd.xlane.f32.xlu0 %v4040_v13  ;;  %v5045_v61 = vadd.f32 %v10113_v57, %v10109_v58 }
 0x761   : > { %11644 = vst [vmem:[#allocation81_spill] sm:$0xff] %v10117_v34  ;;  %v10119_v25 = vpop.eup %6501  ;;  %6521 = vrcp.f32 %v3982_v31  ;;  %4044 = vadd.xlane.f32.xlu1 %v4043_v45  ;;  %v4984_v1 = vpop.xlane.xlu0 %4983  ;;  %v11653_v45 = vld [vmem:[#allocation28_spill] sm:$0xff] }
 0x762   : > { %11645 = vst [vmem:[#allocation11_spill] sm:$0xff] %v10119_v25  ;;  %v3769_v4 = vpop.xlane.xlu1 %3768  ;;  %v10121_v15 = vpop.eup %6503  ;;  %6523 = vrcp.f32 %v4987_v6  ;;  %v5042_v33 = vadd.f32 %v10119_v25, %v10117_v34 }
 0x763   : > { %11646 = vst [vmem:[#allocation105_spill] sm:$0xff] %v10121_v15  ;;  %v3838_v51 = vsub.f32 %v11647_v62, %v3769_v4  ;;  %v3839_v20 = vsub.f32 %v11648_v63, %v3769_v4  ;;  %v10127_v21 = vpop.eup %6505  ;;  %6525 = vrcp.f32 %v4984_v1  ;;  %v11654_v62 = vld [vmem:[#allocation89_spill] sm:$0xff]  ;;  %v11655_v63 = vld [vmem:[#allocation70_spill] sm:$0xff] }
 0x764   : > { %11649 = vst [vmem:[#allocation51_spill] sm:$0xff] %v10127_v21  ;;  %v10131_v52 = vpop.eup %6507  ;;  %5043 = vadd.xlane.f32.xlu0 %v5042_v33 }
 0x765   : > { %11650 = vst [vmem:[#allocation50_spill] sm:$0xff] %v10131_v52  ;;  %v3952_v29 = vmul.f32 1.442695, %v3838_v51  ;;  %v3954_v10 = vmul.f32 1.442695, %v3839_v20  ;;  %v10133_v36 = vpop.eup %6509  ;;  %5046 = vadd.xlane.f32.xlu1 %v5045_v61  ;;  %v3766_v31 = vpop.xlane.xlu0 %3765  ;;  %v11657_v51 = vld [vmem:[#allocation110_spill] sm:$0xff]  ;;  %v4049_v61 = vadd.f32 %v10127_v21, %v10121_v15 }
 0x766   : > { %11651 = vst [vmem:[#allocation99_spill] sm:$0xff] %v10133_v36  ;;  %v4771_v6 = vpop.xlane.xlu1 %4770  ;;  %v10135_v13 = vpop.eup %6511  ;;  %v3836_v4 = vsub.f32 %v11653_v45, %v3766_v31  ;;  %v3837_v1 = vsub.f32 %v11654_v62, %v3766_v31  ;;  %v4046_v33 = vadd.f32 %v10133_v36, %v10131_v52  ;;  %v11661_v52 = vld [vmem:[#allocation71_spill] sm:$0xff] }
 0x767   : > { %11652 = vst [vmem:[#allocation82_spill] sm:$0xff] %v10135_v13  ;;  %6527 = vpow2.f32 %v3952_v29  ;;  %v4840_v34 = vsub.f32 %v11655_v63, %v4771_v6  ;;  %v10140_v58 = vpop.eup %6513  ;;  %v4841_v20 = vsub.f32 %v11657_v51, %v4771_v6  ;;  %v11660_v6 = vld [vmem:[#allocation94_spill] sm:$0xff] }
 0x768   : > { %11656 = vst [vmem:[#allocation34_spill] sm:$0xff] %v10140_v58  ;;  %6529 = vpow2.f32 %v3954_v10  ;;  %v10147_v57 = vpop.eup %6515  ;;  %v3948_v29 = vmul.f32 1.442695, %v3836_v4  ;;  %v3950_v25 = vmul.f32 1.442695, %v3837_v1  ;;  %4047 = vadd.xlane.f32.xlu0 %v4046_v33  ;;  %v11662_v4 = vld [vmem:[#allocation16_spill] sm:$0xff] }
 0x769   : > { %11658 = vst [vmem:[#allocation53_spill] sm:$0xff] %v10147_v57  ;;  %v4954_v45 = vmul.f32 1.442695, %v4840_v34  ;;  %v10149_v41 = vpop.eup %6517  ;;  %v4956_v31 = vmul.f32 1.442695, %v4841_v20  ;;  %4050 = vadd.xlane.f32.xlu1 %v4049_v61  ;;  %v4768_v62 = vpop.xlane.xlu0 %4767  ;;  %v5051_v34 = vadd.f32 %v10140_v58, %v10135_v13  ;;  %v11663_v20 = vld [vmem:[#allocation31_spill] sm:$0xff] }
 0x76a   : > { %11659 = vst [vmem:[#allocation56_spill] sm:$0xff] %v10149_v41  ;;  %v3991_v10 = vpop.xlane.xlu1 %3990  ;;  %v6520_v63 = vpop.eup %6519  ;;  %6531 = vpow2.f32 %v3948_v29  ;;  %v4838_v51 = vsub.f32 %v11660_v6, %v4768_v62  ;;  %v4839_v36 = vsub.f32 %v11661_v52, %v4768_v62  ;;  %v5048_v15 = vadd.f32 %v10149_v41, %v10147_v57  ;;  %v11666_v41 = vld [vmem:[#allocation17_spill] sm:$0xff] }
 0x76b   : > { %v6522_v21 = vpop.eup %6521  ;;  %6533 = vpow2.f32 %v3950_v25  ;;  %v4143_v1 = vmul.f32 %v6520_v63, %v11662_v4  ;;  %v4142_v33 = vmul.f32 %v6520_v63, %v11663_v20  ;;  %v11665_v25 = vld [vmem:[#allocation26_spill] sm:$0xff]  ;;  %v11667_v58 = vld [vmem:[#allocation25_spill] sm:$0xff]  ;;  %v11668_v20 = vld [vmem:[#allocation19_spill] sm:$0xff] }
 0x76c   : > { %v6524_v61 = vpop.eup %6523  ;;  %6535 = vpow2.f32 %v4954_v45  ;;  %v4950_v35 = vmul.f32 1.442695, %v4838_v51  ;;  %v4952_v29 = vmul.f32 1.442695, %v4839_v36  ;;  %v4141_v6 = vmul.f32 %v6522_v21, %v11664_v26  ;;  %5049 = vadd.xlane.f32.xlu0 %v5048_v15  ;;  %v11669_v51 = vld [vmem:[#allocation24_spill] sm:$0xff] }
 0x76d   : > { %v6526_v19 = vpop.eup %6525  ;;  %6537 = vpow2.f32 %v4956_v31  ;;  %5052 = vadd.xlane.f32.xlu1 %v5051_v34  ;;  %v3988_v52 = vpop.xlane.xlu0 %3987  ;;  %v4140_v57 = vmul.f32 %v6522_v21, %v11665_v25  ;;  %v5145_v13 = vmul.f32 %v6524_v61, %v11666_v41  ;;  %v5144_v4 = vmul.f32 %v6524_v61, %v11667_v58 }
 0x76e   : > { %v4993_v62 = vpop.xlane.xlu1 %4992  ;;  %6539 = vpow2.f32 %v4950_v35  ;;  %v5778_v63 = vpack.c.bf16 %v4143_v1, %v4141_v6  ;;  %v5143_v45 = vmul.f32 %v6526_v19, %v11668_v20  ;;  %v5142_v36 = vmul.f32 %v6526_v19, %v11669_v51  ;;  %v11672_v35 = vld [vmem:[#allocation29_spill] sm:$0xff]  ;;  %v11673_v1 = vld [vmem:[#allocation63_spill] sm:$0xff] }
 0x76f   : > { %6541 = vpow2.f32 %v4952_v29  ;;  %v5780_v26 = vpack.c.bf16 %v4142_v33, %v4140_v57  ;;  %v11678_v20 = vld [vmem:[#allocation113_spill] sm:$0xff] }
 0x770   : > { %6543 = vrcp.f32 %v3991_v10  ;;  %5779 = vmatprep.subr.bf16.mxu1 %v5778_v63  ;;  %v5842_v15 = vpack.c.bf16 %v5145_v13, %v5143_v45  ;;  %v5844_v31 = vpack.c.bf16 %v5144_v4, %v5142_v36  ;;  %v11677_v4 = vld [vmem:[#allocation62_spill] sm:$0xff]  ;;  %v11680_v36 = vld [vmem:[#allocation77_spill] sm:$0xff] }
 0x771   : > { %v10165_v16 = vpop.eup %6527  ;;  %6545 = vrcp.f32 %v3988_v52  ;;  %5781 = vmatpush1.bf16.xpose.msra.mxu1 %v5780_v26  ;;  %v4990_v41 = vpop.xlane.xlu0 %4989 }
 0x772   : > { %11670 = vst [vmem:[#allocation13_spill] sm:$0xff] %v10165_v16  ;;  %v10167_v34 = vpop.eup %6529  ;;  %v3775_v58 = vpop.xlane.xlu1 %3774  ;;  %6547 = vrcp.f32 %v4993_v62  ;;  %5843 = vmatprep.subr.bf16.mxu0 %v5842_v15  ;;  %v11676_v62 = vld [vmem:[#allocation96_spill] sm:$0xff] }
 0x773   : > { %11671 = vst [vmem:[#allocation108_spill] sm:$0xff] %v10167_v34  ;;  %v3842_v21 = vsub.f32 %v11672_v35, %v3775_v58  ;;  %v3843_v19 = vsub.f32 %v11673_v1, %v3775_v58  ;;  %v4055_v57 = vadd.f32 %v10167_v34, %v10165_v16  ;;  %6549 = vrcp.f32 %v4990_v41  ;;  %5845 = vmatpush1.bf16.xpose.msra.mxu0 %v5844_v31 }
 0x774   : > { %v10173_v10 = vpop.eup %6531 }
 0x775   : > { %11674 = vst [vmem:[#allocation78_spill] sm:$0xff] %v10173_v10  ;;  %v3960_v13 = vmul.f32 1.442695, %v3842_v21  ;;  %v3962_v33 = vmul.f32 1.442695, %v3843_v19  ;;  %4056 = vadd.xlane.f32.xlu1 %v4055_v57  ;;  %v10175_v61 = vpop.eup %6533  ;;  %v3772_v29 = vpop.xlane.xlu0 %3771 }
 0x776   : > { %v4777_v6 = vpop.xlane.xlu1 %4776  ;;  %v10177_v52 = vpop.eup %6535  ;;  %v3840_v25 = vsub.f32 %v11676_v62, %v3772_v29  ;;  %v3841_v63 = vsub.f32 %v11677_v4, %v3772_v29  ;;  %v4052_v15 = vadd.f32 %v10175_v61, %v10173_v10 }
 0x777   : > { %11675 = vst [vmem:[#allocation7_spill] sm:$0xff] %v10177_v52  ;;  %6551 = vpow2.f32 %v3960_v13  ;;  %v4844_v45 = vsub.f32 %v11678_v20, %v4777_v6  ;;  %v10182_v51 = vpop.eup %6537  ;;  %v4845_v26 = vsub.f32 %v11680_v36, %v4777_v6  ;;  %v11683_v6 = vld [vmem:[#allocation5_spill] sm:$0xff] }
 0x778   : > { %11679 = vst [vmem:[#allocation101_spill] sm:$0xff] %v10182_v51  ;;  %6553 = vpow2.f32 %v3962_v33  ;;  %v10187_v31 = vpop.eup %6539  ;;  %v3956_v41 = vmul.f32 1.442695, %v3840_v25  ;;  %v3958_v58 = vmul.f32 1.442695, %v3841_v63  ;;  %v5057_v21 = vadd.f32 %v10182_v51, %v10177_v52  ;;  %4053 = vadd.xlane.f32.xlu0 %v4052_v15  ;;  %v11684_v63 = vld [vmem:[#allocation30_spill] sm:$0xff] }
 0x779   : > { %11681 = vst [vmem:[#allocation38_spill] sm:$0xff] %v10187_v31  ;;  %v4962_v35 = vmul.f32 1.442695, %v4844_v45  ;;  %v10191_v1 = vpop.eup %6541  ;;  %v4964_v19 = vmul.f32 1.442695, %v4845_v26  ;;  %v4774_v57 = vpop.xlane.xlu0 %4773  ;;  %v11685_v45 = vld [vmem:[#allocation123_spill] sm:$0xff] }
 0x77a   : > { %11682 = vst [vmem:[#allocation80_spill] sm:$0xff] %v10191_v1  ;;  %v3997_v13 = vpop.xlane.xlu1 %3996  ;;  %v6544_v33 = vpop.eup %6543  ;;  %6555 = vpow2.f32 %v3956_v41  ;;  %5058 = vadd.xlane.f32.xlu1 %v5057_v21  ;;  %v4842_v29 = vsub.f32 %v11543_v30, %v4774_v57  ;;  %v4843_v62 = vsub.f32 %v11683_v6, %v4774_v57  ;;  %v5054_v25 = vadd.f32 %v10191_v1, %v10187_v31  ;;  %v11686_v51 = vld [vmem:[#allocation37_spill] sm:$0xff]  ;;  %v11687_v6 = vld [vmem:[#allocation116_spill] sm:$0xff]  ;;  %v11688_v31 = vld [vmem:[#allocation91_spill] sm:$0xff] }
 0x77b   : > { %v6546_v4 = vpop.eup %6545  ;;  %6557 = vpow2.f32 %v3958_v58  ;;  %v4147_v20 = vmul.f32 %v6544_v33, %v11684_v63  ;;  %v4146_v36 = vmul.f32 %v6544_v33, %v11685_v45  ;;  %v11689_v58 = vld [vmem:[#allocation121_spill] sm:$0xff]  ;;  %v11690_v33 = vld [vmem:[#allocation60_spill] sm:$0xff] }
 0x77c   : > { %v6548_v26 = vpop.eup %6547  ;;  %6559 = vpow2.f32 %v4962_v35  ;;  %v4958_v15 = vmul.f32 1.442695, %v4842_v29  ;;  %v4960_v52 = vmul.f32 1.442695, %v4843_v62  ;;  %v4145_v41 = vmul.f32 %v6546_v4, %v11686_v51  ;;  %5055 = vadd.xlane.f32.xlu0 %v5054_v25  ;;  %v11691_v35 = vld [vmem:[#allocation39_spill] sm:$0xff] }
 0x77d   : > { %v6550_v21 = vpop.eup %6549  ;;  %6561 = vpow2.f32 %v4964_v19  ;;  %v3994_v30 = vpop.xlane.xlu0 %3993  ;;  %v4144_v16 = vmul.f32 %v6546_v4, %v11687_v6  ;;  %v5149_v1 = vmul.f32 %v6548_v26, %v11688_v31  ;;  %v5148_v10 = vmul.f32 %v6548_v26, %v11689_v58  ;;  %v11699_v58 = vld [vmem:[#allocation42_spill] sm:$0xff] }
 0x77e   : > { %v4999_v57 = vpop.xlane.xlu1 %4998  ;;  %6563 = vpow2.f32 %v4958_v15  ;;  %v5782_v63 = vpack.c.bf16 %v4147_v20, %v4145_v41  ;;  %v5147_v45 = vmul.f32 %v6550_v21, %v11690_v33  ;;  %v5146_v29 = vmul.f32 %v6550_v21, %v11691_v35  ;;  %v11694_v20 = vld [vmem:[#allocation47_spill] sm:$0xff]  ;;  %v11695_v15 = vld [vmem:[#allocation49_spill] sm:$0xff]  ;;  %v11700_v33 = vld [vmem:[#allocation100_spill] sm:$0xff] }
 0x77f   : > { %6565 = vpow2.f32 %v4960_v52  ;;  %v5784_v62 = vpack.c.bf16 %v4146_v36, %v4144_v16 }
 0x780   : > { %6567 = vrcp.f32 %v3997_v13  ;;  %5783 = vmatprep.subr.bf16.mxu1 %v5782_v63  ;;  %v5846_v19 = vpack.c.bf16 %v5149_v1, %v5147_v45  ;;  %v5848_v25 = vpack.c.bf16 %v5148_v10, %v5146_v29  ;;  %v11702_v29 = vld [vmem:[#allocation87_spill] sm:$0xff] }
 0x781   : > { %v10205_v51 = vpop.eup %6551  ;;  %6569 = vrcp.f32 %v3994_v30  ;;  %5785 = vmatpush1.bf16.xpose.msra.mxu1 %v5784_v62  ;;  %v4996_v31 = vpop.xlane.xlu0 %4995 }
 0x782   : > { %11692 = vst [vmem:[#allocation90_spill] sm:$0xff] %v10205_v51  ;;  %v10207_v34 = vpop.eup %6553  ;;  %v3781_v4 = vpop.xlane.xlu1 %3780  ;;  %6571 = vrcp.f32 %v4999_v57  ;;  %5847 = vmatprep.subr.bf16.mxu0 %v5846_v19  ;;  %v11698_v57 = vld [vmem:[#allocation117_spill] sm:$0xff] }
 0x783   : > { %11693 = vst [vmem:[#allocation12_spill] sm:$0xff] %v10207_v34  ;;  %v3846_v26 = vsub.f32 %v11694_v20, %v3781_v4  ;;  %v3847_v41 = vsub.f32 %v11695_v15, %v3781_v4  ;;  %v4061_v16 = vadd.f32 %v10207_v34, %v10205_v51  ;;  %6573 = vrcp.f32 %v4996_v31  ;;  %5849 = vmatpush1.bf16.xpose.msra.mxu0 %v5848_v25 }
 0x784   : > { %v10213_v52 = vpop.eup %6555 }
 0x785   : > { %11696 = vst [vmem:[#allocation107_spill] sm:$0xff] %v10213_v52  ;;  %v3968_v10 = vmul.f32 1.442695, %v3846_v26  ;;  %v3970_v1 = vmul.f32 1.442695, %v3847_v41  ;;  %4062 = vadd.xlane.f32.xlu1 %v4061_v16  ;;  %v10215_v13 = vpop.eup %6557  ;;  %v3778_v36 = vpop.xlane.xlu0 %3777 }
 0x786   : > { %v4783_v21 = vpop.xlane.xlu1 %4782  ;;  %v10217_v30 = vpop.eup %6559  ;;  %v3844_v6 = vsub.f32 %v11698_v57, %v3778_v36  ;;  %v3845_v63 = vsub.f32 %v11699_v58, %v3778_v36  ;;  %v4058_v19 = vadd.f32 %v10215_v13, %v10213_v52 }
 0x787   : > { %11697 = vst [vmem:[#allocation106_spill] sm:$0xff] %v10217_v30  ;;  %6575 = vpow2.f32 %v3968_v10  ;;  %v4848_v45 = vsub.f32 %v11700_v33, %v4783_v21  ;;  %v10222_v35 = vpop.eup %6561  ;;  %v4849_v62 = vsub.f32 %v11702_v29, %v4783_v21  ;;  %v11705_v21 = vld [vmem:[#allocation85_spill] sm:$0xff] }
 0x788   : > { %11701 = vst [vmem:[#allocation109_spill] sm:$0xff] %v10222_v35  ;;  %6577 = vpow2.f32 %v3970_v1  ;;  %v10227_v25 = vpop.eup %6563  ;;  %v3964_v31 = vmul.f32 1.442695, %v3844_v6  ;;  %v3966_v4 = vmul.f32 1.442695, %v3845_v63  ;;  %v5063_v26 = vadd.f32 %v10222_v35, %v10217_v30  ;;  %4059 = vadd.xlane.f32.xlu0 %v4058_v19  ;;  %v11706_v63 = vld [vmem:[#allocation95_spill] sm:$0xff] }
 0x789   : > { %11703 = vst [vmem:[#allocation59_spill] sm:$0xff] %v10227_v25  ;;  %v4970_v20 = vmul.f32 1.442695, %v4848_v45  ;;  %v10231_v15 = vpop.eup %6565  ;;  %v4972_v41 = vmul.f32 1.442695, %v4849_v62  ;;  %v4780_v16 = vpop.xlane.xlu0 %4779  ;;  %v11707_v45 = vld [vmem:[#allocation92_spill] sm:$0xff] }
 0x78a   : > { %11704 = vst [vmem:[#allocation36_spill] sm:$0xff] %v10231_v15  ;;  %v4003_v10 = vpop.xlane.xlu1 %4002  ;;  %v6568_v1 = vpop.eup %6567  ;;  %6579 = vpow2.f32 %v3964_v31  ;;  %5064 = vadd.xlane.f32.xlu1 %v5063_v26  ;;  %v4846_v36 = vsub.f32 %v11577_v55, %v4780_v16  ;;  %v4847_v57 = vsub.f32 %v11705_v21, %v4780_v16  ;;  %v5060_v6 = vadd.f32 %v10231_v15, %v10227_v25  ;;  %v11708_v35 = vld [vmem:[#allocation120_spill] sm:$0xff]  ;;  %v11709_v21 = vld [vmem:[#allocation125_spill] sm:$0xff] }
 0x78b   : > { %v6570_v58 = vpop.eup %6569  ;;  %6581 = vpow2.f32 %v3966_v4  ;;  %v4151_v33 = vmul.f32 %v6568_v1, %v11706_v63  ;;  %v4150_v29 = vmul.f32 %v6568_v1, %v11707_v45  ;;  %v11710_v25 = vld [vmem:[#allocation124_spill] sm:$0xff]  ;;  %v11711_v4 = vld [vmem:[#allocation93_spill] sm:$0xff]  ;;  %v11712_v1 = vld [vmem:[#allocation10_spill] sm:$0xff] }
 0x78c   : > { %v6572_v62 = vpop.eup %6571  ;;  %6583 = vpow2.f32 %v4970_v20  ;;  %v4966_v19 = vmul.f32 1.442695, %v4846_v36  ;;  %v4968_v30 = vmul.f32 1.442695, %v4847_v57  ;;  %v4149_v31 = vmul.f32 %v6570_v58, %v11708_v35  ;;  %5061 = vadd.xlane.f32.xlu0 %v5060_v6  ;;  %v11713_v20 = vld [vmem:[#allocation40_spill] sm:$0xff] }
 0x78d   : > { %v6574_v26 = vpop.eup %6573  ;;  %6585 = vpow2.f32 %v4972_v41  ;;  %v4000_v55 = vpop.xlane.xlu0 %3999  ;;  %v4148_v51 = vmul.f32 %v6570_v58, %v11709_v21  ;;  %v5153_v15 = vmul.f32 %v6572_v62, %v11710_v25  ;;  %v5152_v52 = vmul.f32 %v6572_v62, %v11711_v4  ;;  %v11715_v62 = vld [vmem:[#allocation97_spill] sm:$0xff]  ;;  %v11719_v4 = vld [vmem:[#allocation115_spill] sm:$0xff] }
 0x78e   : > { %v5005_v16 = vpop.xlane.xlu1 %5004  ;;  %6587 = vpow2.f32 %v4966_v19  ;;  %v5786_v63 = vpack.c.bf16 %v4151_v33, %v4149_v31  ;;  %v5151_v45 = vmul.f32 %v6574_v26, %v11712_v1  ;;  %v5150_v36 = vmul.f32 %v6574_v26, %v11713_v20 }
 0x78f   : > { %6589 = vpow2.f32 %v4968_v30  ;;  %v5788_v57 = vpack.c.bf16 %v4150_v29, %v4148_v51 }
 0x790   : > { %6591 = vrcp.f32 %v4003_v10  ;;  %5787 = vmatprep.subr.bf16.mxu1 %v5786_v63  ;;  %v5850_v41 = vpack.c.bf16 %v5153_v15, %v5151_v45  ;;  %v5852_v6 = vpack.c.bf16 %v5152_v52, %v5150_v36  ;;  %v11721_v45 = vld [vmem:[#allocation114_spill] sm:$0xff] }
 0x791   : > { %v10245_v35 = vpop.eup %6575  ;;  %6593 = vrcp.f32 %v4000_v55  ;;  %5789 = vmatpush1.bf16.xpose.msra.mxu1 %v5788_v57  ;;  %v5002_v25 = vpop.xlane.xlu0 %5001 }
 0x792   : > { %11714 = vst [vmem:[#allocation58_spill] sm:$0xff] %v10245_v35  ;;  %v10247_v34 = vpop.eup %6577  ;;  %v3787_v58 = vpop.xlane.xlu1 %3786  ;;  %6595 = vrcp.f32 %v5005_v16  ;;  %5851 = vmatprep.subr.bf16.mxu0 %v5850_v41  ;;  %v11718_v16 = vld [vmem:[#allocation44_spill] sm:$0xff] }
 0x793   : > { %v3850_v33 = vsub.f32 %v9866_v14, %v3787_v58  ;;  %v3851_v19 = vsub.f32 %v11715_v62, %v3787_v58  ;;  %v4067_v51 = vadd.f32 %v10247_v34, %v10245_v35  ;;  %6597 = vrcp.f32 %v5002_v25  ;;  %5853 = vmatpush1.bf16.xpose.msra.mxu0 %v5852_v6  ;;  %v11717_v14 = vld [vmem:[#allocation103_spill] sm:$0xff] }
 0x794   : > { %v10253_v30 = vpop.eup %6579 }
 0x795   : > { %v3976_v52 = vmul.f32 1.442695, %v3850_v33  ;;  %v3978_v15 = vmul.f32 1.442695, %v3851_v19  ;;  %4068 = vadd.xlane.f32.xlu1 %v4067_v51  ;;  %v10255_v10 = vpop.eup %6581  ;;  %v3784_v29 = vpop.xlane.xlu0 %3783 }
 0x796   : > { %v4789_v31 = vpop.xlane.xlu1 %4788  ;;  %v10257_v26 = vpop.eup %6583  ;;  %v3848_v55 = vsub.f32 %v11717_v14, %v3784_v29  ;;  %v3849_v21 = vsub.f32 %v11718_v16, %v3784_v29  ;;  %v4064_v36 = vadd.f32 %v10255_v10, %v10253_v30 }
 0x797   : > { %11716 = vst [vmem:[#allocation88_spill] sm:$0xff] %v10257_v26  ;;  %6599 = vpow2.f32 %v3976_v52  ;;  %v4852_v63 = vsub.f32 %v11719_v4, %v4789_v31  ;;  %v10262_v1 = vpop.eup %6585  ;;  %v4853_v20 = vsub.f32 %v11721_v45, %v4789_v31 }
 0x798   : > { %11720 = vst [vmem:[#allocation83_spill] sm:$0xff] %v10262_v1  ;;  %6601 = vpow2.f32 %v3978_v15  ;;  %v10267_v57 = vpop.eup %6587  ;;  %v3972_v41 = vmul.f32 1.442695, %v3848_v55  ;;  %v3974_v6 = vmul.f32 1.442695, %v3849_v21  ;;  %v5069_v58 = vadd.f32 %v10262_v1, %v10257_v26  ;;  %4065 = vadd.xlane.f32.xlu0 %v4064_v36  ;;  %v11724_v55 = vld [vmem:[#allocation111_spill] sm:$0xff] }
 0x799   : > { %11722 = vst [vmem:[#allocation84_spill] sm:$0xff] %v10267_v57  ;;  %v4978_v25 = vmul.f32 1.442695, %v4852_v63  ;;  %v10271_v33 = vpop.eup %6589  ;;  %v4980_v62 = vmul.f32 1.442695, %v4853_v20  ;;  %v4786_v19 = vpop.xlane.xlu0 %4785  ;;  %v11725_v21 = vld [vmem:[#allocation46_spill] sm:$0xff] }
 0x79a   : > { %11723 = vst [vmem:[#allocation23_spill] sm:$0xff] %v10271_v33  ;;  %v4009_v51 = vpop.xlane.xlu1 %4008  ;;  %v6592_v52 = vpop.eup %6591  ;;  %6603 = vpow2.f32 %v3972_v41  ;;  %5070 = vadd.xlane.f32.xlu1 %v5069_v58  ;;  %v4850_v15 = vsub.f32 %v11613_v7, %v4786_v19  ;;  %v4851_v29 = vsub.f32 %v11614_v44, %v4786_v19  ;;  %v5066_v31 = vadd.f32 %v10271_v33, %v10267_v57  ;;  %v11726_v36 = vld [vmem:[#allocation69_spill] sm:$0xff]  ;;  %v11727_v19 = vld [vmem:[#allocation75_spill] sm:$0xff]  ;;  %v11728_v57 = vld [vmem:[#allocation6_spill] sm:$0xff] }
 0x79b   : > { %v6594_v14 = vpop.eup %6593  ;;  %6605 = vpow2.f32 %v3974_v6  ;;  %v4155_v16 = vmul.f32 %v6592_v52, %v11724_v55  ;;  %v4154_v4 = vmul.f32 %v6592_v52, %v11725_v21  ;;  %v11729_v6 = vld [vmem:[#allocation67_spill] sm:$0xff]  ;;  %v11730_v52 = vld [vmem:[#allocation102_spill] sm:$0xff] }
 0x79c   : > { %v6596_v63 = vpop.eup %6595  ;;  %6607 = vpow2.f32 %v4978_v25  ;;  %v4974_v45 = vmul.f32 1.442695, %v4850_v15  ;;  %v4976_v20 = vmul.f32 1.442695, %v4851_v29  ;;  %v4153_v41 = vmul.f32 %v6594_v14, %v11726_v36  ;;  %5067 = vadd.xlane.f32.xlu0 %v5066_v31  ;;  %v11731_v25 = vld [vmem:[#allocation66_spill] sm:$0xff] }
 0x79d   : > { %v6598_v58 = vpop.eup %6597  ;;  %6609 = vpow2.f32 %v4980_v62  ;;  %v4006_v7 = vpop.xlane.xlu0 %4005  ;;  %v4152_v26 = vmul.f32 %v6594_v14, %v11727_v19  ;;  %v5157_v33 = vmul.f32 %v6596_v63, %v11728_v57  ;;  %v5156_v1 = vmul.f32 %v6596_v63, %v11729_v6 }
 0x79e   : > { %v5011_v44 = vpop.xlane.xlu1 %5010  ;;  %6611 = vpow2.f32 %v4974_v45  ;;  %v5790_v55 = vpack.c.bf16 %v4155_v16, %v4153_v41  ;;  %v5155_v21 = vmul.f32 %v6598_v58, %v11730_v52  ;;  %v5154_v15 = vmul.f32 %v6598_v58, %v11731_v25 }
 0x79f   : > { %6613 = vpow2.f32 %v4976_v20  ;;  %v5792_v29 = vpack.c.bf16 %v4154_v4, %v4152_v26 }
 0x7a0   : > { %6615 = vrcp.f32 %v4009_v51  ;;  %5791 = vmatprep.subr.bf16.mxu1 %v5790_v55  ;;  %v5854_v62 = vpack.c.bf16 %v5157_v33, %v5155_v21  ;;  %v5856_v31 = vpack.c.bf16 %v5156_v1, %v5154_v15 }
 0x7a1   : > { %v10285_v36 = vpop.eup %6599  ;;  %6617 = vrcp.f32 %v4006_v7  ;;  %5793 = vmatpush1.bf16.xpose.msra.mxu1 %v5792_v29  ;;  %v5008_v57 = vpop.xlane.xlu0 %5007  ;;  %v11732_v29 = vld [vmem:[#allocation35_spill] sm:$0xff] }
 0x7a2   : > { %v10287_v35 = vpop.eup %6601  ;;  %v4015_v14 = vpop.xlane.xlu1 %4014  ;;  %6619 = vrcp.f32 %v5011_v44  ;;  %5855 = vmatprep.subr.bf16.mxu0 %v5854_v62 }
 0x7a3   : > { %v4073_v16 = vadd.f32 %v10287_v35, %v10285_v36  ;;  %6621 = vrcp.f32 %v5008_v57  ;;  %5857 = vmatpush1.bf16.xpose.msra.mxu0 %v5856_v31 }
 0x7a4   : > { %v10291_v26 = vpop.eup %6603  ;;  %6623 = vrcp.f32 %v4015_v14 }
 0x7a5   : > { %4074 = vadd.xlane.f32.xlu1 %v4073_v16  ;;  %v10293_v51 = vpop.eup %6605  ;;  %v4012_v1 = vpop.xlane.xlu0 %4011 }
 0x7a6   : > { %v5017_v33 = vpop.xlane.xlu1 %5016  ;;  %v10295_v4 = vpop.eup %6607  ;;  %6625 = vrcp.f32 %v4012_v1  ;;  %v4070_v63 = vadd.f32 %v10293_v51, %v10291_v26 }
 0x7a7   : > { %v10299_v45 = vpop.eup %6609  ;;  %6627 = vrcp.f32 %v5017_v33 }
 0x7a8   : > { %v10301_v20 = vpop.eup %6611  ;;  %4071 = vadd.xlane.f32.xlu0 %v4070_v63  ;;  %v5075_v41 = vadd.f32 %v10299_v45, %v10295_v4 }
 0x7a9   : > { %v10305_v58 = vpop.eup %6613  ;;  %v5014_v7 = vpop.xlane.xlu0 %5013 }
 0x7aa   : > { %v4021_v44 = vpop.xlane.xlu1 %4020  ;;  %v6616_v19 = vpop.eup %6615  ;;  %5076 = vadd.xlane.f32.xlu1 %v5075_v41  ;;  %6629 = vrcp.f32 %v5014_v7  ;;  %v5072_v6 = vadd.f32 %v10305_v58, %v10301_v20 }
 0x7ab   : > { %v6618_v55 = vpop.eup %6617  ;;  %6631 = vrcp.f32 %v4021_v44  ;;  %v4159_v25 = vmul.f32 %v6616_v19, %v9907_v9  ;;  %v4158_v62 = vmul.f32 %v6616_v19, %v11732_v29 }
 0x7ac   : > { %v6620_v52 = vpop.eup %6619  ;;  %5073 = vadd.xlane.f32.xlu0 %v5072_v6  ;;  %v4157_v21 = vmul.f32 %v6618_v55, %v9897_v2  ;;  %v4156_v15 = vmul.f32 %v6618_v55, %v9893_v37 }
 0x7ad   : > { %v6622_v31 = vpop.eup %6621  ;;  %v4018_v57 = vpop.xlane.xlu0 %4017  ;;  %v5161_v16 = vmul.f32 %v6620_v52, %v9918_v11  ;;  %v5160_v9 = vmul.f32 %v6620_v52, %v9911_v48  ;;  %v11735_v52 = vld [vmem:[#allocation43_spill] sm:$0xff] }
 0x7ae   : > { %v5023_v14 = vpop.xlane.xlu1 %5022  ;;  %v6624_v1 = vpop.eup %6623  ;;  %6633 = vrcp.f32 %v4018_v57  ;;  %v5794_v33 = vpack.c.bf16 %v4159_v25, %v4157_v21  ;;  %v5796_v63 = vpack.c.bf16 %v4158_v62, %v4156_v15  ;;  %v5159_v41 = vmul.f32 %v6622_v31, %v9931_v49  ;;  %v11733_v21 = vld [vmem:[#allocation54_spill] sm:$0xff]  ;;  %v11736_v57 = vld [vmem:[#allocation45_spill] sm:$0xff] }
 0x7af   : > { %6635 = vrcp.f32 %v5023_v14  ;;  %v5158_v2 = vmul.f32 %v6622_v31, %v9924_v43  ;;  %v4163_v55 = vmul.f32 %v6624_v1, %v9941_v17  ;;  %v11734_v43 = vld [vmem:[#allocation41_spill] sm:$0xff] }
 0x7b0   : > { %v6626_v7 = vpop.eup %6625  ;;  %5795 = vmatprep.subr.bf16.mxu1 %v5794_v33  ;;  %v5858_v37 = vpack.c.bf16 %v5161_v16, %v5159_v41  ;;  %v4162_v15 = vmul.f32 %v6624_v1, %v11734_v43  ;;  %v11737_v16 = vld [vmem:[#allocation73_spill] sm:$0xff]  ;;  %v293_v43 = vld [vmem:[%s10476_s5 + $0x10] sm:$0xff] }
 0x7b1   : > { %v6628_v44 = vpop.eup %6627  ;;  %5797 = vmatpush1.bf16.xpose.msra.mxu1 %v5796_v63  ;;  %v5020_v19 = vpop.xlane.xlu0 %5019  ;;  %v5860_v6 = vpack.c.bf16 %v5160_v9, %v5158_v2  ;;  %v4161_v11 = vmul.f32 %v6626_v7, %v9945_v28  ;;  %v4160_v25 = vmul.f32 %v6626_v7, %v11733_v21  ;;  %v11738_v33 = vld [vmem:[#allocation9_spill] sm:$0xff]  ;;  %v292_v9 = vld [vmem:[%s10476_s5 + $0x8] sm:$0xff]  ;;  %v11739_v7 = vld [vmem:[#allocation68_spill] sm:$0xff] }
 0x7b2   : > { %6637 = vrcp.f32 %v5020_v19  ;;  %5859 = vmatprep.subr.bf16.mxu0 %v5858_v37  ;;  %v5165_v29 = vmul.f32 %v6628_v44, %v11735_v52  ;;  %v5164_v17 = vmul.f32 %v6628_v44, %v11738_v33  ;;  %v11740_v19 = vld [vmem:[#allocation98_spill] sm:$0xff]  ;;  %v11742_v44 = vld [vmem:[#allocation79_spill] sm:$0xff] }
 0x7b3   : > { %5861 = vmatpush1.bf16.xpose.msra.mxu0 %v5860_v6  ;;  %v5798_v49 = vpack.c.bf16 %v4163_v55, %v4161_v11  ;;  %v5800_v31 = vpack.c.bf16 %v4162_v15, %v4160_v25  ;;  %v11741_v11 = vld [vmem:[#allocation8_spill] sm:$0xff] }
 0x7b4   : > { %v6630_v48 = vpop.eup %6629  ;;  %v11743_v15 = vld [vmem:[#allocation112_spill] sm:$0xff] }
 0x7b5   : > { %v6632_v62 = vpop.eup %6631  ;;  %5799 = vmatprep.subr.bf16.mxu1 %v5798_v49  ;;  %v5163_v14 = vmul.f32 %v6630_v48, %v11736_v57  ;;  %v5162_v28 = vmul.f32 %v6630_v48, %v11737_v16  ;;  %v11745_v57 = vld [vmem:[#allocation76_spill] sm:$0xff] }
 0x7b6   : > { %v4167_v6 = vmul.f32 %v6632_v62, %v11740_v19  ;;  %v4166_v25 = vmul.f32 %v6632_v62, %v11742_v44  ;;  %v11746_v16 = vld [vmem:[#allocation48_spill] sm:$0xff]  ;;  %v291_v62 = vld [vmem:[%s10476_s5] sm:$0xff] }
 0x7b7   : > { %v5862_v63 = vpack.c.bf16 %v5165_v29, %v5163_v14  ;;  %v5864_v41 = vpack.c.bf16 %v5164_v17, %v5162_v28  ;;  %v11744_v29 = vld [vmem:[#allocation33_spill] sm:$0xff] }
 0x7b8   : > { %v6634_v2 = vpop.eup %6633 }
 0x7b9   : > { %v6636_v1 = vpop.eup %6635  ;;  %5801 = vmatpush1.bf16.xpose.msra.mxu1 %v5800_v31  ;;  %5863 = vmatprep.subr.bf16.mxu0 %v5862_v63  ;;  %v4165_v37 = vmul.f32 %v6634_v2, %v11739_v7  ;;  %v4164_v55 = vmul.f32 %v6634_v2, %v11741_v11  ;;  %v294_v63 = vld [vmem:[%s10476_s5 + $0x18] sm:$0xff] }
 0x7ba   : > { %v5169_v48 = vmul.f32 %v6636_v1, %v11743_v15  ;;  %v5168_v28 = vmul.f32 %v6636_v1, %v11746_v16 }
 0x7bb   : > { %5284 = vperm.xlu1 %5942, %v292_v9   ;;  %5865 = vmatpush1.bf16.xpose.msra.mxu0 %v5864_v41  ;;  %v5802_v21 = vpack.c.bf16 %v4167_v6, %v4165_v37  ;;  %v5804_v52 = vpack.c.bf16 %v4166_v25, %v4164_v55 }
 0x7bc   : > { %v6638_v49 = vpop.eup %6637 }
 0x7bd   : > { %5803 = vmatprep.subr.bf16.mxu1 %v5802_v21  ;;  %v5167_v31 = vmul.f32 %v6638_v49, %v11744_v29  ;;  %v5166_v14 = vmul.f32 %v6638_v49, %v11745_v57 }
 0x7bf   : > { %5289 = vperm.xlu1 %5942, %v293_v43   ;;  %v5866_v33 = vpack.c.bf16 %v5169_v48, %v5167_v31  ;;  %v5868_v17 = vpack.c.bf16 %v5168_v28, %v5166_v14 }
 0x7c1   : > { %5805 = vmatpush1.bf16.xpose.msra.mxu1 %v5804_v52  ;;  %5867 = vmatprep.subr.bf16.mxu0 %v5866_v33 }
 0x7c2   : > { %5279 = vperm.xlu0 %5941, %v291_v62  }
 0x7c3   : > { %5869 = vmatpush1.bf16.xpose.msra.mxu0 %v5868_v17 }
 0x7c6   : > { %5294 = vperm.xlu0 %5941, %v294_v63  }
 0x7d1   : > { %v4024_v41 = vpop.xlane.xlu0 %4023 }
 0x7d2   : > { %6639 = vrcp.f32 %v4024_v41 }
 0x7d6   : > { %v4027_v2 = vpop.xlane.xlu1 %4026 }
 0x7d7   : > { %6641 = vrcp.f32 %v4027_v2 }
 0x7d9   : > { %v5026_v9 = vpop.xlane.xlu0 %5025 }
 0x7da   : > { %v5029_v1 = vpop.xlane.xlu1 %5028  ;;  %6643 = vrcp.f32 %v5026_v9 }
 0x7db   : > { %6645 = vrcp.f32 %v5029_v1 }
 0x7dc   : > { %v6640_v19 = vpop.eup %6639 }
 0x7dd   : > { %v4030_v7 = vpop.xlane.xlu0 %4029  ;;  %v4169_v21 = vmul.f32 %v6640_v19, %v10005_v50  ;;  %v4168_v25 = vmul.f32 %v6640_v19, %v10002_v5 }
 0x7de   : > { %v4033_v37 = vpop.xlane.xlu1 %4032  ;;  %6647 = vrcp.f32 %v4030_v7 }
 0x7df   : > { %6649 = vrcp.f32 %v4033_v37 }
 0x7e1   : > { %v6642_v6 = vpop.eup %6641  ;;  %v5032_v11 = vpop.xlane.xlu0 %5031 }
 0x7e2   : > { %v5035_v55 = vpop.xlane.xlu1 %5034  ;;  %v4171_v44 = vmul.f32 %v6642_v6, %v10017_v47  ;;  %v4170_v49 = vmul.f32 %v6642_v6, %v10015_v23  ;;  %6651 = vrcp.f32 %v5032_v11 }
 0x7e3   : > { %6653 = vrcp.f32 %v5035_v55 }
 0x7e4   : > { %v5806_v43 = vpack.c.bf16 %v4171_v44, %v4169_v21  ;;  %v5808_v15 = vpack.c.bf16 %v4170_v49, %v4168_v25  ;;  %v6644_v48 = vpop.eup %6643 }
 0x7e5   : > { %v6646_v52 = vpop.eup %6645  ;;  %v4036_v29 = vpop.xlane.xlu0 %4035  ;;  %v5171_v57 = vmul.f32 %v6644_v48, %v10029_v18  ;;  %v5170_v14 = vmul.f32 %v6644_v48, %v10027_v38 }
 0x7e6   : > { %5807 = vmatprep.subr.bf16.mxu1 %v5806_v43  ;;  %v4039_v31 = vpop.xlane.xlu1 %4038  ;;  %6655 = vrcp.f32 %v4036_v29  ;;  %v5173_v50 = vmul.f32 %v6646_v52, %v10022_v12  ;;  %v5172_v5 = vmul.f32 %v6646_v52, %v10013_v53  ;;  %v11747_v52 = vld [vmem:[#allocation55_spill] sm:$0xff] }
 0x7e7   : > { %5809 = vmatpush1.bf16.xpose.msra.mxu1 %v5808_v15  ;;  %6657 = vrcp.f32 %v4039_v31 }
 0x7e8   : > { %v6648_v23 = vpop.eup %6647  ;;  %v5870_v47 = vpack.c.bf16 %v5173_v50, %v5171_v57  ;;  %v5872_v16 = vpack.c.bf16 %v5172_v5, %v5170_v14  ;;  %v11748_v5 = vld [vmem:[#allocation74_spill] sm:$0xff] }
 0x7e9   : > { %v6650_v28 = vpop.eup %6649  ;;  %v5038_v62 = vpop.xlane.xlu0 %5037  ;;  %v4173_v17 = vmul.f32 %v6648_v23, %v10045_v56  ;;  %v4172_v63 = vmul.f32 %v6648_v23, %v10043_v3 }
 0x7ea   : > { %v5041_v33 = vpop.xlane.xlu1 %5040  ;;  %6659 = vrcp.f32 %v5038_v62  ;;  %5871 = vmatprep.subr.bf16.mxu0 %v5870_v47  ;;  %v4175_v38 = vmul.f32 %v6650_v28, %v10036_v27  ;;  %v4174_v18 = vmul.f32 %v6650_v28, %v10031_v42  ;;  %v11749_v47 = vld [vmem:[#allocation57_spill] sm:$0xff]  ;;  %v11751_v28 = vld [vmem:[#allocation52_spill] sm:$0xff] }
 0x7eb   : > { %6661 = vrcp.f32 %v5041_v33  ;;  %5873 = vmatpush1.bf16.xpose.msra.mxu0 %v5872_v16 }
 0x7ec   : > { %v6652_v53 = vpop.eup %6651  ;;  %v5810_v12 = vpack.c.bf16 %v4175_v38, %v4173_v17  ;;  %v5812_v41 = vpack.c.bf16 %v4174_v18, %v4172_v63  ;;  %v11752_v38 = vld [vmem:[#allocation11_spill] sm:$0xff] }
 0x7ed   : > { %v6654_v2 = vpop.eup %6653  ;;  %v4042_v9 = vpop.xlane.xlu0 %4041  ;;  %v5175_v7 = vmul.f32 %v6652_v53, %v10061_v22  ;;  %v5174_v56 = vmul.f32 %v6652_v53, %v10059_v39  ;;  %v11753_v53 = vld [vmem:[#allocation81_spill] sm:$0xff] }
 0x7ee   : > { %v4045_v1 = vpop.xlane.xlu1 %4044  ;;  %6663 = vrcp.f32 %v4042_v9  ;;  %5811 = vmatprep.subr.bf16.mxu1 %v5810_v12  ;;  %v5177_v3 = vmul.f32 %v6654_v2, %v10052_v54  ;;  %v5176_v27 = vmul.f32 %v6654_v2, %v10047_v59  ;;  %v11755_v9 = vld [vmem:[#allocation72_spill] sm:$0xff] }
 0x7ef   : > { %6665 = vrcp.f32 %v4045_v1  ;;  %5813 = vmatpush1.bf16.xpose.msra.mxu1 %v5812_v41  ;;  %v11754_v41 = vld [vmem:[#allocation104_spill] sm:$0xff] }
 0x7f0   : > { %v6656_v42 = vpop.eup %6655  ;;  %v5874_v37 = vpack.c.bf16 %v5177_v3, %v5175_v7  ;;  %v5876_v19 = vpack.c.bf16 %v5176_v27, %v5174_v56 }
 0x7f1   : > { %v6658_v6 = vpop.eup %6657  ;;  %v5044_v11 = vpop.xlane.xlu0 %5043  ;;  %v4177_v21 = vmul.f32 %v6656_v42, %v10077_v8  ;;  %v4176_v22 = vmul.f32 %v6656_v42, %v10075_v32 }
 0x7f2   : > { %v5047_v55 = vpop.xlane.xlu1 %5046  ;;  %6667 = vrcp.f32 %v5044_v11  ;;  %5875 = vmatprep.subr.bf16.mxu0 %v5874_v37  ;;  %v4179_v39 = vmul.f32 %v6658_v6, %v10068_v46  ;;  %v4178_v54 = vmul.f32 %v6658_v6, %v10063_v60  ;;  %v11756_v37 = vld [vmem:[#allocation99_spill] sm:$0xff]  ;;  %v11757_v6 = vld [vmem:[#allocation50_spill] sm:$0xff] }
 0x7f3   : > { %6669 = vrcp.f32 %v5047_v55  ;;  %5877 = vmatpush1.bf16.xpose.msra.mxu0 %v5876_v19  ;;  %v11758_v55 = vld [vmem:[#allocation51_spill] sm:$0xff] }
 0x7f4   : > { %v6660_v59 = vpop.eup %6659  ;;  %v5814_v44 = vpack.c.bf16 %v4179_v39, %v4177_v21  ;;  %v5816_v25 = vpack.c.bf16 %v4178_v54, %v4176_v22  ;;  %v11759_v22 = vld [vmem:[#allocation105_spill] sm:$0xff] }
 0x7f5   : > { %v6662_v49 = vpop.eup %6661  ;;  %v4048_v43 = vpop.xlane.xlu0 %4047  ;;  %v5179_v48 = vmul.f32 %v6660_v59, %v10093_v0  ;;  %v5178_v8 = vmul.f32 %v6660_v59, %v10091_v24  ;;  %v11750_v24 = vld [vmem:[#allocation86_spill] sm:$0xff] }
 0x7f6   : > { %v4051_v15 = vpop.xlane.xlu1 %4050  ;;  %6671 = vrcp.f32 %v4048_v43  ;;  %5815 = vmatprep.subr.bf16.mxu1 %v5814_v44  ;;  %v5181_v32 = vmul.f32 %v6662_v49, %v10084_v40  ;;  %v5180_v46 = vmul.f32 %v6662_v49, %v11747_v52  ;;  %v11760_v43 = vld [vmem:[#allocation56_spill] sm:$0xff]  ;;  %v11762_v52 = vld [vmem:[#allocation34_spill] sm:$0xff] }
 0x7f7   : > { %6673 = vrcp.f32 %v4051_v15  ;;  %5817 = vmatpush1.bf16.xpose.msra.mxu1 %v5816_v25 }
 0x7f8   : > { %v6664_v60 = vpop.eup %6663  ;;  %v5878_v29 = vpack.c.bf16 %v5181_v32, %v5179_v48  ;;  %v5880_v31 = vpack.c.bf16 %v5180_v46, %v5178_v8  ;;  %v11761_v48 = vld [vmem:[#allocation53_spill] sm:$0xff] }
 0x7f9   : > { %v6666_v57 = vpop.eup %6665  ;;  %v5050_v14 = vpop.xlane.xlu0 %5049  ;;  %v4181_v23 = vmul.f32 %v6664_v60, %v11748_v5  ;;  %v4180_v0 = vmul.f32 %v6664_v60, %v11749_v47  ;;  %v11763_v60 = vld [vmem:[#allocation82_spill] sm:$0xff] }
 0x7fa   : > { %v5053_v50 = vpop.xlane.xlu1 %5052  ;;  %6675 = vrcp.f32 %v5050_v14  ;;  %5879 = vmatprep.subr.bf16.mxu0 %v5878_v29  ;;  %v4183_v16 = vmul.f32 %v6666_v57, %v11750_v24  ;;  %v4182_v40 = vmul.f32 %v6666_v57, %v11751_v28 }
 0x7fb   : > { %6677 = vrcp.f32 %v5053_v50  ;;  %5881 = vmatpush1.bf16.xpose.msra.mxu0 %v5880_v31 }
 0x7fc   : > { %v6668_v62 = vpop.eup %6667  ;;  %v5818_v33 = vpack.c.bf16 %v4183_v16, %v4181_v23  ;;  %v5820_v17 = vpack.c.bf16 %v4182_v40, %v4180_v0  ;;  %v11764_v0 = vld [vmem:[#allocation108_spill] sm:$0xff]  ;;  %v11765_v16 = vld [vmem:[#allocation78_spill] sm:$0xff]  ;;  %v11766_v40 = vld [vmem:[#allocation13_spill] sm:$0xff] }
 0x7fd   : > { %v6670_v63 = vpop.eup %6669  ;;  %v5183_v18 = vmul.f32 %v6668_v62, %v11752_v38  ;;  %v5182_v12 = vmul.f32 %v6668_v62, %v11753_v53  ;;  %v11767_v53 = vld [vmem:[#allocation80_spill] sm:$0xff] }
 0x7fe   : > { %5819 = vmatprep.subr.bf16.mxu1 %v5818_v33  ;;  %v5185_v2 = vmul.f32 %v6670_v63, %v11754_v41  ;;  %v5184_v1 = vmul.f32 %v6670_v63, %v11755_v9  ;;  %v11768_v41 = vld [vmem:[#allocation101_spill] sm:$0xff]  ;;  %v11769_v9 = vld [vmem:[#allocation38_spill] sm:$0xff] }
 0x7ff   : > { %5821 = vmatpush1.bf16.xpose.msra.mxu1 %v5820_v17 }
 0x800   : > { %v6672_v7 = vpop.eup %6671  ;;  %v5882_v56 = vpack.c.bf16 %v5185_v2, %v5183_v18  ;;  %v5884_v27 = vpack.c.bf16 %v5184_v1, %v5182_v12 }
 0x801   : > { %v6674_v42 = vpop.eup %6673  ;;  %v4185_v19 = vmul.f32 %v6672_v7, %v11756_v37  ;;  %v4184_v11 = vmul.f32 %v6672_v7, %v11757_v6 }
 0x802   : > { %v4057_v3 = vpop.xlane.xlu1 %4056  ;;  %5883 = vmatprep.subr.bf16.mxu0 %v5882_v56  ;;  %v4187_v21 = vmul.f32 %v6674_v42, %v11758_v55  ;;  %v4186_v39 = vmul.f32 %v6674_v42, %v11759_v22  ;;  %v11771_v55 = vld [vmem:[#allocation12_spill] sm:$0xff]  ;;  %v11772_v22 = vld [vmem:[#allocation107_spill] sm:$0xff] }
 0x803   : > { %5885 = vmatpush1.bf16.xpose.msra.mxu0 %v5884_v27  ;;  %6679 = vrcp.f32 %v4057_v3 }
 0x804   : > { %v6676_v54 = vpop.eup %6675  ;;  %v5822_v59 = vpack.c.bf16 %v4187_v21, %v4185_v19  ;;  %v5824_v44 = vpack.c.bf16 %v4186_v39, %v4184_v11 }
 0x805   : > { %v6678_v25 = vpop.eup %6677  ;;  %v4054_v49 = vpop.xlane.xlu0 %4053  ;;  %v5187_v15 = vmul.f32 %v6676_v54, %v11760_v43  ;;  %v5186_v8 = vmul.f32 %v6676_v54, %v11761_v48  ;;  %v11773_v54 = vld [vmem:[#allocation90_spill] sm:$0xff]  ;;  %v11774_v48 = vld [vmem:[#allocation36_spill] sm:$0xff] }
 0x806   : > { %6681 = vrcp.f32 %v4054_v49  ;;  %5823 = vmatprep.subr.bf16.mxu1 %v5822_v59  ;;  %v5189_v46 = vmul.f32 %v6678_v25, %v11762_v52  ;;  %v5188_v29 = vmul.f32 %v6678_v25, %v11763_v60 }
 0x807   : > { %v5059_v32 = vpop.xlane.xlu1 %5058  ;;  %5825 = vmatpush1.bf16.xpose.msra.mxu1 %v5824_v44 }
 0x808   : > { %6683 = vrcp.f32 %v5059_v32  ;;  %v5886_v31 = vpack.c.bf16 %v5189_v46, %v5187_v15  ;;  %v5888_v57 = vpack.c.bf16 %v5188_v29, %v5186_v8  ;;  %v11775_v32 = vld [vmem:[#allocation109_spill] sm:$0xff]  ;;  %v11776_v46 = vld [vmem:[#allocation59_spill] sm:$0xff] }
 0x809   : > { %v5056_v14 = vpop.xlane.xlu0 %5055 }
 0x80a   : > { %6685 = vrcp.f32 %v5056_v14  ;;  %5887 = vmatprep.subr.bf16.mxu0 %v5886_v31 }
 0x80b   : > { %5889 = vmatpush1.bf16.xpose.msra.mxu0 %v5888_v57 }
 0x80d   : > { %v6680_v50 = vpop.eup %6679 }
 0x80e   : > { %v4191_v24 = vmul.f32 %v6680_v50, %v11764_v0  ;;  %v4190_v62 = vmul.f32 %v6680_v50, %v11766_v40  ;;  %v11778_v40 = vld [vmem:[#allocation58_spill] sm:$0xff] }
 0x810   : > { %v6682_v5 = vpop.eup %6681 }
 0x811   : > { %v4189_v47 = vmul.f32 %v6682_v5, %v10175_v61  ;;  %v4188_v28 = vmul.f32 %v6682_v5, %v11765_v16  ;;  %v11770_v61 = vld [vmem:[#allocation7_spill] sm:$0xff] }
 0x812   : > { %v4063_v23 = vpop.xlane.xlu1 %4062  ;;  %v6684_v33 = vpop.eup %6683 }
 0x813   : > { %v5826_v17 = vpack.c.bf16 %v4191_v24, %v4189_v47  ;;  %v5828_v63 = vpack.c.bf16 %v4190_v62, %v4188_v28  ;;  %6687 = vrcp.f32 %v4063_v23  ;;  %v5193_v2 = vmul.f32 %v6684_v33, %v11768_v41 }
 0x814   : > { %v6686_v38 = vpop.eup %6685  ;;  %v5192_v7 = vmul.f32 %v6684_v33, %v11770_v61 }
 0x815   : > { %v4060_v18 = vpop.xlane.xlu0 %4059  ;;  %5827 = vmatprep.subr.bf16.mxu1 %v5826_v17  ;;  %v5191_v12 = vmul.f32 %v6686_v38, %v11767_v53  ;;  %v5190_v1 = vmul.f32 %v6686_v38, %v11769_v9 }
 0x816   : > { %6689 = vrcp.f32 %v4060_v18  ;;  %5829 = vmatpush1.bf16.xpose.msra.mxu1 %v5828_v63  ;;  %v11779_v18 = vld [vmem:[#allocation83_spill] sm:$0xff] }
 0x817   : > { %v5065_v56 = vpop.xlane.xlu1 %5064  ;;  %v5890_v3 = vpack.c.bf16 %v5193_v2, %v5191_v12  ;;  %v5892_v27 = vpack.c.bf16 %v5192_v7, %v5190_v1  ;;  %v11780_v12 = vld [vmem:[#allocation23_spill] sm:$0xff]  ;;  %v11781_v2 = vld [vmem:[#allocation84_spill] sm:$0xff] }
 0x818   : > { %6691 = vrcp.f32 %v5065_v56 }
 0x819   : > { %v5062_v42 = vpop.xlane.xlu0 %5061  ;;  %5891 = vmatprep.subr.bf16.mxu0 %v5890_v3 }
 0x81a   : > { %6693 = vrcp.f32 %v5062_v42  ;;  %5893 = vmatpush1.bf16.xpose.msra.mxu0 %v5892_v27 }
 0x81d   : > { %v6688_v37 = vpop.eup %6687 }
 0x81e   : > { %v4195_v21 = vmul.f32 %v6688_v37, %v11771_v55  ;;  %v4194_v59 = vmul.f32 %v6688_v37, %v11773_v54 }
 0x820   : > { %v6690_v19 = vpop.eup %6689 }
 0x821   : > { %v4193_v11 = vmul.f32 %v6690_v19, %v10215_v13  ;;  %v4192_v39 = vmul.f32 %v6690_v19, %v11772_v22  ;;  %v11777_v13 = vld [vmem:[#allocation106_spill] sm:$0xff] }
 0x822   : > { %v4069_v6 = vpop.xlane.xlu1 %4068  ;;  %v6692_v44 = vpop.eup %6691 }
 0x823   : > { %v5830_v25 = vpack.c.bf16 %v4195_v21, %v4193_v11  ;;  %v5832_v49 = vpack.c.bf16 %v4194_v59, %v4192_v39  ;;  %6695 = vrcp.f32 %v4069_v6  ;;  %v5197_v52 = vmul.f32 %v6692_v44, %v11775_v32 }
 0x824   : > { %v6694_v43 = vpop.eup %6693  ;;  %v5196_v29 = vmul.f32 %v6692_v44, %v11777_v13  ;;  %v289_v13 = vld [vmem:[%s10475_s4 + $0x10] sm:$0xff] }
 0x825   : > { %v4066_v15 = vpop.xlane.xlu0 %4065  ;;  %5831 = vmatprep.subr.bf16.mxu1 %v5830_v25  ;;  %v5195_v8 = vmul.f32 %v6694_v43, %v11774_v48  ;;  %v5194_v60 = vmul.f32 %v6694_v43, %v11776_v46  ;;  %v11786_v25 = vld [vmem:[#allocation18_spill] sm:$0xff]  ;;  %v11788_v43 = vld [vmem:[#allocation32_spill] sm:$0xff]  ;;  %v287_v46 = vld [vmem:[%s10475_s4] sm:$0xff] }
 0x826   : > { %6697 = vrcp.f32 %v4066_v15  ;;  %5833 = vmatpush1.bf16.xpose.msra.mxu1 %v5832_v49  ;;  %v11787_v49 = vld [vmem:[#allocation119_spill] sm:$0xff] }
 0x827   : > { %v5071_v31 = vpop.xlane.xlu1 %5070  ;;  %v5894_v57 = vpack.c.bf16 %v5197_v52, %v5195_v8  ;;  %v5896_v14 = vpack.c.bf16 %v5196_v29, %v5194_v60  ;;  %v288_v60 = vld [vmem:[%s10475_s4 + $0x8] sm:$0xff]  ;;  %v290_v29 = vld [vmem:[%s10475_s4 + $0x18] sm:$0xff] }
 0x828   : > { %6699 = vrcp.f32 %v5071_v31 }
 0x829   : > { %v5068_v50 = vpop.xlane.xlu0 %5067  ;;  %5895 = vmatprep.subr.bf16.mxu0 %v5894_v57 }
 0x82a   : > { %6701 = vrcp.f32 %v5068_v50  ;;  %5897 = vmatpush1.bf16.xpose.msra.mxu0 %v5896_v14 }
 0x82d   : > { %v6696_v5 = vpop.eup %6695 }
 0x82e   : > { %v4199_v16 = vmul.f32 %v6696_v5, %v10247_v34  ;;  %v4198_v62 = vmul.f32 %v6696_v5, %v11778_v40 }
 0x830   : > { %v6698_v23 = vpop.eup %6697 }
 0x831   : > { %v4197_v24 = vmul.f32 %v6698_v23, %v10255_v10  ;;  %v4196_v28 = vmul.f32 %v6698_v23, %v10253_v30  ;;  %v11782_v10 = vld [vmem:[#allocation88_spill] sm:$0xff] }
 0x832   : > { %v4075_v47 = vpop.xlane.xlu1 %4074  ;;  %v6700_v0 = vpop.eup %6699 }
 0x833   : > { %6703 = vrcp.f32 %v4075_v47  ;;  %v5834_v33 = vpack.c.bf16 %v4199_v16, %v4197_v24  ;;  %v5836_v17 = vpack.c.bf16 %v4198_v62, %v4196_v28  ;;  %v5201_v53 = vmul.f32 %v6700_v0, %v11779_v18  ;;  %v6711_v47 = vld [vmem:[%s6856_s18] sm:$0xff]  ;;  %v6712_v24 = vld [vmem:[%s6856_s18 + $0x8] sm:$0xff]  ;;  %v6714_v18 = vld [vmem:[%s6856_s18 + $0x18] sm:$0xff] }
 0x834   : > { %v6702_v63 = vpop.eup %6701  ;;  %v5200_v1 = vmul.f32 %v6700_v0, %v11782_v10  ;;  %v6715_v10 = vld [vmem:[%s6856_s18 + $0x20] sm:$0xff] }
 0x835   : > { %v4072_v38 = vpop.xlane.xlu0 %4071  ;;  %5835 = vmatprep.subr.bf16.mxu1 %v5834_v33  ;;  %v5199_v41 = vmul.f32 %v6702_v63, %v11780_v12  ;;  %v5198_v9 = vmul.f32 %v6702_v63, %v11781_v2 }
 0x836   : > { %6705 = vrcp.f32 %v4072_v38  ;;  %5837 = vmatpush1.bf16.xpose.msra.mxu1 %v5836_v17  ;;  %v6713_v17 = vld [vmem:[%s6856_s18 + $0x10] sm:$0xff] }
 0x837   : > { %v5077_v34 = vpop.xlane.xlu1 %5076  ;;  %v5898_v30 = vpack.c.bf16 %v5201_v53, %v5199_v41  ;;  %v5900_v61 = vpack.c.bf16 %v5200_v1, %v5198_v9 }
 0x838   : > { %6707 = vrcp.f32 %v5077_v34 }
 0x839   : > { %v5074_v7 = vpop.xlane.xlu0 %5073  ;;  %5899 = vmatprep.subr.bf16.mxu0 %v5898_v30  ;;  %v6716_v30 = vld [vmem:[%s6856_s18 + $0x28] sm:$0xff] }
 0x83a   : > { %6709 = vrcp.f32 %v5074_v7  ;;  %5901 = vmatpush1.bf16.xpose.msra.mxu0 %v5900_v61 }
 0x83b   : > { %v5285_v5 = vpop.permute.xlu1 %5284 }
 0x83d   : > { %v6704_v56 = vpop.eup %6703 }
 0x83e   : > { %v4203_v42 = vmul.f32 %v6704_v56, %v10287_v35  ;;  %v4202_v19 = vmul.f32 %v6704_v56, %v10285_v36  ;;  %v11784_v35 = vld [vmem:[#allocation118_spill] sm:$0xff] }
 0x83f   : > { %v5290_v38 = vpop.permute.xlu1 %5289 }
 0x840   : > { %v6706_v3 = vpop.eup %6705 }
 0x841   : > { %v4201_v27 = vmul.f32 %v6706_v3, %v10293_v51  ;;  %v4200_v37 = vmul.f32 %v6706_v3, %v10291_v26  ;;  %v11783_v51 = vld [vmem:[#allocation122_spill] sm:$0xff]  ;;  %v5280_v31 = vpop.permute.xlu0 %5279 }
 0x842   : > { %v6708_v6 = vpop.eup %6707  ;;  %v11785_v44 = vpack.c.bf16 %v11783_v51, %v11784_v35 }
 0x843   : > { %v5838_v11 = vpack.c.bf16 %v4203_v42, %v4201_v27  ;;  %v5840_v55 = vpack.c.bf16 %v4202_v19, %v4200_v37  ;;  %v5205_v39 = vmul.f32 %v6708_v6, %v10299_v45  ;;  %v5204_v59 = vmul.f32 %v6708_v6, %v10295_v4  ;;  %v6717_v42 = vld [vmem:[%s6856_s18 + $0x30] sm:$0xff]  ;;  %v6718_v19 = vld [vmem:[%s6856_s18 + $0x38] sm:$0xff] }
 0x844   : > { %v6710_v21 = vpop.eup %6709  ;;  %v11790_v45 = vmov 0.0  }
 0x845   : > { %5839 = vmatprep.subr.bf16.mxu1 %v5838_v11  ;;  %v5203_v22 = vmul.f32 %v6710_v21, %v10305_v58  ;;  %v5202_v54 = vmul.f32 %v6710_v21, %v10301_v20  ;;  %v11789_v58 = vpack.c.bf16 %v11787_v49, %v11788_v43  ;;  %v11791_v20 = vld [vmem:[#allocation20_spill] sm:$0xff]  ;;  %v5295_v34 = vpop.permute.xlu0 %5294 }
 0x846   : > { %5841 = vmatpush1.bf16.xpose.msra.mxu1 %v5840_v55 }
 0x847   : > { %5907 = vmatprep.subr.bf16.mxu1 %v11785_v44  ;;  %v5902_v26 = vpack.c.bf16 %v5205_v39, %v5203_v22  ;;  %v5904_v36 = vpack.c.bf16 %v5204_v59, %v5202_v54 }
 0x849   : > { %5903 = vmatprep.subr.bf16.mxu0 %v5902_v26 }
 0x84a   : > { %5905 = vmatpush1.bf16.xpose.msra.mxu0 %v5904_v36 }
 0x84d   : > { %4269 = vmatmul.mubr.f32.vlgmr.msra.gmra.mrb[136].mxu1 %v11786_v25 }
 0x84e   : > { %5909 = vmatpush1.bf16.msra.mxu1 %v11789_v58  ;;  %5373 = vmatprep.mubr.f32.mxu1 %v11790_v45 }
 0x851   : > { %5271 = vmatmul.mubr.f32.vlgmr.msra.gmra.mrb[148].mxu0 %v11791_v20 }
 0x920   : > { %v4270_v4 = vpop.f32.mrb[136].mxu1 }
 0x921   : > { %v4272_v15 = vpop.f32.mrb[137].mxu1 }
 0x924   : > { %v5272_v48 = vpop.f32.mrb[148].mxu0 }
 0x925   : > { %v5912_v8 = vpack.c.bf16 %v5272_v48, %v4270_v4  ;;  %v5274_v32 = vpop.f32.mrb[149].mxu0 }
 0x926   : > { %v5910_v52 = vpack.c.bf16 %v5274_v32, %v4272_v15 }
 0x928   : > { %5911 = vmatprep.subr.bf16.mxu1 %v5910_v52 }
 0x929   : > { %5913 = vmatpush1.bf16.msra.mxu1 %v5912_v8 }
 0x92c   : > { %5634 = vmatmul.mubr.msk.f32.vlgmr.msra.gmra.mrb[138].mxu1 %vm295_vm0, %v287_v46 }
 0x92d   : > { %5379 = vmatprep.mubr.f32.mxu1 %v11790_v45 }
 0x930   : > { %5635 = vmatmul.mubr.msk.f32.gmra.mrb[140].mxu1 %vm295_vm0, %v288_v60 }
 0x931   : > { %5385 = vmatprep.mubr.f32.mxu1 %v11790_v45 }
 0x934   : > { %5636 = vmatmul.mubr.msk.f32.gmra.mrb[142].mxu1 %vm295_vm0, %v289_v13 }
 0x935   : > { %5391 = vmatprep.mubr.f32.mxu1 %v11790_v45 }
 0x938   : > { %5637 = vmatmul.mubr.msk.f32.gmra.mrb[144].mxu1 %vm295_vm0, %v290_v29 }
 0x9ff   : > { %v5375_v57 = vpop.f32.mrb[138].mxu1 }
 0xa00   : > { %v5376_v14 = vadd.f32 %v5375_v57, %v5280_v31  ;;  %v5377_v50 = vpop.f32.mrb[139].mxu1 }
 0xa01   : > { %v5378_v23 = vadd.f32 %v5377_v50, %v5280_v31 }
 0xa02   : > { %v5398_v0 = vadd.f32 %v6711_v47, %v5376_v14 }
 0xa03   : > { %v5399_v16 = vadd.f32 %v6712_v24, %v5378_v23  ;;  %v5381_v28 = vpop.f32.mrb[140].mxu1 }
 0xa04   : > { %5406 = vst [vmem:[%s10450_s29] sm:$0xff] %v5398_v0  ;;  %v5382_v40 = vadd.f32 %v5381_v28, %v5285_v5  ;;  %v5383_v62 = vpop.f32.mrb[141].mxu1 }
 0xa05   : > { %5407 = vst [vmem:[%s10450_s29 + $0x8] sm:$0xff] %v5399_v16  ;;  %v5384_v33 = vadd.f32 %v5383_v62, %v5285_v5 }
 0xa06   : > { %v5400_v63 = vadd.f32 %v6713_v17, %v5382_v40 }
 0xa07   : > { %v5401_v53 = vadd.f32 %v6714_v18, %v5384_v33  ;;  %v5387_v12 = vpop.f32.mrb[142].mxu1 }
 0xa08   : > { %5408 = vst [vmem:[%s10450_s29 + $0x10] sm:$0xff] %v5400_v63  ;;  %v5388_v41 = vadd.f32 %v5387_v12, %v5290_v38  ;;  %v5389_v2 = vpop.f32.mrb[143].mxu1 }
 0xa09   : > { %5409 = vst [vmem:[%s10450_s29 + $0x18] sm:$0xff] %v5401_v53  ;;  %v5390_v9 = vadd.f32 %v5389_v2, %v5290_v38 }
 0xa0a   : > { %v5402_v1 = vadd.f32 %v6715_v10, %v5388_v41 }
 0xa0b   : > { %v5403_v61 = vadd.f32 %v6716_v30, %v5390_v9  ;;  %v5393_v7 = vpop.f32.mrb[144].mxu1 }
 0xa0c   : > { %5410 = vst [vmem:[%s10450_s29 + $0x20] sm:$0xff] %v5402_v1  ;;  %v5394_v56 = vadd.f32 %v5393_v7, %v5295_v34  ;;  %v5395_v3 = vpop.f32.mrb[145].mxu1 }
 0xa0d   : > { %5411 = vst [vmem:[%s10450_s29 + $0x28] sm:$0xff] %v5403_v61  ;;  %v5396_v27 = vadd.f32 %v5395_v3, %v5295_v34 }
 0xa0e   : > { %v5404_v37 = vadd.f32 %v6717_v42, %v5394_v56 }
 0xa0f   : > { %v5405_v6 = vadd.f32 %v6718_v19, %v5396_v27 }
 0xa10   : > { %5412 = vst [vmem:[%s10450_s29 + $0x30] sm:$0xff] %v5404_v37 }
 0xa11   : > { %5413 = vst [vmem:[%s10450_s29 + $0x38] sm:$0xff] %v5405_v6 }
 0xa12 PF: > { %s17_s21 = sadd.s32 1, %s6757_s21  }
 0xa13   : > { %p14_p3 = scmp.ge.s32.totalorder %s17_s21, 4  }
 0xa15   :  { %16 = sbr.rel (!%p14_p3) target bundleno = 1 (0x1), region = 83 }
 0xa1c   :  { %5435 = vsyncpa [#allocation3], 1 }
 0xa1d   :  { %5437 = vsyncpa [#allocation3 + $0x1], 1 }

</bundles_post_ra>
